<compile_context>
chip_gen: v6e
topology: v6e:2x2x1
jax: 0.10.0
libtpu: 0.0.40
codegen_flags: <defaults>
</compile_context>

<pallas_src>
import functools

import numpy as np
import jax
import jax.numpy as jnp
from jax import lax
from jax.experimental import pallas as pl
from jax.experimental.pallas import tpu as pltpu

EPS = 1e-5
KSIZE = 3


def _round_up(x, m):
    return (x + m - 1) // m * m


def _is_pow2(v):
    return v > 0 and (v & (v - 1)) == 0


# ---------------------------------------------------------------------------
# The single fused Pallas kernel.
#
# Every intermediate lives on the flat "image grid" of M = N*H*W rows
# (row r = (b*H + y)*W + x, channels on the lane axis).  A conv tap (kh, kw)
# is then a constant row offset kh*W + kw, so im2col is a sublane roll; the
# stride-2 pooled grid reuses the same rows at even (y, x), so layer 2 uses
# the same trick with doubled offsets.  Rows that do not correspond to valid
# conv outputs carry don't-care values and are excluded from BN statistics via
# an iota-derived mask; they are never consumed by the pools or the output.
# ---------------------------------------------------------------------------
def _encoder_kernel(N, H, W, CIN, K1P, inv_n1, inv_n2, out_rows,
                    img_ref, w1_ref, w2_ref, bn_ref, o_ref):
    C = o_ref.shape[1]
    M = N * H * W
    OH1, OW1 = H - KSIZE + 1, W - KSIZE + 1          # layer-1 conv map
    PH1, PW1 = OH1 // 2, OW1 // 2                    # layer-1 pooled map
    OH2, OW2 = PH1 - KSIZE + 1, PW1 - KSIZE + 1      # layer-2 conv map

    def roll_up(a, off):
        # result[i, :] = a[(i + off) % M, :]   (XLU sublane rotation)
        off = off % M
        if off == 0:
            return a
        return pltpu.roll(a, M - off, axis=0)

    # ----- static decode of the flat row index r = (b*H + y)*W + x ----------
    r = lax.broadcasted_iota(jnp.int32, (M, C), 0)
    if _is_pow2(W) and _is_pow2(H):
        xx = r & (W - 1)
        yy = (r >> (W.bit_length() - 1)) & (H - 1)
    else:
        # exact for the small integer ranges involved (r < 2**22)
        rf = r.astype(jnp.float32)
        row = jnp.floor((rf + 0.5) / W)              # b*H + y
        xx = r - (row * W).astype(jnp.int32)
        yy = (row - jnp.floor((row + 0.5) / H) * H).astype(jnp.int32)
    valid1 = (yy < OH1) & (xx < OW1)
    valid2 = ((yy & 1) == 0) & ((xx & 1) == 0) & (yy < 2 * OH2) & (xx < 2 * OW2)

    # packed BN parameters: rows = b1, g1, bt1, b2, g2, bt2, 0, 0
    b1 = bn_ref[0:1, :]
    g1 = bn_ref[1:2, :]
    bt1 = bn_ref[2:3, :]
    b2 = bn_ref[3:4, :]
    g2 = bn_ref[4:5, :]
    bt2 = bn_ref[5:6, :]

    # -------- layer 1: conv (bf16 MXU, f32 acc) + BN(batch) + ReLU + pool ---
    img = img_ref[...]                                           # (M, CIN) f32
    rowwin = jnp.concatenate(
        [roll_up(img, kw) for kw in range(KSIZE)], axis=1)       # (M, 3*CIN)
    patches = jnp.concatenate(
        [roll_up(rowwin, kh * W) for kh in range(KSIZE)], axis=1)  # (kh,kw,cin)
    k1 = KSIZE * KSIZE * CIN
    if K1P > k1:                                                 # align K
        patches = jnp.concatenate(
            [patches, jnp.zeros((M, K1P - k1), jnp.float32)], axis=1)
    y1 = jnp.dot(patches.astype(jnp.bfloat16), w1_ref[...],
                 preferred_element_type=jnp.float32) + b1
    mean1 = jnp.sum(jnp.where(valid1, y1, 0.0), axis=0, keepdims=True) * inv_n1
    d1 = y1 - mean1
    var1 = jnp.sum(jnp.where(valid1, d1 * d1, 0.0), axis=0,
                   keepdims=True) * inv_n1
    z1 = jnp.maximum(d1 * (g1 * lax.rsqrt(var1 + EPS)) + bt1, 0.0)
    # 2x2 max-pool: pooled value for (b, y//2, x//2) stays at row (b, y, x)
    t1 = jnp.maximum(z1, roll_up(z1, 1))
    pooled1 = jnp.maximum(t1, roll_up(t1, W))                    # (M, C) f32

    # -------- layer 2 on the same flat grid (stride-2 offsets) --------------
    rowwin2 = jnp.concatenate(
        [roll_up(pooled1, 2 * kw) for kw in range(KSIZE)], axis=1)   # (M, 3C)
    patches2 = jnp.concatenate(
        [roll_up(rowwin2, 2 * kh * W) for kh in range(KSIZE)], axis=1)  # (M, 9C)
    y2 = jnp.dot(patches2.astype(jnp.bfloat16), w2_ref[...],
                 preferred_element_type=jnp.float32) + b2
    mean2 = jnp.sum(jnp.where(valid2, y2, 0.0), axis=0, keepdims=True) * inv_n2
    d2 = y2 - mean2
    var2 = jnp.sum(jnp.where(valid2, d2 * d2, 0.0), axis=0,
                   keepdims=True) * inv_n2
    z2 = jnp.maximum(d2 * (g2 * lax.rsqrt(var2 + EPS)) + bt2, 0.0)
    t2 = jnp.maximum(z2, roll_up(z2, 2))
    pooled2 = jnp.maximum(t2, roll_up(t2, 2 * W))

    # gather the N*PH2*PW2 valid output rows (static row indices)
    o_ref[...] = jnp.concatenate(
        [pooled2[rr:rr + 1, :] for rr in out_rows], axis=0)


# ---------------------------------------------------------------------------
# Wrapper (NCHW in / NCHW out, like the PyTorch module).
# ---------------------------------------------------------------------------
def cnn_encoder_forward(x_nchw, params):
    n, cin, h, w = x_nchw.shape
    c = params["w1"].shape[1]
    m = n * h * w
    assert m % 8 == 0, "N*H*W must be a multiple of 8 (sublane tiling)"

    oh1, ow1 = h - KSIZE + 1, w - KSIZE + 1
    ph1, pw1 = oh1 // 2, ow1 // 2
    oh2, ow2 = ph1 - KSIZE + 1, pw1 - KSIZE + 1
    ph2, pw2 = oh2 // 2, ow2 // 2
    k1 = KSIZE * KSIZE * cin
    k1p = _round_up(k1, 8)

    # kernel operands (bf16 only where they feed the MXU)
    img = jnp.transpose(x_nchw, (0, 2, 3, 1)).reshape(m, cin).astype(jnp.float32)
    w1p = jnp.pad(params["w1"], ((0, k1p - k1), (0, 0))).astype(jnp.bfloat16)
    w2b = params["w2"].astype(jnp.bfloat16)
    zc = jnp.zeros((c,), jnp.float32)
    bn = jnp.stack([params["b1"], params["g1"], params["bt1"],
                    params["b2"], params["g2"], params["bt2"], zc, zc],
                   axis=0).astype(jnp.float32)                    # (8, C)

    out_rows = tuple(b * h * w + (4 * pp) * w + 4 * qq
                     for b in range(n) for pp in range(ph2) for qq in range(pw2))

    kernel = functools.partial(
        _encoder_kernel, n, h, w, cin, k1p,
        1.0 / (n * oh1 * ow1), 1.0 / (n * oh2 * ow2), out_rows)

    full = lambda a: pl.BlockSpec(a.shape, lambda i: (0, 0))
    out2d = pl.pallas_call(
        kernel,
        grid=(1,),
        in_specs=[full(img), full(w1p), full(w2b), full(bn)],
        out_specs=pl.BlockSpec((n * ph2 * pw2, c), lambda i: (0, 0)),
        out_shape=jax.ShapeDtypeStruct((n * ph2 * pw2, c), jnp.float32),
        compiler_params=pltpu.CompilerParams(
            dimension_semantics=("arbitrary",)),
    )(img, w1p, w2b, bn)

    out = out2d.reshape(n, ph2, pw2, c)
    return jnp.transpose(out, (0, 3, 1, 2))                      # NHWC -> NCHW


# ---------------------------------------------------------------------------
# Pure-JAX (f32, XLA) reference of the PyTorch module semantics.
# ---------------------------------------------------------------------------
def reference_forward(x_nchw, params):
    def layer(x, w_mat, b, g, bt):
        cin, cout = x.shape[1], w_mat.shape[1]
        w_hwio = w_mat.reshape(KSIZE, KSIZE, cin, cout)
        y = jax.lax.conv_general_dilated(
            x, w_hwio, (1, 1), "VALID",
            dimension_numbers=("NCHW", "HWIO", "NCHW"))
        y = y + b.reshape(1, cout, 1, 1)
        mean = y.mean(axis=(0, 2, 3), keepdims=True)
        var = y.var(axis=(0, 2, 3), keepdims=True)               # biased, train BN
        y = (y - mean) / jnp.sqrt(var + EPS) * g.reshape(1, cout, 1, 1) \
            + bt.reshape(1, cout, 1, 1)
        y = jnp.maximum(y, 0.0)
        n_, c_, h_, w_ = y.shape
        ph_, pw_ = h_ // 2, w_ // 2
        return y[:, :, :2 * ph_, :2 * pw_].reshape(
            n_, c_, ph_, 2, pw_, 2).max(axis=(3, 5))

    x = layer(x_nchw, params["w1"], params["b1"], params["g1"], params["bt1"])
    x = layer(x, params["w2"], params["b2"], params["g2"], params["bt2"])
    return x


def init_params(key):
    k = jax.random.split(key, 8)
    return {
        # conv weights in (kh*kw*cin, cout) layout, K ordered (kh, kw, cin)
        "w1": 0.1 * jax.random.normal(k[0], (3 * 3 * 3, 32), jnp.float32),
        "b1": 0.1 * jax.random.normal(k[1], (32,), jnp.float32),
        "g1": 1.0 + 0.1 * jax.random.normal(k[2], (32,), jnp.float32),
        "bt1": 0.1 * jax.random.normal(k[3], (32,), jnp.float32),
        "w2": 0.05 * jax.random.normal(k[4], (3 * 3 * 32, 32), jnp.float32),
        "b2": 0.1 * jax.random.normal(k[5], (32,), jnp.float32),
        "g2": 1.0 + 0.1 * jax.random.normal(k[6], (32,), jnp.float32),
        "bt2": 0.1 * jax.random.normal(k[7], (32,), jnp.float32),
    }


if __name__ == "__main__":
    key = jax.random.PRNGKey(0)
    pkey, xkey = jax.random.split(key)
    params = init_params(pkey)

    x = jax.random.normal(xkey, (2, 3, 16, 16), jnp.float32)     # NCHW

    out = jax.jit(cnn_encoder_forward)(x, params)
    out = jax.block_until_ready(out)

    ref = reference_forward(x, params)
    assert out.shape == (2, 32, 2, 2), out.shape
    # bf16 MXU operands (f32 accumulation) -> tolerance relaxed vs. f32 ref.
    np.testing.assert_allclose(np.asarray(out), np.asarray(ref),
                               rtol=2e-2, atol=2e-2)
    print("KERNEL_OK")
</pallas_src>

<mosaic_0001>
module attributes {stable_mosaic.version = 11 : i64} {
  func.func @_encoder_kernel(%arg0: i32, %arg1: memref<512x3xf32, #tpu.memory_space<vmem>>, %arg2: memref<32x32xbf16, #tpu.memory_space<vmem>>, %arg3: memref<288x32xbf16, #tpu.memory_space<vmem>>, %arg4: memref<8x32xf32, #tpu.memory_space<vmem>>, %arg5: memref<8x32xf32, #tpu.memory_space<vmem>>) attributes {dimension_semantics = [#tpu.dimension_semantics<arbitrary>], iteration_bounds = array<i64: 1>, scalar_prefetch = 0 : i64, scratch_operands = 0 : i64, tpu.core_type = #tpu.core_type<tc>, window_params = [{pipeline_mode = #tpu.pipeline_mode<synchronous>, transform_indices = @transform_0, window_bounds = array<i64: 512, 3>}, {pipeline_mode = #tpu.pipeline_mode<synchronous>, transform_indices = @transform_1, window_bounds = array<i64: 32, 32>}, {pipeline_mode = #tpu.pipeline_mode<synchronous>, transform_indices = @transform_2, window_bounds = array<i64: 288, 32>}, {pipeline_mode = #tpu.pipeline_mode<synchronous>, transform_indices = @transform_3, window_bounds = array<i64: 8, 32>}, {pipeline_mode = #tpu.pipeline_mode<synchronous>, transform_indices = @transform_4, window_bounds = array<i64: 8, 32>}]} {
    %0 = tpu.iota {dimensions = array<i32: 0>} : vector<512x32xi32>
    %c15_i32 = arith.constant 15 : i32
    %1 = vector.broadcast %c15_i32 : i32 to vector<512x32xi32>
    %2 = arith.andi %0, %1 : vector<512x32xi32>
    %c4_i32 = arith.constant 4 : i32
    %3 = vector.broadcast %c4_i32 : i32 to vector<512x32xi32>
    %4 = arith.shrsi %0, %3 : vector<512x32xi32>
    %c15_i32_0 = arith.constant 15 : i32
    %5 = vector.broadcast %c15_i32_0 : i32 to vector<512x32xi32>
    %6 = arith.andi %4, %5 : vector<512x32xi32>
    %c14_i32 = arith.constant 14 : i32
    %7 = vector.broadcast %c14_i32 : i32 to vector<512x32xi32>
    %8 = arith.cmpi slt, %6, %7 : vector<512x32xi32>
    %c14_i32_1 = arith.constant 14 : i32
    %9 = vector.broadcast %c14_i32_1 : i32 to vector<512x32xi32>
    %10 = arith.cmpi slt, %2, %9 : vector<512x32xi32>
    %11 = arith.andi %8, %10 : vector<512x32xi1>
    %c1_i32 = arith.constant 1 : i32
    %12 = vector.broadcast %c1_i32 : i32 to vector<512x32xi32>
    %13 = arith.andi %6, %12 : vector<512x32xi32>
    %c0_i32 = arith.constant 0 : i32
    %14 = vector.broadcast %c0_i32 : i32 to vector<512x32xi32>
    %15 = arith.cmpi eq, %13, %14 : vector<512x32xi32>
    %c1_i32_2 = arith.constant 1 : i32
    %16 = vector.broadcast %c1_i32_2 : i32 to vector<512x32xi32>
    %17 = arith.andi %2, %16 : vector<512x32xi32>
    %c0_i32_3 = arith.constant 0 : i32
    %18 = vector.broadcast %c0_i32_3 : i32 to vector<512x32xi32>
    %19 = arith.cmpi eq, %17, %18 : vector<512x32xi32>
    %20 = arith.andi %15, %19 : vector<512x32xi1>
    %c10_i32 = arith.constant 10 : i32
    %21 = vector.broadcast %c10_i32 : i32 to vector<512x32xi32>
    %22 = arith.cmpi slt, %6, %21 : vector<512x32xi32>
    %23 = arith.andi %20, %22 : vector<512x32xi1>
    %c10_i32_4 = arith.constant 10 : i32
    %24 = vector.broadcast %c10_i32_4 : i32 to vector<512x32xi32>
    %25 = arith.cmpi slt, %2, %24 : vector<512x32xi32>
    %26 = arith.andi %23, %25 : vector<512x32xi1>
    %c0 = arith.constant 0 : index
    %c0_5 = arith.constant 0 : index
    %27 = vector.load %arg4[%c0, %c0_5] : memref<8x32xf32, #tpu.memory_space<vmem>>, vector<1x32xf32>
    %c1 = arith.constant 1 : index
    %c0_6 = arith.constant 0 : index
    %28 = vector.load %arg4[%c1, %c0_6] : memref<8x32xf32, #tpu.memory_space<vmem>>, vector<1x32xf32>
    %c2 = arith.constant 2 : index
    %c0_7 = arith.constant 0 : index
    %29 = vector.load %arg4[%c2, %c0_7] : memref<8x32xf32, #tpu.memory_space<vmem>>, vector<1x32xf32>
    %c3 = arith.constant 3 : index
    %c0_8 = arith.constant 0 : index
    %30 = vector.load %arg4[%c3, %c0_8] : memref<8x32xf32, #tpu.memory_space<vmem>>, vector<1x32xf32>
    %c4 = arith.constant 4 : index
    %c0_9 = arith.constant 0 : index
    %31 = vector.load %arg4[%c4, %c0_9] : memref<8x32xf32, #tpu.memory_space<vmem>>, vector<1x32xf32>
    %c5 = arith.constant 5 : index
    %c0_10 = arith.constant 0 : index
    %32 = vector.load %arg4[%c5, %c0_10] : memref<8x32xf32, #tpu.memory_space<vmem>>, vector<1x32xf32>
    %c0_11 = arith.constant 0 : index
    %c0_12 = arith.constant 0 : index
    %33 = vector.load %arg1[%c0_11, %c0_12] : memref<512x3xf32, #tpu.memory_space<vmem>>, vector<512x3xf32>
    %c511_i32 = arith.constant 511 : i32
    %34 = tpu.dynamic_rotate %33 by %c511_i32 dim 0 : vector<512x3xf32>, i32 -> vector<512x3xf32>
    %c510_i32 = arith.constant 510 : i32
    %35 = tpu.dynamic_rotate %33 by %c510_i32 dim 0 : vector<512x3xf32>, i32 -> vector<512x3xf32>
    %36 = tpu.concatenate %33, %34, %35 in 1 : vector<512x3xf32>, vector<512x3xf32>, vector<512x3xf32> -> vector<512x9xf32>
    %c496_i32 = arith.constant 496 : i32
    %37 = tpu.dynamic_rotate %36 by %c496_i32 dim 0 : vector<512x9xf32>, i32 -> vector<512x9xf32>
    %c480_i32 = arith.constant 480 : i32
    %38 = tpu.dynamic_rotate %36 by %c480_i32 dim 0 : vector<512x9xf32>, i32 -> vector<512x9xf32>
    %39 = tpu.concatenate %36, %37, %38 in 1 : vector<512x9xf32>, vector<512x9xf32>, vector<512x9xf32> -> vector<512x27xf32>
    %cst = arith.constant 0.000000e+00 : f32
    %40 = vector.broadcast %cst : f32 to vector<512x5xf32>
    %41 = tpu.concatenate %39, %40 in 1 : vector<512x27xf32>, vector<512x5xf32> -> vector<512x32xf32>
    %42 = arith.truncf %41 : vector<512x32xf32> to vector<512x32xbf16>
    %c0_13 = arith.constant 0 : index
    %c0_14 = arith.constant 0 : index
    %43 = vector.load %arg2[%c0_13, %c0_14] : memref<32x32xbf16, #tpu.memory_space<vmem>>, vector<32x32xbf16>
    %cst_15 = arith.constant dense<0.000000e+00> : vector<512x32xf32>
    %44 = tpu.matmul %42, %43, %cst_15 {dimension_numbers = #tpu.dot_dimension_numbers<[1], [0], [0], [1], [0, 0, 1, 1], [], []>} : vector<512x32xbf16>, vector<32x32xbf16>, vector<512x32xf32> -> vector<512x32xf32>
    %45 = vector.broadcast %27 : vector<1x32xf32> to vector<512x32xf32>
    %46 = arith.addf %44, %45 : vector<512x32xf32>
    %cst_16 = arith.constant 0.000000e+00 : f32
    %47 = vector.broadcast %cst_16 : f32 to vector<512x32xf32>
    %48 = arith.select %11, %46, %47 : vector<512x32xi1>, vector<512x32xf32>
    %cst_17 = arith.constant dense<0.000000e+00> : vector<32xf32>
    %49 = vector.multi_reduction <add>, %48, %cst_17 [0] : vector<512x32xf32> to vector<32xf32>
    %50 = vector.shape_cast %49 : vector<32xf32> to vector<1x32xf32>
    %cst_18 = arith.constant 0.00255102036 : f32
    %51 = vector.broadcast %cst_18 : f32 to vector<1x32xf32>
    %52 = arith.mulf %50, %51 : vector<1x32xf32>
    %53 = vector.broadcast %52 : vector<1x32xf32> to vector<512x32xf32>
    %54 = arith.subf %46, %53 : vector<512x32xf32>
    %55 = arith.mulf %54, %54 : vector<512x32xf32>
    %cst_19 = arith.constant 0.000000e+00 : f32
    %56 = vector.broadcast %cst_19 : f32 to vector<512x32xf32>
    %57 = arith.select %11, %55, %56 : vector<512x32xi1>, vector<512x32xf32>
    %cst_20 = arith.constant dense<0.000000e+00> : vector<32xf32>
    %58 = vector.multi_reduction <add>, %57, %cst_20 [0] : vector<512x32xf32> to vector<32xf32>
    %59 = vector.shape_cast %58 : vector<32xf32> to vector<1x32xf32>
    %cst_21 = arith.constant 0.00255102036 : f32
    %60 = vector.broadcast %cst_21 : f32 to vector<1x32xf32>
    %61 = arith.mulf %59, %60 : vector<1x32xf32>
    %cst_22 = arith.constant 9.99999974E-6 : f32
    %62 = vector.broadcast %cst_22 : f32 to vector<1x32xf32>
    %63 = arith.addf %61, %62 : vector<1x32xf32>
    %64 = math.rsqrt %63 : vector<1x32xf32>
    %65 = arith.mulf %28, %64 : vector<1x32xf32>
    %66 = vector.broadcast %65 : vector<1x32xf32> to vector<512x32xf32>
    %67 = arith.mulf %54, %66 : vector<512x32xf32>
    %68 = vector.broadcast %29 : vector<1x32xf32> to vector<512x32xf32>
    %69 = arith.addf %67, %68 : vector<512x32xf32>
    %cst_23 = arith.constant 0.000000e+00 : f32
    %70 = vector.broadcast %cst_23 : f32 to vector<512x32xf32>
    %71 = arith.maximumf %69, %70 : vector<512x32xf32>
    %c511_i32_24 = arith.constant 511 : i32
    %72 = tpu.dynamic_rotate %71 by %c511_i32_24 dim 0 : vector<512x32xf32>, i32 -> vector<512x32xf32>
    %73 = arith.maximumf %71, %72 : vector<512x32xf32>
    %c496_i32_25 = arith.constant 496 : i32
    %74 = tpu.dynamic_rotate %73 by %c496_i32_25 dim 0 : vector<512x32xf32>, i32 -> vector<512x32xf32>
    %75 = arith.maximumf %73, %74 : vector<512x32xf32>
    %c510_i32_26 = arith.constant 510 : i32
    %76 = tpu.dynamic_rotate %75 by %c510_i32_26 dim 0 : vector<512x32xf32>, i32 -> vector<512x32xf32>
    %c508_i32 = arith.constant 508 : i32
    %77 = tpu.dynamic_rotate %75 by %c508_i32 dim 0 : vector<512x32xf32>, i32 -> vector<512x32xf32>
    %78 = tpu.concatenate %75, %76, %77 in 1 : vector<512x32xf32>, vector<512x32xf32>, vector<512x32xf32> -> vector<512x96xf32>
    %c480_i32_27 = arith.constant 480 : i32
    %79 = tpu.dynamic_rotate %78 by %c480_i32_27 dim 0 : vector<512x96xf32>, i32 -> vector<512x96xf32>
    %c448_i32 = arith.constant 448 : i32
    %80 = tpu.dynamic_rotate %78 by %c448_i32 dim 0 : vector<512x96xf32>, i32 -> vector<512x96xf32>
    %81 = tpu.concatenate %78, %79, %80 in 1 : vector<512x96xf32>, vector<512x96xf32>, vector<512x96xf32> -> vector<512x288xf32>
    %82 = arith.truncf %81 : vector<512x288xf32> to vector<512x288xbf16>
    %c0_28 = arith.constant 0 : index
    %c0_29 = arith.constant 0 : index
    %83 = vector.load %arg3[%c0_28, %c0_29] : memref<288x32xbf16, #tpu.memory_space<vmem>>, vector<288x32xbf16>
    %cst_30 = arith.constant dense<0.000000e+00> : vector<512x32xf32>
    %84 = tpu.matmul %82, %83, %cst_30 {dimension_numbers = #tpu.dot_dimension_numbers<[1], [0], [0], [1], [0, 0, 1, 1], [], []>} : vector<512x288xbf16>, vector<288x32xbf16>, vector<512x32xf32> -> vector<512x32xf32>
    %85 = vector.broadcast %30 : vector<1x32xf32> to vector<512x32xf32>
    %86 = arith.addf %84, %85 : vector<512x32xf32>
    %cst_31 = arith.constant 0.000000e+00 : f32
    %87 = vector.broadcast %cst_31 : f32 to vector<512x32xf32>
    %88 = arith.select %26, %86, %87 : vector<512x32xi1>, vector<512x32xf32>
    %cst_32 = arith.constant dense<0.000000e+00> : vector<32xf32>
    %89 = vector.multi_reduction <add>, %88, %cst_32 [0] : vector<512x32xf32> to vector<32xf32>
    %90 = vector.shape_cast %89 : vector<32xf32> to vector<1x32xf32>
    %cst_33 = arith.constant 2.000000e-02 : f32
    %91 = vector.broadcast %cst_33 : f32 to vector<1x32xf32>
    %92 = arith.mulf %90, %91 : vector<1x32xf32>
    %93 = vector.broadcast %92 : vector<1x32xf32> to vector<512x32xf32>
    %94 = arith.subf %86, %93 : vector<512x32xf32>
    %95 = arith.mulf %94, %94 : vector<512x32xf32>
    %cst_34 = arith.constant 0.000000e+00 : f32
    %96 = vector.broadcast %cst_34 : f32 to vector<512x32xf32>
    %97 = arith.select %26, %95, %96 : vector<512x32xi1>, vector<512x32xf32>
    %cst_35 = arith.constant dense<0.000000e+00> : vector<32xf32>
    %98 = vector.multi_reduction <add>, %97, %cst_35 [0] : vector<512x32xf32> to vector<32xf32>
    %99 = vector.shape_cast %98 : vector<32xf32> to vector<1x32xf32>
    %cst_36 = arith.constant 2.000000e-02 : f32
    %100 = vector.broadcast %cst_36 : f32 to vector<1x32xf32>
    %101 = arith.mulf %99, %100 : vector<1x32xf32>
    %cst_37 = arith.constant 9.99999974E-6 : f32
    %102 = vector.broadcast %cst_37 : f32 to vector<1x32xf32>
    %103 = arith.addf %101, %102 : vector<1x32xf32>
    %104 = math.rsqrt %103 : vector<1x32xf32>
    %105 = arith.mulf %31, %104 : vector<1x32xf32>
    %106 = vector.broadcast %105 : vector<1x32xf32> to vector<512x32xf32>
    %107 = arith.mulf %94, %106 : vector<512x32xf32>
    %108 = vector.broadcast %32 : vector<1x32xf32> to vector<512x32xf32>
    %109 = arith.addf %107, %108 : vector<512x32xf32>
    %cst_38 = arith.constant 0.000000e+00 : f32
    %110 = vector.broadcast %cst_38 : f32 to vector<512x32xf32>
    %111 = arith.maximumf %109, %110 : vector<512x32xf32>
    %c510_i32_39 = arith.constant 510 : i32
    %112 = tpu.dynamic_rotate %111 by %c510_i32_39 dim 0 : vector<512x32xf32>, i32 -> vector<512x32xf32>
    %113 = arith.maximumf %111, %112 : vector<512x32xf32>
    %c480_i32_40 = arith.constant 480 : i32
    %114 = tpu.dynamic_rotate %113 by %c480_i32_40 dim 0 : vector<512x32xf32>, i32 -> vector<512x32xf32>
    %115 = arith.maximumf %113, %114 : vector<512x32xf32>
    %116 = vector.extract_strided_slice %115 {offsets = [0, 0], sizes = [1, 32], strides = [1, 1]} : vector<512x32xf32> to vector<1x32xf32>
    %117 = vector.extract_strided_slice %115 {offsets = [4, 0], sizes = [1, 32], strides = [1, 1]} : vector<512x32xf32> to vector<1x32xf32>
    %118 = vector.extract_strided_slice %115 {offsets = [64, 0], sizes = [1, 32], strides = [1, 1]} : vector<512x32xf32> to vector<1x32xf32>
    %119 = vector.extract_strided_slice %115 {offsets = [68, 0], sizes = [1, 32], strides = [1, 1]} : vector<512x32xf32> to vector<1x32xf32>
    %120 = vector.extract_strided_slice %115 {offsets = [256, 0], sizes = [1, 32], strides = [1, 1]} : vector<512x32xf32> to vector<1x32xf32>
    %121 = vector.extract_strided_slice %115 {offsets = [260, 0], sizes = [1, 32], strides = [1, 1]} : vector<512x32xf32> to vector<1x32xf32>
    %122 = vector.extract_strided_slice %115 {offsets = [320, 0], sizes = [1, 32], strides = [1, 1]} : vector<512x32xf32> to vector<1x32xf32>
    %123 = vector.extract_strided_slice %115 {offsets = [324, 0], sizes = [1, 32], strides = [1, 1]} : vector<512x32xf32> to vector<1x32xf32>
    %124 = tpu.concatenate %116, %117, %118, %119, %120, %121, %122, %123 in 0 : vector<1x32xf32>, vector<1x32xf32>, vector<1x32xf32>, vector<1x32xf32>, vector<1x32xf32>, vector<1x32xf32>, vector<1x32xf32>, vector<1x32xf32> -> vector<8x32xf32>
    %c0_41 = arith.constant 0 : index
    %c0_42 = arith.constant 0 : index
    %125 = vector.load %arg5[%c0_41, %c0_42] : memref<8x32xf32, #tpu.memory_space<vmem>>, vector<8x32xf32>
    tpu.vector_store %arg5[%c0_41, %c0_42], %124 {strides = array<i32>} : memref<8x32xf32, #tpu.memory_space<vmem>>, vector<8x32xf32>,
    return
  }
  func.func @transform_0(%arg0: i32) -> (i32, i32) {
    %c0_i32 = arith.constant 0 : i32
    %c0_i32_0 = arith.constant 0 : i32
    %c0_i32_1 = arith.constant 0 : i32
    return %c0_i32, %c0_i32_0 : i32, i32
  }
  func.func @transform_1(%arg0: i32) -> (i32, i32) {
    %c0_i32 = arith.constant 0 : i32
    %c0_i32_0 = arith.constant 0 : i32
    %c0_i32_1 = arith.constant 0 : i32
    return %c0_i32, %c0_i32_0 : i32, i32
  }
  func.func @transform_2(%arg0: i32) -> (i32, i32) {
    %c0_i32 = arith.constant 0 : i32
    %c0_i32_0 = arith.constant 0 : i32
    %c0_i32_1 = arith.constant 0 : i32
    return %c0_i32, %c0_i32_0 : i32, i32
  }
  func.func @transform_3(%arg0: i32) -> (i32, i32) {
    %c0_i32 = arith.constant 0 : i32
    %c0_i32_0 = arith.constant 0 : i32
    %c0_i32_1 = arith.constant 0 : i32
    return %c0_i32, %c0_i32_0 : i32, i32
  }
  func.func @transform_4(%arg0: i32) -> (i32, i32) {
    %c0_i32 = arith.constant 0 : i32
    %c0_i32_0 = arith.constant 0 : i32
    %c0_i32_1 = arith.constant 0 : i32
    return %c0_i32, %c0_i32_0 : i32, i32
  }
}

</mosaic_0001>

<bundles_post_ra>
// kernel: cnn_encoder_forward.1
= control target key start
LH: loop header
LB: loop body
LE: loop exit
PB: predicated region body
PF: predicated region fallthrough
CT: control target
= control target key end

     0   :  { %v19_v0 = vlaneseq  ;;  %s8801_s11 = smov 3   ;;  %s8802_s12 = smov 6   ;;  %s17238_s0 = inlined_call_operand.vmem [shape: f32[512,3], index: 0, kind: input, shape index: {}]   ;;  %s17239_s1 = inlined_call_operand.vmem [shape: bf16[32,32], index: 1, kind: input, shape index: {}]   ;;  %s17240_s2 = inlined_call_operand.vmem [shape: bf16[288,32], index: 2, kind: input, shape index: {}]   ;;  %s17241_s3 = inlined_call_operand.vmem [shape: f32[8,32], index: 3, kind: input, shape index: {}]   ;;  %s17242_s4 = inlined_call_operand.hbm [shape: f32[8,32], index: 4, kind: output, shape index: {}]  }
   0x1   :  { %v8838_v1 = vld [vmem:[%s17238_s0 + $0x10] sm:$0xff]  ;;  %v8843_v2 = vld [vmem:[%s17238_s0 + $0x18] sm:$0xff]  ;;  %v8848_v3 = vld [vmem:[%s17238_s0 + $0x20] sm:$0xff] }
   0x2   :  { %v1116_v4 = vrot.slane %v8838_v1, 1  ;;  %v1117_v5 = vrot.slane %v8843_v2, 1  ;;  %v1118_v6 = vrot.slane %v8848_v3, 1  ;;  %v1245_v7 = vrot.slane %v8838_v1, 2  ;;  %v8857_v8 = vld [vmem:[%s17238_s0 + $0x28] sm:$0xff]  ;;  %v8862_v9 = vld [vmem:[%s17238_s0 + $0x30] sm:$0xff] }
   0x3   :  { %v8864_v10 = vshrl.u32 %v19_v0, 7  ;;  %v1246_v11 = vrot.slane %v8843_v2, 2  ;;  %v1247_v12 = vrot.slane %v8848_v3, 2  ;;  %v1119_v13 = vrot.slane %v8857_v8, 1  ;;  %v8872_v14 = vld [vmem:[%s17238_s0 + $0x38] sm:$0xff]  ;;  %v8877_v15 = vld [vmem:[%s17238_s0 + $0x40] sm:$0xff] }
   0x4   :  { %v1120_v16 = vrot.slane %v8862_v9, 1  ;;  %v1121_v17 = vrot.slane %v8872_v14, 1  ;;  %v1122_v18 = vrot.slane %v8877_v15, 1  ;;  %v1248_v19 = vrot.slane %v8857_v8, 2  ;;  %v8906_v30 = vld [vmem:[%s17238_s0 + $0x48] sm:$0xff]  ;;  %v8911_v31 = vld [vmem:[%s17238_s0 + $0x50] sm:$0xff] }
   0x5   :  { %17941 = vst [vmem:[#allocation5_spill] sm:$0xff] %v8864_v10  ;;  %vm17274_vm0 = vcmp.lt.s32.totalorder %v8864_v10, 7  ;;  %vm17273_vm1 = vcmp.lt.s32.totalorder %v8864_v10, 6  ;;  %v1249_v20 = vrot.slane %v8862_v9, 2  ;;  %v1250_v21 = vrot.slane %v8872_v14, 2  ;;  %v8916_v32 = vld [vmem:[%s17238_s0 + $0x58] sm:$0xff] }
   0x6   :  { %v1238_v22 = vsel %vm17274_vm0, %v1117_v5, %v1118_v6  ;;  %v1239_v23 = vsel %vm17274_vm0, %v1116_v4, %v1117_v5  ;;  %v1367_v24 = vsel %vm17273_vm1, %v1246_v11, %v1247_v12  ;;  %v1368_v25 = vsel %vm17273_vm1, %v1245_v7, %v1246_v11  ;;  %v8925_v36 = vld [vmem:[%s17238_s0 + $0x60] sm:$0xff]  ;;  %v8959_v57 = vld [vmem:[%s17238_s0 + $0x68] sm:$0xff]  ;;  %v8964_v58 = vld [vmem:[%s17238_s0 + $0x70] sm:$0xff] }
   0x7   :  { %v7470_v26 = vpack.i.bf16 %v1238_v22, %v1239_v23  ;;  %v7480_v27 = vpack.i.bf16 %v1367_v24, %v1368_v25  ;;  %v1236_v28 = vsel %vm17274_vm0, %v1119_v13, %v1120_v16  ;;  %v1237_v29 = vsel %vm17274_vm0, %v1118_v6, %v1119_v13  ;;  %v8969_v59 = vld [vmem:[%s17238_s0 + $0x78] sm:$0xff]  ;;  %v8974_v60 = vld [vmem:[%s17238_s0 + $0x80] sm:$0xff] }
   0x8   :  { %v7475_v33 = vpack.i.bf16 %v1236_v28, %v1237_v29  ;;  %v1234_v34 = vsel %vm17274_vm0, %v1121_v17, %v1122_v18  ;;  %v1235_v35 = vsel %vm17274_vm0, %v1120_v16, %v1121_v17  ;;  %v1365_v38 = vsel %vm17273_vm1, %v1248_v19, %v1249_v20  ;;  %v9011_v25 = vld [vmem:[%s17238_s0 + $0x98] sm:$0xff] }
   0x9   :  { %7471 = vrot.lane.b32.xlu0 %v7470_v26, %s8801_s11  ;;  %7481 = vrot.lane.b32.xlu1 %v7480_v27, %s8802_s12  ;;  %v7485_v37 = vpack.i.bf16 %v1234_v34, %v1235_v35  ;;  %v1366_v39 = vsel %vm17273_vm1, %v1247_v12, %v1248_v19  ;;  %v1251_v40 = vrot.slane %v8877_v15, 2  ;;  %v1364_v41 = vsel %vm17273_vm1, %v1249_v20, %v1250_v21  ;;  %v8994_v19 = vld [vmem:[%s17238_s0 + $0x88] sm:$0xff]  ;;  %v8999_v20 = vld [vmem:[%s17238_s0 + $0x90] sm:$0xff] }
   0xa   :  { %v1123_v42 = vrot.slane %v8906_v30, 1  ;;  %v1124_v43 = vrot.slane %v8911_v31, 1  ;;  %v1125_v44 = vrot.slane %v8916_v32, 1  ;;  %v1126_v46 = vrot.slane %v8925_v36, 1 }
   0xb   :  { %v1363_v45 = vsel %vm17273_vm1, %v1250_v21, %v1251_v40  ;;  %v7490_v47 = vpack.i.bf16 %v1365_v38, %v1366_v39  ;;  %v1252_v48 = vrot.slane %v8906_v30, 2  ;;  %v1253_v49 = vrot.slane %v8911_v31, 2 }
   0xc   :  { %v7495_v50 = vpack.i.bf16 %v1363_v45, %v1364_v41  ;;  %v1232_v51 = vsel %vm17274_vm0, %v1123_v42, %v1124_v43  ;;  %v1233_v52 = vsel %vm17274_vm0, %v1122_v18, %v1123_v42  ;;  %v1230_v53 = vsel %vm17274_vm0, %v1125_v44, %v1126_v46 }
   0xd   :  { %7476 = vrot.lane.b32.xlu0 %v7475_v33, %s8801_s11  ;;  %7486 = vrot.lane.b32.xlu1 %v7485_v37, %s8801_s11  ;;  %v1231_v54 = vsel %vm17274_vm0, %v1124_v43, %v1125_v44  ;;  %v1254_v55 = vrot.slane %v8916_v32, 2  ;;  %v1255_v56 = vrot.slane %v8925_v36, 2  ;;  %v7500_v61 = vpack.i.bf16 %v1232_v51, %v1233_v52  ;;  %v9022_v33 = vld [vmem:[%s17238_s0 + $0xa0] sm:$0xff] }
   0xe   :  { %v1361_v62 = vsel %vm17273_vm1, %v1252_v48, %v1253_v49  ;;  %v7505_v63 = vpack.i.bf16 %v1230_v53, %v1231_v54  ;;  %v1362_v0 = vsel %vm17273_vm1, %v1251_v40, %v1252_v48  ;;  %v1127_v5 = vrot.slane %v8959_v57, 1  ;;  %v9047_v48 = vld [vmem:[%s17238_s0 + $0xb0] sm:$0xff]  ;;  %v9059_v53 = vld [vmem:[%s17238_s0 + $0xb8] sm:$0xff] }
   0xf   :  { %v1128_v6 = vrot.slane %v8964_v58, 1  ;;  %v1359_v11 = vsel %vm17273_vm1, %v1254_v55, %v1255_v56  ;;  %v1360_v12 = vsel %vm17273_vm1, %v1253_v49, %v1254_v55  ;;  %v1129_v13 = vrot.slane %v8969_v59, 1 }
  0x10   :  { %v1130_v16 = vrot.slane %v8974_v60, 1  ;;  %v7510_v17 = vpack.i.bf16 %v1361_v62, %v1362_v0  ;;  %v1256_v18 = vrot.slane %v8959_v57, 2  ;;  %v7515_v21 = vpack.i.bf16 %v1359_v11, %v1360_v12  ;;  %v9070_v62 = vld [vmem:[%s17238_s0 + $0xc0] sm:$0xff] }
  0x11   :  { %7491 = vrot.lane.b32.xlu0 %v7490_v47, %s8802_s12  ;;  %7496 = vrot.lane.b32.xlu1 %v7495_v50, %s8802_s12  ;;  %v1228_v22 = vsel %vm17274_vm0, %v1127_v5, %v1128_v6  ;;  %v1229_v23 = vsel %vm17274_vm0, %v1126_v46, %v1127_v5  ;;  %v1257_v24 = vrot.slane %v8964_v58, 2  ;;  %v1227_v27 = vsel %vm17274_vm0, %v1128_v6, %v1129_v13  ;;  %v9042_v47 = vld [vmem:[%s17238_s0 + $0xa8] sm:$0xff] }
  0x12   :  { %v1226_v26 = vsel %vm17274_vm0, %v1129_v13, %v1130_v16  ;;  %v1258_v28 = vrot.slane %v8969_v59, 2  ;;  %v1259_v29 = vrot.slane %v8974_v60, 2  ;;  %v7520_v34 = vpack.i.bf16 %v1228_v22, %v1229_v23  ;;  %v9090_v23 = vld [vmem:[%s17238_s0 + $0xc8] sm:$0xff] }
  0x13   :  { %v1358_v35 = vsel %vm17273_vm1, %v1255_v56, %v1256_v18  ;;  %v7525_v37 = vpack.i.bf16 %v1226_v26, %v1227_v27  ;;  %v1357_v38 = vsel %vm17273_vm1, %v1256_v18, %v1257_v24  ;;  %v1131_v39 = vrot.slane %v8994_v19, 1 }
  0x14   :  { %v1132_v40 = vrot.slane %v8999_v20, 1  ;;  %v1355_v41 = vsel %vm17273_vm1, %v1258_v28, %v1259_v29  ;;  %v1356_v42 = vsel %vm17273_vm1, %v1257_v24, %v1258_v28  ;;  %v1133_v43 = vrot.slane %v9011_v25, 1  ;;  %v9095_v24 = vld [vmem:[%s17238_s0 + $0xd0] sm:$0xff] }
  0x15   :  { %7501 = vrot.lane.b32.xlu0 %v7500_v61, %s8801_s11  ;;  %7506 = vrot.lane.b32.xlu1 %v7505_v63, %s8801_s11  ;;  %v1134_v44 = vrot.slane %v9022_v33, 1  ;;  %v7530_v45 = vpack.i.bf16 %v1357_v38, %v1358_v35  ;;  %v1260_v46 = vrot.slane %v8994_v19, 2  ;;  %v7535_v49 = vpack.i.bf16 %v1355_v41, %v1356_v42 }
  0x16   :  { %v1224_v50 = vsel %vm17274_vm0, %v1131_v39, %v1132_v40  ;;  %v1225_v51 = vsel %vm17274_vm0, %v1130_v16, %v1131_v39  ;;  %v1261_v52 = vrot.slane %v8999_v20, 2  ;;  %v1223_v55 = vsel %vm17274_vm0, %v1132_v40, %v1133_v43  ;;  %v9118_v40 = vld [vmem:[%s17238_s0 + $0xe0] sm:$0xff] }
  0x17   :  { %v1222_v54 = vsel %vm17274_vm0, %v1133_v43, %v1134_v44  ;;  %v1262_v56 = vrot.slane %v9011_v25, 2  ;;  %v1263_v61 = vrot.slane %v9022_v33, 2  ;;  %v7540_v63 = vpack.i.bf16 %v1224_v50, %v1225_v51 }
  0x18   :  { %v1354_v0 = vsel %vm17273_vm1, %v1259_v29, %v1260_v46  ;;  %v7545_v5 = vpack.i.bf16 %v1222_v54, %v1223_v55  ;;  %v1353_v6 = vsel %vm17273_vm1, %v1260_v46, %v1261_v52  ;;  %v1135_v11 = vrot.slane %v9042_v47, 1 }
  0x19   :  { %7511 = vrot.lane.b32.xlu0 %v7510_v17, %s8802_s12  ;;  %7516 = vrot.lane.b32.xlu1 %v7515_v21, %s8802_s12  ;;  %v1136_v12 = vrot.slane %v9047_v48, 1  ;;  %v1351_v13 = vsel %vm17273_vm1, %v1262_v56, %v1263_v61  ;;  %v1352_v16 = vsel %vm17273_vm1, %v1261_v52, %v1262_v56  ;;  %v1137_v17 = vrot.slane %v9059_v53, 1 }
  0x1a   :  { %v1138_v18 = vrot.slane %v9070_v62, 1  ;;  %v7550_v21 = vpack.i.bf16 %v1353_v6, %v1354_v0  ;;  %v1264_v22 = vrot.slane %v9042_v47, 2  ;;  %v7555_v26 = vpack.i.bf16 %v1351_v13, %v1352_v16 }
  0x1b   :  { %v1220_v27 = vsel %vm17274_vm0, %v1135_v11, %v1136_v12  ;;  %v1221_v28 = vsel %vm17274_vm0, %v1134_v44, %v1135_v11  ;;  %v1265_v29 = vrot.slane %v9047_v48, 2  ;;  %v1266_v38 = vrot.slane %v9059_v53, 2 }
  0x1c   :  { %v1218_v35 = vsel %vm17274_vm0, %v1137_v17, %v1138_v18  ;;  %v1267_v39 = vrot.slane %v9070_v62, 2  ;;  %v7560_v41 = vpack.i.bf16 %v1220_v27, %v1221_v28  ;;  %v1350_v42 = vsel %vm17273_vm1, %v1263_v61, %v1264_v22 }
  0x1d   :  { %7521 = vrot.lane.b32.xlu0 %v7520_v34, %s8801_s11  ;;  %7526 = vrot.lane.b32.xlu1 %v7525_v37, %s8801_s11  ;;  %v9107_v34 = vld [vmem:[%s17238_s0 + $0xd8] sm:$0xff]  ;;  %v1219_v37 = vsel %vm17274_vm0, %v1136_v12, %v1137_v17 }
  0x21   :  { %7531 = vrot.lane.b32.xlu0 %v7530_v45, %s8802_s12  ;;  %7536 = vrot.lane.b32.xlu1 %v7535_v49, %s8802_s12 }
  0x25   :  { %7541 = vrot.lane.b32.xlu0 %v7540_v63, %s8801_s11  ;;  %7546 = vrot.lane.b32.xlu1 %v7545_v5, %s8801_s11 }
  0x26   :  { %9 = vsyncpa [#allocation3], 0  ;;  %v1349_v43 = vsel %vm17273_vm1, %v1264_v22, %v1265_v29  ;;  %v7565_v44 = vpack.i.bf16 %v1218_v35, %v1219_v37  ;;  %v1139_v45 = vrot.slane %v9090_v23, 1  ;;  %v1140_v46 = vrot.slane %v9095_v24, 1  ;;  %v9151_v13 = vld [vmem:[%s17238_s0 + $0xe8] sm:$0xff]  ;;  %v9156_v16 = vld [vmem:[%s17238_s0 + $0xf0] sm:$0xff] }
  0x27   :  { %v1347_v49 = vsel %vm17273_vm1, %v1266_v38, %v1267_v39  ;;  %v1348_v50 = vsel %vm17273_vm1, %v1265_v29, %v1266_v38  ;;  %v1141_v51 = vrot.slane %v9107_v34, 1  ;;  %v1142_v52 = vrot.slane %v9118_v40, 1  ;;  %v9161_v17 = vld [vmem:[%s17238_s0 + $0xf8] sm:$0xff]  ;;  %s8803_s21 = smov 9   ;;  %s8805_s10 = smov 32  }
  0x28   :  { %v7570_v54 = vpack.i.bf16 %v1349_v43, %v1350_v42  ;;  %v1268_v55 = vrot.slane %v9090_v23, 2  ;;  %v7575_v56 = vpack.i.bf16 %v1347_v49, %v1348_v50  ;;  %v1216_v61 = vsel %vm17274_vm0, %v1139_v45, %v1140_v46  ;;  %s8806_s13 = smov 64   ;;  %s8808_s29 = smov 96  }
  0x29   :  { %7551 = vrot.lane.b32.xlu0 %v7550_v21, %s8802_s12  ;;  %7556 = vrot.lane.b32.xlu1 %v7555_v26, %s8802_s12  ;;  %v1217_v63 = vsel %vm17274_vm0, %v1138_v18, %v1139_v45  ;;  %v1269_v0 = vrot.slane %v9095_v24, 2  ;;  %v1214_v5 = vsel %vm17274_vm0, %v1141_v51, %v1142_v52  ;;  %v1215_v6 = vsel %vm17274_vm0, %v1140_v46, %v1141_v51  ;;  %v9166_v18 = vld [vmem:[%s17238_s0 + $0x100] sm:$0xff] }
  0x2a   :  { %v1270_v11 = vrot.slane %v9107_v34, 2  ;;  %v1271_v12 = vrot.slane %v9118_v40, 2  ;;  %v7580_v21 = vpack.i.bf16 %v1216_v61, %v1217_v63  ;;  %v1346_v22 = vsel %vm17273_vm1, %v1267_v39, %v1268_v55  ;;  %v9214_v61 = vld [vmem:[%s17238_s0 + $0x110] sm:$0xff] }
  0x2b   :  { %v1345_v26 = vsel %vm17273_vm1, %v1268_v55, %v1269_v0  ;;  %v7585_v27 = vpack.i.bf16 %v1214_v5, %v1215_v6  ;;  %v1143_v28 = vrot.slane %v9151_v13, 1  ;;  %v1144_v29 = vrot.slane %v9156_v16, 1  ;;  %v9199_v55 = vld [vmem:[%s17238_s0] sm:$0xff] }
  0x2c   :  { %v1343_v35 = vsel %vm17273_vm1, %v1270_v11, %v1271_v12  ;;  %v1344_v37 = vsel %vm17273_vm1, %v1269_v0, %v1270_v11  ;;  %v1145_v38 = vrot.slane %v9161_v17, 1  ;;  %v1146_v39 = vrot.slane %v9166_v18, 1 }
  0x2d   :  { %7561 = vrot.lane.b32.xlu0 %v7560_v41, %s8801_s11  ;;  %7566 = vrot.lane.b32.xlu1 %v7565_v44, %s8801_s11  ;;  %v7590_v41 = vpack.i.bf16 %v1345_v26, %v1346_v22  ;;  %v1272_v42 = vrot.slane %v9151_v13, 2  ;;  %v7595_v43 = vpack.i.bf16 %v1343_v35, %v1344_v37  ;;  %v1212_v44 = vsel %vm17274_vm0, %v1143_v28, %v1144_v29 }
  0x2e   :  { %v1213_v45 = vsel %vm17274_vm0, %v1142_v52, %v1143_v28  ;;  %v1273_v46 = vrot.slane %v9156_v16, 2  ;;  %v1210_v49 = vsel %vm17274_vm0, %v1145_v38, %v1146_v39  ;;  %v1211_v50 = vsel %vm17274_vm0, %v1144_v29, %v1145_v38  ;;  %v9204_v52 = vld [vmem:[%s17238_s0 + $0x8] sm:$0xff]  ;;  %v9233_v28 = vld [vmem:[%s17238_s0 + $0x118] sm:$0xff]  ;;  %v9238_v29 = vld [vmem:[%s17238_s0 + $0x120] sm:$0xff] }
  0x2f   :  { %v1274_v51 = vrot.slane %v9161_v17, 2  ;;  %v7600_v63 = vpack.i.bf16 %v1212_v44, %v1213_v45  ;;  %v1342_v0 = vsel %vm17273_vm1, %v1271_v12, %v1272_v42  ;;  %v7605_v6 = vpack.i.bf16 %v1210_v49, %v1211_v50 }
  0x30   :  { %v1341_v5 = vsel %vm17273_vm1, %v1272_v42, %v1273_v46  ;;  %v17244_v11 = vrot.slane %v9199_v55, 1  ;;  %v1277_v38 = vrot.slane %v9214_v61, 2  ;;  %v1150_v49 = vrot.slane %v9238_v29, 1 }
  0x31   :  { %7571 = vrot.lane.b32.xlu0 %v7570_v54, %s8802_s12  ;;  %7576 = vrot.lane.b32.xlu1 %v7575_v56, %s8802_s12  ;;  %v1275_v54 = vrot.slane %v9166_v18, 2  ;;  %v9209_v56 = vld [vmem:[%s17238_s0 + $0x108] sm:$0xff]  ;;  %v1340_v26 = vsel %vm17273_vm1, %v1273_v46, %v1274_v51  ;;  %v7610_v35 = vpack.i.bf16 %v1341_v5, %v1342_v0  ;;  %v1149_v46 = vrot.slane %v9233_v28, 1 }
  0x32   :  { %v1147_v12 = vrot.slane %v9209_v56, 1  ;;  %v1276_v37 = vrot.slane %v9209_v56, 2  ;;  %v1278_v0 = vrot.slane %v9233_v28, 2  ;;  %v9269_v5 = vld [vmem:[%s17238_s0 + $0x128] sm:$0xff]  ;;  %vm1884_vm2 = vcmask 23552  }
  0x33   :  { %v1339_v22 = vsel %vm17273_vm1, %v1274_v51, %v1275_v54  ;;  %vm1949_vm3 = vcmask 48128   ;;  %vm2462_vm4 = vcmask 72704   ;;  %vm2527_vm5 = vcmask 146432  }
  0x34   :  { %v1209_v45 = vsel %vm17274_vm0, %v1146_v39, %v1147_v12  ;;  %v1337_v51 = vsel %vm17273_vm1, %v1276_v37, %v1277_v38  ;;  %v1279_v39 = vrot.slane %v9238_v29, 2  ;;  %vm2592_vm6 = vcmask 220160  }
  0x35   :  { %7581 = vrot.lane.b32.xlu0 %v7580_v21, %s8801_s11  ;;  %7586 = vrot.lane.b32.xlu1 %v7585_v27, %s8801_s11  ;;  %v1115_v21 = vrot.slane %v9204_v52, 1  ;;  %v1148_v27 = vrot.slane %v9214_v61, 1  ;;  %vm17352_vm7 = vcmask 261120  }
  0x37   :  { %v1240_v42 = vsel %vm17274_vm0, %v1115_v21, %v1116_v4  ;;  %v1208_v44 = vsel %vm17274_vm0, %v1147_v12, %v1148_v27  ;;  %v9285_v12 = vld [vmem:[%s17238_s0 + $0x138] sm:$0xff] }
  0x38   :  { %v7620_v4 = vpack.i.bf16 %v1208_v44, %v1209_v45  ;;  %v1336_v44 = vsel %vm17273_vm1, %v1277_v38, %v1278_v0 }
  0x39   :  { %7591 = vrot.lane.b32.xlu0 %v7590_v41, %s8802_s12  ;;  %7596 = vrot.lane.b32.xlu1 %v7595_v43, %s8802_s12  ;;  %v7615_v41 = vpack.i.bf16 %v1339_v22, %v1340_v26  ;;  %v1241_v43 = vsel %vm17274_vm0, %v17244_v11, %v1115_v21  ;;  %v1206_v21 = vsel %vm17274_vm0, %v1149_v46, %v1150_v49  ;;  %v17243_v22 = vrot.slane %v9199_v55, 2 }
  0x3a   :  { %v7625_v50 = vpack.i.bf16 %v1240_v42, %v1241_v43  ;;  %v1244_v26 = vrot.slane %v9204_v52, 2  ;;  %v1335_v43 = vsel %vm17273_vm1, %v1278_v0, %v1279_v39  ;;  %v1280_v0 = vrot.slane %v9269_v5, 2 }
  0x3c   :  { %v1369_v45 = vsel %vm17273_vm1, %v1244_v26, %v1245_v7 }
  0x3d   :  { %7601 = vrot.lane.b32.xlu0 %v7600_v63, %s8801_s11  ;;  %7606 = vrot.lane.b32.xlu1 %v7605_v6, %s8801_s11  ;;  %v1338_v63 = vsel %vm17273_vm1, %v1275_v54, %v1276_v37  ;;  %v9274_v6 = vld [vmem:[%s17238_s0 + $0x130] sm:$0xff]  ;;  %v1207_v54 = vsel %vm17274_vm0, %v1148_v27, %v1149_v46  ;;  %v1370_v46 = vsel %vm17273_vm1, %v17243_v22, %v1244_v26 }
  0x3e   :  { %17942 = vst [vmem:[#allocation6_spill] sm:$0xff] %v9274_v6  ;;  %v7635_v37 = vpack.i.bf16 %v1337_v51, %v1338_v63  ;;  %v1152_v42 = vrot.slane %v9274_v6, 1  ;;  %v7630_v27 = vpack.i.bf16 %v1206_v21, %v1207_v54  ;;  %v7640_v38 = vpack.i.bf16 %v1369_v45, %v1370_v46  ;;  %v9321_v54 = vld [vmem:[%s17238_s0 + $0x148] sm:$0xff]  ;;  %v9326_v26 = vld [vmem:[%s17238_s0 + $0x150] sm:$0xff] }
  0x3f   :  { %v1281_v21 = vrot.slane %v9274_v6, 2  ;;  %17944 = vst [vmem:[#allocation8_spill] sm:$0xff] %v9321_v54  ;;  %17945 = vst [vmem:[#allocation9_spill] sm:$0xff] %v9326_v26  ;;  %v1155_v46 = vrot.slane %v9321_v54, 1  ;;  %v1156_v22 = vrot.slane %v9326_v26, 1 }
  0x41   :  { %7611 = vrot.lane.b32.xlu0 %v7610_v35, %s8802_s12  ;;  %7616 = vrot.lane.b32.xlu1 %v7615_v41, %s8802_s12  ;;  %v9290_v35 = vld [vmem:[%s17238_s0 + $0x140] sm:$0xff]  ;;  %v1151_v41 = vrot.slane %v9269_v5, 1 }
  0x42   :  { %17943 = vst [vmem:[#allocation7_spill] sm:$0xff] %v9290_v35  ;;  %v1154_v51 = vrot.slane %v9290_v35, 1 }
  0x43   :  { %v1204_v63 = vsel %vm17274_vm0, %v1151_v41, %v1152_v42  ;;  %v1205_v7 = vsel %vm17274_vm0, %v1150_v49, %v1151_v41  ;;  %v1282_v41 = vrot.slane %v9285_v12, 2 }
  0x44   :  { %v7650_v45 = vpack.i.bf16 %v1204_v63, %v1205_v7 }
  0x45   :  { %7626 = vrot.lane.b32.xlu1 %v7625_v50, %s8801_s11  ;;  %7621 = vrot.lane.b32.xlu0 %v7620_v4, %s8801_s11  ;;  %v1153_v50 = vrot.slane %v9285_v12, 1  ;;  %v7645_v4 = vpack.i.bf16 %v1335_v43, %v1336_v44  ;;  %v9337_v43 = vld [vmem:[%s17238_s0 + $0x158] sm:$0xff]  ;;  %v9342_v44 = vld [vmem:[%s17238_s0 + $0x160] sm:$0xff]  ;;  %v1332_v63 = vsel %vm17273_vm1, %v1281_v21, %v1282_v41 }
  0x46   :  { %17946 = vst [vmem:[#allocation10_spill] sm:$0xff] %v9337_v43  ;;  %17947 = vst [vmem:[#allocation11_spill] sm:$0xff] %v9342_v44  ;;  %v1157_v7 = vrot.slane %v9337_v43, 1  ;;  %v1158_v6 = vrot.slane %v9342_v44, 1 }
  0x47   :  { %v1203_v49 = vsel %vm17274_vm0, %v1152_v42, %v1153_v50  ;;  %v1333_v42 = vsel %vm17273_vm1, %v1280_v0, %v1281_v21  ;;  %v1285_v21 = vrot.slane %v9326_v26, 2 }
  0x49   :  { %7636 = vrot.lane.b32.xlu1 %v7635_v37, %s8802_s12  ;;  %7631 = vrot.lane.b32.xlu0 %v7630_v27, %s8801_s11  ;;  %v1202_v37 = vsel %vm17274_vm0, %v1153_v50, %v1154_v51  ;;  %v1283_v27 = vrot.slane %v9290_v35, 2  ;;  %v1334_v50 = vsel %vm17273_vm1, %v1279_v39, %v1280_v0  ;;  %v1201_v0 = vsel %vm17274_vm0, %v1154_v51, %v1155_v46  ;;  %v9380_v51 = vld [vmem:[%s17238_s0 + $0x170] sm:$0xff] }
  0x4a   :  { %v7655_v11 = vpack.i.bf16 %v1202_v37, %v1203_v49  ;;  %v1284_v37 = vrot.slane %v9321_v54, 2  ;;  %v9369_v49 = vld [vmem:[%s17238_s0 + $0x168] sm:$0xff]  ;;  %v1160_v26 = vrot.slane %v9380_v51, 1 }
  0x4b   :  { %v1331_v35 = vsel %vm17273_vm1, %v1282_v41, %v1283_v27  ;;  %v1198_v41 = vsel %vm17274_vm0, %v1157_v7, %v1158_v6 }
  0x4c   :  { %v7665_v39 = vpack.i.bf16 %v1331_v35, %v1332_v63  ;;  %v1287_v35 = vrot.slane %v9342_v44, 2  ;;  %v1329_v63 = vsel %vm17273_vm1, %v1284_v37, %v1285_v21 }
  0x4d   :  { %7646 = vrot.lane.b32.xlu1 %v7645_v4, %s8802_s12  ;;  %7641 = vrot.lane.b32.xlu0 %v7640_v38, %s8802_s12  ;;  %v7660_v4 = vpack.i.bf16 %v1333_v42, %v1334_v50  ;;  %v1200_v38 = vsel %vm17274_vm0, %v1155_v46, %v1156_v22  ;;  %v9385_v46 = vld [vmem:[%s17238_s0 + $0x178] sm:$0xff]  ;;  %v9390_v42 = vld [vmem:[%s17238_s0 + $0x180] sm:$0xff]  ;;  %v1159_v50 = vrot.slane %v9369_v49, 1 }
  0x4f   :  { %v1197_v54 = vsel %vm17274_vm0, %v1158_v6, %v1159_v50 }
  0x51   :  { %7651 = vrot.lane.b32.xlu0 %v7650_v45, %s8801_s11  ;;  %7656 = vrot.lane.b32.xlu1 %v7655_v11, %s8801_s11  ;;  %v1199_v45 = vsel %vm17274_vm0, %v1156_v22, %v1157_v7  ;;  %v1286_v11 = vrot.slane %v9337_v43, 2  ;;  %v7670_v22 = vpack.i.bf16 %v1200_v38, %v1201_v0  ;;  %v1330_v7 = vsel %vm17273_vm1, %v1283_v27, %v1284_v37 }
  0x52   :  { %v7675_v44 = vpack.i.bf16 %v1198_v41, %v1199_v45  ;;  %v1161_v0 = vrot.slane %v9385_v46, 1  ;;  %v1196_v37 = vsel %vm17274_vm0, %v1159_v50, %v1160_v26  ;;  %v1288_v41 = vrot.slane %v9369_v49, 2 }
  0x53   :  { %v1327_v43 = vsel %vm17273_vm1, %v1286_v11, %v1287_v35  ;;  %v1328_v38 = vsel %vm17273_vm1, %v1285_v21, %v1286_v11  ;;  %v1289_v21 = vrot.slane %v9380_v51, 2  ;;  %v1290_v11 = vrot.slane %v9385_v46, 2 }
  0x54   :  { %v7685_v27 = vpack.i.bf16 %v1327_v43, %v1328_v38  ;;  %v1195_v6 = vsel %vm17274_vm0, %v1160_v26, %v1161_v0  ;;  %v7690_v43 = vpack.i.bf16 %v1196_v37, %v1197_v54 }
  0x55   :  { %7661 = vrot.lane.b32.xlu0 %v7660_v4, %s8802_s12  ;;  %7666 = vrot.lane.b32.xlu1 %v7665_v39, %s8802_s12  ;;  %v1162_v4 = vrot.slane %v9390_v42, 1  ;;  %v7680_v39 = vpack.i.bf16 %v1329_v63, %v1330_v7  ;;  %v1325_v50 = vsel %vm17273_vm1, %v1288_v41, %v1289_v21  ;;  %v1326_v63 = vsel %vm17273_vm1, %v1287_v35, %v1288_v41 }
  0x56   :  { %v1324_v7 = vsel %vm17273_vm1, %v1289_v21, %v1290_v11  ;;  %v7700_v38 = vpack.i.bf16 %v1325_v50, %v1326_v63  ;;  %v8750_v21 = vld [vmem:[%s17239_s1 + $0x8] sm:$0xff]  }
  0x57   :  { %v1194_v45 = vsel %vm17274_vm0, %v1161_v0, %v1162_v4  ;;  %7293 = vmatprep.subr.bf16.mxu0 %v8750_v21 }
  0x58   :  { %7294 = vmatpush3.bf16.msra.mxu0 %v8750_v21 }
  0x59   :  { %7671 = vrot.lane.b32.xlu0 %v7670_v22, %s8801_s11  ;;  %7676 = vrot.lane.b32.xlu1 %v7675_v44, %s8801_s11  ;;  %v17251_v44 = vrot.slane %v9390_v42, 2  ;;  %v7695_v22 = vpack.i.bf16 %v1194_v45, %v1195_v6 }
  0x5b   :  { %v1323_v26 = vsel %vm17273_vm1, %v1290_v11, %v17251_v44 }
  0x5c   :  { %v7705_v54 = vpack.i.bf16 %v1323_v26, %v1324_v7 }
  0x5d   :  { %7681 = vrot.lane.b32.xlu0 %v7680_v39, %s8802_s12  ;;  %7686 = vrot.lane.b32.xlu1 %v7685_v27, %s8802_s12 }
  0x61   :  { %7691 = vrot.lane.b32.xlu0 %v7690_v43, %s8801_s11  ;;  %7696 = vrot.lane.b32.xlu1 %v7695_v22, %s8801_s11 }
  0x65   :  { %7701 = vrot.lane.b32.xlu0 %v7700_v38, %s8802_s12  ;;  %7706 = vrot.lane.b32.xlu1 %v7705_v54, %s8802_s12 }
  0x7b   :  { %v7472_v35 = vpop.permute.xlu0 %7471  ;;  %v7482_v0 = vpop.permute.xlu1 %7481 }
  0x7c   :  { %v7474_v39 = vunpack.i.h.bf16 %v7472_v35  ;;  %v7473_v27 = vunpack.i.l.bf16 %v7472_v35  ;;  %v7484_v37 = vunpack.i.h.bf16 %v7482_v0  ;;  %v7483_v41 = vunpack.i.l.bf16 %v7482_v0 }
  0x7e   :  { %v1888_v45 = vsel %vm1884_vm2, %v8843_v2, %v7474_v39  ;;  %v1887_v6 = vsel %vm1884_vm2, %v8838_v1, %v7473_v27  ;;  %v8751_v1 = vld [vmem:[%s17239_s1] sm:$0xff]   ;;  %s8804_s1 = smov 18  }
  0x7f   :  { %v7477_v11 = vpop.permute.xlu0 %7476  ;;  %v7487_v43 = vpop.permute.xlu1 %7486  ;;  %v9446_v22 = vsel %vm1949_vm3, %v1887_v6, %v7483_v41  ;;  %v9449_v50 = vsel %vm1949_vm3, %v1888_v45, %v7484_v37  ;;  %7295 = vmatprep.subr.bf16.mxu0 %v8751_v1 }
  0x80   :  { %v7479_v63 = vunpack.i.h.bf16 %v7477_v11  ;;  %v7478_v26 = vunpack.i.l.bf16 %v7477_v11  ;;  %v7489_v7 = vunpack.i.h.bf16 %v7487_v43  ;;  %v7488_v38 = vunpack.i.l.bf16 %v7487_v43  ;;  %7296 = vmatpush3.bf16.msra.mxu0 %v8751_v1 }
  0x81   :  { %v9453_v2 = vpack.i.bf16 %v9449_v50, %v9446_v22 }
  0x82   :  { %v1890_v41 = vsel %vm1884_vm2, %v8857_v8, %v7479_v63  ;;  %v1889_v21 = vsel %vm1884_vm2, %v8848_v3, %v7478_v26  ;;  %v1892_v45 = vsel %vm1884_vm2, %v8872_v14, %v7489_v7  ;;  %v1891_v6 = vsel %vm1884_vm2, %v8862_v9, %v7488_v38 }
  0x83   :  { %17948 = vst [vmem:[#allocation12_spill] sm:$0xff] %v9453_v2  ;;  %7711 = vrot.lane.b32.xlu0 %v9453_v2, %s8803_s21  ;;  %v7492_v54 = vpop.permute.xlu0 %7491  ;;  %v7497_v35 = vpop.permute.xlu1 %7496 }
  0x84   :  { %v7494_v0 = vunpack.i.h.bf16 %v7492_v54  ;;  %v7493_v39 = vunpack.i.l.bf16 %v7492_v54  ;;  %v7499_v27 = vunpack.i.h.bf16 %v7497_v35  ;;  %v7498_v37 = vunpack.i.l.bf16 %v7497_v35 }
  0x86   :  { %v9469_v11 = vsel %vm1949_vm3, %v1889_v21, %v7493_v39  ;;  %v9472_v43 = vsel %vm1949_vm3, %v1890_v41, %v7494_v0  ;;  %v9477_v3 = vsel %vm1949_vm3, %v1891_v6, %v7498_v37  ;;  %v9480_v14 = vsel %vm1949_vm3, %v1892_v45, %v7499_v27 }
  0x87   :  { %v7502_v54 = vpop.permute.xlu0 %7501  ;;  %v7507_v1 = vpop.permute.xlu1 %7506  ;;  %v7720_v8 = vpack.i.bf16 %v9472_v43, %v9469_v11  ;;  %v7730_v39 = vpack.i.bf16 %v9480_v14, %v9477_v3 }
  0x88   :  { %v7504_v63 = vunpack.i.h.bf16 %v7502_v54  ;;  %v7503_v26 = vunpack.i.l.bf16 %v7502_v54  ;;  %v7509_v9 = vunpack.i.h.bf16 %v7507_v1  ;;  %v7508_v7 = vunpack.i.l.bf16 %v7507_v1 }
  0x89   :  { %7721 = vrot.lane.b32.xlu0 %v7720_v8, %s8804_s1  ;;  %7716 = vrot.lane.b32.xlu1 %v7720_v8, %s8803_s21 }
  0x8a   :  { %v1894_v38 = vsel %vm1884_vm2, %v8906_v30, %v7504_v63  ;;  %v1893_v45 = vsel %vm1884_vm2, %v8877_v15, %v7503_v26  ;;  %v1896_v6 = vsel %vm1884_vm2, %v8916_v32, %v7509_v9  ;;  %v1895_v54 = vsel %vm1884_vm2, %v8911_v31, %v7508_v7 }
  0x8b   :  { %v7512_v35 = vpop.permute.xlu0 %7511  ;;  %v7517_v0 = vpop.permute.xlu1 %7516 }
  0x8c   :  { %v7514_v37 = vunpack.i.h.bf16 %v7512_v35  ;;  %v7513_v41 = vunpack.i.l.bf16 %v7512_v35  ;;  %v7519_v27 = vunpack.i.h.bf16 %v7517_v0  ;;  %v7518_v21 = vunpack.i.l.bf16 %v7517_v0 }
  0x8d   :  { %7731 = vrot.lane.b32.xlu0 %v7730_v39, %s8803_s21  ;;  %7726 = vrot.lane.b32.xlu1 %v7730_v39, %s8804_s1 }
  0x8e   :  { %v9497_v30 = vsel %vm1949_vm3, %v1893_v45, %v7513_v41  ;;  %v9500_v1 = vsel %vm1949_vm3, %v1894_v38, %v7514_v37  ;;  %v9505_v32 = vsel %vm1949_vm3, %v1895_v54, %v7518_v21  ;;  %v9508_v31 = vsel %vm1949_vm3, %v1896_v6, %v7519_v27  ;;  %v9519_v41 = vld [vmem:[%s17238_s0 + $0x188] sm:$0xff]  ;;  %v9524_v27 = vld [vmem:[%s17238_s0 + $0x190] sm:$0xff] }
  0x8f   :  { %v7522_v8 = vpop.permute.xlu0 %7521  ;;  %v7527_v63 = vpop.permute.xlu1 %7526  ;;  %v7740_v15 = vpack.i.bf16 %v9500_v1, %v9497_v30  ;;  %v7750_v37 = vpack.i.bf16 %v9508_v31, %v9505_v32  ;;  %17949 = vst [vmem:[#allocation13_spill] sm:$0xff] %v9519_v41  ;;  %17950 = vst [vmem:[#allocation14_spill] sm:$0xff] %v9524_v27 }
  0x90   :  { %v7524_v26 = vunpack.i.h.bf16 %v7522_v8  ;;  %v7523_v9 = vunpack.i.l.bf16 %v7522_v8  ;;  %v7529_v7 = vunpack.i.h.bf16 %v7527_v63  ;;  %v7528_v35 = vunpack.i.l.bf16 %v7527_v63 }
  0x91   :  { %7741 = vrot.lane.b32.xlu0 %v7740_v15, %s8804_s1  ;;  %7736 = vrot.lane.b32.xlu1 %v7740_v15, %s8803_s21 }
  0x92   :  { %v1898_v38 = vsel %vm1884_vm2, %v8959_v57, %v7524_v26  ;;  %v1897_v57 = vsel %vm1884_vm2, %v8925_v36, %v7523_v9  ;;  %v1900_v8 = vsel %vm1884_vm2, %v8969_v59, %v7529_v7  ;;  %v1899_v63 = vsel %vm1884_vm2, %v8964_v58, %v7528_v35 }
  0x93   :  { %v7532_v0 = vpop.permute.xlu0 %7531  ;;  %v7537_v39 = vpop.permute.xlu1 %7536  ;;  %v1164_v36 = vrot.slane %v9524_v27, 1 }
  0x94   :  { %v7534_v21 = vunpack.i.h.bf16 %v7532_v0  ;;  %v7533_v45 = vunpack.i.l.bf16 %v7532_v0  ;;  %v7539_v6 = vunpack.i.h.bf16 %v7537_v39  ;;  %v7538_v54 = vunpack.i.l.bf16 %v7537_v39 }
  0x95   :  { %7751 = vrot.lane.b32.xlu0 %v7750_v37, %s8803_s21  ;;  %7746 = vrot.lane.b32.xlu1 %v7750_v37, %s8804_s1  ;;  %v1163_v0 = vrot.slane %v9519_v41, 1 }
  0x96   :  { %v9535_v15 = vsel %vm1949_vm3, %v1897_v57, %v7533_v45  ;;  %v9538_v26 = vsel %vm1949_vm3, %v1898_v38, %v7534_v21  ;;  %v9545_v7 = vsel %vm1949_vm3, %v1899_v63, %v7538_v54  ;;  %v9548_v35 = vsel %vm1949_vm3, %v1900_v8, %v7539_v6  ;;  %v9553_v38 = vld [vmem:[%s17238_s0 + $0x198] sm:$0xff]  ;;  %v9568_v63 = vld [vmem:[%s17238_s0 + $0x1a0] sm:$0xff] }
  0x97   :  { %17951 = vst [vmem:[#allocation15_spill] sm:$0xff] %v9535_v15  ;;  %17952 = vst [vmem:[#allocation16_spill] sm:$0xff] %v9538_v26  ;;  %v7542_v9 = vpop.permute.xlu0 %7541  ;;  %v7547_v39 = vpop.permute.xlu1 %7546  ;;  %v7760_v59 = vpack.i.bf16 %v9538_v26, %v9535_v15  ;;  %v1192_v57 = vsel %vm17274_vm0, %v1163_v0, %v1164_v36  ;;  %v1193_v6 = vsel %vm17274_vm0, %v1162_v4, %v1163_v0  ;;  %v1292_v54 = vrot.slane %v9519_v41, 2 }
  0x98   :  { %v7544_v58 = vunpack.i.h.bf16 %v7542_v9  ;;  %17953 = vst [vmem:[#allocation17_spill] sm:$0xff] %v9545_v7  ;;  %v7543_v37 = vunpack.i.l.bf16 %v7542_v9  ;;  %v7549_v21 = vunpack.i.h.bf16 %v7547_v39  ;;  %v7548_v45 = vunpack.i.l.bf16 %v7547_v39 }
  0x99   :  { %7761 = vrot.lane.b32.xlu0 %v7760_v59, %s8804_s1  ;;  %7756 = vrot.lane.b32.xlu1 %v7760_v59, %s8803_s21  ;;  %v1293_v8 = vrot.slane %v9524_v27, 2  ;;  %v7770_v44 = vpack.i.bf16 %v9548_v35, %v9545_v7  ;;  %v1165_v2 = vrot.slane %v9553_v38, 1 }
  0x9a   :  { %v1902_v9 = vsel %vm1884_vm2, %v8994_v19, %v7544_v58  ;;  %v1901_v27 = vsel %vm1884_vm2, %v8974_v60, %v7543_v37  ;;  %v1904_v26 = vsel %vm1884_vm2, %v9011_v25, %v7549_v21  ;;  %v1903_v19 = vsel %vm1884_vm2, %v8999_v20, %v7548_v45 }
  0x9b   :  { %v7552_v39 = vpop.permute.xlu0 %7551  ;;  %v7557_v59 = vpop.permute.xlu1 %7556  ;;  %v1166_v58 = vrot.slane %v9568_v63, 1  ;;  %v7790_v25 = vpack.i.bf16 %v1192_v57, %v1193_v6 }
  0x9c   :  { %v7554_v4 = vunpack.i.h.bf16 %v7552_v39  ;;  %v7553_v0 = vunpack.i.l.bf16 %v7552_v39  ;;  %v7559_v41 = vunpack.i.h.bf16 %v7557_v59  ;;  %v7558_v15 = vunpack.i.l.bf16 %v7557_v59 }
  0x9d   :  { %7771 = vrot.lane.b32.xlu0 %v7770_v44, %s8803_s21  ;;  %7766 = vrot.lane.b32.xlu1 %v7770_v44, %s8804_s1  ;;  %v1321_v44 = vsel %vm17273_vm1, %v1292_v54, %v1293_v8  ;;  %v1190_v57 = vsel %vm17274_vm0, %v1165_v2, %v1166_v58 }
  0x9e   :  { %v9585_v7 = vsel %vm1949_vm3, %v1901_v27, %v7553_v0  ;;  %v9588_v39 = vsel %vm1949_vm3, %v1902_v9, %v7554_v4  ;;  %v9593_v20 = vsel %vm1949_vm3, %v1903_v19, %v7558_v15  ;;  %v9596_v45 = vsel %vm1949_vm3, %v1904_v26, %v7559_v41 }
  0x9f   :  { %17954 = vst [vmem:[#allocation18_spill] sm:$0xff] %v9585_v7  ;;  %v7780_v60 = vpack.i.bf16 %v9588_v39, %v9585_v7  ;;  %v7562_v37 = vpop.permute.xlu0 %7561  ;;  %v7567_v21 = vpop.permute.xlu1 %7566  ;;  %17955 = vst [vmem:[#allocation19_spill] sm:$0xff] %v9593_v20  ;;  %v17957_v27 = vrot.slane %v9390_v42, 2  ;;  %v1191_v15 = vsel %vm17274_vm0, %v1164_v36, %v1165_v2  ;;  %v1294_v41 = vrot.slane %v9553_v38, 2 }
  0xa0   :  { %17956 = vst [vmem:[#allocation20_spill] sm:$0xff] %v9596_v45  ;;  %v1295_v26 = vrot.slane %v9568_v63, 2  ;;  %v7785_v42 = vpack.i.bf16 %v9596_v45, %v9593_v20  ;;  %v7795_v4 = vpack.i.bf16 %v1190_v57, %v1191_v15  ;;  %v7564_v0 = vunpack.i.h.bf16 %v7562_v37 }
  0xa1   :  { %v1322_v9 = vsel %vm17273_vm1, %v17957_v27, %v1292_v54  ;;  %7781 = vrot.lane.b32.xlu0 %v7780_v60, %s8804_s1  ;;  %7776 = vrot.lane.b32.xlu1 %v7780_v60, %s8803_s21  ;;  %v7563_v19 = vunpack.i.l.bf16 %v7562_v37  ;;  %v1320_v36 = vsel %vm17273_vm1, %v1293_v8, %v1294_v41  ;;  %v9625_v60 = vld [vmem:[%s17238_s0 + $0x1a8] sm:$0xff]  ;;  %v9630_v37 = vld [vmem:[%s17238_s0 + $0x1b0] sm:$0xff]  ;;  %v7569_v15 = vunpack.i.h.bf16 %v7567_v21 }
  0xa2   :  { %v7800_v54 = vpack.i.bf16 %v1321_v44, %v1322_v9  ;;  %v1319_v2 = vsel %vm17273_vm1, %v1294_v41, %v1295_v26  ;;  %17958 = vst [vmem:[#allocation21_spill] sm:$0xff] %v9625_v60  ;;  %17959 = vst [vmem:[#allocation22_spill] sm:$0xff] %v9630_v37  ;;  %v1906_v8 = vsel %vm1884_vm2, %v9042_v47, %v7564_v0  ;;  %v7568_v41 = vunpack.i.l.bf16 %v7567_v21 }
  0xa3   :  { %v7572_v6 = vpop.permute.xlu0 %7571  ;;  %v7577_v59 = vpop.permute.xlu1 %7576  ;;  %v7805_v9 = vpack.i.bf16 %v1319_v2, %v1320_v36  ;;  %v1905_v57 = vsel %vm1884_vm2, %v9022_v33, %v7563_v19  ;;  %v1167_v20 = vrot.slane %v9625_v60, 1  ;;  %v1168_v45 = vrot.slane %v9630_v37, 1  ;;  %v9652_v33 = vld [vmem:[%s17238_s0 + $0x1c0] sm:$0xff] }
  0xa4   :  { %v7573_v27 = vunpack.i.l.bf16 %v7572_v6  ;;  %v7579_v21 = vunpack.i.h.bf16 %v7577_v59  ;;  %v1908_v19 = vsel %vm1884_vm2, %v9059_v53, %v7569_v15  ;;  %v1907_v2 = vsel %vm1884_vm2, %v9047_v48, %v7568_v41 }
  0xa5   :  { %7786 = vrot.lane.b32.xlu1 %v7785_v42, %s8804_s1  ;;  %7791 = vrot.lane.b32.xlu0 %v7790_v25, %s8801_s11  ;;  %v7574_v25 = vunpack.i.h.bf16 %v7572_v6  ;;  %v9647_v6 = vld [vmem:[%s17238_s0 + $0x1b8] sm:$0xff]  ;;  %v1296_v36 = vrot.slane %v9625_v60, 2  ;;  %v1170_v53 = vrot.slane %v9652_v33, 1 }
  0xa6   :  { %17960 = vst [vmem:[#allocation23_spill] sm:$0xff] %v9647_v6  ;;  %v9686_v15 = vsel %vm1949_vm3, %v1908_v19, %v7579_v21  ;;  %v1298_v41 = vrot.slane %v9647_v6, 2 }
  0xa7   :  { %v9620_v63 = vpop.permute.xlu0 %7581  ;;  %v9632_v44 = vpop.permute.xlu1 %7586  ;;  %v9660_v0 = vsel %vm1949_vm3, %v1906_v8, %v7574_v25  ;;  %v1189_v25 = vsel %vm17274_vm0, %v1166_v58, %v1167_v20  ;;  %v1169_v8 = vrot.slane %v9647_v6, 1  ;;  %17964 = vst [vmem:[#allocation27_spill] sm:$0xff] %v9686_v15 }
  0xa8   :  { %17962 = vst [vmem:[#allocation25_spill] sm:$0xff] %v9660_v0 }
  0xa9   :  { %7801 = vrot.lane.b32.xlu0 %v7800_v54, %s8802_s12  ;;  %7796 = vrot.lane.b32.xlu1 %v7795_v4, %s8801_s11  ;;  %v7578_v54 = vunpack.i.l.bf16 %v7577_v59  ;;  %v9657_v4 = vsel %vm1949_vm3, %v1905_v57, %v7573_v27  ;;  %v1297_v59 = vrot.slane %v9630_v37, 2  ;;  %v1188_v27 = vsel %vm17274_vm0, %v1167_v20, %v1168_v45 }
  0xaa   :  { %17961 = vst [vmem:[#allocation24_spill] sm:$0xff] %v9657_v4  ;;  %v7820_v48 = vpack.i.bf16 %v9660_v0, %v9657_v4  ;;  %v7830_v58 = vpack.i.bf16 %v1188_v27, %v1189_v25  ;;  %v1318_v4 = vsel %vm17273_vm1, %v1295_v26, %v1296_v36  ;;  %v17265_v0 = vrot.slane %v9652_v33, 2 }
  0xab   :  { %v9642_v7 = vpop.permute.xlu0 %7591  ;;  %v9654_v47 = vpop.permute.xlu1 %7596  ;;  %v9683_v57 = vsel %vm1949_vm3, %v1907_v2, %v7578_v54  ;;  %v1317_v20 = vsel %vm17273_vm1, %v1296_v36, %v1297_v59  ;;  %v1186_v54 = vsel %vm17274_vm0, %v1169_v8, %v1170_v53  ;;  %v1187_v21 = vsel %vm17274_vm0, %v1168_v45, %v1169_v8  ;;  %v9705_v2 = vld [vmem:[%s17238_s0 + $0x1c8] sm:$0xff] }
  0xac   :  { %17963 = vst [vmem:[#allocation26_spill] sm:$0xff] %v9683_v57  ;;  %v7825_v19 = vpack.i.bf16 %v9686_v15, %v9683_v57  ;;  %17965 = vst [vmem:[#allocation28_spill] sm:$0xff] %v9705_v2  ;;  %v7840_v25 = vpack.i.bf16 %v1317_v20, %v1318_v4  ;;  %v1316_v26 = vsel %vm17273_vm1, %v1297_v59, %v1298_v41  ;;  %v7583_v45 = vunpack.i.l.bf16 %v9620_v63  ;;  %v9725_v59 = vld [vmem:[%s17238_s0 + $0x1d0] sm:$0xff] }
  0xad   :  { %7811 = vrot.lane.b32.xlu0 %v7785_v42, %s8803_s21  ;;  %7806 = vrot.lane.b32.xlu1 %v7805_v9, %s8802_s12  ;;  %v7835_v8 = vpack.i.bf16 %v1186_v54, %v1187_v21  ;;  %v1315_v57 = vsel %vm17273_vm1, %v1298_v41, %v17265_v0  ;;  %v1171_v4 = vrot.slane %v9705_v2, 1  ;;  %17966 = vst [vmem:[#allocation29_spill] sm:$0xff] %v9725_v59  ;;  %v7593_v15 = vunpack.i.l.bf16 %v9642_v7 }
  0xae   :  { %v1909_v41 = vsel %vm1884_vm2, %v9070_v62, %v7583_v45  ;;  %v7589_v21 = vunpack.i.h.bf16 %v9632_v44  ;;  %v7588_v0 = vunpack.i.l.bf16 %v9632_v44  ;;  %v1172_v37 = vrot.slane %v9725_v59, 1  ;;  %v9751_v44 = vld [vmem:[%s17238_s0 + $0x1e0] sm:$0xff] }
  0xaf   :  { %v9678_v42 = vpop.permute.xlu0 %7601  ;;  %v9680_v9 = vpop.permute.xlu1 %7606  ;;  %v1300_v62 = vrot.slane %v9705_v2, 2  ;;  %v7599_v45 = vunpack.i.h.bf16 %v9654_v47 }
  0xb0   :  { %v1912_v2 = vsel %vm1884_vm2, %v9107_v34, %v7589_v21  ;;  %v1911_v60 = vsel %vm1884_vm2, %v9095_v24, %v7588_v0 }
  0xb1   :  { %7821 = vrot.lane.b32.xlu0 %v7820_v48, %s8804_s1  ;;  %7816 = vrot.lane.b32.xlu1 %v7820_v48, %s8803_s21  ;;  %v7584_v48 = vunpack.i.h.bf16 %v9620_v63  ;;  %v7594_v63 = vunpack.i.h.bf16 %v9642_v7  ;;  %v1185_v7 = vsel %vm17274_vm0, %v1170_v53, %v1171_v4  ;;  %v7598_v53 = vunpack.i.l.bf16 %v9654_v47 }
  0xb3   :  { %v9707_v27 = vpop.permute.xlu0 %7611  ;;  %v9711_v36 = vpop.permute.xlu1 %7616  ;;  %v1910_v54 = vsel %vm1884_vm2, %v9090_v23, %v7584_v48  ;;  %v9745_v23 = vld [vmem:[%s17238_s0 + $0x1d8] sm:$0xff] }
  0xb4   :  { %v9761_v6 = vsel %vm1949_vm3, %v1910_v54, %v7594_v63  ;;  %v1173_v47 = vrot.slane %v9745_v23, 1  ;;  %v1174_v63 = vrot.slane %v9751_v44, 1  ;;  %v1302_v54 = vrot.slane %v9745_v23, 2 }
  0xb5   :  { %7826 = vrot.lane.b32.xlu1 %v7825_v19, %s8804_s1  ;;  %7831 = vrot.lane.b32.xlu0 %v7830_v58, %s8801_s11  ;;  %v7845_v58 = vpack.i.bf16 %v1315_v57, %v1316_v26 }
  0xb7   :  { %v9727_v20 = vpop.permute.xlu0 %7621  ;;  %v7627_v57 = vpop.permute.xlu1 %7626 }
  0xb8   :  { %v7628_v26 = vunpack.i.l.bf16 %v7627_v57 }
  0xb9   :  { %7841 = vrot.lane.b32.xlu0 %v7840_v25, %s8802_s12  ;;  %7836 = vrot.lane.b32.xlu1 %v7835_v8, %s8801_s11  ;;  %v7629_v25 = vunpack.i.h.bf16 %v7627_v57  ;;  %v9758_v8 = vsel %vm1949_vm3, %v1909_v41, %v7593_v15  ;;  %v1301_v57 = vrot.slane %v9725_v59, 2  ;;  %v1184_v15 = vsel %vm17274_vm0, %v1171_v4, %v1172_v37 }
  0xba   :  { %v7860_v24 = vpack.i.bf16 %v9761_v6, %v9758_v8  ;;  %v9783_v41 = vsel %vm1949_vm3, %v1911_v60, %v7598_v53  ;;  %v9786_v4 = vsel %vm1949_vm3, %v1912_v2, %v7599_v45  ;;  %v7870_v34 = vpack.i.bf16 %v1184_v15, %v1185_v7 }
  0xbb   :  { %v9753_v48 = vpop.permute.xlu0 %7631  ;;  %v1886_v0 = vsel %vm1884_vm2, %v9204_v52, %v7629_v25  ;;  %17967 = vst [vmem:[#allocation30_spill] sm:$0xff] %v9783_v41  ;;  %v1313_v52 = vsel %vm17273_vm1, %v1300_v62, %v1301_v57  ;;  %v17968_v25 = vrot.slane %v9652_v33, 2  ;;  %v1182_v60 = vsel %vm17274_vm0, %v1173_v47, %v1174_v63 }
  0xbc   :  { %v1183_v2 = vsel %vm17274_vm0, %v1172_v37, %v1173_v47  ;;  %v7865_v7 = vpack.i.bf16 %v9786_v4, %v9783_v41  ;;  %v9819_v37 = vld [vmem:[%s17238_s0 + $0x1e8] sm:$0xff]  ;;  %v7604_v47 = vunpack.i.h.bf16 %v9678_v42 }
  0xbd   :  { %7851 = vrot.lane.b32.xlu0 %v7825_v19, %s8803_s21  ;;  %7846 = vrot.lane.b32.xlu1 %v7845_v58, %s8802_s12  ;;  %v1885_v19 = vsel %vm1884_vm2, %v9199_v55, %v7628_v26  ;;  %v1314_v26 = vsel %vm17273_vm1, %v17968_v25, %v1300_v62 }
  0xbe   :  { %v7880_v62 = vpack.i.bf16 %v1313_v52, %v1314_v26  ;;  %v1175_v52 = vrot.slane %v9819_v37, 1  ;;  %v7614_v26 = vunpack.i.h.bf16 %v9707_v27 }
  0xbf   :  { %v7642_v58 = vpop.permute.xlu0 %7641 }
  0xc0   :  { %v7644_v21 = vunpack.i.h.bf16 %v7642_v58  ;;  %v7643_v59 = vunpack.i.l.bf16 %v7642_v58 }
  0xc1   :  { %7861 = vrot.lane.b32.xlu0 %v7860_v24, %s8804_s1  ;;  %7856 = vrot.lane.b32.xlu1 %v7860_v24, %s8803_s21  ;;  %v17970_v24 = vrot.slane %v9751_v44, 2 }
  0xc2   :  { %v9801_v45 = vsel %vm1949_vm3, %v1885_v19, %v7643_v59  ;;  %v9804_v53 = vsel %vm1949_vm3, %v1886_v0, %v7644_v21  ;;  %v9824_v59 = vld [vmem:[%s17238_s0 + $0x1f0] sm:$0xff]  ;;  %v7603_v0 = vunpack.i.l.bf16 %v9678_v42  ;;  %v7875_v19 = vpack.i.bf16 %v1182_v60, %v1183_v2 }
  0xc3   :  { %v9810_v15 = vpack.i.bf16 %v9804_v53, %v9801_v45  ;;  %v1311_v58 = vsel %vm17273_vm1, %v1302_v54, %v17970_v24  ;;  %v1312_v21 = vsel %vm17273_vm1, %v1301_v57, %v1302_v54  ;;  %v1176_v25 = vrot.slane %v9824_v59, 1  ;;  %v7637_v57 = vpop.permute.xlu1 %7636 }
  0xc4   :  { %v7613_v24 = vunpack.i.l.bf16 %v9707_v27  ;;  %v1914_v42 = vsel %vm1884_vm2, %v9151_v13, %v7604_v47  ;;  %v1913_v41 = vsel %vm1884_vm2, %v9118_v40, %v7603_v0  ;;  %v7608_v60 = vunpack.i.l.bf16 %v9680_v9  ;;  %v9847_v27 = vld [vmem:[%s17238_s0 + $0x1f8] sm:$0xff] }
  0xc5   :  { %17969 = vst [vmem:[#allocation31_spill] sm:$0xff] %v9810_v15  ;;  %7866 = vrot.lane.b32.xlu1 %v7865_v7, %s8804_s1  ;;  %7871 = vrot.lane.b32.xlu0 %v7870_v34, %s8801_s11  ;;  %v7885_v15 = vpack.i.bf16 %v1311_v58, %v1312_v21  ;;  %v7609_v34 = vunpack.i.h.bf16 %v9680_v9  ;;  %v1180_v13 = vsel %vm17274_vm0, %v1175_v52, %v1176_v25  ;;  %v1304_v54 = vrot.slane %v9819_v37, 2 }
  0xc6   :  { %v1305_v40 = vrot.slane %v9824_v59, 2  ;;  %v7619_v2 = vunpack.i.h.bf16 %v9711_v36  ;;  %v7618_v9 = vunpack.i.l.bf16 %v9711_v36  ;;  %v9859_v58 = vsel %vm1949_vm3, %v1914_v42, %v7614_v26  ;;  %v7652_v26 = vpop.permute.xlu0 %7651 }
  0xc7   :  { %v1916_v47 = vsel %vm1884_vm2, %v9161_v17, %v7609_v34  ;;  %v1915_v0 = vsel %vm1884_vm2, %v9156_v16, %v7608_v60  ;;  %v1177_v36 = vrot.slane %v9847_v27, 1  ;;  %v7647_v21 = vpop.permute.xlu1 %7646  ;;  %v17972_v42 = vrot.slane %v9199_v55, 1 }
  0xc8   :  { %v9876_v17 = vsel %vm1949_vm3, %v1916_v47, %v7619_v2  ;;  %v1306_v60 = vrot.slane %v9847_v27, 2 }
  0xc9   :  { %7881 = vrot.lane.b32.xlu0 %v7880_v62, %s8802_s12  ;;  %7876 = vrot.lane.b32.xlu1 %v7875_v19, %s8801_s11  ;;  %v9856_v62 = vsel %vm1949_vm3, %v1913_v41, %v7613_v24  ;;  %v1181_v19 = vsel %vm17274_vm0, %v1174_v63, %v1175_v52  ;;  %v9873_v24 = vsel %vm1949_vm3, %v1915_v0, %v7618_v9  ;;  %v17971_v63 = vrot.slane %v9751_v44, 2 }
  0xca   :  { %v7900_v41 = vpack.i.bf16 %v9859_v58, %v9856_v62  ;;  %v7910_v16 = vpack.i.bf16 %v1180_v13, %v1181_v19  ;;  %v1179_v52 = vsel %vm17274_vm0, %v1176_v25, %v1177_v36  ;;  %v1242_v34 = vsel %vm17274_vm0, %v1177_v36, %v17972_v42 }
  0xcb   :  { %v7905_v13 = vpack.i.bf16 %v9876_v17, %v9873_v24  ;;  %v7657_v2 = vpop.permute.xlu1 %7656  ;;  %v7915_v47 = vpack.i.bf16 %v1242_v34, %v1179_v52  ;;  %v7624_v0 = vunpack.i.h.bf16 %v9727_v20  ;;  %v1308_v25 = vsel %vm17273_vm1, %v1305_v40, %v1306_v60 }
  0xcc   :  { %v17973_v19 = vrot.slane %v9199_v55, 2  ;;  %v7633_v42 = vunpack.i.l.bf16 %v9753_v48  ;;  %v7649_v34 = vunpack.i.h.bf16 %v7647_v21 }
  0xcd   :  { %7891 = vrot.lane.b32.xlu0 %v7865_v7, %s8803_s21  ;;  %7886 = vrot.lane.b32.xlu1 %v7885_v15, %s8802_s12  ;;  %v1309_v7 = vsel %vm17273_vm1, %v1304_v54, %v1305_v40  ;;  %v1310_v15 = vsel %vm17273_vm1, %v17971_v63, %v1304_v54  ;;  %v7623_v54 = vunpack.i.l.bf16 %v9727_v20  ;;  %v7639_v63 = vunpack.i.h.bf16 %v7637_v57 }
  0xce   :  { %v7920_v9 = vpack.i.bf16 %v1309_v7, %v1310_v15  ;;  %v1371_v36 = vsel %vm17273_vm1, %v1306_v60, %v17973_v19  ;;  %v7638_v7 = vunpack.i.l.bf16 %v7637_v57  ;;  %v1918_v52 = vsel %vm1884_vm2, %v9209_v56, %v7624_v0 }
  0xcf   :  { %v7925_v15 = vpack.i.bf16 %v1371_v36, %v1308_v25  ;;  %v1917_v20 = vsel %vm1884_vm2, %v9166_v18, %v7623_v54  ;;  %v7667_v55 = vpop.permute.xlu1 %7666  ;;  %v7648_v60 = vunpack.i.l.bf16 %v7647_v21  ;;  %v9917_v56 = vsel %vm1949_vm3, %v1918_v52, %v7639_v63 }
  0xd0   :  { %v9914_v57 = vsel %vm1949_vm3, %v1917_v20, %v7638_v7  ;;  %v7654_v0 = vunpack.i.h.bf16 %v7652_v26  ;;  %v7658_v36 = vunpack.i.l.bf16 %v7657_v2  ;;  %v7668_v52 = vunpack.i.l.bf16 %v7667_v55 }
  0xd1   :  { %7901 = vrot.lane.b32.xlu0 %v7900_v41, %s8804_s1  ;;  %7896 = vrot.lane.b32.xlu1 %v7900_v41, %s8803_s21  ;;  %v7662_v41 = vpop.permute.xlu0 %7661  ;;  %v7940_v21 = vpack.i.bf16 %v9917_v56, %v9914_v57 }
  0xd2   :  { %v7664_v54 = vunpack.i.h.bf16 %v7662_v41  ;;  %v7663_v25 = vunpack.i.l.bf16 %v7662_v41 }
  0xd5   :  { %7906 = vrot.lane.b32.xlu1 %v7905_v13, %s8804_s1  ;;  %7911 = vrot.lane.b32.xlu0 %v7910_v16, %s8801_s11  ;;  %v7634_v16 = vunpack.i.h.bf16 %v9753_v48  ;;  %v7672_v40 = vpop.permute.xlu0 %7671  ;;  %v1919_v48 = vsel %vm1884_vm2, %v9214_v61, %v7633_v42  ;;  %v1922_v61 = vsel %vm1884_vm2, %v9269_v5, %v7654_v0  ;;  %v7669_v5 = vunpack.i.h.bf16 %v7667_v55 }
  0xd6   :  { %v9928_v19 = vsel %vm1949_vm3, %v1919_v48, %v7648_v60  ;;  %v7673_v42 = vunpack.i.l.bf16 %v7672_v40 }
  0xd7   :  { %v1920_v18 = vsel %vm1884_vm2, %v9233_v28, %v7634_v16  ;;  %v7674_v16 = vunpack.i.h.bf16 %v7672_v40 }
  0xd8   :  { %v9931_v28 = vsel %vm1949_vm3, %v1920_v18, %v7649_v34 }
  0xd9   :  { %7921 = vrot.lane.b32.xlu0 %v7920_v9, %s8802_s12  ;;  %7916 = vrot.lane.b32.xlu1 %v7915_v47, %s8801_s11  ;;  %v7653_v9 = vunpack.i.l.bf16 %v7652_v26  ;;  %v7677_v47 = vpop.permute.xlu1 %7676  ;;  %v7682_v63 = vpop.permute.xlu0 %7681  ;;  %v7950_v41 = vpack.i.bf16 %v9931_v28, %v9928_v19 }
  0xda   :  { %v7683_v0 = vunpack.i.l.bf16 %v7682_v63 }
  0xdb   :  { %v1921_v26 = vsel %vm1884_vm2, %v9238_v29, %v7653_v9  ;;  %v17975_v9 = vld [vmem:[#allocation8_spill] sm:$0xff] }
  0xdc   :  { %v9942_v7 = vsel %vm1949_vm3, %v1921_v26, %v7663_v25  ;;  %v1926_v40 = vsel %vm1884_vm2, %v17975_v9, %v7674_v16  ;;  %v7679_v25 = vunpack.i.h.bf16 %v7677_v47 }
  0xdd   :  { %7931 = vrot.lane.b32.xlu0 %v7905_v13, %s8803_s21  ;;  %7926 = vrot.lane.b32.xlu1 %v7925_v15, %s8802_s12  ;;  %v7659_v13 = vunpack.i.h.bf16 %v7657_v2  ;;  %v9945_v15 = vsel %vm1949_vm3, %v1922_v61, %v7664_v54  ;;  %v17974_v2 = vld [vmem:[#allocation6_spill] sm:$0xff]  ;;  %v7687_v34 = vpop.permute.xlu1 %7686  ;;  %v7692_v18 = vpop.permute.xlu0 %7691  ;;  %v7678_v61 = vunpack.i.l.bf16 %v7677_v47  ;;  %v17978_v47 = vld [vmem:[#allocation9_spill] sm:$0xff] }
  0xde   :  { %v1923_v20 = vsel %vm1884_vm2, %v17974_v2, %v7658_v36  ;;  %v7960_v60 = vpack.i.bf16 %v9945_v15, %v9942_v7  ;;  %v7693_v16 = vunpack.i.l.bf16 %v7692_v18 }
  0xdf   :  { %v1924_v29 = vsel %vm1884_vm2, %v9285_v12, %v7659_v13  ;;  %v9956_v48 = vsel %vm1949_vm3, %v1923_v20, %v7668_v52  ;;  %v7684_v12 = vunpack.i.h.bf16 %v7682_v63  ;;  %v17977_v52 = vld [vmem:[#allocation10_spill] sm:$0xff]  ;;  %v1927_v2 = vsel %vm1884_vm2, %v17978_v47, %v7678_v61 }
  0xe0   :  { %v9959_v55 = vsel %vm1949_vm3, %v1924_v29, %v7669_v5  ;;  %v7688_v5 = vunpack.i.l.bf16 %v7687_v34  ;;  %v1928_v29 = vsel %vm1884_vm2, %v17977_v52, %v7679_v25  ;;  %v7694_v20 = vunpack.i.h.bf16 %v7692_v18  ;;  %v17979_v18 = vld [vmem:[#allocation11_spill] sm:$0xff] }
  0xe1   :  { %7941 = vrot.lane.b32.xlu0 %v7940_v21, %s8804_s1  ;;  %7936 = vrot.lane.b32.xlu1 %v7940_v21, %s8803_s21  ;;  %v17976_v21 = vld [vmem:[#allocation7_spill] sm:$0xff]  ;;  %v7970_v26 = vpack.i.bf16 %v9959_v55, %v9956_v48  ;;  %v7697_v13 = vpop.permute.xlu1 %7696  ;;  %v9973_v63 = vsel %vm1949_vm3, %v1926_v40, %v7684_v12 }
  0xe2   :  { %v1925_v54 = vsel %vm1884_vm2, %v17976_v21, %v7673_v42  ;;  %v7702_v42 = vpop.permute.xlu0 %7701  ;;  %v9984_v12 = vsel %vm1949_vm3, %v1927_v2, %v7688_v5  ;;  %v1930_v40 = vsel %vm1884_vm2, %v9369_v49, %v7694_v20  ;;  %v1929_v21 = vsel %vm1884_vm2, %v17979_v18, %v7693_v16 }
  0xe3   :  { %v9970_v36 = vsel %vm1949_vm3, %v1925_v54, %v7683_v0  ;;  %v7704_v0 = vunpack.i.h.bf16 %v7702_v42  ;;  %v7703_v9 = vunpack.i.l.bf16 %v7702_v42  ;;  %v7699_v54 = vunpack.i.h.bf16 %v7697_v13 }
  0xe4   :  { %v7698_v25 = vunpack.i.l.bf16 %v7697_v13 }
  0xe5   :  { %7951 = vrot.lane.b32.xlu0 %v7950_v41, %s8803_s21  ;;  %7946 = vrot.lane.b32.xlu1 %v7950_v41, %s8804_s1  ;;  %v7689_v41 = vunpack.i.h.bf16 %v7687_v34  ;;  %v7707_v61 = vpop.permute.xlu1 %7706  ;;  %v10001_v5 = vsel %vm1949_vm3, %v1930_v40, %v7704_v0 }
  0xe6   :  { %v7709_v49 = vunpack.i.h.bf16 %v7707_v61  ;;  %v7708_v52 = vunpack.i.l.bf16 %v7707_v61  ;;  %v1931_v13 = vsel %vm1884_vm2, %v9380_v51, %v7698_v25 }
  0xe7   :  { %v9987_v34 = vsel %vm1949_vm3, %v1928_v29, %v7689_v41  ;;  %v9998_v41 = vsel %vm1949_vm3, %v1929_v21, %v7703_v9  ;;  %v1932_v29 = vsel %vm1884_vm2, %v9385_v46, %v7699_v54 }
  0xe8   :  { %v8000_v2 = vpack.i.bf16 %v10001_v5, %v9998_v41  ;;  %v10012_v20 = vsel %vm1949_vm3, %v1931_v13, %v7708_v52  ;;  %v10015_v16 = vsel %vm1949_vm3, %v1932_v29, %v7709_v49 }
  0xe9   :  { %7961 = vrot.lane.b32.xlu0 %v7960_v60, %s8804_s1  ;;  %7956 = vrot.lane.b32.xlu1 %v7960_v60, %s8803_s21  ;;  %v7980_v60 = vpack.i.bf16 %v9973_v63, %v9970_v36  ;;  %v8010_v0 = vpack.i.bf16 %v10015_v16, %v10012_v20 }
  0xed   :  { %7971 = vrot.lane.b32.xlu0 %v7970_v26, %s8803_s21  ;;  %7966 = vrot.lane.b32.xlu1 %v7970_v26, %s8804_s1  ;;  %v7990_v26 = vpack.i.bf16 %v9987_v34, %v9984_v12 }
  0xf1   :  { %7981 = vrot.lane.b32.xlu0 %v7980_v60, %s8804_s1  ;;  %7976 = vrot.lane.b32.xlu1 %v7980_v60, %s8803_s21 }
  0xf5   :  { %7991 = vrot.lane.b32.xlu0 %v7990_v26, %s8803_s21  ;;  %7986 = vrot.lane.b32.xlu1 %v7990_v26, %s8804_s1  ;;  %v7712_v47 = vpop.permute.xlu0 %7711 }
  0xf6   :  { %v7714_v42 = vunpack.i.h.bf16 %v7712_v47  ;;  %v7713_v60 = vunpack.i.l.bf16 %v7712_v47 }
  0xf8   :  { %v2463_v54 = vsel %vm2462_vm4, %v9801_v45, %v7713_v60  ;;  %v2464_v25 = vsel %vm2462_vm4, %v9804_v53, %v7714_v42 }
  0xf9   :  { %8001 = vrot.lane.b32.xlu0 %v8000_v2, %s8804_s1  ;;  %7996 = vrot.lane.b32.xlu1 %v8000_v2, %s8803_s21 }
  0xfb   :  { %v7722_v51 = vpop.permute.xlu0 %7721  ;;  %v7717_v46 = vpop.permute.xlu1 %7716 }
  0xfc   :  { %v7724_v9 = vunpack.i.h.bf16 %v7722_v51  ;;  %v7723_v40 = vunpack.i.l.bf16 %v7722_v51  ;;  %v7719_v18 = vunpack.i.h.bf16 %v7717_v46  ;;  %v7718_v21 = vunpack.i.l.bf16 %v7717_v46 }
  0xfd   :  { %8011 = vrot.lane.b32.xlu0 %v8010_v0, %s8803_s21  ;;  %8006 = vrot.lane.b32.xlu1 %v8010_v0, %s8804_s1 }
  0xfe   :  { %v2528_v61 = vsel %vm2527_vm5, %v2463_v54, %v7723_v40  ;;  %v2529_v26 = vsel %vm2527_vm5, %v2464_v25, %v7724_v9  ;;  %v2466_v45 = vsel %vm2462_vm4, %v9449_v50, %v7719_v18  ;;  %v2465_v53 = vsel %vm2462_vm4, %v9446_v22, %v7718_v21 }
  0xff   :  { %v7732_v49 = vpop.permute.xlu0 %7731  ;;  %v7727_v52 = vpop.permute.xlu1 %7726  ;;  %v2593_v29 = vsel %vm2592_vm6, %v2528_v61, 0.0  ;;  %v2594_v13 = vsel %vm2592_vm6, %v2529_v26, 0.0 }
 0x100   :  { %v7734_v47 = vunpack.i.h.bf16 %v7732_v49  ;;  %v7729_v2 = vunpack.i.h.bf16 %v7727_v52  ;;  %v7728_v51 = vunpack.i.l.bf16 %v7727_v52  ;;  %v7733_v42 = vunpack.i.l.bf16 %v7732_v49 }
 0x101   :  { %v2657_v60 = vpack.c.bf16 %v2594_v13, %v2593_v29 }
 0x102   :  { %v2530_v46 = vsel %vm2527_vm5, %v2465_v53, %v7728_v51  ;;  %v2531_v0 = vsel %vm2527_vm5, %v2466_v45, %v7729_v2  ;;  %v2468_v50 = vsel %vm2462_vm4, %v9472_v43, %v7734_v47  ;;  %v2467_v22 = vsel %vm2462_vm4, %v9469_v11, %v7733_v42 }
 0x103   :  { %7297 = vmatprep.mubr.msk.bf16.mxu0 %vm17352_vm7, %v2657_v60  ;;  %v7742_v9 = vpop.permute.xlu0 %7741  ;;  %v7737_v40 = vpop.permute.xlu1 %7736  ;;  %v2595_v54 = vsel %vm2592_vm6, %v2530_v46, 0.0  ;;  %v2596_v25 = vsel %vm2592_vm6, %v2531_v0, 0.0 }
 0x104   :  { %v7744_v18 = vunpack.i.h.bf16 %v7742_v9  ;;  %v7743_v61 = vunpack.i.l.bf16 %v7742_v9  ;;  %v7739_v21 = vunpack.i.h.bf16 %v7737_v40  ;;  %v7738_v26 = vunpack.i.l.bf16 %v7737_v40 }
 0x105   :  { %v2658_v49 = vpack.c.bf16 %v2596_v25, %v2595_v54 }
 0x106   :  { %v2532_v52 = vsel %vm2527_vm5, %v2467_v22, %v7743_v61  ;;  %v2533_v29 = vsel %vm2527_vm5, %v2468_v50, %v7744_v18  ;;  %v2470_v11 = vsel %vm2462_vm4, %v9480_v14, %v7739_v21  ;;  %v2469_v42 = vsel %vm2462_vm4, %v9477_v3, %v7738_v26 }
 0x107   :  { %7298 = vmatmul.mubr.msk.bf16.vlgmr.msra.gmra.mxu0 %vm17352_vm7, %v2658_v49  ;;  %v7752_v13 = vpop.permute.xlu0 %7751  ;;  %v7747_v2 = vpop.permute.xlu1 %7746  ;;  %v2597_v51 = vsel %vm2592_vm6, %v2532_v52, 0.0  ;;  %v2598_v43 = vsel %vm2592_vm6, %v2533_v29, 0.0 }
 0x108   :  { %v7754_v47 = vunpack.i.h.bf16 %v7752_v13  ;;  %v7749_v45 = vunpack.i.h.bf16 %v7747_v2  ;;  %v7748_v53 = vunpack.i.l.bf16 %v7747_v2  ;;  %v7753_v60 = vunpack.i.l.bf16 %v7752_v13 }
 0x109   :  { %v2659_v46 = vpack.c.bf16 %v2598_v43, %v2597_v51 }
 0x10a   :  { %v2534_v0 = vsel %vm2527_vm5, %v2469_v42, %v7748_v53  ;;  %v2535_v9 = vsel %vm2527_vm5, %v2470_v11, %v7749_v45  ;;  %v2472_v14 = vsel %vm2462_vm4, %v9500_v1, %v7754_v47  ;;  %v2471_v3 = vsel %vm2462_vm4, %v9497_v30, %v7753_v60 }
 0x10b   :  { %7301 = vmatprep.mubr.msk.bf16.mxu0 %vm17352_vm7, %v2659_v46  ;;  %v7762_v40 = vpop.permute.xlu0 %7761  ;;  %v7757_v54 = vpop.permute.xlu1 %7756  ;;  %v2599_v25 = vsel %vm2592_vm6, %v2534_v0, 0.0  ;;  %v2600_v50 = vsel %vm2592_vm6, %v2535_v9, 0.0 }
 0x10c   :  { %v7764_v18 = vunpack.i.h.bf16 %v7762_v40  ;;  %v7763_v61 = vunpack.i.l.bf16 %v7762_v40  ;;  %v7759_v22 = vunpack.i.h.bf16 %v7757_v54  ;;  %v7758_v21 = vunpack.i.l.bf16 %v7757_v54  ;;  %v17980_v54 = vld [vmem:[#allocation16_spill] sm:$0xff] }
 0x10d   :  { %v2660_v26 = vpack.c.bf16 %v2600_v50, %v2599_v25 }
 0x10e   :  { %v2536_v49 = vsel %vm2527_vm5, %v2471_v3, %v7763_v61  ;;  %v2537_v52 = vsel %vm2527_vm5, %v2472_v14, %v7764_v18  ;;  %v2474_v30 = vsel %vm2462_vm4, %v9508_v31, %v7759_v22  ;;  %v2473_v45 = vsel %vm2462_vm4, %v9505_v32, %v7758_v21  ;;  %v17981_v32 = vld [vmem:[#allocation15_spill] sm:$0xff] }
 0x10f   :  { %7302 = vmatmul.mubr.msk.bf16.gmra.mxu0 %vm17352_vm7, %v2660_v26  ;;  %v7772_v29 = vpop.permute.xlu0 %7771  ;;  %v7767_v13 = vpop.permute.xlu1 %7766  ;;  %v2601_v2 = vsel %vm2592_vm6, %v2536_v49, 0.0  ;;  %v2602_v1 = vsel %vm2592_vm6, %v2537_v52, 0.0 }
 0x110   :  { %v7774_v51 = vunpack.i.h.bf16 %v7772_v29  ;;  %v7769_v43 = vunpack.i.h.bf16 %v7767_v13  ;;  %v7768_v47 = vunpack.i.l.bf16 %v7767_v13  ;;  %v7773_v53 = vunpack.i.l.bf16 %v7772_v29 }
 0x111   :  { %v2661_v11 = vpack.c.bf16 %v2602_v1, %v2601_v2 }
 0x112   :  { %v2538_v42 = vsel %vm2527_vm5, %v2473_v45, %v7768_v47  ;;  %v2539_v60 = vsel %vm2527_vm5, %v2474_v30, %v7769_v43  ;;  %v2476_v31 = vsel %vm2462_vm4, %v17980_v54, %v7774_v51  ;;  %v2475_v14 = vsel %vm2462_vm4, %v17981_v32, %v7773_v53  ;;  %v17982_v43 = vld [vmem:[#allocation17_spill] sm:$0xff] }
 0x113   :  { %7305 = vmatprep.mubr.msk.bf16.mxu0 %vm17352_vm7, %v2661_v11  ;;  %v7782_v46 = vpop.permute.xlu0 %7781  ;;  %v7777_v0 = vpop.permute.xlu1 %7776  ;;  %v2603_v9 = vsel %vm2592_vm6, %v2538_v42, 0.0  ;;  %v2604_v40 = vsel %vm2592_vm6, %v2539_v60, 0.0 }
 0x114   :  { %v7784_v25 = vunpack.i.h.bf16 %v7782_v46  ;;  %v7783_v50 = vunpack.i.l.bf16 %v7782_v46  ;;  %v7779_v18 = vunpack.i.h.bf16 %v7777_v0  ;;  %v7778_v61 = vunpack.i.l.bf16 %v7777_v0 }
 0x115   :  { %v2662_v3 = vpack.c.bf16 %v2604_v40, %v2603_v9  ;;  %v17983_v9 = vld [vmem:[#allocation13_spill] sm:$0xff] }
 0x116   :  { %v2540_v22 = vsel %vm2527_vm5, %v2475_v14, %v7783_v50  ;;  %v2541_v21 = vsel %vm2527_vm5, %v2476_v31, %v7784_v25  ;;  %v2478_v51 = vsel %vm2462_vm4, %v9548_v35, %v7779_v18  ;;  %v2477_v47 = vsel %vm2462_vm4, %v17982_v43, %v7778_v61  ;;  %v8774_v31 = vld [vmem:[%s17238_s0 + $0x180] sm:$0xff] }
 0x117   :  { %7306 = vmatmul.mubr.msk.bf16.gmra.mxu0 %vm17352_vm7, %v2662_v3  ;;  %v7787_v26 = vpop.permute.xlu1 %7786  ;;  %v7792_v49 = vpop.permute.xlu0 %7791  ;;  %v2605_v52 = vsel %vm2592_vm6, %v2540_v22, 0.0  ;;  %v2606_v29 = vsel %vm2592_vm6, %v2541_v21, 0.0 }
 0x118   :  { %v7789_v13 = vunpack.i.h.bf16 %v7787_v26  ;;  %v7788_v2 = vunpack.i.l.bf16 %v7787_v26  ;;  %v7794_v1 = vunpack.i.h.bf16 %v7792_v49  ;;  %v7793_v30 = vunpack.i.l.bf16 %v7792_v49 }
 0x119   :  { %v2663_v45 = vpack.c.bf16 %v2606_v29, %v2605_v52  ;;  %v17984_v29 = vld [vmem:[#allocation14_spill] sm:$0xff] }
 0x11a   :  { %v2542_v53 = vsel %vm2527_vm5, %v2477_v47, %v7788_v2  ;;  %v2543_v11 = vsel %vm2527_vm5, %v2478_v51, %v7789_v13  ;;  %v1934_v35 = vsel %vm1884_vm2, %v17983_v9, %v7794_v1  ;;  %v1933_v25 = vsel %vm1884_vm2, %v8774_v31, %v7793_v30 }
 0x11b   :  { %7309 = vmatprep.mubr.msk.bf16.mxu0 %vm17352_vm7, %v2663_v45  ;;  %v7802_v42 = vpop.permute.xlu0 %7801  ;;  %v7797_v60 = vpop.permute.xlu1 %7796  ;;  %v2607_v46 = vsel %vm2592_vm6, %v2542_v53, 0.0  ;;  %v2608_v0 = vsel %vm2592_vm6, %v2543_v11, 0.0 }
 0x11c   :  { %v7804_v40 = vunpack.i.h.bf16 %v7802_v42  ;;  %v7803_v54 = vunpack.i.l.bf16 %v7802_v42  ;;  %v7799_v50 = vunpack.i.h.bf16 %v7797_v60  ;;  %v7798_v32 = vunpack.i.l.bf16 %v7797_v60  ;;  %v17985_v42 = vld [vmem:[#allocation18_spill] sm:$0xff] }
 0x11d   :  { %v2664_v14 = vpack.c.bf16 %v2608_v0, %v2607_v46 }
 0x11e   :  { %v10101_v18 = vsel %vm1949_vm3, %v1933_v25, %v7803_v54  ;;  %v10104_v61 = vsel %vm1949_vm3, %v1934_v35, %v7804_v40  ;;  %v1936_v52 = vsel %vm1884_vm2, %v9553_v38, %v7799_v50  ;;  %v1935_v13 = vsel %vm1884_vm2, %v17984_v29, %v7798_v32 }
 0x11f   :  { %7310 = vmatmul.mubr.msk.bf16.gmra.mxu0 %vm17352_vm7, %v2664_v14  ;;  %v7812_v3 = vpop.permute.xlu0 %7811  ;;  %v7807_v22 = vpop.permute.xlu1 %7806  ;;  %v8020_v21 = vpack.i.bf16 %v10104_v61, %v10101_v18  ;;  %v17986_v14 = vld [vmem:[#allocation20_spill] sm:$0xff] }
 0x120   :  { %v7809_v26 = vunpack.i.h.bf16 %v7807_v22  ;;  %v7808_v49 = vunpack.i.l.bf16 %v7807_v22  ;;  %v7814_v2 = vunpack.i.h.bf16 %v7812_v3  ;;  %v7813_v1 = vunpack.i.l.bf16 %v7812_v3  ;;  %v17987_v22 = vld [vmem:[#allocation19_spill] sm:$0xff] }
 0x121   :  { %8021 = vrot.lane.b32.xlu0 %v8020_v21, %s8804_s1  ;;  %8016 = vrot.lane.b32.xlu1 %v8020_v21, %s8803_s21 }
 0x122   :  { %v10116_v51 = vsel %vm1949_vm3, %v1935_v13, %v7808_v49  ;;  %v10119_v43 = vsel %vm1949_vm3, %v1936_v52, %v7809_v26  ;;  %v2480_v11 = vsel %vm2462_vm4, %v9588_v39, %v7814_v2  ;;  %v2479_v60 = vsel %vm2462_vm4, %v17985_v42, %v7813_v1 }
 0x123   :  { %v7822_v47 = vpop.permute.xlu0 %7821  ;;  %v7817_v30 = vpop.permute.xlu1 %7816  ;;  %v8030_v38 = vpack.i.bf16 %v10119_v43, %v10116_v51 }
 0x124   :  { %v7824_v45 = vunpack.i.h.bf16 %v7822_v47  ;;  %v7823_v53 = vunpack.i.l.bf16 %v7822_v47  ;;  %v7819_v46 = vunpack.i.h.bf16 %v7817_v30  ;;  %v7818_v0 = vunpack.i.l.bf16 %v7817_v30  ;;  %v17988_v30 = vld [vmem:[#allocation21_spill] sm:$0xff] }
 0x125   :  { %8031 = vrot.lane.b32.xlu0 %v8030_v38, %s8803_s21  ;;  %8026 = vrot.lane.b32.xlu1 %v8030_v38, %s8804_s1 }
 0x126   :  { %v2544_v9 = vsel %vm2527_vm5, %v2479_v60, %v7823_v53  ;;  %v2545_v35 = vsel %vm2527_vm5, %v2480_v11, %v7824_v45  ;;  %v2482_v3 = vsel %vm2462_vm4, %v17986_v14, %v7819_v46  ;;  %v2481_v21 = vsel %vm2462_vm4, %v17987_v22, %v7818_v0  ;;  %v8775_v11 = vld [vmem:[%s17238_s0 + $0x1a0] sm:$0xff]  ;;  %v17990_v14 = vld [vmem:[#allocation22_spill] sm:$0xff] }
 0x127   :  { %v7827_v40 = vpop.permute.xlu1 %7826  ;;  %v7832_v54 = vpop.permute.xlu0 %7831  ;;  %v2609_v31 = vsel %vm2592_vm6, %v2544_v9, 0.0  ;;  %v2610_v25 = vsel %vm2592_vm6, %v2545_v35, 0.0 }
 0x128   :  { %v7829_v39 = vunpack.i.h.bf16 %v7827_v40  ;;  %v7828_v50 = vunpack.i.l.bf16 %v7827_v40  ;;  %v7834_v32 = vunpack.i.h.bf16 %v7832_v54  ;;  %v7833_v26 = vunpack.i.l.bf16 %v7832_v54 }
 0x129   :  { %v2665_v49 = vpack.c.bf16 %v2610_v25, %v2609_v31 }
 0x12a   :  { %v2546_v52 = vsel %vm2527_vm5, %v2481_v21, %v7828_v50  ;;  %v2547_v29 = vsel %vm2527_vm5, %v2482_v3, %v7829_v39  ;;  %v1938_v38 = vsel %vm1884_vm2, %v17988_v30, %v7834_v32  ;;  %v1937_v42 = vsel %vm1884_vm2, %v8775_v11, %v7833_v26  ;;  %v17989_v50 = vld [vmem:[#allocation23_spill] sm:$0xff] }
 0x12b   :  { %7313 = vmatprep.mubr.msk.bf16.mxu0 %vm17352_vm7, %v2665_v49  ;;  %v7842_v13 = vpop.permute.xlu0 %7841  ;;  %v7837_v2 = vpop.permute.xlu1 %7836  ;;  %v2611_v1 = vsel %vm2592_vm6, %v2546_v52, 0.0  ;;  %v2612_v47 = vsel %vm2592_vm6, %v2547_v29, 0.0 }
 0x12c   :  { %v7844_v45 = vunpack.i.h.bf16 %v7842_v13  ;;  %v7843_v53 = vunpack.i.l.bf16 %v7842_v13  ;;  %v7839_v60 = vunpack.i.h.bf16 %v7837_v2  ;;  %v7838_v46 = vunpack.i.l.bf16 %v7837_v2 }
 0x12d   :  { %v2666_v0 = vpack.c.bf16 %v2612_v47, %v2611_v1  ;;  %v17991_v47 = vld [vmem:[#allocation25_spill] sm:$0xff] }
 0x12e   :  { %v10149_v9 = vsel %vm1949_vm3, %v1937_v42, %v7843_v53  ;;  %v10152_v35 = vsel %vm1949_vm3, %v1938_v38, %v7844_v45  ;;  %v1940_v32 = vsel %vm1884_vm2, %v17989_v50, %v7839_v60  ;;  %v1939_v3 = vsel %vm1884_vm2, %v17990_v14, %v7838_v46  ;;  %v17992_v38 = vld [vmem:[#allocation24_spill] sm:$0xff]  ;;  %v17993_v50 = vld [vmem:[#allocation27_spill] sm:$0xff]  ;;  %v17994_v14 = vld [vmem:[#allocation26_spill] sm:$0xff] }
 0x12f   :  { %7314 = vmatmul.mubr.msk.bf16.gmra.mxu0 %vm17352_vm7, %v2666_v0  ;;  %v7852_v40 = vpop.permute.xlu0 %7851  ;;  %v7847_v54 = vpop.permute.xlu1 %7846  ;;  %v8040_v31 = vpack.i.bf16 %v10152_v35, %v10149_v9 }
 0x130   :  { %v7849_v25 = vunpack.i.h.bf16 %v7847_v54  ;;  %v7848_v39 = vunpack.i.l.bf16 %v7847_v54  ;;  %v7854_v22 = vunpack.i.h.bf16 %v7852_v40  ;;  %v7853_v21 = vunpack.i.l.bf16 %v7852_v40 }
 0x131   :  { %8041 = vrot.lane.b32.xlu0 %v8040_v31, %s8804_s1  ;;  %8036 = vrot.lane.b32.xlu1 %v8040_v31, %s8803_s21 }
 0x132   :  { %v10164_v26 = vsel %vm1949_vm3, %v1939_v3, %v7848_v39  ;;  %v10167_v49 = vsel %vm1949_vm3, %v1940_v32, %v7849_v25  ;;  %v2484_v30 = vsel %vm2462_vm4, %v17991_v47, %v7854_v22  ;;  %v2483_v45 = vsel %vm2462_vm4, %v17992_v38, %v7853_v21 }
 0x133   :  { %v7862_v52 = vpop.permute.xlu0 %7861  ;;  %v7857_v29 = vpop.permute.xlu1 %7856  ;;  %v8050_v13 = vpack.i.bf16 %v10167_v49, %v10164_v26 }
 0x134   :  { %v7864_v2 = vunpack.i.h.bf16 %v7862_v52  ;;  %v7863_v1 = vunpack.i.l.bf16 %v7862_v52  ;;  %v7859_v53 = vunpack.i.h.bf16 %v7857_v29  ;;  %v7858_v11 = vunpack.i.l.bf16 %v7857_v29 }
 0x135   :  { %8051 = vrot.lane.b32.xlu0 %v8050_v13, %s8803_s21  ;;  %8046 = vrot.lane.b32.xlu1 %v8050_v13, %s8804_s1 }
 0x136   :  { %v2548_v42 = vsel %vm2527_vm5, %v2483_v45, %v7863_v1  ;;  %v2549_v60 = vsel %vm2527_vm5, %v2484_v30, %v7864_v2  ;;  %v2486_v32 = vsel %vm2462_vm4, %v17993_v50, %v7859_v53  ;;  %v2485_v3 = vsel %vm2462_vm4, %v17994_v14, %v7858_v11  ;;  %v17995_v30 = vld [vmem:[#allocation28_spill] sm:$0xff] }
 0x137   :  { %v7867_v46 = vpop.permute.xlu1 %7866  ;;  %v7872_v0 = vpop.permute.xlu0 %7871  ;;  %v2613_v40 = vsel %vm2592_vm6, %v2548_v42, 0.0  ;;  %v2614_v54 = vsel %vm2592_vm6, %v2549_v60, 0.0 }
 0x138   :  { %v7869_v31 = vunpack.i.h.bf16 %v7867_v46  ;;  %v7868_v25 = vunpack.i.l.bf16 %v7867_v46  ;;  %v7874_v39 = vunpack.i.h.bf16 %v7872_v0  ;;  %v7873_v22 = vunpack.i.l.bf16 %v7872_v0 }
 0x139   :  { %v2667_v21 = vpack.c.bf16 %v2614_v54, %v2613_v40 }
 0x13a   :  { %v2550_v52 = vsel %vm2527_vm5, %v2485_v3, %v7868_v25  ;;  %v2551_v29 = vsel %vm2527_vm5, %v2486_v32, %v7869_v31  ;;  %v1942_v38 = vsel %vm1884_vm2, %v17995_v30, %v7874_v39  ;;  %v1941_v11 = vsel %vm1884_vm2, %v9652_v33, %v7873_v22  ;;  %v17996_v32 = vld [vmem:[#allocation29_spill] sm:$0xff] }
 0x13b   :  { %7317 = vmatprep.mubr.msk.bf16.mxu0 %vm17352_vm7, %v2667_v21  ;;  %v7882_v13 = vpop.permute.xlu0 %7881  ;;  %v7877_v2 = vpop.permute.xlu1 %7876  ;;  %v2615_v1 = vsel %vm2592_vm6, %v2550_v52, 0.0  ;;  %v2616_v47 = vsel %vm2592_vm6, %v2551_v29, 0.0 }
 0x13c   :  { %v7884_v45 = vunpack.i.h.bf16 %v7882_v13  ;;  %v7883_v53 = vunpack.i.l.bf16 %v7882_v13  ;;  %v7879_v42 = vunpack.i.h.bf16 %v7877_v2  ;;  %v7878_v60 = vunpack.i.l.bf16 %v7877_v2 }
 0x13d   :  { %v2668_v46 = vpack.c.bf16 %v2616_v47, %v2615_v1 }
 0x13e   :  { %v10195_v0 = vsel %vm1949_vm3, %v1941_v11, %v7883_v53  ;;  %v10198_v40 = vsel %vm1949_vm3, %v1942_v38, %v7884_v45  ;;  %v1944_v33 = vsel %vm1884_vm2, %v9745_v23, %v7879_v42  ;;  %v1943_v14 = vsel %vm1884_vm2, %v17996_v32, %v7878_v60 }
 0x13f   :  { %7318 = vmatmul.mubr.msk.bf16.gmra.mxu0 %vm17352_vm7, %v2668_v46  ;;  %v7892_v54 = vpop.permute.xlu0 %7891  ;;  %v7887_v31 = vpop.permute.xlu1 %7886  ;;  %v8060_v25 = vpack.i.bf16 %v10198_v40, %v10195_v0 }
 0x140   :  { %v7889_v39 = vunpack.i.h.bf16 %v7887_v31  ;;  %v7888_v50 = vunpack.i.l.bf16 %v7887_v31  ;;  %v7894_v3 = vunpack.i.h.bf16 %v7892_v54  ;;  %v7893_v22 = vunpack.i.l.bf16 %v7892_v54 }
 0x141   :  { %8061 = vrot.lane.b32.xlu0 %v8060_v25, %s8804_s1  ;;  %8056 = vrot.lane.b32.xlu1 %v8060_v25, %s8803_s21 }
 0x142   :  { %v10210_v21 = vsel %vm1949_vm3, %v1943_v14, %v7888_v50  ;;  %v10213_v52 = vsel %vm1949_vm3, %v1944_v33, %v7889_v39  ;;  %v2488_v47 = vsel %vm2462_vm4, %v9761_v6, %v7894_v3  ;;  %v2487_v30 = vsel %vm2462_vm4, %v9758_v8, %v7893_v22  ;;  %v17997_v39 = vld [vmem:[#allocation30_spill] sm:$0xff] }
 0x143   :  { %v7902_v29 = vpop.permute.xlu0 %7901  ;;  %v7897_v13 = vpop.permute.xlu1 %7896  ;;  %v8070_v23 = vpack.i.bf16 %v10213_v52, %v10210_v21 }
 0x144   :  { %v7904_v2 = vunpack.i.h.bf16 %v7902_v29  ;;  %v7903_v1 = vunpack.i.l.bf16 %v7902_v29  ;;  %v7899_v38 = vunpack.i.h.bf16 %v7897_v13  ;;  %v7898_v45 = vunpack.i.l.bf16 %v7897_v13 }
 0x145   :  { %8071 = vrot.lane.b32.xlu0 %v8070_v23, %s8803_s21  ;;  %8066 = vrot.lane.b32.xlu1 %v8070_v23, %s8804_s1 }
 0x146   :  { %v2552_v53 = vsel %vm2527_vm5, %v2487_v30, %v7903_v1  ;;  %v2553_v11 = vsel %vm2527_vm5, %v2488_v47, %v7904_v2  ;;  %v2490_v8 = vsel %vm2462_vm4, %v9786_v4, %v7899_v38  ;;  %v2489_v50 = vsel %vm2462_vm4, %v17997_v39, %v7898_v45 }
 0x147   :  { %v7907_v42 = vpop.permute.xlu1 %7906  ;;  %v7912_v60 = vpop.permute.xlu0 %7911  ;;  %v2617_v46 = vsel %vm2592_vm6, %v2552_v53, 0.0  ;;  %v2618_v54 = vsel %vm2592_vm6, %v2553_v11, 0.0 }
 0x148   :  { %v7909_v6 = vunpack.i.h.bf16 %v7907_v42  ;;  %v7908_v31 = vunpack.i.l.bf16 %v7907_v42  ;;  %v7914_v25 = vunpack.i.h.bf16 %v7912_v60  ;;  %v7913_v33 = vunpack.i.l.bf16 %v7912_v60 }
 0x149   :  { %v2669_v32 = vpack.c.bf16 %v2618_v54, %v2617_v46 }
 0x14a   :  { %v2554_v14 = vsel %vm2527_vm5, %v2489_v50, %v7908_v31  ;;  %v2555_v3 = vsel %vm2527_vm5, %v2490_v8, %v7909_v6  ;;  %v1946_v4 = vsel %vm1884_vm2, %v9819_v37, %v7914_v25  ;;  %v1945_v47 = vsel %vm1884_vm2, %v9751_v44, %v7913_v33 }
 0x14b   :  { %7321 = vmatprep.mubr.msk.bf16.mxu0 %vm17352_vm7, %v2669_v32  ;;  %v7922_v22 = vpop.permute.xlu0 %7921  ;;  %v7917_v29 = vpop.permute.xlu1 %7916  ;;  %v2619_v13 = vsel %vm2592_vm6, %v2554_v14, 0.0  ;;  %v2620_v23 = vsel %vm2592_vm6, %v2555_v3, 0.0 }
 0x14c   :  { %v7924_v2 = vunpack.i.h.bf16 %v7922_v22  ;;  %v7923_v1 = vunpack.i.l.bf16 %v7922_v22  ;;  %v7919_v30 = vunpack.i.h.bf16 %v7917_v29  ;;  %v7918_v38 = vunpack.i.l.bf16 %v7917_v29 }
 0x14d   :  { %v2670_v45 = vpack.c.bf16 %v2620_v23, %v2619_v13 }
 0x14e   :  { %v10241_v53 = vsel %vm1949_vm3, %v1945_v47, %v7923_v1  ;;  %v10244_v11 = vsel %vm1949_vm3, %v1946_v4, %v7924_v2  ;;  %v1948_v44 = vsel %vm1884_vm2, %v9847_v27, %v7919_v30  ;;  %v1947_v6 = vsel %vm1884_vm2, %v9824_v59, %v7918_v38 }
 0x14f   :  { %7322 = vmatmul.mubr.msk.bf16.gmra.mxu0 %vm17352_vm7, %v2670_v45  ;;  %v7932_v42 = vpop.permute.xlu0 %7931  ;;  %v7927_v60 = vpop.permute.xlu1 %7926  ;;  %v8080_v37 = vpack.i.bf16 %v10244_v11, %v10241_v53 }
 0x150   :  { %v7929_v46 = vunpack.i.h.bf16 %v7927_v60  ;;  %v7928_v54 = vunpack.i.l.bf16 %v7927_v60  ;;  %v7934_v31 = vunpack.i.h.bf16 %v7932_v42  ;;  %v7933_v25 = vunpack.i.l.bf16 %v7932_v42  ;;  %v17998_v60 = vld [vmem:[#allocation31_spill] sm:$0xff] }
 0x151   :  { %8081 = vrot.lane.b32.xlu0 %v8080_v37, %s8804_s1  ;;  %8076 = vrot.lane.b32.xlu1 %v8080_v37, %s8803_s21 }
 0x152   :  { %v10256_v8 = vsel %vm1949_vm3, %v1947_v6, %v7928_v54  ;;  %v10259_v39 = vsel %vm1949_vm3, %v1948_v44, %v7929_v46  ;;  %v2492_v59 = vsel %vm2462_vm4, %v9859_v58, %v7934_v31  ;;  %v2491_v3 = vsel %vm2462_vm4, %v9856_v62, %v7933_v25 }
 0x153   :  { %v7942_v50 = vpop.permute.xlu0 %7941  ;;  %v7937_v33 = vpop.permute.xlu1 %7936  ;;  %v8090_v27 = vpack.i.bf16 %v10259_v39, %v10256_v8 }
 0x154   :  { %v7944_v32 = vunpack.i.h.bf16 %v7942_v50  ;;  %v7943_v14 = vunpack.i.l.bf16 %v7942_v50  ;;  %v7939_v22 = vunpack.i.h.bf16 %v7937_v33  ;;  %v7938_v29 = vunpack.i.l.bf16 %v7937_v33 }
 0x155   :  { %8091 = vrot.lane.b32.xlu0 %v8090_v27, %s8803_s21  ;;  %8086 = vrot.lane.b32.xlu1 %v8090_v27, %s8804_s1 }
 0x156   :  { %v2556_v13 = vsel %vm2527_vm5, %v2491_v3, %v7943_v14  ;;  %v2557_v23 = vsel %vm2527_vm5, %v2492_v59, %v7944_v32  ;;  %v2494_v62 = vsel %vm2462_vm4, %v9876_v17, %v7939_v22  ;;  %v2493_v45 = vsel %vm2462_vm4, %v9873_v24, %v7938_v29  ;;  %v17999_v14 = vld [vmem:[#allocation12_spill] sm:$0xff] }
 0x157   :  { %v7952_v4 = vpop.permute.xlu0 %7951  ;;  %v7947_v2 = vpop.permute.xlu1 %7946  ;;  %v2621_v1 = vsel %vm2592_vm6, %v2556_v13, 0.0  ;;  %v2622_v47 = vsel %vm2592_vm6, %v2557_v23, 0.0 }
 0x158   :  { %v7954_v58 = vunpack.i.h.bf16 %v7952_v4  ;;  %v7949_v30 = vunpack.i.h.bf16 %v7947_v2  ;;  %v7948_v38 = vunpack.i.l.bf16 %v7947_v2  ;;  %v7953_v42 = vunpack.i.l.bf16 %v7952_v4 }
 0x159   :  { %8101 = vrot.lane.b32.xlu0 %v17998_v60, %s8804_s1  ;;  %8096 = vrot.lane.b32.xlu1 %v17998_v60, %s8803_s21  ;;  %v2671_v37 = vpack.c.bf16 %v2622_v47, %v2621_v1 }
 0x15a   :  { %v2558_v46 = vsel %vm2527_vm5, %v2493_v45, %v7948_v38  ;;  %v2559_v54 = vsel %vm2527_vm5, %v2494_v62, %v7949_v30  ;;  %v2496_v31 = vsel %vm2462_vm4, %v9917_v56, %v7954_v58  ;;  %v2495_v33 = vsel %vm2462_vm4, %v9914_v57, %v7953_v42 }
 0x15b   :  { %7325 = vmatprep.mubr.msk.bf16.mxu0 %vm17352_vm7, %v2671_v37  ;;  %v7962_v44 = vpop.permute.xlu0 %7961  ;;  %v7957_v6 = vpop.permute.xlu1 %7956  ;;  %v2623_v17 = vsel %vm2592_vm6, %v2558_v46, 0.0  ;;  %v2624_v24 = vsel %vm2592_vm6, %v2559_v54, 0.0 }
 0x15c   :  { %v7964_v25 = vunpack.i.h.bf16 %v7962_v44  ;;  %v7963_v50 = vunpack.i.l.bf16 %v7962_v44  ;;  %v7959_v27 = vunpack.i.h.bf16 %v7957_v6  ;;  %v7958_v32 = vunpack.i.l.bf16 %v7957_v6 }
 0x15d   :  { %8106 = vrot.lane.b32.xlu1 %v17999_v14, %s8804_s1  ;;  %v2672_v59 = vpack.c.bf16 %v2624_v24, %v2623_v17 }
 0x15e   :  { %v2560_v3 = vsel %vm2527_vm5, %v2495_v33, %v7963_v50  ;;  %v2561_v22 = vsel %vm2527_vm5, %v2496_v31, %v7964_v25  ;;  %v2498_v1 = vsel %vm2462_vm4, %v9931_v28, %v7959_v27  ;;  %v2497_v47 = vsel %vm2462_vm4, %v9928_v19, %v7958_v32 }
 0x15f   :  { %7326 = vmatmul.mubr.msk.bf16.gmra.mxu0 %vm17352_vm7, %v2672_v59  ;;  %v7972_v29 = vpop.permute.xlu0 %7971  ;;  %v7967_v13 = vpop.permute.xlu1 %7966  ;;  %v2625_v56 = vsel %vm2592_vm6, %v2560_v3, 0.0  ;;  %v2626_v23 = vsel %vm2592_vm6, %v2561_v22, 0.0 }
 0x160   :  { %v7974_v4 = vunpack.i.h.bf16 %v7972_v29  ;;  %v7969_v57 = vunpack.i.h.bf16 %v7967_v13  ;;  %v7968_v2 = vunpack.i.l.bf16 %v7967_v13  ;;  %v7973_v58 = vunpack.i.l.bf16 %v7972_v29 }
 0x161   :  { %v2673_v30 = vpack.c.bf16 %v2626_v23, %v2625_v56 }
 0x162   :  { %v2562_v38 = vsel %vm2527_vm5, %v2497_v47, %v7968_v2  ;;  %v2563_v62 = vsel %vm2527_vm5, %v2498_v1, %v7969_v57  ;;  %v2500_v28 = vsel %vm2462_vm4, %v9945_v15, %v7974_v4  ;;  %v2499_v19 = vsel %vm2462_vm4, %v9942_v7, %v7973_v58 }
 0x163   :  { %7329 = vmatprep.mubr.msk.bf16.mxu0 %vm17352_vm7, %v2673_v30  ;;  %v7982_v45 = vpop.permute.xlu0 %7981  ;;  %v7977_v42 = vpop.permute.xlu1 %7976  ;;  %v2627_v60 = vsel %vm2592_vm6, %v2562_v38, 0.0  ;;  %v2628_v37 = vsel %vm2592_vm6, %v2563_v62, 0.0 }
 0x164   :  { %v7984_v46 = vunpack.i.h.bf16 %v7982_v45  ;;  %v7983_v54 = vunpack.i.l.bf16 %v7982_v45  ;;  %v7979_v44 = vunpack.i.h.bf16 %v7977_v42  ;;  %v7978_v6 = vunpack.i.l.bf16 %v7977_v42 }
 0x165   :  { %v2674_v17 = vpack.c.bf16 %v2628_v37, %v2627_v60 }
 0x166   :  { %v2564_v24 = vsel %vm2527_vm5, %v2499_v19, %v7983_v54  ;;  %v2565_v31 = vsel %vm2527_vm5, %v2500_v28, %v7984_v46  ;;  %v2502_v7 = vsel %vm2462_vm4, %v9959_v55, %v7979_v44  ;;  %v2501_v59 = vsel %vm2462_vm4, %v9956_v48, %v7978_v6 }
 0x167   :  { %7330 = vmatmul.mubr.msk.bf16.gmra.mxu0 %vm17352_vm7, %v2674_v17  ;;  %v7992_v25 = vpop.permute.xlu0 %7991  ;;  %v7987_v50 = vpop.permute.xlu1 %7986  ;;  %v2629_v33 = vsel %vm2592_vm6, %v2564_v24, 0.0  ;;  %v2630_v15 = vsel %vm2592_vm6, %v2565_v31, 0.0 }
 0x168   :  { %v7994_v27 = vunpack.i.h.bf16 %v7992_v25  ;;  %v7989_v32 = vunpack.i.h.bf16 %v7987_v50  ;;  %v7988_v14 = vunpack.i.l.bf16 %v7987_v50  ;;  %v7993_v3 = vunpack.i.l.bf16 %v7992_v25 }
 0x169   :  { %v2675_v22 = vpack.c.bf16 %v2630_v15, %v2629_v33 }
 0x16a   :  { %v2566_v29 = vsel %vm2527_vm5, %v2501_v59, %v7988_v14  ;;  %v2567_v13 = vsel %vm2527_vm5, %v2502_v7, %v7989_v32  ;;  %v2504_v55 = vsel %vm2462_vm4, %v9973_v63, %v7994_v27  ;;  %v2503_v48 = vsel %vm2462_vm4, %v9970_v36, %v7993_v3 }
 0x16b   :  { %7333 = vmatprep.mubr.msk.bf16.mxu0 %vm17352_vm7, %v2675_v22  ;;  %v8002_v56 = vpop.permute.xlu0 %8001  ;;  %v7997_v23 = vpop.permute.xlu1 %7996  ;;  %v2631_v4 = vsel %vm2592_vm6, %v2566_v29, 0.0  ;;  %v2632_v57 = vsel %vm2592_vm6, %v2567_v13, 0.0 }
 0x16c   :  { %v8004_v2 = vunpack.i.h.bf16 %v8002_v56  ;;  %v8003_v1 = vunpack.i.l.bf16 %v8002_v56  ;;  %v7999_v47 = vunpack.i.h.bf16 %v7997_v23  ;;  %v7998_v58 = vunpack.i.l.bf16 %v7997_v23 }
 0x16d   :  { %v2676_v30 = vpack.c.bf16 %v2632_v57, %v2631_v4 }
 0x16e   :  { %v2568_v38 = vsel %vm2527_vm5, %v2503_v48, %v8003_v1  ;;  %v2569_v62 = vsel %vm2527_vm5, %v2504_v55, %v8004_v2  ;;  %v2506_v28 = vsel %vm2462_vm4, %v9987_v34, %v7999_v47  ;;  %v2505_v36 = vsel %vm2462_vm4, %v9984_v12, %v7998_v58 }
 0x16f   :  { %7334 = vmatmul.mubr.msk.bf16.gmra.mxu0 %vm17352_vm7, %v2676_v30  ;;  %v8007_v45 = vpop.permute.xlu1 %8006  ;;  %v2633_v42 = vsel %vm2592_vm6, %v2568_v38, 0.0  ;;  %v2634_v60 = vsel %vm2592_vm6, %v2569_v62, 0.0  ;;  %v8012_v24 = vpop.permute.xlu0 %8011 }
 0x170   :  { %v8009_v63 = vunpack.i.h.bf16 %v8007_v45  ;;  %v8008_v37 = vunpack.i.l.bf16 %v8007_v45  ;;  %v2677_v46 = vpack.c.bf16 %v2634_v60, %v2633_v42  ;;  %v8014_v31 = vunpack.i.h.bf16 %v8012_v24 }
 0x171   :  { %v8013_v34 = vunpack.i.l.bf16 %v8012_v24 }
 0x172   :  { %v2570_v54 = vsel %vm2527_vm5, %v2505_v36, %v8008_v37  ;;  %v2571_v19 = vsel %vm2527_vm5, %v2506_v28, %v8009_v63  ;;  %7337 = vmatprep.mubr.msk.bf16.mxu0 %vm17352_vm7, %v2677_v46  ;;  %v2508_v15 = vsel %vm2462_vm4, %v10001_v5, %v8014_v31 }
 0x173   :  { %v2635_v44 = vsel %vm2592_vm6, %v2570_v54, 0.0  ;;  %v2636_v6 = vsel %vm2592_vm6, %v2571_v19, 0.0  ;;  %v2507_v27 = vsel %vm2462_vm4, %v9998_v41, %v8013_v34 }
 0x174   :  { %v2678_v17 = vpack.c.bf16 %v2636_v6, %v2635_v44 }
 0x177   :  { %7338 = vmatmul.mubr.msk.bf16.gmra.mxu0 %vm17352_vm7, %v2678_v17 }
 0x193   :  { %v8022_v25 = vpop.permute.xlu0 %8021  ;;  %v8017_v50 = vpop.permute.xlu1 %8016 }
 0x194   :  { %v8024_v12 = vunpack.i.h.bf16 %v8022_v25  ;;  %v8023_v33 = vunpack.i.l.bf16 %v8022_v25  ;;  %v8019_v32 = vunpack.i.h.bf16 %v8017_v50  ;;  %v8018_v14 = vunpack.i.l.bf16 %v8017_v50 }
 0x196   :  { %v2572_v7 = vsel %vm2527_vm5, %v2507_v27, %v8023_v33  ;;  %v2573_v59 = vsel %vm2527_vm5, %v2508_v15, %v8024_v12  ;;  %v2510_v23 = vsel %vm2462_vm4, %v10015_v16, %v8019_v32  ;;  %v2509_v5 = vsel %vm2462_vm4, %v10012_v20, %v8018_v14 }
 0x197   :  { %v8027_v3 = vpop.permute.xlu1 %8026  ;;  %v2637_v22 = vsel %vm2592_vm6, %v2572_v7, 0.0  ;;  %v2638_v29 = vsel %vm2592_vm6, %v2573_v59, 0.0  ;;  %v8032_v48 = vpop.permute.xlu0 %8031 }
 0x198   :  { %v8029_v13 = vunpack.i.h.bf16 %v8027_v3  ;;  %v8028_v56 = vunpack.i.l.bf16 %v8027_v3  ;;  %v2679_v41 = vpack.c.bf16 %v2638_v29, %v2637_v22  ;;  %v8034_v47 = vunpack.i.h.bf16 %v8032_v48 }
 0x199   :  { %v8033_v16 = vunpack.i.l.bf16 %v8032_v48 }
 0x19a   :  { %v2574_v4 = vsel %vm2527_vm5, %v2509_v5, %v8028_v56  ;;  %v2575_v57 = vsel %vm2527_vm5, %v2510_v23, %v8029_v13  ;;  %7341 = vmatprep.mubr.msk.bf16.mxu0 %vm17352_vm7, %v2679_v41  ;;  %v2512_v62 = vsel %vm2462_vm4, %v10104_v61, %v8034_v47 }
 0x19b   :  { %v2639_v55 = vsel %vm2592_vm6, %v2574_v4, 0.0  ;;  %v2640_v2 = vsel %vm2592_vm6, %v2575_v57, 0.0  ;;  %v2511_v45 = vsel %vm2462_vm4, %v10101_v18, %v8033_v16 }
 0x19c   :  { %v2680_v1 = vpack.c.bf16 %v2640_v2, %v2639_v55 }
 0x19e   :  { %7342 = vmatmul.mubr.msk.bf16.gmra.mxu0 %vm17352_vm7, %v2680_v1 }
 0x1a3   :  { %v8042_v58 = vpop.permute.xlu0 %8041  ;;  %v8037_v30 = vpop.permute.xlu1 %8036 }
 0x1a4   :  { %v8044_v20 = vunpack.i.h.bf16 %v8042_v58  ;;  %v8043_v38 = vunpack.i.l.bf16 %v8042_v58  ;;  %v8039_v42 = vunpack.i.h.bf16 %v8037_v30  ;;  %v8038_v60 = vunpack.i.l.bf16 %v8037_v30 }
 0x1a5   :  { %v21_v30 = vadd.s32 8, %v8864_v10 }
 0x1a6   :  { %v2576_v63 = vsel %vm2527_vm5, %v2511_v45, %v8043_v38  ;;  %v2577_v37 = vsel %vm2527_vm5, %v2512_v62, %v8044_v20  ;;  %v2514_v44 = vsel %vm2462_vm4, %v10119_v43, %v8039_v42  ;;  %v2513_v61 = vsel %vm2462_vm4, %v10116_v51, %v8038_v60 }
 0x1a7   :  { %v8047_v28 = vpop.permute.xlu1 %8046  ;;  %v2641_v36 = vsel %vm2592_vm6, %v2576_v63, 0.0  ;;  %v2642_v46 = vsel %vm2592_vm6, %v2577_v37, 0.0  ;;  %v8052_v25 = vpop.permute.xlu0 %8051 }
 0x1a8   :  { %v8049_v54 = vunpack.i.h.bf16 %v8047_v28  ;;  %v8048_v19 = vunpack.i.l.bf16 %v8047_v28  ;;  %v2681_v18 = vpack.c.bf16 %v2642_v46, %v2641_v36  ;;  %v8054_v50 = vunpack.i.h.bf16 %v8052_v25 }
 0x1a9   :  { %v8053_v43 = vunpack.i.l.bf16 %v8052_v25 }
 0x1aa   :  { %v2578_v6 = vsel %vm2527_vm5, %v2513_v61, %v8048_v19  ;;  %v2579_v17 = vsel %vm2527_vm5, %v2514_v44, %v8049_v54  ;;  %7345 = vmatprep.mubr.msk.bf16.mxu0 %vm17352_vm7, %v2681_v18  ;;  %v2516_v27 = vsel %vm2462_vm4, %v10152_v35, %v8054_v50  ;;  %v149_v19 = vshra.s32 %v21_v30, 4 }
 0x1ab   :  { %v2643_v24 = vsel %vm2592_vm6, %v2578_v6, 0.0  ;;  %v2644_v31 = vsel %vm2592_vm6, %v2579_v17, 0.0  ;;  %v2515_v32 = vsel %vm2462_vm4, %v10149_v9, %v8053_v43 }
 0x1ac   :  { %v2682_v34 = vpack.c.bf16 %v2644_v31, %v2643_v24  ;;  %v10414_v24 = vadd.s32 16, %v8864_v10 }
 0x1ae   :  { %7346 = vmatmul.mubr.msk.bf16.gmra.mxu0 %vm17352_vm7, %v2682_v34  ;;  %18000 = vst [vmem:[#allocation6_spill] sm:$0xff] %v10414_v24  ;;  %v148_v34 = vshra.s32 %v8864_v10, 4 }
 0x1b3   :  { %v8062_v12 = vpop.permute.xlu0 %8061  ;;  %v8057_v33 = vpop.permute.xlu1 %8056 }
 0x1b4   :  { %v8064_v51 = vunpack.i.h.bf16 %v8062_v12  ;;  %v8063_v15 = vunpack.i.l.bf16 %v8062_v12  ;;  %v8059_v14 = vunpack.i.h.bf16 %v8057_v33  ;;  %v8058_v7 = vunpack.i.l.bf16 %v8057_v33 }
 0x1b6   :  { %v2580_v59 = vsel %vm2527_vm5, %v2515_v32, %v8063_v15  ;;  %v2581_v3 = vsel %vm2527_vm5, %v2516_v27, %v8064_v51  ;;  %v2518_v5 = vsel %vm2462_vm4, %v10167_v49, %v8059_v14  ;;  %v2517_v35 = vsel %vm2462_vm4, %v10164_v26, %v8058_v7 }
 0x1b7   :  { %v8067_v22 = vpop.permute.xlu1 %8066  ;;  %v2645_v29 = vsel %vm2592_vm6, %v2580_v59, 0.0  ;;  %v2646_v13 = vsel %vm2592_vm6, %v2581_v3, 0.0  ;;  %v8072_v1 = vpop.permute.xlu0 %8071  ;;  %v10421_v51 = vand.u32 15, %v21_v30  ;;  %v10427_v27 = vand.u32 15, %v149_v19 }
 0x1b8   :  { %v8069_v56 = vunpack.i.h.bf16 %v8067_v22  ;;  %v8068_v23 = vunpack.i.l.bf16 %v8067_v22  ;;  %v2683_v9 = vpack.c.bf16 %v2646_v13, %v2645_v29  ;;  %v8074_v48 = vunpack.i.h.bf16 %v8072_v1 }
 0x1b9   :  { %v8073_v49 = vunpack.i.l.bf16 %v8072_v1  ;;  %18001 = vst [vmem:[#allocation8_spill] sm:$0xff] %v10421_v51  ;;  %18002 = vst [vmem:[#allocation7_spill] sm:$0xff] %v10427_v27  ;;  %v23_v29 = vadd.s32 24, %v8864_v10  ;;  %vm341_vm8 = vcmp.lt.s32.totalorder %v10421_v51, 14  ;;  %vm277_vm9 = vcmp.lt.s32.totalorder %v10427_v27, 14 }
 0x1ba   :  { %v2582_v41 = vsel %vm2527_vm5, %v2517_v35, %v8068_v23  ;;  %v2583_v4 = vsel %vm2527_vm5, %v2518_v5, %v8069_v56  ;;  %7349 = vmatprep.mubr.msk.bf16.mxu0 %vm17352_vm7, %v2683_v9  ;;  %v2520_v20 = vsel %vm2462_vm4, %v10198_v40, %v8074_v48  ;;  %v150_v56 = vshra.s32 %v10414_v24, 4  ;;  %vm10464_vm10 = vmand %vm277_vm9, %vm341_vm8 }
 0x1bb   :  { %v2647_v57 = vsel %vm2592_vm6, %v2582_v41, 0.0  ;;  %v2648_v55 = vsel %vm2592_vm6, %v2583_v4, 0.0  ;;  %v2519_v38 = vsel %vm2462_vm4, %v10195_v0, %v8073_v49  ;;  %v151_v49 = vshra.s32 %v23_v29, 4 }
 0x1bc   :  { %v2684_v2 = vpack.c.bf16 %v2648_v55, %v2647_v57  ;;  %v10444_v57 = vld [vmem:[%s17241_s3] ss:$0 sm:$0xff]  ;;  %v10446_v55 = vand.u32 15, %v148_v34 }
 0x1be   :  { %7350 = vmatmul.mubr.msk.bf16.gmra.mxu0 %vm17352_vm7, %v2684_v2  ;;  %18003 = vst [vmem:[#allocation10_spill] sm:$0xff] %v10446_v55  ;;  %vm17328_vm11 = vcmp.lt.s32.totalorder %v10446_v55, 14 }
 0x1c3   :  { %v8082_v47 = vpop.permute.xlu0 %8081  ;;  %v8077_v16 = vpop.permute.xlu1 %8076 }
 0x1c4   :  { %v8084_v26 = vunpack.i.h.bf16 %v8082_v47  ;;  %v8083_v58 = vunpack.i.l.bf16 %v8082_v47  ;;  %v8078_v42 = vunpack.i.l.bf16 %v8077_v16  ;;  %v8079_v60 = vunpack.i.h.bf16 %v8077_v16 }
 0x1c6   :  { %v2585_v62 = vsel %vm2527_vm5, %v2520_v20, %v8084_v26  ;;  %v2584_v45 = vsel %vm2527_vm5, %v2519_v38, %v8083_v58  ;;  %v2521_v6 = vsel %vm2462_vm4, %v10210_v21, %v8078_v42  ;;  %v2522_v17 = vsel %vm2462_vm4, %v10213_v52, %v8079_v60 }
 0x1c7   :  { %v10404_v63 = vpop.f32.mrf.mxu0  ;;  %v8092_v37 = vpop.permute.xlu0 %8091  ;;  %v2649_v28 = vsel %vm2592_vm6, %v2584_v45, 0.0  ;;  %v2650_v36 = vsel %vm2592_vm6, %v2585_v62, 0.0  ;;  %v25_v20 = vadd.s32 40, %v8864_v10  ;;  %v10475_v62 = vand.u32 15, %v150_v56 }
 0x1c8   :  { %v8087_v46 = vpop.permute.xlu1 %8086  ;;  %v2685_v54 = vpack.c.bf16 %v2650_v36, %v2649_v28  ;;  %v8094_v40 = vunpack.i.h.bf16 %v8092_v37  ;;  %v8093_v44 = vunpack.i.l.bf16 %v8092_v37  ;;  %v10479_v45 = vadd.s32 32, %v8864_v10 }
 0x1c9   :  { %v8089_v61 = vunpack.i.h.bf16 %v8087_v46  ;;  %v8088_v0 = vunpack.i.l.bf16 %v8087_v46  ;;  %v2840_v18 = vpop.f32.mrf.mxu0  ;;  %18006 = vst [vmem:[#allocation9_spill] sm:$0xff] %v10475_v62  ;;  %v10481_v37 = vand.u32 15, %v23_v29  ;;  %v10483_v28 = vand.u32 15, %v151_v49 }
 0x1ca   :  { %7353 = vmatprep.mubr.msk.bf16.mxu0 %vm17352_vm7, %v2685_v54  ;;  %v2524_v52 = vsel %vm2462_vm4, %v10244_v11, %v8094_v40  ;;  %v2523_v15 = vsel %vm2462_vm4, %v10241_v53, %v8093_v44  ;;  %v10471_v30 = vadd.f32 %v10444_v57, %v2840_v18  ;;  %18007 = vst [vmem:[#allocation11_spill] sm:$0xff] %v10479_v45  ;;  %v153_v19 = vshra.s32 %v25_v20, 4 }
 0x1cb   :  { %v2586_v31 = vsel %vm2527_vm5, %v2521_v6, %v8088_v0  ;;  %v10418_v25 = vpop.f32.mrf.mxu0  ;;  %v8102_v50 = vpop.permute.xlu0 %8101  ;;  %v2587_v43 = vsel %vm2527_vm5, %v2522_v17, %v8089_v61  ;;  %18008 = vst [vmem:[#allocation16_spill] sm:$0xff] %v10481_v37  ;;  %18009 = vst [vmem:[#allocation15_spill] sm:$0xff] %v10483_v28  ;;  %v10490_v46 = vadd.f32 %v10404_v63, %v10444_v57  ;;  %vm17301_vm12 = vcmp.lt.s32.totalorder %v10475_v62, 14 }
 0x1cc   :  { %v8104_v12 = vunpack.i.h.bf16 %v8102_v50  ;;  %v8103_v33 = vunpack.i.l.bf16 %v8102_v50  ;;  %v8097_v21 = vpop.permute.xlu1 %8096  ;;  %v2651_v14 = vsel %vm2592_vm6, %v2586_v31, 0.0  ;;  %v2652_v11 = vsel %vm2592_vm6, %v2587_v43, 0.0 }
 0x1cd   :  { %v2843_v32 = vpop.f32.mrf.mxu0  ;;  %v8099_v3 = vunpack.i.h.bf16 %v8097_v21  ;;  %v8098_v22 = vunpack.i.l.bf16 %v8097_v21  ;;  %v2686_v53 = vpack.c.bf16 %v2652_v11, %v2651_v14  ;;  %v3095_v54 = vsel %vm17328_vm11, %v10471_v30, 0.0 }
 0x1ce   :  { %v2588_v7 = vsel %vm2527_vm5, %v2523_v15, %v8103_v33  ;;  %v2589_v59 = vsel %vm2527_vm5, %v2524_v52, %v8104_v12  ;;  %v10454_v47 = vadd.f32 %v10444_v57, %v2843_v32  ;;  %v152_v44 = vshra.s32 %v10479_v45, 4 }
 0x1cf   :  { %v10433_v13 = vpop.f32.mrf.mxu0  ;;  %v2653_v5 = vsel %vm2592_vm6, %v2588_v7, 0.0  ;;  %v2654_v4 = vsel %vm2592_vm6, %v2589_v59, 0.0  ;;  %v2526_v2 = vsel %vm2462_vm4, %v10259_v39, %v8099_v3  ;;  %v2525_v1 = vsel %vm2462_vm4, %v10256_v8, %v8098_v22  ;;  %7354 = vmatmul.mubr.msk.bf16.gmra.mxu0 %vm17352_vm7, %v2686_v53 }
 0x1d0   :  { %v8107_v23 = vpop.permute.xlu1 %8106  ;;  %v2687_v48 = vpack.c.bf16 %v2654_v4, %v2653_v5  ;;  %v3096_v36 = vsel %vm10464_vm10, %v10454_v47, 0.0  ;;  %vm279_vm13 = vcmp.lt.s32.totalorder %v10483_v28, 14  ;;  %vm343_vm14 = vcmp.lt.s32.totalorder %v10481_v37, 14 }
 0x1d1   :  { %v8109_v35 = vunpack.i.h.bf16 %v8107_v23  ;;  %v8108_v9 = vunpack.i.l.bf16 %v8107_v23  ;;  %v2856_v41 = vpop.f32.mrf.mxu0  ;;  %v3160_v40 = vsel %vm17352_vm7, %v3096_v36, 0.0  ;;  %v3159_v63 = vsel %vm17352_vm7, %v3095_v54, 0.0  ;;  %vm10515_vm15 = vmand %vm279_vm13, %vm343_vm14 }
 0x1d2   :  { %7357 = vmatprep.mubr.msk.bf16.mxu0 %vm17352_vm7, %v2687_v48  ;;  %v10504_v0 = vand.u32 15, %v25_v20  ;;  %v3097_v18 = vsel %vm17301_vm12, %v10490_v46, 0.0  ;;  %v10511_v6 = vadd.f32 %v10418_v25, %v10444_v57  ;;  %v3161_v17 = vadd.f32 %v3160_v40, %v3159_v63 }
 0x1d3   :  { %v2590_v16 = vsel %vm2527_vm5, %v2525_v1, %v8108_v9  ;;  %v2591_v26 = vsel %vm2527_vm5, %v2526_v2, %v8109_v35  ;;  %v10458_v58 = vpop.f32.mrf.mxu0  ;;  %v10513_v31 = vand.u32 15, %v153_v19  ;;  %v10520_v50 = vadd.s32 48, %v8864_v10 }
 0x1d4   :  { %v2655_v8 = vsel %vm2592_vm6, %v2590_v16, 0.0  ;;  %v2656_v38 = vsel %vm2592_vm6, %v2591_v26, 0.0  ;;  %18010 = vst [vmem:[#allocation17_spill] sm:$0xff] %v10504_v0  ;;  %v10522_v43 = vand.u32 15, %v152_v44  ;;  %v27_v33 = vadd.s32 56, %v8864_v10 }
 0x1d5   :  { %v2859_v42 = vpop.f32.mrf.mxu0  ;;  %v2688_v60 = vpack.c.bf16 %v2656_v38, %v2655_v8  ;;  %18011 = vst [vmem:[#allocation13_spill] sm:$0xff] %v10513_v31  ;;  %18014 = vst [vmem:[#allocation14_spill] sm:$0xff] %v10520_v50  ;;  %v3162_v21 = vsel %vm17352_vm7, %v3097_v18, 0.0  ;;  %vm345_vm2 = vcmp.lt.s32.totalorder %v10504_v0, 14  ;;  %v3098_v25 = vsel %vm10515_vm15, %v10511_v6, 0.0 }
 0x1d6   :  { %18015 = vst [vmem:[#allocation18_spill] sm:$0xff] %v10522_v43  ;;  %v3163_v52 = vadd.f32 %v3162_v21, %v3161_v17  ;;  %v10531_v15 = vadd.f32 %v10444_v57, %v2856_v41  ;;  %vm281_vm3 = vcmp.lt.s32.totalorder %v10513_v31, 14  ;;  %v154_v32 = vshra.s32 %v10520_v50, 4 }
 0x1d7   :  { %v10498_v61 = vpop.f32.mrf.mxu0  ;;  %7358 = vmatmul.mubr.msk.bf16.gmra.mxu0 %vm17352_vm7, %v2688_v60  ;;  %vm17300_vm4 = vcmp.lt.s32.totalorder %v10522_v43, 14  ;;  %v155_v7 = vshra.s32 %v27_v33, 4  ;;  %v10539_v59 = vadd.f32 %v10444_v57, %v2859_v42  ;;  %v3164_v3 = vsel %vm17352_vm7, %v3098_v25, 0.0  ;;  %vm10542_vm5 = vmand %vm281_vm3, %vm345_vm2 }
 0x1d8   :  { %v3099_v29 = vsel %vm17300_vm4, %v10531_v15, 0.0  ;;  %v3165_v11 = vadd.f32 %v3164_v3, %v3163_v52  ;;  %v29_v56 = vadd.s32 72, %v8864_v10  ;;  %v10550_v53 = vand.u32 15, %v154_v32 }
 0x1d9   :  { %v2872_v12 = vpop.f32.mrf.mxu0  ;;  %v10553_v23 = vadd.s32 64, %v8864_v10  ;;  %v10555_v35 = vand.u32 15, %v27_v33  ;;  %v10557_v9 = vand.u32 15, %v155_v7  ;;  %v3100_v41 = vsel %vm10542_vm5, %v10539_v59, 0.0 }
 0x1da   :  { %18018 = vst [vmem:[#allocation20_spill] sm:$0xff] %v10550_v53  ;;  %v3166_v4 = vsel %vm17352_vm7, %v3099_v29, 0.0  ;;  %v10565_v2 = vadd.f32 %v10433_v13, %v10444_v57  ;;  %v157_v48 = vshra.s32 %v29_v56, 4  ;;  %vm17299_vm6 = vcmp.lt.s32.totalorder %v10550_v53, 14 }
 0x1db   :  { %v10536_v14 = vpop.f32.mrf.mxu0  ;;  %18019 = vst [vmem:[#allocation19_spill] sm:$0xff] %v10553_v23  ;;  %18020 = vst [vmem:[#allocation21_spill] sm:$0xff] %v10555_v35  ;;  %v3167_v1 = vadd.f32 %v3166_v4, %v3165_v11  ;;  %v3168_v49 = vsel %vm17352_vm7, %v3100_v41, 0.0  ;;  %v156_v16 = vshra.s32 %v10553_v23, 4  ;;  %vm283_vm8 = vcmp.lt.s32.totalorder %v10557_v9, 14 }
 0x1dc   :  { %18021 = vst [vmem:[#allocation23_spill] sm:$0xff] %v10557_v9  ;;  %vm347_vm9 = vcmp.lt.s32.totalorder %v10555_v35, 14  ;;  %v10574_v8 = vand.u32 15, %v29_v56  ;;  %v3101_v13 = vsel %vm17299_vm6, %v10565_v2, 0.0  ;;  %v10581_v20 = vadd.f32 %v10458_v58, %v10444_v57 }
 0x1dd   :  { %v2875_v5 = vpop.f32.mrf.mxu0  ;;  %v3169_v38 = vadd.f32 %v3168_v49, %v3167_v1  ;;  %v10583_v42 = vand.u32 15, %v157_v48  ;;  %vm10585_vm13 = vmand %vm283_vm8, %vm347_vm9  ;;  %v10590_v36 = vadd.s32 80, %v8864_v10  ;;  %v10592_v54 = vand.u32 15, %v156_v16 }
 0x1de   :  { %18022 = vst [vmem:[#allocation22_spill] sm:$0xff] %v10574_v8  ;;  %v31_v40 = vadd.s32 88, %v8864_v10  ;;  %v3170_v44 = vsel %vm17352_vm7, %v3101_v13, 0.0  ;;  %vm349_vm14 = vcmp.lt.s32.totalorder %v10574_v8, 14  ;;  %v3102_v58 = vsel %vm10585_vm13, %v10581_v20, 0.0 }
 0x1df   :  { %v10570_v26 = vpop.f32.mrf.mxu0  ;;  %18023 = vst [vmem:[#allocation25_spill] sm:$0xff] %v10583_v42  ;;  %18026 = vst [vmem:[#allocation24_spill] sm:$0xff] %v10590_v36  ;;  %v3171_v63 = vadd.f32 %v3170_v44, %v3169_v38  ;;  %v10601_v18 = vadd.f32 %v10444_v57, %v2872_v12  ;;  %vm285_vm2 = vcmp.lt.s32.totalorder %v10583_v42, 14  ;;  %v158_v17 = vshra.s32 %v10590_v36, 4 }
 0x1e0   :  { %18027 = vst [vmem:[#allocation27_spill] sm:$0xff] %v10592_v54  ;;  %vm17298_vm3 = vcmp.lt.s32.totalorder %v10592_v54, 14  ;;  %v159_v21 = vshra.s32 %v31_v40, 4  ;;  %v10609_v25 = vadd.f32 %v10444_v57, %v2875_v5  ;;  %v3172_v52 = vsel %vm17352_vm7, %v3102_v58, 0.0  ;;  %vm10612_vm8 = vmand %vm285_vm2, %vm349_vm14 }
 0x1e1   :  { %v2888_v19 = vpop.f32.mrf.mxu0  ;;  %v3103_v12 = vsel %vm17298_vm3, %v10601_v18, 0.0  ;;  %v3173_v7 = vadd.f32 %v3172_v52, %v3171_v63  ;;  %v33_v3 = vadd.s32 104, %v8864_v10  ;;  %v10620_v29 = vand.u32 15, %v158_v17 }
 0x1e2   :  { %v10623_v11 = vadd.s32 96, %v8864_v10  ;;  %v10625_v5 = vand.u32 15, %v31_v40  ;;  %v10627_v41 = vand.u32 15, %v159_v21  ;;  %v3104_v4 = vsel %vm10612_vm8, %v10609_v25, 0.0 }
 0x1e3   :  { %v10606_v33 = vpop.f32.mrf.mxu0  ;;  %18030 = vst [vmem:[#allocation26_spill] sm:$0xff] %v10620_v29  ;;  %v3174_v1 = vsel %vm17352_vm7, %v3103_v12, 0.0  ;;  %v10637_v49 = vadd.f32 %v10498_v61, %v10444_v57  ;;  %v161_v13 = vshra.s32 %v33_v3, 4  ;;  %vm17280_vm9 = vcmp.lt.s32.totalorder %v10620_v29, 14 }
 0x1e4   :  { %18031 = vst [vmem:[#allocation28_spill] sm:$0xff] %v10623_v11  ;;  %18032 = vst [vmem:[#allocation29_spill] sm:$0xff] %v10625_v5  ;;  %v3175_v16 = vadd.f32 %v3174_v1, %v3173_v7  ;;  %v3176_v38 = vsel %vm17352_vm7, %v3104_v4, 0.0  ;;  %v160_v40 = vshra.s32 %v10623_v11, 4  ;;  %vm287_vm14 = vcmp.lt.s32.totalorder %v10627_v41, 14 }
 0x1e5   :  { %v2891_v56 = vpop.f32.mrf.mxu0  ;;  %18033 = vst [vmem:[#allocation30_spill] sm:$0xff] %v10627_v41  ;;  %vm351_vm2 = vcmp.lt.s32.totalorder %v10625_v5, 14  ;;  %v10644_v44 = vand.u32 15, %v33_v3  ;;  %v3105_v61 = vsel %vm17280_vm9, %v10637_v49, 0.0  ;;  %v10651_v63 = vadd.f32 %v10536_v14, %v10444_v57 }
 0x1e6   :  { %v3177_v17 = vadd.f32 %v3176_v38, %v3175_v16  ;;  %v10653_v21 = vand.u32 15, %v161_v13  ;;  %vm10655_vm1 = vmand %vm287_vm14, %vm351_vm2  ;;  %v10660_v12 = vadd.s32 112, %v8864_v10  ;;  %v10662_v7 = vand.u32 15, %v160_v40 }
 0x1e7   :  { %18034 = vst [vmem:[#allocation31_spill] sm:$0xff] %v10644_v44  ;;  %v35_v3 = vadd.s32 120, %v8864_v10  ;;  %v3178_v4 = vsel %vm17352_vm7, %v3105_v61, 0.0  ;;  %vm353_vm0 = vcmp.lt.s32.totalorder %v10644_v44, 14  ;;  %v37_v1 = vadd.s32 136, %v8864_v10 }
 0x1e8   :  { %18035 = vst [vmem:[#allocation12_spill] sm:$0xff] %v10653_v21  ;;  %18038 = vst [vmem:[#allocation32_spill] sm:$0xff] %v10660_v12  ;;  %v3106_v16 = vsel %vm10655_vm1, %v10651_v63, 0.0  ;;  %v3179_v13 = vadd.f32 %v3178_v4, %v3177_v17  ;;  %v10674_v38 = vadd.f32 %v10444_v57, %v2888_v19  ;;  %vm289_vm14 = vcmp.lt.s32.totalorder %v10653_v21, 14 }
 0x1e9   :  { %18039 = vst [vmem:[#allocation33_spill] sm:$0xff] %v10662_v7  ;;  %v162_v40 = vshra.s32 %v10660_v12, 4  ;;  %vm17297_vm2 = vcmp.lt.s32.totalorder %v10662_v7, 14  ;;  %v10680_v61 = vadd.s32 128, %v8864_v10  ;;  %v163_v44 = vshra.s32 %v35_v3, 4  ;;  %vm10686_vm9 = vmand %vm289_vm14, %vm353_vm0 }
 0x1ea   :  { %v10683_v11 = vadd.f32 %v10444_v57, %v2891_v56  ;;  %v3180_v8 = vsel %vm17352_vm7, %v3106_v16, 0.0  ;;  %v18041_v17 = vmov 0  ;;  %v165_v19 = vshra.s32 %v37_v1, 4 }
 0x1eb   :  { %18040 = vst [vmem:[#allocation34_spill] sm:$0xff] %v10680_v61  ;;  %v18042_v17 = vsel %vm10686_vm9, 4294967295, %v18041_v17  ;;  %v3107_v21 = vsel %vm17297_vm2, %v10674_v38, 0.0  ;;  %v3181_v12 = vadd.f32 %v3180_v8, %v3179_v13  ;;  %v10693_v42 = vand.u32 15, %v162_v40 }
 0x1ec   :  { %v164_v5 = vshra.s32 %v10680_v61, 4  ;;  %v10698_v56 = vand.u32 15, %v35_v3  ;;  %v10700_v16 = vand.u32 15, %v163_v44  ;;  %v3108_v23 = vsel %vm10686_vm9, %v10683_v11, 0.0 }
 0x1ed   :  { %18043 = vst [vmem:[#allocation35_spill] sm:$0xff] %v10693_v42  ;;  %v3182_v0 = vsel %vm17352_vm7, %v3107_v21, 0.0  ;;  %v10706_v31 = vand.u32 15, %v37_v1  ;;  %v10708_v36 = vand.u32 15, %v165_v19  ;;  %v10712_v8 = vadd.f32 %v10570_v26, %v10444_v57 }
 0x1ee   :  { %18044 = vst [vmem:[#allocation36_spill] sm:$0xff] %v10698_v56  ;;  %18045 = vst [vmem:[#allocation37_spill] sm:$0xff] %v10700_v16  ;;  %v3183_v13 = vadd.f32 %v3182_v0, %v3181_v12  ;;  %vm17327_vm0 = vcmp.lt.s32.totalorder %v10693_v42, 14  ;;  %v3184_v44 = vsel %vm17352_vm7, %v3108_v23, 0.0  ;;  %v10717_v3 = vadd.s32 144, %v8864_v10 }
 0x1ef   :  { %v10633_v48 = vpop.f32.mrf.mxu0  ;;  %18046 = vst [vmem:[#allocation38_spill] sm:$0xff] %v10706_v31  ;;  %18047 = vst [vmem:[#allocation39_spill] sm:$0xff] %v10708_v36  ;;  %v10719_v40 = vand.u32 15, %v164_v5  ;;  %vm291_vm14 = vcmp.lt.s32.totalorder %v10700_v16, 14  ;;  %vm355_vm2 = vcmp.lt.s32.totalorder %v10698_v56, 14  ;;  %v39_v21 = vadd.s32 152, %v8864_v10 }
 0x1f0   :  { %18048 = vst [vmem:[#allocation40_spill] sm:$0xff] %v10717_v3  ;;  %vm293_vm3 = vcmp.lt.s32.totalorder %v10708_v36, 14  ;;  %vm357_vm6 = vcmp.lt.s32.totalorder %v10706_v31, 14  ;;  %v41_v0 = vadd.s32 168, %v8864_v10  ;;  %v3109_v23 = vsel %vm17327_vm0, %v10712_v8, 0.0  ;;  %vm10737_vm4 = vmand %vm291_vm14, %vm355_vm2 }
 0x1f1   :  { %v2904_v58 = vpop.f32.mrf.mxu0  ;;  %18049 = vst [vmem:[#allocation41_spill] sm:$0xff] %v10719_v40  ;;  %v10732_v26 = vadd.f32 %v10606_v33, %v10444_v57  ;;  %v3185_v5 = vadd.f32 %v3184_v44, %v3183_v13  ;;  %v18050_v1 = vmov 0  ;;  %v166_v19 = vshra.s32 %v10717_v3, 4  ;;  %vm10754_vm2 = vmand %vm293_vm3, %vm357_vm6 }
 0x1f2   :  { %v10735_v12 = vadd.f32 %v10444_v57, %v2904_v58  ;;  %v18051_v1 = vsel %vm10737_vm4, 4294967295, %v18050_v1  ;;  %vm17326_vm12 = vcmp.lt.s32.totalorder %v10719_v40, 14  ;;  %v10744_v31 = vadd.s32 160, %v8864_v10 }
 0x1f3   :  { %v10667_v14 = vpop.f32.mrf.mxu0  ;;  %18052 = vst [vmem:[#allocation42_spill] sm:$0xff] %v18051_v1  ;;  %v167_v16 = vshra.s32 %v39_v21, 4  ;;  %v3186_v58 = vsel %vm17352_vm7, %v3109_v23, 0.0  ;;  %v18054_v13 = vmov 0  ;;  %v169_v44 = vshra.s32 %v41_v0, 4 }
 0x1f4   :  { %18053 = vst [vmem:[#allocation43_spill] sm:$0xff] %v10744_v31  ;;  %v18055_v13 = vsel %vm10754_vm2, 4294967295, %v18054_v13  ;;  %v3110_v3 = vsel %vm10737_vm4, %v10732_v26, 0.0  ;;  %v3187_v35 = vadd.f32 %v3186_v58, %v3185_v5  ;;  %v3111_v9 = vsel %vm17326_vm12, %v10735_v12, 0.0 }
 0x1f5   :  { %v2907_v4 = vpop.f32.mrf.mxu0  ;;  %18056 = vst [vmem:[#allocation44_spill] sm:$0xff] %v18055_v13  ;;  %v168_v23 = vshra.s32 %v10744_v31, 4  ;;  %v10767_v36 = vand.u32 15, %v39_v21  ;;  %v10769_v50 = vand.u32 15, %v167_v16  ;;  %v3188_v27 = vsel %vm17352_vm7, %v3110_v3, 0.0 }
 0x1f6   :  { %v10749_v33 = vadd.f32 %v10444_v57, %v2907_v4  ;;  %v10764_v4 = vand.u32 15, %v166_v19  ;;  %v3190_v5 = vsel %vm17352_vm7, %v3111_v9, 0.0  ;;  %v10776_v58 = vand.u32 15, %v41_v0 }
 0x1f7   :  { %18058 = vst [vmem:[#allocation46_spill] sm:$0xff] %v10767_v36  ;;  %18059 = vst [vmem:[#allocation47_spill] sm:$0xff] %v10769_v50  ;;  %v10778_v37 = vand.u32 15, %v169_v44  ;;  %v10784_v21 = vadd.f32 %v10633_v48, %v10444_v57  ;;  %v3189_v16 = vadd.f32 %v3188_v27, %v3187_v35  ;;  %v10789_v28 = vadd.s32 176, %v8864_v10 }
 0x1f8   :  { %18057 = vst [vmem:[#allocation45_spill] sm:$0xff] %v10764_v4  ;;  %v3112_v51 = vsel %vm10754_vm2, %v10749_v33, 0.0  ;;  %18060 = vst [vmem:[#allocation48_spill] sm:$0xff] %v10776_v58  ;;  %vm17335_vm6 = vcmp.lt.s32.totalorder %v10764_v4, 14  ;;  %v10791_v3 = vand.u32 15, %v168_v23  ;;  %vm295_vm3 = vcmp.lt.s32.totalorder %v10769_v50, 14 }
 0x1f9   :  { %18061 = vst [vmem:[#allocation49_spill] sm:$0xff] %v10778_v37  ;;  %v3192_v31 = vsel %vm17352_vm7, %v3112_v51, 0.0  ;;  %18062 = vst [vmem:[#allocation50_spill] sm:$0xff] %v10789_v28  ;;  %v3191_v9 = vadd.f32 %v3190_v5, %v3189_v16  ;;  %vm359_vm14 = vcmp.lt.s32.totalorder %v10767_v36, 14  ;;  %v43_v0 = vadd.s32 184, %v8864_v10 }
 0x1fa   :  { %18063 = vst [vmem:[#allocation51_spill] sm:$0xff] %v10791_v3  ;;  %vm361_vm0 = vcmp.lt.s32.totalorder %v10776_v58, 14  ;;  %v45_v35 = vadd.s32 200, %v8864_v10  ;;  %v3113_v51 = vsel %vm17335_vm6, %v10784_v21, 0.0  ;;  %v10804_v48 = vadd.f32 %v10667_v14, %v10444_v57  ;;  %vm10809_vm11 = vmand %vm295_vm3, %vm359_vm14 }
 0x1fb   :  { %v3193_v44 = vadd.f32 %v3192_v31, %v3191_v9  ;;  %v18065_v5 = vmov 0  ;;  %v170_v16 = vshra.s32 %v10789_v28, 4  ;;  %vm17351_vm12 = vcmp.lt.s32.totalorder %v10791_v3, 14 }
 0x1fc   :  { %v18066_v5 = vsel %vm10809_vm11, 4294967295, %v18065_v5  ;;  %v10816_v58 = vadd.s32 192, %v8864_v10  ;;  %v171_v36 = vshra.s32 %v43_v0, 4  ;;  %v3194_v31 = vsel %vm17352_vm7, %v3113_v51, 0.0 }
 0x1fd   :  { %18067 = vst [vmem:[#allocation53_spill] sm:$0xff] %v18066_v5  ;;  %vm18070_vm6 = vcmp.lt.s32.totalorder %v10778_v37, 14  ;;  %v18071_v14 = vmov 0  ;;  %v173_v9 = vshra.s32 %v45_v35, 4  ;;  %v3114_v28 = vsel %vm10809_vm11, %v10804_v48, 0.0 }
 0x1fe   :  { %18068 = vst [vmem:[#allocation54_spill] sm:$0xff] %v10816_v58  ;;  %vm10824_vm2 = vmand %vm18070_vm6, %vm361_vm0  ;;  %v3195_v24 = vadd.f32 %v3194_v31, %v3193_v44  ;;  %v10836_v4 = vand.u32 15, %v170_v16  ;;  %v172_v51 = vshra.s32 %v10816_v58, 4  ;;  %v10839_v37 = vand.u32 15, %v43_v0 }
 0x1ff   :  { %v10696_v41 = vpop.f32.mrf.mxu0  ;;  %v18072_v14 = vsel %vm10824_vm2, 4294967295, %v18071_v14  ;;  %v10841_v13 = vand.u32 15, %v171_v36  ;;  %v3196_v5 = vsel %vm17352_vm7, %v3114_v28, 0.0  ;;  %v10848_v31 = vand.u32 15, %v45_v35 }
 0x200   :  { %18073 = vst [vmem:[#allocation56_spill] sm:$0xff] %v18072_v14  ;;  %18074 = vst [vmem:[#allocation57_spill] sm:$0xff] %v10836_v4  ;;  %v10850_v3 = vand.u32 15, %v173_v9  ;;  %v10854_v58 = vadd.f32 %v10696_v41, %v10444_v57  ;;  %v3197_v0 = vadd.f32 %v3196_v5, %v3195_v24  ;;  %vm17359_vm0 = vcmp.lt.s32.totalorder %v10836_v4, 14 }
 0x201   :  { %v2920_v61 = vpop.f32.mrf.mxu0  ;;  %18075 = vst [vmem:[#allocation58_spill] sm:$0xff] %v10839_v37  ;;  %18076 = vst [vmem:[#allocation59_spill] sm:$0xff] %v10841_v13  ;;  %v10859_v14 = vadd.s32 208, %v8864_v10  ;;  %v10861_v28 = vand.u32 15, %v172_v51  ;;  %vm299_vm6 = vcmp.lt.s32.totalorder %v10841_v13, 14  ;;  %vm363_vm3 = vcmp.lt.s32.totalorder %v10839_v37, 14 }
 0x202   :  { %v10807_v23 = vadd.f32 %v10444_v57, %v2920_v61  ;;  %18077 = vst [vmem:[#allocation60_spill] sm:$0xff] %v10848_v31  ;;  %18078 = vst [vmem:[#allocation61_spill] sm:$0xff] %v10850_v3  ;;  %v47_v41 = vadd.s32 216, %v8864_v10  ;;  %v49_v24 = vadd.s32 232, %v8864_v10 }
 0x203   :  { %v10746_v56 = vpop.f32.mrf.mxu0  ;;  %18079 = vst [vmem:[#allocation62_spill] sm:$0xff] %v10854_v58  ;;  %18080 = vst [vmem:[#allocation63_spill] sm:$0xff] %v10859_v14  ;;  %vm17375_vm14 = vcmp.lt.s32.totalorder %v10861_v28, 14 }
 0x204   :  { %18064 = vst [vmem:[#allocation52_spill] sm:$0xff] %v10807_v23  ;;  %18081 = vst [vmem:[#allocation64_spill] sm:$0xff] %v10861_v28  ;;  %v10876_v5 = vadd.f32 %v10746_v56, %v10444_v57  ;;  %v175_v13 = vshra.s32 %v47_v41, 4 }
 0x205   :  { %v2923_v45 = vpop.f32.mrf.mxu0 }
 0x206   :  { %v10819_v50 = vadd.f32 %v10444_v57, %v2923_v45  ;;  %v3115_v45 = vsel %vm17351_vm12, %v10807_v23, 0.0  ;;  %vm365_vm12 = vcmp.lt.s32.totalorder %v10848_v31, 14  ;;  %v10888_v31 = vadd.s32 224, %v8864_v10 }
 0x207   :  { %v3198_v44 = vsel %vm17352_vm7, %v3115_v45, 0.0  ;;  %v10911_v23 = vand.u32 15, %v175_v13 }
 0x208   :  { %18069 = vst [vmem:[#allocation55_spill] sm:$0xff] %v10819_v50  ;;  %v3116_v40 = vsel %vm10824_vm2, %v10819_v50, 0.0  ;;  %v3199_v35 = vadd.f32 %v3198_v44, %v3197_v0  ;;  %v18083_v44 = vmov 0  ;;  %v174_v0 = vshra.s32 %v10859_v14, 4  ;;  %18086 = vst [vmem:[#allocation67_spill] sm:$0xff] %v10888_v31 }
 0x209   :  { %v3200_v36 = vsel %vm17352_vm7, %v3116_v40, 0.0  ;;  %v3117_v40 = vsel %vm17359_vm0, %v10854_v58, 0.0  ;;  %vm10881_vm7 = vmand %vm299_vm6, %vm363_vm3  ;;  %vm18088_vm0 = vcmask 261120   ;;  %vm18089_vm2 = vcmp.lt.s32.totalorder %v10850_v3, 14  ;;  %18095 = vst [vmem:[#allocation72_spill] sm:$0xff] %v10911_v23 }
 0x20a   :  { %v3201_v9 = vadd.f32 %v3200_v36, %v3199_v35  ;;  %v18084_v44 = vsel %vm10881_vm7, 4294967295, %v18083_v44  ;;  %v3202_v36 = vsel %vm18088_vm0, %v3117_v40, 0.0  ;;  %vm10896_vm6 = vmand %vm18089_vm2, %vm365_vm12  ;;  %v177_v35 = vshra.s32 %v49_v24, 4 }
 0x20b   :  { %18085 = vst [vmem:[#allocation66_spill] sm:$0xff] %v18084_v44  ;;  %v3118_v14 = vsel %vm10881_vm7, %v10876_v5, 0.0  ;;  %v176_v40 = vshra.s32 %v10888_v31, 4  ;;  %v10909_v3 = vand.u32 15, %v47_v41  ;;  %vm18096_vm12 = vmmov %vm18088_vm0  ;;  %v10929_v31 = vadd.s32 240, %v8864_v10 }
 0x20c   :  { %v3203_v4 = vadd.f32 %v3202_v36, %v3201_v9  ;;  %v3204_v44 = vsel %vm18096_vm12, %v3118_v14, 0.0  ;;  %vm18097_vm2 = vmmov %vm18088_vm0  ;;  %v10918_v36 = vand.u32 15, %v49_v24  ;;  %v10920_v28 = vand.u32 15, %v177_v35 }
 0x20d   :  { %18094 = vst [vmem:[#allocation71_spill] sm:$0xff] %v10909_v3  ;;  %vm18101_vm3 = vmmov %vm18097_vm2  ;;  %vm303_vm12 = vcmp.lt.s32.totalorder %v10911_v23, 14  ;;  %v51_v24 = vadd.s32 248, %v8864_v10  ;;  %v18106_v35 = vmov 0 }
 0x20e   :  { %18098 = vst [vmem:[#allocation73_spill] sm:$0xff] %v10918_v36  ;;  %18099 = vst [vmem:[#allocation74_spill] sm:$0xff] %v10920_v28  ;;  %v3205_v41 = vadd.f32 %v3204_v44, %v3203_v4 }
 0x20f   :  { %v10780_v19 = vpop.f32.mrf.mxu0  ;;  %18102 = vst [vmem:[#allocation76_spill] sm:$0xff] %v10929_v31  ;;  %v10974_v23 = vand.u32 15, %v51_v24 }
 0x211   :  { %v2936_v27 = vpop.f32.mrf.mxu0  ;;  %18116 = vst [vmem:[#allocation85_spill] sm:$0xff] %v10974_v23 }
 0x212   :  { %v10879_v51 = vadd.f32 %v10444_v57, %v2936_v27  ;;  %v18090_v27 = vmov 0 }
 0x213   :  { %v10828_v61 = vpop.f32.mrf.mxu0  ;;  %v18091_v27 = vsel %vm10896_vm6, 4294967295, %v18090_v27 }
 0x214   :  { %18082 = vst [vmem:[#allocation65_spill] sm:$0xff] %v10879_v51  ;;  %18092 = vst [vmem:[#allocation69_spill] sm:$0xff] %v18091_v27  ;;  %v3119_v58 = vsel %vm17375_vm14, %v10879_v51, 0.0  ;;  %v10931_v27 = vand.u32 15, %v176_v40  ;;  %vm305_vm14 = vcmp.lt.s32.totalorder %v10920_v28, 14  ;;  %v10943_v4 = vadd.f32 %v10828_v61, %v10444_v57 }
 0x215   :  { %v2939_v16 = vpop.f32.mrf.mxu0  ;;  %v3206_v9 = vsel %vm18097_vm2, %v3119_v58, 0.0  ;;  %vm367_vm2 = vcmp.lt.s32.totalorder %v10909_v3, 14  ;;  %v178_v40 = vshra.s32 %v10929_v31, 4  ;;  %v53_v28 = vadd.s32 264, %v8864_v10 }
 0x216   :  { %v10891_v56 = vadd.f32 %v10444_v57, %v2939_v16  ;;  %v10906_v16 = vand.u32 15, %v174_v0  ;;  %v10924_v0 = vadd.f32 %v10780_v19, %v10444_v57  ;;  %18103 = vst [vmem:[#allocation77_spill] sm:$0xff] %v10931_v27  ;;  %v3207_v58 = vadd.f32 %v3206_v9, %v3205_v41  ;;  %18104 = vst [vmem:[#allocation78_spill] sm:$0xff] %v10943_v4 }
 0x217   :  { %vm17405_vm7 = vcmp.lt.s32.totalorder %v10931_v27, 14  ;;  %v179_v41 = vshra.s32 %v51_v24, 4  ;;  %v10969_v3 = vand.u32 15, %v178_v40 }
 0x218   :  { %18087 = vst [vmem:[#allocation68_spill] sm:$0xff] %v10891_v56  ;;  %18093 = vst [vmem:[#allocation70_spill] sm:$0xff] %v10906_v16  ;;  %v3120_v1 = vsel %vm10896_vm6, %v10891_v56, 0.0  ;;  %vm17380_vm0 = vcmp.lt.s32.totalorder %v10906_v16, 14  ;;  %vm369_vm6 = vcmp.lt.s32.totalorder %v10918_v36, 14 }
 0x219   :  { %18100 = vst [vmem:[#allocation75_spill] sm:$0xff] %v10924_v0  ;;  %v3208_v13 = vsel %vm18101_vm3, %v3120_v1, 0.0  ;;  %v3121_v1 = vsel %vm17380_vm0, %v10924_v0, 0.0  ;;  %vm10948_vm3 = vmand %vm303_vm12, %vm367_vm2  ;;  %vm18110_vm0 = vcmask 261120   ;;  %v10976_v16 = vand.u32 15, %v179_v41 }
 0x21a   :  { %v3209_v19 = vadd.f32 %v3208_v13, %v3207_v58  ;;  %v18107_v35 = vsel %vm10948_vm3, 4294967295, %v18106_v35  ;;  %v3210_v61 = vsel %vm18110_vm0, %v3121_v1, 0.0  ;;  %vm10958_vm11 = vmand %vm305_vm14, %vm369_vm6  ;;  %v18111_v13 = vmov 0  ;;  %18114 = vst [vmem:[#allocation83_spill] sm:$0xff] %v10969_v3 }
 0x21b   :  { %18108 = vst [vmem:[#allocation80_spill] sm:$0xff] %v18107_v35  ;;  %v18112_v13 = vsel %vm10958_vm11, 4294967295, %v18111_v13  ;;  %18117 = vst [vmem:[#allocation86_spill] sm:$0xff] %v10976_v16  ;;  %vm307_vm2 = vcmp.lt.s32.totalorder %v10976_v16, 14 }
 0x21c   :  { %18113 = vst [vmem:[#allocation82_spill] sm:$0xff] %v18112_v13  ;;  %v3211_v58 = vadd.f32 %v3210_v61, %v3209_v19  ;;  %vm18118_vm14 = vmmov %vm18110_vm0 }
 0x21d   :  { %vm18119_vm6 = vmmov %vm18110_vm0  ;;  %vm17400_vm0 = vcmp.lt.s32.totalorder %v10969_v3, 14 }
 0x21e   :  { %vm18121_vm12 = vmmov %vm18119_vm6 }
 0x21f   :  { %v10863_v45 = vpop.f32.mrf.mxu0 }
 0x220   :  { %v10985_v40 = vadd.f32 %v10863_v45, %v10444_v57 }
 0x221   :  { %v2952_v37 = vpop.f32.mrf.mxu0 }
 0x222   :  { %v10946_v44 = vadd.f32 %v10444_v57, %v2952_v37  ;;  %v3122_v37 = vsel %vm10948_vm3, %v10943_v4, 0.0  ;;  %18120 = vst [vmem:[#allocation87_spill] sm:$0xff] %v10985_v40 }
 0x223   :  { %v7328_v50 = vpop.f32.mrf.mxu0  ;;  %v3212_v61 = vsel %vm18118_vm14, %v3122_v37, 0.0  ;;  %vm371_vm14 = vcmp.lt.s32.totalorder %v10974_v23, 14  ;;  %v10992_v37 = vand.u32 15, %v53_v28 }
 0x224   :  { %18105 = vst [vmem:[#allocation79_spill] sm:$0xff] %v10946_v44  ;;  %v3123_v31 = vsel %vm17405_vm7, %v10946_v44, 0.0  ;;  %v3213_v35 = vadd.f32 %v3212_v61, %v3211_v58  ;;  %v181_v44 = vshra.s32 %v53_v28, 4  ;;  %v10998_v45 = vadd.f32 %v7328_v50, %v10444_v57 }
 0x225   :  { %v2955_v14 = vpop.f32.mrf.mxu0  ;;  %v3214_v27 = vsel %vm18119_vm6, %v3123_v31, 0.0  ;;  %18122 = vst [vmem:[#allocation88_spill] sm:$0xff] %v10992_v37  ;;  %v3125_v31 = vsel %vm17400_vm0, %v10985_v40, 0.0  ;;  %vm11002_vm6 = vmand %vm307_vm2, %vm371_vm14  ;;  %vm373_vm0 = vcmp.lt.s32.totalorder %v10992_v37, 14 }
 0x226   :  { %v10955_v36 = vadd.f32 %v10444_v57, %v2955_v14  ;;  %v10972_v14 = vadd.s32 256, %v8864_v10  ;;  %v3215_v0 = vadd.f32 %v3214_v27, %v3213_v35  ;;  %18123 = vst [vmem:[#allocation89_spill] sm:$0xff] %v10998_v45  ;;  %v11000_v61 = vand.u32 15, %v181_v44 }
 0x227   :  { %v7331_v9 = vpop.f32.mrf.mxu0  ;;  %v11007_v27 = vadd.s32 272, %v8864_v10  ;;  %v3218_v23 = vsel %vm18121_vm12, %v3125_v31, 0.0  ;;  %v3126_v50 = vsel %vm11002_vm6, %v10998_v45, 0.0 }
 0x228   :  { %18109 = vst [vmem:[#allocation81_spill] sm:$0xff] %v10955_v36  ;;  %18115 = vst [vmem:[#allocation84_spill] sm:$0xff] %v10972_v14  ;;  %v3124_v19 = vsel %vm10958_vm11, %v10955_v36, 0.0  ;;  %v180_v41 = vshra.s32 %v10972_v14, 4  ;;  %v55_v14 = vadd.s32 280, %v8864_v10  ;;  %vm309_vm2 = vcmp.lt.s32.totalorder %v11000_v61, 14 }
 0x229   :  { %v2968_v1 = vpop.f32.mrf.mxu0  ;;  %v3216_v24 = vsel %vm18121_vm12, %v3124_v19, 0.0  ;;  %18124 = vst [vmem:[#allocation90_spill] sm:$0xff] %v11000_v61  ;;  %v18125_v19 = vmov 0  ;;  %18128 = vst [vmem:[#allocation92_spill] sm:$0xff] %v11007_v27  ;;  %v3220_v37 = vsel %vm18121_vm12, %v3126_v50, 0.0  ;;  %v11038_v61 = vadd.s32 288, %v8864_v10 }
 0x22a   :  { %v3217_v58 = vadd.f32 %v3216_v24, %v3215_v0  ;;  %v18126_v19 = vsel %vm11002_vm6, 4294967295, %v18125_v19  ;;  %v11009_v35 = vand.u32 15, %v180_v41  ;;  %v11018_v44 = vadd.f32 %v10444_v57, %v2968_v1  ;;  %vm11027_vm7 = vmand %vm309_vm2, %vm373_vm0 }
 0x22b   :  { %v7332_v4 = vpop.f32.mrf.mxu0  ;;  %18127 = vst [vmem:[#allocation91_spill] sm:$0xff] %v18126_v19  ;;  %v182_v24 = vshra.s32 %v11007_v27, 4  ;;  %v183_v16 = vshra.s32 %v55_v14, 4  ;;  %v18132_v19 = vmov 0  ;;  %18136 = vst [vmem:[#allocation98_spill] sm:$0xff] %v11038_v61  ;;  %v11040_v3 = vand.u32 15, %v55_v14 }
 0x22c   :  { %18129 = vst [vmem:[#allocation93_spill] sm:$0xff] %v11009_v35  ;;  %v3219_v0 = vadd.f32 %v3218_v23, %v3217_v58  ;;  %18130 = vst [vmem:[#allocation94_spill] sm:$0xff] %v11018_v44  ;;  %vm17417_vm14 = vcmp.lt.s32.totalorder %v11009_v35, 14  ;;  %v18133_v19 = vsel %vm11027_vm7, 4294967295, %v18132_v19  ;;  %v57_v58 = vadd.s32 296, %v8864_v10 }
 0x22d   :  { %v2971_v28 = vpop.f32.mrf.mxu0  ;;  %18134 = vst [vmem:[#allocation96_spill] sm:$0xff] %v18133_v19  ;;  %v3127_v23 = vsel %vm17417_vm14, %v11018_v44, 0.0  ;;  %v11035_v27 = vand.u32 15, %v182_v24  ;;  %18137 = vst [vmem:[#allocation99_spill] sm:$0xff] %v11040_v3  ;;  %v11042_v50 = vand.u32 15, %v183_v16  ;;  %v184_v14 = vshra.s32 %v11038_v61, 4 }
 0x22e   :  { %v11024_v31 = vadd.f32 %v10444_v57, %v2971_v28  ;;  %v3221_v1 = vadd.f32 %v3220_v37, %v3219_v0  ;;  %vm18139_vm0 = vmmov %vm18121_vm12  ;;  %v11049_v37 = vadd.f32 %v7331_v9, %v10444_v57  ;;  %v185_v24 = vshra.s32 %v57_v58, 4 }
 0x22f   :  { %v7335_v41 = vpop.f32.mrf.mxu0  ;;  %18135 = vst [vmem:[#allocation97_spill] sm:$0xff] %v11035_v27  ;;  %18138 = vst [vmem:[#allocation100_spill] sm:$0xff] %v11042_v50  ;;  %v3222_v35 = vsel %vm18139_vm0, %v3127_v23, 0.0  ;;  %vm17426_vm2 = vcmp.lt.s32.totalorder %v11035_v27, 14  ;;  %vm311_vm14 = vcmp.lt.s32.totalorder %v11042_v50, 14  ;;  %vm375_vm6 = vcmp.lt.s32.totalorder %v11040_v3, 14 }
 0x230   :  { %18131 = vst [vmem:[#allocation95_spill] sm:$0xff] %v11024_v31  ;;  %v3128_v13 = vsel %vm11027_vm7, %v11024_v31, 0.0  ;;  %18140 = vst [vmem:[#allocation101_spill] sm:$0xff] %v11049_v37  ;;  %v3223_v0 = vadd.f32 %v3222_v35, %v3221_v1  ;;  %v11056_v16 = vand.u32 15, %v57_v58  ;;  %v3129_v9 = vsel %vm17426_vm2, %v11049_v37, 0.0 }
 0x231   :  { %v2984_v28 = vpop.f32.mrf.mxu0  ;;  %vm18141_vm12 = vmmov %vm18139_vm0  ;;  %v11062_v35 = vadd.f32 %v7332_v4, %v10444_v57  ;;  %v11064_v1 = vand.u32 15, %v185_v24  ;;  %v11071_v61 = vadd.s32 304, %v8864_v10  ;;  %v11073_v3 = vand.u32 15, %v184_v14 }
 0x232   :  { %v3224_v44 = vsel %vm18141_vm12, %v3128_v13, 0.0  ;;  %18142 = vst [vmem:[#allocation102_spill] sm:$0xff] %v11056_v16  ;;  %vm11066_vm0 = vmand %vm311_vm14, %vm375_vm6  ;;  %v18145_v13 = vmov 0  ;;  %v59_v50 = vadd.s32 312, %v8864_v10  ;;  %v3226_v27 = vsel %vm18141_vm12, %v3129_v9, 0.0 }
 0x233   :  { %v7336_v45 = vpop.f32.mrf.mxu0  ;;  %18143 = vst [vmem:[#allocation103_spill] sm:$0xff] %v11062_v35  ;;  %v3225_v23 = vadd.f32 %v3224_v44, %v3223_v0  ;;  %18144 = vst [vmem:[#allocation104_spill] sm:$0xff] %v11064_v1  ;;  %v18146_v13 = vsel %vm11066_vm0, 4294967295, %v18145_v13  ;;  %vm377_vm2 = vcmp.lt.s32.totalorder %v11056_v16, 14  ;;  %v3130_v4 = vsel %vm11066_vm0, %v11062_v35, 0.0 }
 0x234   :  { %18147 = vst [vmem:[#allocation105_spill] sm:$0xff] %v18146_v13  ;;  %18148 = vst [vmem:[#allocation106_spill] sm:$0xff] %v11071_v61  ;;  %v11082_v0 = vadd.f32 %v10444_v57, %v2984_v28  ;;  %vm313_vm6 = vcmp.lt.s32.totalorder %v11064_v1, 14  ;;  %v186_v24 = vshra.s32 %v11071_v61, 4  ;;  %vm17441_vm14 = vcmp.lt.s32.totalorder %v11073_v3, 14 }
 0x235   :  { %18149 = vst [vmem:[#allocation107_spill] sm:$0xff] %v11073_v3  ;;  %v2987_v58 = vpop.f32.mrf.mxu0  ;;  %v3227_v44 = vadd.f32 %v3226_v27, %v3225_v23  ;;  %v187_v19 = vshra.s32 %v59_v50, 4  ;;  %v3228_v16 = vsel %vm18141_vm12, %v3130_v4, 0.0  ;;  %vm11091_vm7 = vmand %vm313_vm6, %vm377_vm2  ;;  %v18152_v13 = vmov 0 }
 0x236   :  { %18150 = vst [vmem:[#allocation108_spill] sm:$0xff] %v11082_v0  ;;  %v11088_v9 = vadd.f32 %v10444_v57, %v2987_v58  ;;  %v18153_v13 = vsel %vm11091_vm7, 4294967295, %v18152_v13  ;;  %v3131_v27 = vsel %vm17441_vm14, %v11082_v0, 0.0  ;;  %v61_v23 = vadd.s32 328, %v8864_v10  ;;  %vm18159_vm2 = vmmov %vm18141_vm12 }
 0x237   :  { %v7339_v14 = vpop.f32.mrf.mxu0  ;;  %18154 = vst [vmem:[#allocation110_spill] sm:$0xff] %v18153_v13  ;;  %v3229_v28 = vadd.f32 %v3228_v16, %v3227_v44  ;;  %v11099_v61 = vand.u32 15, %v186_v24  ;;  %v11102_v1 = vadd.s32 320, %v8864_v10  ;;  %v11104_v35 = vand.u32 15, %v59_v50  ;;  %vm18161_vm12 = vmmov %vm18159_vm2 }
 0x238   :  { %18151 = vst [vmem:[#allocation109_spill] sm:$0xff] %v11088_v9  ;;  %v11106_v4 = vand.u32 15, %v187_v19  ;;  %v3132_v37 = vsel %vm11091_vm7, %v11088_v9, 0.0  ;;  %v3230_v3 = vsel %vm18159_vm2, %v3131_v27, 0.0  ;;  %v11113_v16 = vadd.f32 %v7335_v41, %v10444_v57 }
 0x239   :  { %18155 = vst [vmem:[#allocation111_spill] sm:$0xff] %v11099_v61  ;;  %18156 = vst [vmem:[#allocation112_spill] sm:$0xff] %v11102_v1  ;;  %v3000_v58 = vpop.f32.mrf.mxu0  ;;  %v3231_v44 = vadd.f32 %v3230_v3, %v3229_v28  ;;  %v189_v24 = vshra.s32 %v61_v23, 4  ;;  %vm17450_vm6 = vcmp.lt.s32.totalorder %v11099_v61, 14  ;;  %v3232_v0 = vsel %vm18161_vm12, %v3132_v37, 0.0 }
 0x23a   :  { %18157 = vst [vmem:[#allocation113_spill] sm:$0xff] %v11104_v35  ;;  %18158 = vst [vmem:[#allocation114_spill] sm:$0xff] %v11106_v4  ;;  %v188_v50 = vshra.s32 %v11102_v1, 4  ;;  %vm315_vm14 = vcmp.lt.s32.totalorder %v11106_v4, 14  ;;  %vm379_vm0 = vcmp.lt.s32.totalorder %v11104_v35, 14  ;;  %v11120_v19 = vand.u32 15, %v61_v23 }
 0x23b   :  { %18160 = vst [vmem:[#allocation115_spill] sm:$0xff] %v11113_v16  ;;  %v7340_v31 = vpop.f32.mrf.mxu0  ;;  %v3133_v41 = vsel %vm17450_vm6, %v11113_v16, 0.0  ;;  %v11126_v3 = vadd.f32 %v7336_v45, %v10444_v57  ;;  %v3233_v27 = vadd.f32 %v3232_v0, %v3231_v44  ;;  %v11128_v28 = vand.u32 15, %v189_v24  ;;  %vm11130_vm2 = vmand %vm315_vm14, %vm379_vm0 }
 0x23c   :  { %18162 = vst [vmem:[#allocation116_spill] sm:$0xff] %v11120_v19  ;;  %v18165_v37 = vmov 0  ;;  %v11135_v1 = vadd.s32 336, %v8864_v10  ;;  %v11137_v35 = vand.u32 15, %v188_v50  ;;  %v63_v4 = vadd.s32 344, %v8864_v10 }
 0x23d   :  { %18163 = vst [vmem:[#allocation117_spill] sm:$0xff] %v11126_v3  ;;  %18164 = vst [vmem:[#allocation118_spill] sm:$0xff] %v11128_v28  ;;  %v18166_v37 = vsel %vm11130_vm2, 4294967295, %v18165_v37  ;;  %v3003_v23 = vpop.f32.mrf.mxu0  ;;  %v3234_v61 = vsel %vm18161_vm12, %v3133_v41, 0.0  ;;  %vm381_vm6 = vcmp.lt.s32.totalorder %v11120_v19, 14  ;;  %v65_v0 = vadd.s32 360, %v8864_v10 }
 0x23e   :  { %18167 = vst [vmem:[#allocation119_spill] sm:$0xff] %v18166_v37  ;;  %18168 = vst [vmem:[#allocation120_spill] sm:$0xff] %v11135_v1  ;;  %v3134_v44 = vsel %vm11130_vm2, %v11126_v3, 0.0  ;;  %v3235_v24 = vadd.f32 %v3234_v61, %v3233_v27  ;;  %v11149_v13 = vadd.f32 %v10444_v57, %v3000_v58  ;;  %vm317_vm0 = vcmp.lt.s32.totalorder %v11128_v28, 14 }
 0x23f   :  { %18169 = vst [vmem:[#allocation121_spill] sm:$0xff] %v11137_v35  ;;  %v190_v50 = vshra.s32 %v11135_v1, 4  ;;  %vm17468_vm14 = vcmp.lt.s32.totalorder %v11137_v35, 14  ;;  %v11155_v41 = vadd.s32 352, %v8864_v10  ;;  %v191_v19 = vshra.s32 %v63_v4, 4  ;;  %vm11161_vm2 = vmand %vm317_vm0, %vm381_vm6 }
 0x240   :  { %18170 = vst [vmem:[#allocation122_spill] sm:$0xff] %v11149_v13  ;;  %v11158_v16 = vadd.f32 %v10444_v57, %v3003_v23  ;;  %v3236_v37 = vsel %vm18161_vm12, %v3134_v44, 0.0  ;;  %v18173_v61 = vmov 0  ;;  %v193_v27 = vshra.s32 %v65_v0, 4  ;;  %vm18179_vm6 = vmmov %vm18161_vm12 }
 0x241   :  { %18171 = vst [vmem:[#allocation123_spill] sm:$0xff] %v11155_v41  ;;  %v18174_v61 = vsel %vm11161_vm2, 4294967295, %v18173_v61  ;;  %v3135_v1 = vsel %vm17468_vm14, %v11149_v13, 0.0  ;;  %v3237_v28 = vadd.f32 %v3236_v37, %v3235_v24  ;;  %v11168_v3 = vand.u32 15, %v190_v50  ;;  %vm18183_vm12 = vmmov %vm18179_vm6 }
 0x242   :  { %18172 = vst [vmem:[#allocation124_spill] sm:$0xff] %v11158_v16  ;;  %18175 = vst [vmem:[#allocation125_spill] sm:$0xff] %v18174_v61  ;;  %v192_v9 = vshra.s32 %v11155_v41, 4  ;;  %v11171_v40 = vand.u32 15, %v63_v4  ;;  %v11173_v23 = vand.u32 15, %v191_v19  ;;  %v3136_v44 = vsel %vm11161_vm2, %v11158_v16, 0.0 }
 0x243   :  { %18176 = vst [vmem:[#allocation126_spill] sm:$0xff] %v11168_v3  ;;  %v3238_v36 = vsel %vm18179_vm6, %v3135_v1, 0.0  ;;  %v11179_v51 = vand.u32 15, %v65_v0  ;;  %v11181_v35 = vand.u32 15, %v193_v27  ;;  %v11184_v37 = vadd.f32 %v7339_v14, %v10444_v57 }
 0x244   :  { %18177 = vst [vmem:[#allocation127_spill] sm:$0xff] %v11171_v40  ;;  %18178 = vst [vmem:[#allocation128_spill] sm:$0xff] %v11173_v23  ;;  %v3239_v24 = vadd.f32 %v3238_v36, %v3237_v28  ;;  %vm17478_vm0 = vcmp.lt.s32.totalorder %v11168_v3, 14  ;;  %v3240_v4 = vsel %vm18183_vm12, %v3136_v44, 0.0  ;;  %v11189_v19 = vadd.s32 368, %v8864_v10 }
 0x245   :  { %18180 = vst [vmem:[#allocation129_spill] sm:$0xff] %v11179_v51  ;;  %18181 = vst [vmem:[#allocation130_spill] sm:$0xff] %v11181_v35  ;;  %v11191_v50 = vand.u32 15, %v192_v9  ;;  %vm319_vm6 = vcmp.lt.s32.totalorder %v11173_v23, 14  ;;  %vm383_vm14 = vcmp.lt.s32.totalorder %v11171_v40, 14  ;;  %v67_v1 = vadd.s32 376, %v8864_v10 }
 0x246   :  { %18182 = vst [vmem:[#allocation131_spill] sm:$0xff] %v11184_v37  ;;  %18184 = vst [vmem:[#allocation132_spill] sm:$0xff] %v11189_v19  ;;  %vm385_vm7 = vcmp.lt.s32.totalorder %v11179_v51, 14  ;;  %v69_v14 = vadd.s32 392, %v8864_v10  ;;  %v3137_v28 = vsel %vm17478_vm0, %v11184_v37, 0.0  ;;  %v11203_v9 = vadd.f32 %v7340_v31, %v10444_v57 }
 0x247   :  { %18185 = vst [vmem:[#allocation133_spill] sm:$0xff] %v11191_v50  ;;  %v3241_v0 = vadd.f32 %v3240_v4, %v3239_v24  ;;  %vm11208_vm12 = vmand %vm319_vm6, %vm383_vm14  ;;  %v18187_v44 = vmov 0  ;;  %v194_v41 = vshra.s32 %v11189_v19, 4  ;;  %vm17492_vm2 = vcmp.lt.s32.totalorder %v11191_v50, 14 }
 0x248   :  { %18186 = vst [vmem:[#allocation134_spill] sm:$0xff] %v11203_v9  ;;  %v18188_v44 = vsel %vm11208_vm12, 4294967295, %v18187_v44  ;;  %v11217_v23 = vadd.s32 384, %v8864_v10  ;;  %v195_v3 = vshra.s32 %v67_v1, 4  ;;  %vm18192_vm0 = vcmask 261120  }
 0x249   :  { %18189 = vst [vmem:[#allocation135_spill] sm:$0xff] %v18188_v44  ;;  %vm18193_vm14 = vcmp.lt.s32.totalorder %v11181_v35, 14  ;;  %v18194_v24 = vmov 0  ;;  %v197_v19 = vshra.s32 %v69_v14, 4  ;;  %v3138_v61 = vsel %vm11208_vm12, %v11203_v9, 0.0 }
 0x24a   :  { %18190 = vst [vmem:[#allocation136_spill] sm:$0xff] %v11217_v23  ;;  %vm11227_vm6 = vmand %vm18193_vm14, %vm385_vm7  ;;  %v196_v51 = vshra.s32 %v11217_v23, 4  ;;  %v11240_v35 = vand.u32 15, %v67_v1  ;;  %v11242_v16 = vand.u32 15, %v195_v3  ;;  %v11249_v9 = vand.u32 15, %v69_v14 }
 0x24b   :  { %v18195_v24 = vsel %vm11227_vm6, 4294967295, %v18194_v24  ;;  %vm18200_vm7 = vmmov %vm18192_vm0  ;;  %v11251_v50 = vand.u32 15, %v197_v19  ;;  %v11260_v23 = vadd.s32 400, %v8864_v10  ;;  %v71_v19 = vadd.s32 408, %v8864_v10 }
 0x24c   :  { %18196 = vst [vmem:[#allocation138_spill] sm:$0xff] %v18195_v24  ;;  %18198 = vst [vmem:[#allocation140_spill] sm:$0xff] %v11240_v35  ;;  %v3244_v44 = vsel %vm18200_vm7, %v3138_v61, 0.0  ;;  %v11262_v61 = vand.u32 15, %v196_v51  ;;  %vm323_vm7 = vcmp.lt.s32.totalorder %v11242_v16, 14  ;;  %vm389_vm12 = vcmp.lt.s32.totalorder %v11249_v9, 14 }
 0x24d   :  { %18199 = vst [vmem:[#allocation141_spill] sm:$0xff] %v11242_v16  ;;  %18201 = vst [vmem:[#allocation142_spill] sm:$0xff] %v11249_v9  ;;  %v199_v16 = vshra.s32 %v71_v19, 4 }
 0x24e   :  { %18202 = vst [vmem:[#allocation143_spill] sm:$0xff] %v11251_v50  ;;  %18205 = vst [vmem:[#allocation145_spill] sm:$0xff] %v11260_v23 }
 0x24f   :  { %18206 = vst [vmem:[#allocation146_spill] sm:$0xff] %v11262_v61 }
 0x25e   :  { %v11142_v45 = vpop.f32.mrf.mxu0 }
 0x260   :  { %v3016_v58 = vpop.f32.mrf.mxu0 }
 0x261   :  { %v11206_v27 = vadd.f32 %v10444_v57, %v3016_v58  ;;  %v3242_v58 = vsel %vm18192_vm0, %v3137_v28, 0.0  ;;  %v11237_v28 = vand.u32 15, %v194_v41  ;;  %v11255_v41 = vadd.f32 %v11142_v45, %v10444_v57 }
 0x262   :  { %v7344_v56 = vpop.f32.mrf.mxu0  ;;  %v3243_v37 = vadd.f32 %v3242_v58, %v3241_v0 }
 0x263   :  { %18197 = vst [vmem:[#allocation139_spill] sm:$0xff] %v11237_v28  ;;  %18203 = vst [vmem:[#allocation144_spill] sm:$0xff] %v11255_v41  ;;  %vm17500_vm14 = vcmp.lt.s32.totalorder %v11237_v28, 14  ;;  %v11274_v51 = vadd.f32 %v7344_v56, %v10444_v57  ;;  %v11291_v56 = vld [vmem:[%s17241_s3] ss:$0 sm:$0xff] }
 0x264   :  { %v3019_v36 = vpop.f32.mrf.mxu0  ;;  %v3245_v1 = vadd.f32 %v3244_v44, %v3243_v37  ;;  %v73_v37 = vadd.s32 424, %v8864_v10 }
 0x265   :  { %v11220_v31 = vadd.f32 %v10444_v57, %v3019_v36  ;;  %v3139_v36 = vsel %vm17492_vm2, %v11206_v27, 0.0  ;;  %vm18204_vm2 = vmmov %vm18192_vm0  ;;  %18207 = vst [vmem:[#allocation147_spill] sm:$0xff] %v11274_v51 }
 0x266   :  { %v3246_v0 = vsel %vm18192_vm0, %v3139_v36, 0.0  ;;  %vm387_vm0 = vcmp.lt.s32.totalorder %v11240_v35, 14  ;;  %v11286_v35 = vadd.s32 416, %v8864_v10 }
 0x267   :  { %18191 = vst [vmem:[#allocation137_spill] sm:$0xff] %v11220_v31  ;;  %v3140_v13 = vsel %vm11227_vm6, %v11220_v31, 0.0  ;;  %v3247_v36 = vadd.f32 %v3246_v0, %v3245_v1  ;;  %v18209_v0 = vmov 0  ;;  %v198_v1 = vshra.s32 %v11260_v23, 4 }
 0x268   :  { %v3248_v3 = vsel %vm18204_vm2, %v3140_v13, 0.0  ;;  %v3141_v13 = vsel %vm17500_vm14, %v11255_v41, 0.0  ;;  %vm11279_vm2 = vmand %vm323_vm7, %vm387_vm0  ;;  %vm17515_vm6 = vcmp.lt.s32.totalorder %v11262_v61, 14  ;;  %18212 = vst [vmem:[#allocation150_spill] sm:$0xff] %v11286_v35  ;;  %vm18214_vm7 = vcmask 261120  }
 0x269   :  { %v3249_v14 = vadd.f32 %v3248_v3, %v3247_v36  ;;  %v18210_v0 = vsel %vm11279_vm2, 4294967295, %v18209_v0  ;;  %vm18215_vm0 = vcmp.lt.s32.totalorder %v11251_v50, 14  ;;  %v18216_v3 = vmov 0 }
 0x26a   :  { %18211 = vst [vmem:[#allocation149_spill] sm:$0xff] %v18210_v0  ;;  %vm11301_vm14 = vmand %vm18215_vm0, %vm389_vm12  ;;  %v201_v36 = vshra.s32 %v73_v37, 4  ;;  %v3142_v23 = vsel %vm11279_vm2, %v11274_v51, 0.0  ;;  %v11311_v24 = vand.u32 15, %v198_v1  ;;  %v200_v9 = vshra.s32 %v11286_v35, 4 }
 0x26b   :  { %v18217_v3 = vsel %vm11301_vm14, 4294967295, %v18216_v3  ;;  %v11314_v50 = vand.u32 15, %v71_v19  ;;  %v11316_v41 = vand.u32 15, %v199_v16  ;;  %vm18222_vm12 = vmmov %vm18214_vm7  ;;  %v11323_v61 = vand.u32 15, %v73_v37 }
 0x26c   :  { %18218 = vst [vmem:[#allocation152_spill] sm:$0xff] %v18217_v3  ;;  %18219 = vst [vmem:[#allocation153_spill] sm:$0xff] %v11311_v24  ;;  %v3252_v0 = vsel %vm18222_vm12, %v3142_v23, 0.0  ;;  %v11325_v1 = vand.u32 15, %v201_v36  ;;  %vm17525_vm0 = vcmp.lt.s32.totalorder %v11311_v24, 14  ;;  %v11334_v3 = vadd.s32 432, %v8864_v10 }
 0x26d   :  { %18220 = vst [vmem:[#allocation154_spill] sm:$0xff] %v11314_v50  ;;  %18221 = vst [vmem:[#allocation155_spill] sm:$0xff] %v11316_v41  ;;  %v11336_v23 = vand.u32 15, %v200_v9  ;;  %vm327_vm12 = vcmp.lt.s32.totalorder %v11316_v41, 14  ;;  %v75_v37 = vadd.s32 440, %v8864_v10  ;;  %vm393_vm2 = vcmp.lt.s32.totalorder %v11323_v61, 14 }
 0x26e   :  { %v11214_v40 = vpop.f32.mrf.mxu0  ;;  %18223 = vst [vmem:[#allocation156_spill] sm:$0xff] %v11323_v61  ;;  %18224 = vst [vmem:[#allocation157_spill] sm:$0xff] %v11325_v1  ;;  %v18231_v36 = vmov 0  ;;  %v11379_v41 = vadd.s32 464, %v8864_v10 }
 0x26f   :  { %v11329_v35 = vadd.f32 %v11291_v56, %v11214_v40  ;;  %18227 = vst [vmem:[#allocation159_spill] sm:$0xff] %v11334_v3  ;;  %18228 = vst [vmem:[#allocation160_spill] sm:$0xff] %v11336_v23  ;;  %vm17542_vm11 = vcmp.lt.s32.totalorder %v11336_v23, 14  ;;  %v11382_v24 = vand.u32 15, %v75_v37 }
 0x270   :  { %v3032_v4 = vpop.f32.mrf.mxu0  ;;  %18240 = vst [vmem:[#allocation167_spill] sm:$0xff] %v11379_v41 }
 0x271   :  { %v11277_v44 = vadd.f32 %v10444_v57, %v3032_v4  ;;  %v3250_v4 = vsel %vm18214_vm7, %v3141_v13, 0.0  ;;  %18225 = vst [vmem:[#allocation158_spill] sm:$0xff] %v11329_v35  ;;  %18241 = vst [vmem:[#allocation168_spill] sm:$0xff] %v11382_v24 }
 0x272   :  { %v7348_v58 = vpop.f32.mrf.mxu0  ;;  %v3251_v28 = vadd.f32 %v3250_v4, %v3249_v14 }
 0x273   :  { %18208 = vst [vmem:[#allocation148_spill] sm:$0xff] %v11277_v44  ;;  %v11347_v9 = vadd.f32 %v11291_v56, %v7348_v58 }
 0x274   :  { %v3035_v45 = vpop.f32.mrf.mxu0  ;;  %v3253_v19 = vadd.f32 %v3252_v0, %v3251_v28 }
 0x275   :  { %v11294_v57 = vadd.f32 %v11291_v56, %v3035_v45  ;;  %v3143_v45 = vsel %vm17515_vm6, %v11277_v44, 0.0  ;;  %vm18226_vm6 = vmmov %vm18214_vm7  ;;  %18229 = vst [vmem:[#allocation161_spill] sm:$0xff] %v11347_v9 }
 0x276   :  { %v3254_v14 = vsel %vm18214_vm7, %v3143_v45, 0.0  ;;  %vm391_vm7 = vcmp.lt.s32.totalorder %v11314_v50, 14 }
 0x277   :  { %18213 = vst [vmem:[#allocation151_spill] sm:$0xff] %v11294_v57  ;;  %v3144_v31 = vsel %vm11301_vm14, %v11294_v57, 0.0  ;;  %v3255_v57 = vadd.f32 %v3254_v14, %v3253_v19  ;;  %vm329_vm14 = vcmp.lt.s32.totalorder %v11325_v1, 14  ;;  %v202_v14 = vshra.s32 %v11334_v3, 4 }
 0x278   :  { %v3256_v16 = vsel %vm18226_vm6, %v3144_v31, 0.0  ;;  %v3145_v31 = vsel %vm17525_vm0, %v11329_v35, 0.0  ;;  %vm11352_vm6 = vmand %vm327_vm12, %vm391_vm7  ;;  %v203_v19 = vshra.s32 %v75_v37, 4  ;;  %v11362_v1 = vadd.s32 448, %v8864_v10 }
 0x279   :  { %v3257_v28 = vadd.f32 %v3256_v16, %v3255_v57  ;;  %v18232_v36 = vsel %vm11352_vm6, 4294967295, %v18231_v36  ;;  %vm18235_vm0 = vcmask 261120   ;;  %vm11365_vm3 = vmand %vm329_vm14, %vm393_vm2  ;;  %v18236_v57 = vmov 0 }
 0x27a   :  { %18233 = vst [vmem:[#allocation163_spill] sm:$0xff] %v18232_v36  ;;  %18234 = vst [vmem:[#allocation164_spill] sm:$0xff] %v11362_v1  ;;  %v3258_v58 = vsel %vm18235_vm0, %v3145_v31, 0.0  ;;  %v18237_v57 = vsel %vm11365_vm3, 4294967295, %v18236_v57  ;;  %v11376_v50 = vand.u32 15, %v202_v14  ;;  %v79_v31 = vadd.s32 472, %v8864_v10 }
 0x27b   :  { %18238 = vst [vmem:[#allocation165_spill] sm:$0xff] %v18237_v57  ;;  %v3259_v16 = vadd.f32 %v3258_v58, %v3257_v28  ;;  %v11384_v35 = vand.u32 15, %v203_v19  ;;  %v204_v58 = vshra.s32 %v11362_v1, 4  ;;  %vm18243_vm14 = vmmov %vm18235_vm0  ;;  %v206_v19 = vshra.s32 %v11379_v41, 4 }
 0x27c   :  { %18239 = vst [vmem:[#allocation166_spill] sm:$0xff] %v11376_v50  ;;  %vm18244_vm2 = vmmov %vm18235_vm0  ;;  %vm17552_vm0 = vcmp.lt.s32.totalorder %v11376_v50, 14  ;;  %v207_v44 = vshra.s32 %v79_v31, 4 }
 0x27d   :  { %18242 = vst [vmem:[#allocation169_spill] sm:$0xff] %v11384_v35  ;;  %vm18246_vm12 = vmmov %vm18244_vm2  ;;  %vm331_vm7 = vcmp.lt.s32.totalorder %v11384_v35, 14  ;;  %v11426_v35 = vand.u32 15, %v79_v31 }
 0x27e   :  { %v7351_v13 = vpop.f32.mrf.mxu0  ;;  %v11422_v1 = vand.u32 15, %v207_v44 }
 0x27f   :  { %v11393_v36 = vadd.f32 %v11291_v56, %v7351_v13  ;;  %v11405_v13 = vadd.s32 480, %v8864_v10  ;;  %18257 = vst [vmem:[#allocation179_spill] sm:$0xff] %v11426_v35 }
 0x280   :  { %v3048_v4 = vpop.f32.mrf.mxu0  ;;  %18256 = vst [vmem:[#allocation178_spill] sm:$0xff] %v11422_v1 }
 0x281   :  { %v11350_v0 = vadd.f32 %v11291_v56, %v3048_v4  ;;  %v3146_v4 = vsel %vm11352_vm6, %v11347_v9, 0.0  ;;  %18245 = vst [vmem:[#allocation170_spill] sm:$0xff] %v11393_v36  ;;  %18249 = vst [vmem:[#allocation173_spill] sm:$0xff] %v11405_v13 }
 0x282   :  { %v7352_v45 = vpop.f32.mrf.mxu0  ;;  %v3260_v23 = vsel %vm18243_vm14, %v3146_v4, 0.0  ;;  %v11400_v4 = vand.u32 15, %v204_v58  ;;  %v18252_v58 = vmov 0 }
 0x283   :  { %18230 = vst [vmem:[#allocation162_spill] sm:$0xff] %v11350_v0  ;;  %v3147_v3 = vsel %vm17542_vm11, %v11350_v0, 0.0  ;;  %v3261_v0 = vadd.f32 %v3260_v23, %v3259_v16  ;;  %vm395_vm11 = vcmp.lt.s32.totalorder %v11382_v24, 14  ;;  %v81_v23 = vadd.s32 488, %v8864_v10 }
 0x284   :  { %v3051_v40 = vpop.f32.mrf.mxu0  ;;  %v3262_v14 = vsel %vm18244_vm2, %v3147_v3, 0.0  ;;  %18247 = vst [vmem:[#allocation171_spill] sm:$0xff] %v11400_v4  ;;  %v3149_v16 = vsel %vm17552_vm0, %v11393_v36, 0.0  ;;  %vm11416_vm14 = vmand %vm331_vm7, %vm395_vm11  ;;  %v83_v24 = vadd.s32 504, %v8864_v10  ;;  %vm17572_vm2 = vcmp.lt.s32.totalorder %v11400_v4, 14 }
 0x285   :  { %v11359_v61 = vadd.f32 %v11291_v56, %v3051_v40  ;;  %v77_v40 = vadd.s32 456, %v8864_v10  ;;  %v3263_v57 = vadd.f32 %v3262_v14, %v3261_v0  ;;  %v18253_v58 = vsel %vm11416_vm14, 4294967295, %v18252_v58 }
 0x286   :  { %18254 = vst [vmem:[#allocation176_spill] sm:$0xff] %v18253_v58  ;;  %vm399_vm11 = vcmp.lt.s32.totalorder %v11426_v35, 14  ;;  %v11465_v51 = vand.u32 15, %v81_v23 }
 0x287   :  { %v3148_v28 = vsel %vm11365_vm3, %v11359_v61, 0.0  ;;  %v205_v9 = vshra.s32 %v77_v40, 4  ;;  %v11402_v3 = vand.u32 15, %v77_v40  ;;  %v11420_v40 = vand.u32 15, %v206_v19  ;;  %vm18260_vm3 = vmmov %vm18246_vm12 }
 0x288   :  { %v3264_v37 = vsel %vm18246_vm12, %v3148_v28, 0.0  ;;  %v11412_v28 = vadd.f32 %v11291_v56, %v7352_v45  ;;  %v11429_v45 = vadd.s32 496, %v8864_v10  ;;  %v209_v19 = vshra.s32 %v81_v23, 4  ;;  %18267 = vst [vmem:[#allocation184_spill] sm:$0xff] %v11465_v51 }
 0x289   :  { %18248 = vst [vmem:[#allocation172_spill] sm:$0xff] %v11402_v3  ;;  %v3265_v0 = vadd.f32 %v3264_v37, %v3263_v57  ;;  %v11414_v14 = vand.u32 15, %v205_v9  ;;  %18255 = vst [vmem:[#allocation177_spill] sm:$0xff] %v11420_v40  ;;  %v3266_v9 = vsel %vm18246_vm12, %v3149_v16, 0.0  ;;  %v208_v37 = vshra.s32 %v11405_v13, 4 }
 0x28a   :  { %18250 = vst [vmem:[#allocation174_spill] sm:$0xff] %v11412_v28  ;;  %18258 = vst [vmem:[#allocation180_spill] sm:$0xff] %v11429_v45  ;;  %v3150_v44 = vsel %vm11416_vm14, %v11412_v28, 0.0  ;;  %v211_v16 = vshra.s32 %v83_v24, 4  ;;  %vm18261_vm0 = vcmp.lt.s32.totalorder %v11402_v3, 14  ;;  %v11461_v28 = vand.u32 15, %v209_v19 }
 0x28b   :  { %18251 = vst [vmem:[#allocation175_spill] sm:$0xff] %v11414_v14  ;;  %v3267_v50 = vadd.f32 %v3266_v9, %v3265_v0  ;;  %vm333_vm7 = vcmp.lt.s32.totalorder %v11414_v14, 14  ;;  %v210_v0 = vshra.s32 %v11429_v45, 4  ;;  %vm18259_vm14 = vmmov %vm18246_vm12  ;;  %v18262_v14 = vmov 0 }
 0x28c   :  { %v3268_v9 = vsel %vm18259_vm14, %v3150_v44, 0.0  ;;  %vm11455_vm12 = vmand %vm333_vm7, %vm18261_vm0  ;;  %v11459_v58 = vand.u32 15, %v208_v37  ;;  %18266 = vst [vmem:[#allocation183_spill] sm:$0xff] %v11461_v28  ;;  %v11473_v3 = vand.u32 15, %v211_v16  ;;  %vm18273_vm0 = vcmp.lt.s32.totalorder %v11420_v40, 14 }
 0x28d   :  { %v18263_v14 = vsel %vm11455_vm12, 4294967295, %v18262_v14  ;;  %v3269_v4 = vadd.f32 %v3268_v9, %v3267_v50  ;;  %vm18275_vm7 = vcmask 261120   ;;  %v11483_v9 = vand.u32 15, %v210_v0 }
 0x28e   :  { %18264 = vst [vmem:[#allocation181_spill] sm:$0xff] %v18263_v14  ;;  %18265 = vst [vmem:[#allocation182_spill] sm:$0xff] %v11459_v58 }
 0x28f   :  { %v7355_v41 = vpop.f32.mrf.mxu0  ;;  %18272 = vst [vmem:[#allocation186_spill] sm:$0xff] %v11473_v3  ;;  %18276 = vst [vmem:[#allocation188_spill] sm:$0xff] %v11483_v9 }
 0x290   :  { %v11444_v10 = vadd.f32 %v11291_v56, %v7355_v41 }
 0x291   :  { %v3064_v57 = vpop.f32.mrf.mxu0 }
 0x292   :  { %v11438_v36 = vadd.f32 %v11291_v56, %v3064_v57  ;;  %v3153_v37 = vsel %vm18273_vm0, %v11444_v10, 0.0  ;;  %vm401_vm0 = vcmp.lt.s32.totalorder %v11465_v51, 14 }
 0x293   :  { %v7356_v31 = vpop.f32.mrf.mxu0 }
 0x294   :  { %v3151_v13 = vsel %vm17572_vm2, %v11438_v36, 0.0  ;;  %v3076_v35 = vadd.f32 %v11291_v56, %v7356_v31  ;;  %v11480_v31 = vand.u32 15, %v83_v24  ;;  %vm18277_vm2 = vmmov %vm18275_vm7 }
 0x295   :  { %v3270_v57 = vsel %vm18260_vm3, %v3151_v13, 0.0  ;;  %v3067_v41 = vpop.f32.mrf.mxu0  ;;  %vm18268_vm3 = vcmp.lt.s32.totalorder %v11422_v1, 14  ;;  %v18269_v13 = vmov 0  ;;  %v3274_v24 = vsel %vm18277_vm2, %v3153_v37, 0.0  ;;  %vm18278_vm6 = vmmov %vm18277_vm2 }
 0x296   :  { %v3068_v45 = vadd.f32 %v11291_v56, %v3067_v41  ;;  %vm11469_vm14 = vmand %vm18268_vm3, %vm399_vm11  ;;  %v3271_v50 = vadd.f32 %v3270_v57, %v3269_v4  ;;  %18274 = vst [vmem:[#allocation187_spill] sm:$0xff] %v11480_v31  ;;  %vm336_vm11 = vcmp.lt.s32.totalorder %v11459_v58, 14  ;;  %vm337_vm3 = vcmp.lt.s32.totalorder %v11461_v28, 14 }
 0x297   :  { %v18270_v13 = vsel %vm11469_vm14, 4294967295, %v18269_v13  ;;  %v7359_v44 = vpop.f32.mrf.mxu0  ;;  %v3154_v16 = vsel %vm11469_vm14, %v3076_v35, 0.0  ;;  %vm338_vm14 = vcmp.lt.s32.totalorder %v11483_v9, 14  ;;  %vm11499_vm4 = vmand %vm337_vm3, %vm401_vm0  ;;  %vm18289_vm0 = vcmp.lt.s32.totalorder %v10446_v55, 14  ;;  %v18369_v55 = vld [vmem:[#allocation101_spill] sm:$0xff] }
 0x298   :  { %18271 = vst [vmem:[#allocation185_spill] sm:$0xff] %v18270_v13  ;;  %v3152_v19 = vsel %vm11455_vm12, %v3068_v45, 0.0  ;;  %vm339_vm12 = vcmp.lt.s32.totalorder %v11473_v3, 14  ;;  %v3276_v28 = vsel %vm18278_vm6, %v3154_v16, 0.0  ;;  %vm18284_vm6 = vmmov %vm18277_vm2 }
 0x299   :  { %v3272_v23 = vsel %vm18275_vm7, %v3152_v19, 0.0  ;;  %v3080_v41 = vpop.f32.mrf.mxu0  ;;  %v3089_v19 = vadd.f32 %v11291_v56, %v7359_v44  ;;  %vm403_vm7 = vcmp.lt.s32.totalorder %v11480_v31, 14  ;;  %vm18285_vm3 = vmmov %vm18277_vm2 }
 0x29a   :  { %v3273_v1 = vadd.f32 %v3272_v23, %v3271_v50  ;;  %v3081_v4 = vadd.f32 %v11291_v56, %v3080_v41  ;;  %v18279_v50 = vmov 0  ;;  %vm11506_vm9 = vmand %vm339_vm12, %vm403_vm7  ;;  %vm18290_vm7 = vcmp.lt.s32.totalorder %v10475_v62, 14  ;;  %v18374_v62 = vld [vmem:[#allocation103_spill] sm:$0xff] }
 0x29b   :  { %v7360_v57 = vpop.f32.mrf.mxu0  ;;  %v18280_v50 = vsel %vm11499_vm4, 4294967295, %v18279_v50  ;;  %v3157_v16 = vsel %vm338_vm14, %v3089_v19, 0.0  ;;  %vm18286_vm12 = vmmov %vm18277_vm2 }
 0x29c   :  { %v3275_v0 = vadd.f32 %v3274_v24, %v3273_v1  ;;  %v3155_v40 = vsel %vm336_vm11, %v3081_v4, 0.0  ;;  %18281 = vst [vmem:[#allocation189_spill] sm:$0xff] %v18280_v50  ;;  %v3092_v41 = vadd.f32 %v11291_v56, %v7360_v57  ;;  %v1045_v24 = vld [vmem:[%s17241_s3 + $0x1] sm:$0x1] }
 0x29d   :  { %v3083_v37 = vpop.f32.mrf.mxu0  ;;  %v3278_v44 = vsel %vm18277_vm2, %v3155_v40, 0.0 }
 0x29e   :  { %v3277_v23 = vadd.f32 %v3276_v28, %v3275_v0  ;;  %v3084_v1 = vadd.f32 %v11291_v56, %v3083_v37  ;;  %v3158_v28 = vsel %vm11506_vm9, %v3092_v41, 0.0  ;;  %v3282_v56 = vsel %vm18285_vm3, %v3157_v16, 0.0 }
 0x29f   :  { %v3284_v0 = vsel %vm18286_vm12, %v3158_v28, 0.0  ;;  %vm18293_vm3 = vcmp.lt.s32.totalorder %v10522_v43, 14  ;;  %vm18294_vm12 = vmmov %vm18277_vm2  ;;  %v18359_v43 = vld [vmem:[#allocation94_spill] sm:$0xff] }
 0x2a0   :  { %v3279_v31 = vadd.f32 %v3278_v44, %v3277_v23  ;;  %v3156_v3 = vsel %vm11499_vm4, %v3084_v1, 0.0 }
 0x2a1   :  { %v3280_v51 = vsel %vm18284_vm6, %v3156_v3, 0.0  ;;  %vm18291_vm6 = vmmov %vm18277_vm2 }
 0x2a2   :  { %v3281_v57 = vadd.f32 %v3280_v51, %v3279_v31 }
 0x2a4   :  { %v3283_v40 = vadd.f32 %v3282_v56, %v3281_v57 }
 0x2a6   :  { %v3285_v37 = vadd.f32 %v3284_v0, %v3283_v40 }
 0x2a8   :  { %v3286_v58 = vrot.slane %v3285_v37, 4 }
 0x2aa   :  { %v3287_v13 = vadd.f32 %v3286_v58, %v3285_v37 }
 0x2ac   :  { %v3288_v9 = vrot.slane %v3287_v13, 2 }
 0x2ae   :  { %v3289_v14 = vadd.f32 %v3288_v9, %v3287_v13 }
 0x2b0   :  { %v3290_v23 = vrot.slane %v3289_v14, 1 }
 0x2b2   :  { %v3291_v44 = vadd.f32 %v3290_v23, %v3289_v14 }
 0x2b4   :  { %v11519_v50 = vmul.f32 0.0025510204, %v3291_v44 }
 0x2b6   :  { %v11523_v3 = vsub.f32 %v11359_v61, %v11519_v50  ;;  %v11527_v51 = vsub.f32 %v11438_v36, %v11519_v50  ;;  %v11530_v31 = vsub.f32 %v3068_v45, %v11519_v50  ;;  %v11534_v58 = vsub.f32 %v11444_v10, %v11519_v50 }
 0x2b7   :  { %v11537_v13 = vsub.f32 %v3076_v35, %v11519_v50  ;;  %v11540_v14 = vsub.f32 %v3081_v4, %v11519_v50  ;;  %v11543_v61 = vsub.f32 %v3084_v1, %v11519_v50  ;;  %v11546_v9 = vsub.f32 %v3089_v19, %v11519_v50 }
 0x2b8   :  { %18287 = vst [vmem:[#allocation190_spill] sm:$0xff] %v11523_v3  ;;  %18288 = vst [vmem:[#allocation191_spill] sm:$0xff] %v11527_v51  ;;  %v11549_v36 = vsub.f32 %v3092_v41, %v11519_v50  ;;  %v11553_v45 = vsub.f32 %v10471_v30, %v11519_v50  ;;  %v11557_v10 = vsub.f32 %v10454_v47, %v11519_v50 }
 0x2b9   :  { %v11561_v35 = vsub.f32 %v10490_v46, %v11519_v50  ;;  %v11565_v4 = vsub.f32 %v10511_v6, %v11519_v50  ;;  %v11573_v30 = vsub.f32 %v10531_v15, %v11519_v50  ;;  %v11579_v46 = vsub.f32 %v10539_v59, %v11519_v50 }
 0x2ba   :  { %v3357_v19 = vmul.f32 %v11553_v45, %v11553_v45  ;;  %v3358_v41 = vmul.f32 %v11557_v10, %v11557_v10  ;;  %v11589_v15 = vsub.f32 %v10565_v2, %v11519_v50  ;;  %v11599_v40 = vsub.f32 %v10581_v20, %v11519_v50 }
 0x2bb   :  { %v3359_v47 = vmul.f32 %v11561_v35, %v11561_v35  ;;  %v3360_v6 = vmul.f32 %v11565_v4, %v11565_v4  ;;  %v3361_v28 = vmul.f32 %v11573_v30, %v11573_v30  ;;  %v3362_v39 = vmul.f32 %v11579_v46, %v11579_v46 }
 0x2bc   :  { %v3421_v1 = vsel %vm18289_vm0, %v3357_v19, 0.0  ;;  %v3422_v16 = vsel %vm10464_vm10, %v3358_v41, 0.0  ;;  %vm18292_vm10 = vmmov %vm18277_vm2  ;;  %v11608_v23 = vsub.f32 %v10601_v18, %v11519_v50  ;;  %v3363_v44 = vmul.f32 %v11589_v15, %v11589_v15 }
 0x2bd   :  { %v3423_v59 = vsel %vm18290_vm7, %v3359_v47, 0.0  ;;  %v3485_v57 = vsel %vm18277_vm2, %v3421_v1, 0.0  ;;  %v3486_v56 = vsel %vm18291_vm6, %v3422_v16, 0.0  ;;  %v3424_v2 = vsel %vm10515_vm15, %v3360_v6, 0.0  ;;  %vm18295_vm15 = vmmov %vm18277_vm2 }
 0x2be   :  { %v3487_v0 = vadd.f32 %v3486_v56, %v3485_v57  ;;  %v3488_v37 = vsel %vm18292_vm10, %v3423_v59, 0.0  ;;  %v3425_v20 = vsel %vm18293_vm3, %v3361_v28, 0.0  ;;  %v3490_v41 = vsel %vm18294_vm12, %v3424_v2, 0.0  ;;  %vm18297_vm7 = vmmov %vm18277_vm2 }
 0x2bf   :  { %v11617_v34 = vsub.f32 %v10609_v25, %v11519_v50  ;;  %v3364_v47 = vmul.f32 %v11599_v40, %v11599_v40  ;;  %v3426_v18 = vsel %vm10542_vm5, %v3362_v39, 0.0  ;;  %v3492_v1 = vsel %vm18295_vm15, %v3425_v20, 0.0  ;;  %vm18298_vm5 = vmmov %vm18277_vm2 }
 0x2c0   :  { %v3489_v19 = vadd.f32 %v3488_v37, %v3487_v0  ;;  %v11626_v16 = vsub.f32 %v10637_v49, %v11519_v50  ;;  %v3365_v28 = vmul.f32 %v11608_v23, %v11608_v23  ;;  %vm18296_vm0 = vcmp.lt.s32.totalorder %v10550_v53, 14  ;;  %vm18300_vm6 = vmmov %vm18298_vm5  ;;  %v18364_v53 = vld [vmem:[#allocation95_spill] sm:$0xff] }
 0x2c1   :  { %v3427_v25 = vsel %vm18296_vm0, %v3363_v44, 0.0  ;;  %v3494_v57 = vsel %vm18297_vm7, %v3426_v18, 0.0  ;;  %v11635_v22 = vsub.f32 %v10651_v63, %v11519_v50  ;;  %v3366_v56 = vmul.f32 %v11617_v34, %v11617_v34  ;;  %vm18303_vm3 = vmmov %vm18298_vm5 }
 0x2c2   :  { %v3491_v6 = vadd.f32 %v3490_v41, %v3489_v19  ;;  %v3428_v49 = vsel %vm10585_vm13, %v3364_v47, 0.0  ;;  %v3496_v2 = vsel %vm18298_vm5, %v3427_v25, 0.0  ;;  %v11644_v0 = vsub.f32 %v10674_v38, %v11519_v50  ;;  %vm18301_vm13 = vmmov %vm18298_vm5 }
 0x2c3   :  { %v3367_v37 = vmul.f32 %v11626_v16, %v11626_v16  ;;  %vm18299_vm2 = vcmp.lt.s32.totalorder %v10592_v54, 14  ;;  %v3498_v20 = vsel %vm18300_vm6, %v3428_v49, 0.0  ;;  %v11653_v60 = vsub.f32 %v10683_v11, %v11519_v50  ;;  %vm18306_vm15 = vmmov %vm18303_vm3  ;;  %v18351_v54 = vld [vmem:[#allocation87_spill] sm:$0xff] }
 0x2c4   :  { %v3493_v59 = vadd.f32 %v3492_v1, %v3491_v6  ;;  %v3429_v63 = vsel %vm18299_vm2, %v3365_v28, 0.0  ;;  %v3368_v19 = vmul.f32 %v11635_v22, %v11635_v22  ;;  %v3430_v38 = vsel %vm10612_vm8, %v3366_v56, 0.0  ;;  %vm18304_vm8 = vmmov %vm18303_vm3 }
 0x2c5   :  { %v3500_v47 = vsel %vm18301_vm13, %v3429_v63, 0.0  ;;  %v11662_v18 = vsub.f32 %v10712_v8, %v11519_v50  ;;  %v3369_v6 = vmul.f32 %v11644_v0, %v11644_v0  ;;  %vm18302_vm10 = vcmp.lt.s32.totalorder %v10620_v29, 14  ;;  %vm18308_vm0 = vmmov %vm18303_vm3  ;;  %v18355_v29 = vld [vmem:[#allocation89_spill] sm:$0xff] }
 0x2c6   :  { %v3495_v39 = vadd.f32 %v3494_v57, %v3493_v59  ;;  %v3431_v11 = vsel %vm18302_vm10, %v3367_v37, 0.0  ;;  %v3502_v28 = vsel %vm18303_vm3, %v3430_v38, 0.0  ;;  %v11671_v32 = vsub.f32 %v10732_v26, %v11519_v50  ;;  %vm18310_vm5 = vmmov %vm18308_vm0 }
 0x2c7   :  { %v3370_v25 = vmul.f32 %v11653_v60, %v11653_v60  ;;  %v3432_v8 = vsel %vm10655_vm1, %v3368_v19, 0.0  ;;  %v3504_v57 = vsel %vm18304_vm8, %v3431_v11, 0.0  ;;  %v11680_v56 = vsub.f32 %v10735_v12, %v11519_v50  ;;  %vm18313_vm6 = vmmov %vm18308_vm0 }
 0x2c8   :  { %v3497_v44 = vadd.f32 %v3496_v2, %v3495_v39  ;;  %v3371_v49 = vmul.f32 %v11662_v18, %v11662_v18  ;;  %vm18305_vm12 = vcmp.lt.s32.totalorder %v10662_v7, 14  ;;  %v3506_v2 = vsel %vm18306_vm15, %v3432_v8, 0.0  ;;  %vm18317_vm10 = vmmov %vm18308_vm0  ;;  %v18344_v7 = vld [vmem:[#allocation79_spill] sm:$0xff] }
 0x2c9   :  { %v3433_v26 = vsel %vm18305_vm12, %v3369_v6, 0.0  ;;  %v11689_v52 = vsub.f32 %v10749_v33, %v11519_v50  ;;  %v3372_v37 = vmul.f32 %v11671_v32, %v11671_v32  ;;  %vm18307_vm1 = vnez %v18042_v17  ;;  %v18311_v6 = vld [vmem:[#allocation42_spill] sm:$0xff]  ;;  %vm18321_vm8 = vmmov %vm18308_vm0 }
 0x2ca   :  { %v3499_v41 = vadd.f32 %v3498_v20, %v3497_v44  ;;  %v3434_v12 = vsel %vm18307_vm1, %v3370_v25, 0.0  ;;  %v3508_v44 = vsel %vm18308_vm0, %v3433_v26, 0.0  ;;  %v11698_v20 = vsub.f32 %v10784_v21, %v11519_v50  ;;  %v18318_v26 = vld [vmem:[#allocation55_spill] sm:$0xff]  ;;  %vm18325_vm15 = vmmov %vm18308_vm0 }
 0x2cb   :  { %v3373_v19 = vmul.f32 %v11680_v56, %v11680_v56  ;;  %vm18309_vm7 = vcmp.lt.s32.totalorder %v10693_v42, 14  ;;  %v11707_v17 = vsub.f32 %v10804_v48, %v11519_v50  ;;  %vm18312_vm2 = vnez %v18311_v6  ;;  %v18348_v42 = vld [vmem:[#allocation81_spill] sm:$0xff] }
 0x2cc   :  { %v3501_v1 = vadd.f32 %v3500_v47, %v3499_v41  ;;  %v3435_v33 = vsel %vm18309_vm7, %v3371_v49, 0.0  ;;  %v3510_v41 = vsel %vm18310_vm5, %v3434_v12, 0.0  ;;  %v3374_v47 = vmul.f32 %v11689_v52, %v11689_v52  ;;  %vm18331_vm5 = vmmov %vm18308_vm0 }
 0x2cd   :  { %v3436_v21 = vsel %vm18312_vm2, %v3372_v37, 0.0  ;;  %v3375_v8 = vmul.f32 %v11698_v20, %v11698_v20  ;;  %v18319_v37 = vld [vmem:[#allocation44_spill] sm:$0xff] }
 0x2ce   :  { %v3503_v59 = vadd.f32 %v3502_v28, %v3501_v1  ;;  %v3512_v1 = vsel %vm18313_vm6, %v3435_v33, 0.0  ;;  %v18314_v28 = vld [vmem:[#allocation52_spill] sm:$0xff]  ;;  %v3514_v49 = vsel %vm18317_vm10, %v3436_v21, 0.0  ;;  %vm18320_vm3 = vnez %v18319_v37  ;;  %v18322_v33 = vld [vmem:[#allocation62_spill] sm:$0xff]  ;;  %vm18335_vm6 = vmmov %vm18308_vm0 }
 0x2cf   :  { %v11716_v25 = vsub.f32 %v18314_v28, %v11519_v50  ;;  %v3438_v12 = vsel %vm18320_vm3, %v3374_v47, 0.0  ;;  %v18326_v28 = vld [vmem:[#allocation53_spill] sm:$0xff]  ;;  %vm18339_vm10 = vmmov %vm18308_vm0 }
 0x2d0   :  { %v3505_v39 = vadd.f32 %v3504_v57, %v3503_v59  ;;  %v18315_v59 = vld [vmem:[#allocation41_spill] sm:$0xff]  ;;  %vm18327_vm1 = vnez %v18326_v28 }
 0x2d1   :  { %vm18316_vm13 = vcmp.lt.s32.totalorder %v18315_v59, 14  ;;  %v18340_v59 = vld [vmem:[#allocation78_spill] sm:$0xff] }
 0x2d2   :  { %v3507_v63 = vadd.f32 %v3506_v2, %v3505_v39  ;;  %v3437_v48 = vsel %vm18316_vm13, %v3373_v19, 0.0  ;;  %v11725_v39 = vsub.f32 %v18318_v26, %v11519_v50  ;;  %v3376_v2 = vmul.f32 %v11707_v17, %v11707_v17  ;;  %v18328_v26 = vld [vmem:[#allocation65_spill] sm:$0xff] }
 0x2d3   :  { %v3377_v19 = vmul.f32 %v11716_v25, %v11716_v25  ;;  %v11752_v37 = vsub.f32 %v18328_v26, %v11519_v50 }
 0x2d4   :  { %v3509_v38 = vadd.f32 %v3508_v44, %v3507_v63  ;;  %v3516_v44 = vsel %vm18321_vm8, %v3437_v48, 0.0  ;;  %v3378_v47 = vmul.f32 %v11725_v39, %v11725_v39  ;;  %v3440_v48 = vsel %vm18327_vm1, %v3376_v2, 0.0  ;;  %vm18343_vm8 = vmmov %vm18308_vm0 }
 0x2d6   :  { %v3511_v11 = vadd.f32 %v3510_v41, %v3509_v38  ;;  %v11734_v38 = vsub.f32 %v18322_v33, %v11519_v50  ;;  %v18323_v41 = vld [vmem:[#allocation45_spill] sm:$0xff]  ;;  %v18332_v33 = vld [vmem:[#allocation68_spill] sm:$0xff] }
 0x2d7   :  { %vm18324_vm12 = vcmp.lt.s32.totalorder %v18323_v41, 14  ;;  %v11761_v28 = vsub.f32 %v18332_v33, %v11519_v50  ;;  %v18336_v41 = vld [vmem:[#allocation75_spill] sm:$0xff] }
 0x2d8   :  { %v3513_v57 = vadd.f32 %v3512_v1, %v3511_v11  ;;  %v3439_v6 = vsel %vm18324_vm12, %v3375_v8, 0.0  ;;  %v3518_v11 = vsel %vm18325_vm15, %v3438_v12, 0.0  ;;  %v11743_v1 = vsub.f32 %v10876_v5, %v11519_v50  ;;  %v18329_v12 = vld [vmem:[#allocation51_spill] sm:$0xff]  ;;  %vm18347_vm15 = vmmov %vm18308_vm0 }
 0x2d9   :  { %v3379_v8 = vmul.f32 %v11734_v38, %v11734_v38  ;;  %vm18330_vm7 = vcmp.lt.s32.totalorder %v18329_v12, 14  ;;  %v11770_v12 = vsub.f32 %v18336_v41, %v11519_v50 }
 0x2da   :  { %v3515_v63 = vadd.f32 %v3514_v49, %v3513_v57  ;;  %v3520_v49 = vsel %vm18308_vm0, %v3439_v6, 0.0  ;;  %v3441_v5 = vsel %vm18330_vm7, %v3377_v19, 0.0  ;;  %v3380_v2 = vmul.f32 %v11743_v1, %v11743_v1  ;;  %v18333_v6 = vld [vmem:[#allocation56_spill] sm:$0xff] }
 0x2db   :  { %vm18334_vm2 = vnez %v18333_v6  ;;  %v3524_v26 = vsel %vm18335_vm6, %v3441_v5, 0.0  ;;  %v3381_v19 = vmul.f32 %v11752_v37, %v11752_v37  ;;  %v11779_v6 = vsub.f32 %v18340_v59, %v11519_v50  ;;  %v18341_v5 = vld [vmem:[#allocation66_spill] sm:$0xff]  ;;  %vm18358_vm6 = vmmov %vm18308_vm0 }
 0x2dc   :  { %v3517_v21 = vadd.f32 %v3516_v44, %v3515_v63  ;;  %v3522_v44 = vsel %vm18331_vm5, %v3440_v48, 0.0  ;;  %v18337_v48 = vld [vmem:[#allocation57_spill] sm:$0xff]  ;;  %vm18342_vm3 = vnez %v18341_v5  ;;  %v11797_v5 = vsub.f32 %v18348_v42, %v11519_v50  ;;  %vm18354_vm5 = vmmov %vm18308_vm0 }
 0x2dd   :  { %vm18338_vm13 = vcmp.lt.s32.totalorder %v18337_v48, 14  ;;  %v3444_v41 = vsel %vm18342_vm3, %v3380_v2, 0.0  ;;  %v11788_v48 = vsub.f32 %v18344_v7, %v11519_v50  ;;  %v3384_v2 = vmul.f32 %v11779_v6, %v11779_v6 }
 0x2de   :  { %v3519_v57 = vadd.f32 %v3518_v11, %v3517_v21  ;;  %v3442_v21 = vsel %vm18334_vm2, %v3378_v47, 0.0  ;;  %v3382_v47 = vmul.f32 %v11761_v28, %v11761_v28 }
 0x2df   :  { %v3526_v33 = vsel %vm18339_vm10, %v3442_v21, 0.0  ;;  %v18345_v21 = vld [vmem:[#allocation64_spill] sm:$0xff]  ;;  %vm18363_vm10 = vmmov %vm18308_vm0 }
 0x2e0   :  { %v3521_v63 = vadd.f32 %v3520_v49, %v3519_v57  ;;  %v3443_v57 = vsel %vm18338_vm13, %v3379_v8, 0.0  ;;  %v3383_v8 = vmul.f32 %v11770_v12, %v11770_v12  ;;  %vm18346_vm12 = vcmp.lt.s32.totalorder %v18345_v21, 14 }
 0x2e1   :  { %v3445_v59 = vsel %vm18346_vm12, %v3381_v19, 0.0  ;;  %v11806_v21 = vsub.f32 %v18351_v54, %v11519_v50  ;;  %v3385_v19 = vmul.f32 %v11788_v48, %v11788_v48 }
 0x2e2   :  { %v3523_v11 = vadd.f32 %v3522_v44, %v3521_v63  ;;  %v3528_v44 = vsel %vm18343_vm8, %v3443_v57, 0.0  ;;  %v18349_v57 = vld [vmem:[#allocation69_spill] sm:$0xff]  ;;  %vm18368_vm8 = vmmov %vm18308_vm0 }
 0x2e3   :  { %vm18350_vm1 = vnez %v18349_v57  ;;  %v11815_v57 = vsub.f32 %v18355_v29, %v11519_v50 }
 0x2e4   :  { %v3525_v49 = vadd.f32 %v3524_v26, %v3523_v11  ;;  %v3530_v26 = vsel %vm18347_vm15, %v3444_v41, 0.0  ;;  %v3446_v7 = vsel %vm18350_vm1, %v3382_v47, 0.0  ;;  %v18352_v41 = vld [vmem:[#allocation70_spill] sm:$0xff]  ;;  %v3386_v47 = vmul.f32 %v11797_v5, %v11797_v5  ;;  %vm18373_vm15 = vmmov %vm18308_vm0 }
 0x2e5   :  { %vm18353_vm7 = vcmp.lt.s32.totalorder %v18352_v41, 14  ;;  %v11824_v41 = vsub.f32 %v18359_v43, %v11519_v50 }
 0x2e6   :  { %v3527_v63 = vadd.f32 %v3526_v33, %v3525_v49  ;;  %v3532_v33 = vsel %vm18308_vm0, %v3445_v59, 0.0  ;;  %v3447_v42 = vsel %vm18353_vm7, %v3383_v8, 0.0  ;;  %v18356_v59 = vld [vmem:[#allocation80_spill] sm:$0xff]  ;;  %v3387_v8 = vmul.f32 %v11806_v21, %v11806_v21 }
 0x2e7   :  { %vm18357_vm2 = vnez %v18356_v59  ;;  %18360 = vst [vmem:[#allocation42_spill] sm:$0xff] %v11824_v41  ;;  %v11833_v59 = vsub.f32 %v18364_v53, %v11519_v50 }
 0x2e8   :  { %v3529_v11 = vadd.f32 %v3528_v44, %v3527_v63  ;;  %v3534_v44 = vsel %vm18354_vm5, %v3446_v7, 0.0  ;;  %v3448_v54 = vsel %vm18357_vm2, %v3384_v2, 0.0  ;;  %v18361_v7 = vld [vmem:[#allocation77_spill] sm:$0xff]  ;;  %v3388_v2 = vmul.f32 %v11815_v57, %v11815_v57  ;;  %vm18382_vm5 = vmmov %vm18308_vm0 }
 0x2e9   :  { %vm18362_vm13 = vcmp.lt.s32.totalorder %v18361_v7, 14  ;;  %18365 = vst [vmem:[#allocation52_spill] sm:$0xff] %v11833_v59  ;;  %v11842_v7 = vsub.f32 %v18369_v55, %v11519_v50 }
 0x2ea   :  { %v3531_v49 = vadd.f32 %v3530_v26, %v3529_v11  ;;  %v3536_v26 = vsel %vm18358_vm6, %v3447_v42, 0.0  ;;  %v3449_v29 = vsel %vm18362_vm13, %v3385_v19, 0.0  ;;  %v18366_v42 = vld [vmem:[#allocation82_spill] sm:$0xff]  ;;  %v3389_v19 = vmul.f32 %v11824_v41, %v11824_v41  ;;  %v18378_v41 = vld [vmem:[#allocation108_spill] sm:$0xff]  ;;  %vm18387_vm6 = vmmov %vm18308_vm0 }
 0x2eb   :  { %vm18367_vm3 = vnez %v18366_v42  ;;  %18370 = vst [vmem:[#allocation55_spill] sm:$0xff] %v11842_v7  ;;  %v11851_v42 = vsub.f32 %v18374_v62, %v11519_v50 }
 0x2ec   :  { %v3533_v63 = vadd.f32 %v3532_v33, %v3531_v49  ;;  %v3538_v33 = vsel %vm18363_vm10, %v3448_v54, 0.0  ;;  %v3450_v43 = vsel %vm18367_vm3, %v3386_v47, 0.0  ;;  %v18371_v54 = vld [vmem:[#allocation83_spill] sm:$0xff]  ;;  %v3390_v47 = vmul.f32 %v11833_v59, %v11833_v59  ;;  %v18383_v59 = vld [vmem:[#allocation109_spill] sm:$0xff]  ;;  %vm18392_vm10 = vmmov %vm18308_vm0 }
 0x2ed   :  { %vm18372_vm12 = vcmp.lt.s32.totalorder %v18371_v54, 14  ;;  %18375 = vst [vmem:[#allocation44_spill] sm:$0xff] %v11851_v42  ;;  %v11860_v54 = vsub.f32 %v18378_v41, %v11519_v50 }
 0x2ee   :  { %v3535_v11 = vadd.f32 %v3534_v44, %v3533_v63  ;;  %v3540_v44 = vsel %vm18368_vm8, %v3449_v29, 0.0  ;;  %v3451_v53 = vsel %vm18372_vm12, %v3387_v8, 0.0  ;;  %v18376_v29 = vld [vmem:[#allocation91_spill] sm:$0xff]  ;;  %v3391_v8 = vmul.f32 %v11842_v7, %v11842_v7  ;;  %vm18397_vm8 = vmmov %vm18308_vm0 }
 0x2ef   :  { %vm18377_vm1 = vnez %v18376_v29  ;;  %18379 = vst [vmem:[#allocation62_spill] sm:$0xff] %v11860_v54  ;;  %v11869_v29 = vsub.f32 %v18383_v59, %v11519_v50  ;;  %v18388_v7 = vld [vmem:[#allocation115_spill] sm:$0xff] }
 0x2f0   :  { %v3537_v49 = vadd.f32 %v3536_v26, %v3535_v11  ;;  %v3542_v26 = vsel %vm18373_vm15, %v3450_v43, 0.0  ;;  %v3452_v55 = vsel %vm18377_vm1, %v3388_v2, 0.0  ;;  %v18380_v43 = vld [vmem:[#allocation93_spill] sm:$0xff]  ;;  %v3392_v2 = vmul.f32 %v11851_v42, %v11851_v42  ;;  %vm18401_vm15 = vmmov %vm18308_vm0 }
 0x2f1   :  { %vm18381_vm7 = vcmp.lt.s32.totalorder %v18380_v43, 14  ;;  %18384 = vst [vmem:[#allocation53_spill] sm:$0xff] %v11869_v29  ;;  %v11878_v43 = vsub.f32 %v18388_v7, %v11519_v50  ;;  %v18393_v42 = vld [vmem:[#allocation117_spill] sm:$0xff] }
 0x2f2   :  { %v3539_v63 = vadd.f32 %v3538_v33, %v3537_v49  ;;  %v3544_v33 = vsel %vm18308_vm0, %v3451_v53, 0.0  ;;  %v3453_v62 = vsel %vm18381_vm7, %v3389_v19, 0.0  ;;  %v18385_v53 = vld [vmem:[#allocation96_spill] sm:$0xff]  ;;  %v3393_v19 = vmul.f32 %v11860_v54, %v11860_v54  ;;  %v18398_v54 = vld [vmem:[#allocation122_spill] sm:$0xff] }
 0x2f3   :  { %vm18386_vm2 = vnez %v18385_v53  ;;  %18389 = vst [vmem:[#allocation65_spill] sm:$0xff] %v11878_v43  ;;  %v11887_v53 = vsub.f32 %v18393_v42, %v11519_v50 }
 0x2f4   :  { %v3541_v11 = vadd.f32 %v3540_v44, %v3539_v63  ;;  %v3546_v44 = vsel %vm18382_vm5, %v3452_v55, 0.0  ;;  %v3454_v41 = vsel %vm18386_vm2, %v3390_v47, 0.0  ;;  %v18390_v55 = vld [vmem:[#allocation97_spill] sm:$0xff]  ;;  %v3394_v47 = vmul.f32 %v11869_v29, %v11869_v29  ;;  %v18402_v29 = vld [vmem:[#allocation124_spill] sm:$0xff]  ;;  %vm18410_vm5 = vmmov %vm18308_vm0 }
 0x2f5   :  { %vm18391_vm13 = vcmp.lt.s32.totalorder %v18390_v55, 14  ;;  %18394 = vst [vmem:[#allocation68_spill] sm:$0xff] %v11887_v53  ;;  %v11896_v55 = vsub.f32 %v18398_v54, %v11519_v50 }
 0x2f6   :  { %v3543_v49 = vadd.f32 %v3542_v26, %v3541_v11  ;;  %v3548_v26 = vsel %vm18387_vm6, %v3453_v62, 0.0  ;;  %v3455_v59 = vsel %vm18391_vm13, %v3391_v8, 0.0  ;;  %v18395_v62 = vld [vmem:[#allocation105_spill] sm:$0xff]  ;;  %v3395_v8 = vmul.f32 %v11878_v43, %v11878_v43  ;;  %v18406_v43 = vld [vmem:[#allocation131_spill] sm:$0xff]  ;;  %vm18415_vm6 = vmmov %vm18308_vm0 }
 0x2f7   :  { %vm18396_vm3 = vnez %v18395_v62  ;;  %v11905_v62 = vsub.f32 %v18402_v29, %v11519_v50 }
 0x2f8   :  { %v3545_v63 = vadd.f32 %v3544_v33, %v3543_v49  ;;  %v3550_v33 = vsel %vm18392_vm10, %v3454_v41, 0.0  ;;  %v3456_v7 = vsel %vm18396_vm3, %v3392_v2, 0.0  ;;  %v18399_v41 = vld [vmem:[#allocation107_spill] sm:$0xff]  ;;  %v3396_v2 = vmul.f32 %v11887_v53, %v11887_v53  ;;  %v18411_v53 = vld [vmem:[#allocation134_spill] sm:$0xff]  ;;  %vm18419_vm10 = vmmov %vm18308_vm0 }
 0x2f9   :  { %vm18400_vm12 = vcmp.lt.s32.totalorder %v18399_v41, 14  ;;  %18403 = vst [vmem:[#allocation56_spill] sm:$0xff] %v11905_v62  ;;  %v11914_v41 = vsub.f32 %v18406_v43, %v11519_v50 }
 0x2fa   :  { %v3547_v11 = vadd.f32 %v3546_v44, %v3545_v63  ;;  %v3552_v44 = vsel %vm18397_vm8, %v3455_v59, 0.0  ;;  %v3457_v42 = vsel %vm18400_vm12, %v3393_v19, 0.0  ;;  %v18404_v59 = vld [vmem:[#allocation110_spill] sm:$0xff]  ;;  %v3397_v19 = vmul.f32 %v11896_v55, %v11896_v55  ;;  %vm18424_vm8 = vmmov %vm18308_vm0 }
 0x2fb   :  { %vm18405_vm1 = vnez %v18404_v59  ;;  %18407 = vst [vmem:[#allocation75_spill] sm:$0xff] %v11914_v41  ;;  %v11923_v59 = vsub.f32 %v18411_v53, %v11519_v50 }
 0x2fc   :  { %v3549_v49 = vadd.f32 %v3548_v26, %v3547_v11  ;;  %v3554_v26 = vsel %vm18401_vm15, %v3456_v7, 0.0  ;;  %v3458_v54 = vsel %vm18405_vm1, %v3394_v47, 0.0  ;;  %v18408_v7 = vld [vmem:[#allocation111_spill] sm:$0xff]  ;;  %v3398_v47 = vmul.f32 %v11905_v62, %v11905_v62  ;;  %v18420_v62 = vld [vmem:[#allocation137_spill] sm:$0xff]  ;;  %vm18429_vm15 = vmmov %vm18308_vm0 }
 0x2fd   :  { %vm18409_vm7 = vcmp.lt.s32.totalorder %v18408_v7, 14  ;;  %18412 = vst [vmem:[#allocation78_spill] sm:$0xff] %v11923_v59  ;;  %v11932_v7 = vsub.f32 %v11206_v27, %v11519_v50 }
 0x2fe   :  { %v3551_v63 = vadd.f32 %v3550_v33, %v3549_v49  ;;  %v3556_v33 = vsel %vm18308_vm0, %v3457_v42, 0.0  ;;  %v3459_v29 = vsel %vm18409_vm7, %v3395_v8, 0.0  ;;  %v18413_v42 = vld [vmem:[#allocation119_spill] sm:$0xff]  ;;  %v3399_v8 = vmul.f32 %v11914_v41, %v11914_v41  ;;  %v18425_v41 = vld [vmem:[#allocation144_spill] sm:$0xff] }
 0x2ff   :  { %vm18414_vm2 = vnez %v18413_v42  ;;  %18416 = vst [vmem:[#allocation66_spill] sm:$0xff] %v11932_v7  ;;  %v11941_v42 = vsub.f32 %v18420_v62, %v11519_v50 }
 0x300   :  { %v3553_v11 = vadd.f32 %v3552_v44, %v3551_v63  ;;  %v3558_v44 = vsel %vm18410_vm5, %v3458_v54, 0.0  ;;  %v3460_v43 = vsel %vm18414_vm2, %v3396_v2, 0.0  ;;  %v18417_v54 = vld [vmem:[#allocation121_spill] sm:$0xff]  ;;  %v3400_v2 = vmul.f32 %v11923_v59, %v11923_v59  ;;  %v18430_v59 = vld [vmem:[#allocation147_spill] sm:$0xff]  ;;  %vm18438_vm5 = vmmov %vm18308_vm0 }
 0x301   :  { %vm18418_vm13 = vcmp.lt.s32.totalorder %v18417_v54, 14  ;;  %18421 = vst [vmem:[#allocation79_spill] sm:$0xff] %v11941_v42  ;;  %v11950_v54 = vsub.f32 %v18425_v41, %v11519_v50 }
 0x302   :  { %v3555_v49 = vadd.f32 %v3554_v26, %v3553_v11  ;;  %v3560_v26 = vsel %vm18415_vm6, %v3459_v29, 0.0  ;;  %v3461_v53 = vsel %vm18418_vm13, %v3397_v19, 0.0  ;;  %v18422_v29 = vld [vmem:[#allocation125_spill] sm:$0xff]  ;;  %v3401_v19 = vmul.f32 %v11932_v7, %v11932_v7  ;;  %v18434_v7 = vld [vmem:[#allocation148_spill] sm:$0xff]  ;;  %vm18443_vm6 = vmmov %vm18308_vm0 }
 0x303   :  { %vm18423_vm3 = vnez %v18422_v29  ;;  %18426 = vst [vmem:[#allocation81_spill] sm:$0xff] %v11950_v54  ;;  %v11959_v29 = vsub.f32 %v18430_v59, %v11519_v50 }
 0x304   :  { %v3557_v63 = vadd.f32 %v3556_v33, %v3555_v49  ;;  %v3562_v33 = vsel %vm18419_vm10, %v3460_v43, 0.0  ;;  %v3462_v27 = vsel %vm18423_vm3, %v3398_v47, 0.0  ;;  %v18427_v43 = vld [vmem:[#allocation126_spill] sm:$0xff]  ;;  %v3402_v47 = vmul.f32 %v11941_v42, %v11941_v42  ;;  %v18439_v42 = vld [vmem:[#allocation151_spill] sm:$0xff]  ;;  %vm18447_vm10 = vmmov %vm18308_vm0 }
 0x305   :  { %vm18428_vm12 = vcmp.lt.s32.totalorder %v18427_v43, 14  ;;  %18431 = vst [vmem:[#allocation69_spill] sm:$0xff] %v11959_v29  ;;  %v11968_v43 = vsub.f32 %v18434_v7, %v11519_v50 }
 0x306   :  { %v3559_v11 = vadd.f32 %v3558_v44, %v3557_v63  ;;  %v3564_v44 = vsel %vm18424_vm8, %v3461_v53, 0.0  ;;  %v3463_v62 = vsel %vm18428_vm12, %v3399_v8, 0.0  ;;  %v18432_v53 = vld [vmem:[#allocation135_spill] sm:$0xff]  ;;  %v3403_v8 = vmul.f32 %v11950_v54, %v11950_v54  ;;  %v18444_v54 = vld [vmem:[#allocation158_spill] sm:$0xff]  ;;  %vm18452_vm8 = vmmov %vm18308_vm0 }
 0x307   :  { %vm18433_vm1 = vnez %v18432_v53  ;;  %18435 = vst [vmem:[#allocation87_spill] sm:$0xff] %v11968_v43  ;;  %v11977_v53 = vsub.f32 %v18439_v42, %v11519_v50 }
 0x308   :  { %v3561_v49 = vadd.f32 %v3560_v26, %v3559_v11  ;;  %v3566_v26 = vsel %vm18429_vm15, %v3462_v27, 0.0  ;;  %v3464_v41 = vsel %vm18433_vm1, %v3400_v2, 0.0  ;;  %v18436_v27 = vld [vmem:[#allocation133_spill] sm:$0xff]  ;;  %v3404_v2 = vmul.f32 %v11959_v29, %v11959_v29  ;;  %vm18456_vm15 = vmmov %vm18308_vm0 }
 0x309   :  { %vm18437_vm7 = vcmp.lt.s32.totalorder %v18436_v27, 14  ;;  %18440 = vst [vmem:[#allocation89_spill] sm:$0xff] %v11977_v53  ;;  %v11986_v27 = vsub.f32 %v18444_v54, %v11519_v50  ;;  %v18448_v29 = vld [vmem:[#allocation161_spill] sm:$0xff] }
 0x30a   :  { %v3563_v63 = vadd.f32 %v3562_v33, %v3561_v49  ;;  %v3568_v33 = vsel %vm18308_vm0, %v3463_v62, 0.0  ;;  %v3465_v59 = vsel %vm18437_vm7, %v3401_v19, 0.0  ;;  %v18441_v62 = vld [vmem:[#allocation138_spill] sm:$0xff]  ;;  %v3405_v19 = vmul.f32 %v11968_v43, %v11968_v43 }
 0x30b   :  { %vm18442_vm2 = vnez %v18441_v62  ;;  %v11995_v62 = vsub.f32 %v18448_v29, %v11519_v50  ;;  %v18453_v43 = vld [vmem:[#allocation162_spill] sm:$0xff] }
 0x30c   :  { %v3565_v11 = vadd.f32 %v3564_v44, %v3563_v63  ;;  %v3570_v44 = vsel %vm18438_vm5, %v3464_v41, 0.0  ;;  %v3466_v7 = vsel %vm18442_vm2, %v3402_v47, 0.0  ;;  %v18445_v41 = vld [vmem:[#allocation139_spill] sm:$0xff]  ;;  %v3406_v47 = vmul.f32 %v11977_v53, %v11977_v53  ;;  %vm18462_vm5 = vmmov %vm18308_vm0 }
 0x30d   :  { %vm18446_vm13 = vcmp.lt.s32.totalorder %v18445_v41, 14  ;;  %18449 = vst [vmem:[#allocation80_spill] sm:$0xff] %v11995_v62  ;;  %v12004_v41 = vsub.f32 %v18453_v43, %v11519_v50  ;;  %v18459_v43 = vld [vmem:[#allocation170_spill] sm:$0xff] }
 0x30e   :  { %v3567_v49 = vadd.f32 %v3566_v26, %v3565_v11  ;;  %v3572_v26 = vsel %vm18443_vm6, %v3465_v59, 0.0  ;;  %v3467_v42 = vsel %vm18446_vm13, %v3403_v8, 0.0  ;;  %v18450_v59 = vld [vmem:[#allocation149_spill] sm:$0xff]  ;;  %v3407_v8 = vmul.f32 %v11986_v27, %v11986_v27  ;;  %vm18467_vm6 = vmmov %vm18308_vm0 }
 0x30f   :  { %vm18451_vm3 = vnez %v18450_v59  ;;  %v3408_v59 = vmul.f32 %v11995_v62, %v11995_v62  ;;  %v12018_v53 = vsub.f32 %v18459_v43, %v11519_v50  ;;  %v18463_v62 = vld [vmem:[#allocation174_spill] sm:$0xff] }
 0x310   :  { %v3569_v63 = vadd.f32 %v3568_v33, %v3567_v49  ;;  %v3574_v33 = vsel %vm18447_vm10, %v3466_v7, 0.0  ;;  %v3468_v54 = vsel %vm18451_vm3, %v3404_v2, 0.0  ;;  %v18454_v7 = vld [vmem:[#allocation146_spill] sm:$0xff]  ;;  %v18457_v2 = vld [vmem:[#allocation152_spill] sm:$0xff]  ;;  %vm18470_vm10 = vmmov %vm18308_vm0 }
 0x311   :  { %vm18455_vm12 = vcmp.lt.s32.totalorder %v18454_v7, 14  ;;  %vm18458_vm1 = vnez %v18457_v2  ;;  %v3409_v7 = vmul.f32 %v12004_v41, %v12004_v41  ;;  %v12027_v2 = vsub.f32 %v18463_v62, %v11519_v50  ;;  %v18471_v62 = vld [vmem:[#allocation165_spill] sm:$0xff] }
 0x312   :  { %v3571_v11 = vadd.f32 %v3570_v44, %v3569_v63  ;;  %v3576_v44 = vsel %vm18452_vm8, %v3467_v42, 0.0  ;;  %v3469_v29 = vsel %vm18455_vm12, %v3405_v19, 0.0  ;;  %v18460_v19 = vld [vmem:[#allocation153_spill] sm:$0xff]  ;;  %vm18472_vm3 = vnez %v18471_v62  ;;  %vm18473_vm8 = vmmov %vm18308_vm0 }
 0x313   :  { %vm18461_vm7 = vcmp.lt.s32.totalorder %v18460_v19, 14  ;;  %18464 = vst [vmem:[#allocation94_spill] sm:$0xff] %v12027_v2  ;;  %v3411_v19 = vmul.f32 %v12018_v53, %v12018_v53  ;;  %v3412_v50 = vmul.f32 %v12027_v2, %v12027_v2 }
 0x314   :  { %v3573_v49 = vadd.f32 %v3572_v26, %v3571_v11  ;;  %v3578_v26 = vsel %vm18456_vm15, %v3468_v54, 0.0  ;;  %vm18476_vm15 = vmmov %vm18308_vm0 }
 0x316   :  { %v3575_v63 = vadd.f32 %v3574_v33, %v3573_v49  ;;  %v3470_v49 = vsel %vm18458_vm1, %v3406_v47, 0.0  ;;  %v3580_v33 = vsel %vm18308_vm0, %v3469_v29, 0.0  ;;  %v3410_v47 = vmul.f32 %v11523_v3, %v11523_v3  ;;  %v18465_v29 = vld [vmem:[#allocation163_spill] sm:$0xff] }
 0x317   :  { %vm18466_vm2 = vnez %v18465_v29 }
 0x318   :  { %v3577_v11 = vadd.f32 %v3576_v44, %v3575_v63  ;;  %v3471_v63 = vsel %vm18461_vm7, %v3407_v8, 0.0  ;;  %v3582_v44 = vsel %vm18462_vm5, %v3470_v49, 0.0  ;;  %v18468_v8 = vld [vmem:[#allocation160_spill] sm:$0xff]  ;;  %v3474_v3 = vsel %vm18472_vm3, %v3410_v47, 0.0  ;;  %vm18481_vm5 = vmmov %vm18308_vm0 }
 0x319   :  { %v3584_v43 = vsel %vm18467_vm6, %v3471_v63, 0.0  ;;  %vm18469_vm13 = vcmp.lt.s32.totalorder %v18468_v8, 14  ;;  %v3413_v63 = vmul.f32 %v11527_v51, %v11527_v51  ;;  %vm18484_vm6 = vmmov %vm18308_vm0 }
 0x31a   :  { %v3579_v42 = vadd.f32 %v3578_v26, %v3577_v11  ;;  %v3472_v11 = vsel %vm18466_vm2, %v3408_v59, 0.0 }
 0x31c   :  { %v3581_v54 = vadd.f32 %v3580_v33, %v3579_v42  ;;  %v3473_v42 = vsel %vm18469_vm13, %v3409_v7, 0.0  ;;  %v3586_v33 = vsel %vm18470_vm10, %v3472_v11, 0.0  ;;  %v3590_v7 = vsel %vm18476_vm15, %v3474_v3, 0.0  ;;  %vm18487_vm10 = vmmov %vm18308_vm0 }
 0x31d   :  { %v3588_v59 = vsel %vm18473_vm8, %v3473_v42, 0.0  ;;  %v3414_v11 = vmul.f32 %v11530_v31, %v11530_v31  ;;  %v3415_v42 = vmul.f32 %v11534_v58, %v11534_v58  ;;  %v3416_v3 = vmul.f32 %v11537_v13, %v11537_v13  ;;  %vm18490_vm8 = vmmov %vm18308_vm0 }
 0x31e   :  { %v3583_v26 = vadd.f32 %v3582_v44, %v3581_v54  ;;  %v18474_v54 = vld [vmem:[#allocation166_spill] sm:$0xff]  ;;  %vm18494_vm15 = vmmov %vm18308_vm0 }
 0x31f   :  { %vm18475_vm12 = vcmp.lt.s32.totalorder %v18474_v54, 14 }
 0x320   :  { %v3585_v49 = vadd.f32 %v3584_v43, %v3583_v26  ;;  %v3475_v44 = vsel %vm18475_vm12, %v3411_v19, 0.0  ;;  %v18477_v26 = vld [vmem:[#allocation176_spill] sm:$0xff]  ;;  %vm18492_vm12 = vmmov %vm18308_vm0 }
 0x321   :  { %vm18478_vm1 = vnez %v18477_v26  ;;  %v3592_v47 = vsel %vm18308_vm0, %v3475_v44, 0.0  ;;  %v18485_v44 = vld [vmem:[#allocation177_spill] sm:$0xff] }
 0x322   :  { %v3587_v29 = vadd.f32 %v3586_v33, %v3585_v49  ;;  %v3476_v43 = vsel %vm18478_vm1, %v3412_v50, 0.0  ;;  %v18479_v49 = vld [vmem:[#allocation171_spill] sm:$0xff]  ;;  %v3417_v50 = vmul.f32 %v11540_v14, %v11540_v14  ;;  %vm18486_vm13 = vcmp.lt.s32.totalorder %v18485_v44, 14  ;;  %vm18496_vm1 = vmmov %vm18308_vm0 }
 0x323   :  { %vm18480_vm7 = vcmp.lt.s32.totalorder %v18479_v49, 14  ;;  %v3594_v19 = vsel %vm18481_vm5, %v3476_v43, 0.0  ;;  %v3418_v43 = vmul.f32 %v11543_v61, %v11543_v61 }
 0x324   :  { %v3589_v8 = vadd.f32 %v3588_v59, %v3587_v29  ;;  %v3477_v33 = vsel %vm18480_vm7, %v3413_v63, 0.0  ;;  %v18482_v29 = vld [vmem:[#allocation181_spill] sm:$0xff] }
 0x325   :  { %vm18483_vm2 = vnez %v18482_v29 }
 0x326   :  { %v3591_v62 = vadd.f32 %v3590_v7, %v3589_v8  ;;  %v3478_v59 = vsel %vm18483_vm2, %v3414_v11, 0.0  ;;  %v3596_v8 = vsel %vm18484_vm6, %v3477_v33, 0.0  ;;  %v3479_v7 = vsel %vm18486_vm13, %v3415_v42, 0.0 }
 0x327   :  { %v3598_v63 = vsel %vm18487_vm10, %v3478_v59, 0.0  ;;  %v3419_v11 = vmul.f32 %v11546_v9, %v11546_v9  ;;  %v3420_v59 = vmul.f32 %v11549_v36, %v11549_v36 }
 0x328   :  { %v3593_v54 = vadd.f32 %v3592_v47, %v3591_v62  ;;  %v18488_v62 = vld [vmem:[#allocation185_spill] sm:$0xff] }
 0x329   :  { %vm18489_vm3 = vnez %v18488_v62 }
 0x32a   :  { %v3595_v26 = vadd.f32 %v3594_v19, %v3593_v54  ;;  %v3480_v47 = vsel %vm18489_vm3, %v3416_v3, 0.0  ;;  %v3600_v54 = vsel %vm18490_vm8, %v3479_v7, 0.0  ;;  %v3481_v19 = vsel %vm336_vm11, %v3417_v50, 0.0  ;;  %vm18497_vm11 = vmmov %vm18308_vm0 }
 0x32b   :  { %v3602_v42 = vsel %vm18492_vm12, %v3480_v47, 0.0  ;;  %v3483_v7 = vsel %vm338_vm14, %v3419_v11, 0.0  ;;  %v3484_v50 = vsel %vm11506_vm9, %v3420_v59, 0.0 }
 0x32c   :  { %v3597_v49 = vadd.f32 %v3596_v8, %v3595_v26  ;;  %v3482_v8 = vsel %vm11499_vm4, %v3418_v43, 0.0  ;;  %v3608_v47 = vsel %vm18497_vm11, %v3483_v7, 0.0  ;;  %v3610_v33 = vsel %vm18308_vm0, %v3484_v50, 0.0  ;;  %v12102_v7 = vld [vmem:[%s17241_s3 + $0x2] ss:$0 sm:$0xff] }
 0x32d   :  { %v3606_v51 = vsel %vm18496_vm1, %v3482_v8, 0.0 }
 0x32e   :  { %v3599_v29 = vadd.f32 %v3598_v63, %v3597_v49  ;;  %v3604_v49 = vsel %vm18494_vm15, %v3481_v19, 0.0 }
 0x330   :  { %v3601_v44 = vadd.f32 %v3600_v54, %v3599_v29 }
 0x332   :  { %v3603_v62 = vadd.f32 %v3602_v42, %v3601_v44 }
 0x334   :  { %v3605_v63 = vadd.f32 %v3604_v49, %v3603_v62 }
 0x336   :  { %v3607_v29 = vadd.f32 %v3606_v51, %v3605_v63  ;;  %v18498_v51 = vld [vmem:[#allocation5_spill] sm:$0xff] }
 0x337   :  { %v17632_v59 = vsub.s32 0, %v18498_v51  ;;  %vm18502_vm4 = vcmp.lt.s32.totalorder %v18498_v51, 7  ;;  %vm18576_vm15 = vcmp.lt.s32.totalorder %v18498_v51, 6 }
 0x338   :  { %v3609_v54 = vadd.f32 %v3608_v47, %v3607_v29  ;;  %vm18503_vm9 = vmmov %vm18502_vm4 }
 0x339   :  { %vm18504_vm14 = vmmov %vm18502_vm4 }
 0x33a   :  { %v3611_v26 = vadd.f32 %v3610_v33, %v3609_v54  ;;  %vm18505_vm7 = vmmov %vm18502_vm4 }
 0x33b   :  { %vm18506_vm5 = vmmov %vm18502_vm4 }
 0x33c   :  { %v3612_v43 = vrot.slane %v3611_v26, 4  ;;  %vm18507_vm2 = vmmov %vm18502_vm4 }
 0x33d   :  { %vm18508_vm6 = vmmov %vm18507_vm2 }
 0x33e   :  { %v3613_v44 = vadd.f32 %v3612_v43, %v3611_v26  ;;  %vm18553_vm13 = vmmov %vm18507_vm2 }
 0x33f   :  { %vm18554_vm10 = vmmov %vm18507_vm2 }
 0x340   :  { %v3614_v42 = vrot.slane %v3613_v44, 2  ;;  %vm18555_vm3 = vmmov %vm18507_vm2 }
 0x341   :  { %vm18556_vm8 = vmmov %vm18507_vm2 }
 0x342   :  { %v3615_v19 = vadd.f32 %v3614_v42, %v3613_v44  ;;  %vm18557_vm12 = vmmov %vm18507_vm2 }
 0x343   :  { %vm18577_vm1 = vmmov %vm18576_vm15 }
 0x344   :  { %v3616_v2 = vrot.slane %v3615_v19, 1  ;;  %vm18612_vm11 = vmmov %vm18507_vm2 }
 0x345   :  { %vm18614_vm0 = vmmov %vm18507_vm2 }
 0x346   :  { %v3617_v3 = vadd.f32 %v3616_v2, %v3615_v19 }
 0x348   :  { %v3618_v11 = vmul.f32 0.0025510204, %v3617_v3 }
 0x34a   :  { %v3619_v62 = vadd.f32 1e-05, %v3618_v11 }
 0x34c   :  { %8770 = vrsqrt.f32 %v3619_v62 }
 0x359   :  { %v8771_v8 = vpop.eup %8770 }
 0x35a   :  { %v3621_v49 = vmul.f32 %v8771_v8, %v1045_v24 }
 0x35c   :  { %v12097_v33 = vrot.slane %v3621_v49, %v17632_v59 }
 0x35e   :  { %v3626_v2 = vmul.f32 %v12097_v33, %v11553_v45  ;;  %v3683_v3 = vmul.f32 %v12097_v33, %v11530_v31  ;;  %v3684_v63 = vmul.f32 %v12097_v33, %v11534_v58  ;;  %v3685_v50 = vmul.f32 %v12097_v33, %v11537_v13 }
 0x35f   :  { %v3686_v29 = vmul.f32 %v12097_v33, %v11540_v14  ;;  %v3687_v47 = vmul.f32 %v12097_v33, %v11543_v61  ;;  %v3688_v54 = vmul.f32 %v12097_v33, %v11546_v9  ;;  %v3689_v45 = vmul.f32 %v12097_v33, %v11549_v36 }
 0x360   :  { %v12121_v31 = vadd.f32 %v12102_v7, %v3626_v2  ;;  %v3751_v58 = vadd.f32 %v12102_v7, %v3683_v3  ;;  %v3752_v26 = vadd.f32 %v12102_v7, %v3684_v63  ;;  %v3753_v13 = vadd.f32 %v12102_v7, %v3685_v50 }
 0x361   :  { %v3754_v14 = vadd.f32 %v12102_v7, %v3686_v29  ;;  %v3755_v43 = vadd.f32 %v12102_v7, %v3687_v47  ;;  %v3756_v61 = vadd.f32 %v12102_v7, %v3688_v54  ;;  %v3757_v9 = vadd.f32 %v12102_v7, %v3689_v45 }
 0x362   :  { %18499 = vst [vmem:[#allocation95_spill] sm:$0xff] %v12121_v31  ;;  %v17633_v44 = vmax.f32 %v12121_v31, 0.0  ;;  %v3815_v36 = vmax.f32 %v3751_v58, 0.0  ;;  %v3816_v42 = vmax.f32 %v3752_v26, 0.0  ;;  %v3817_v19 = vmax.f32 %v3753_v13, 0.0 }
 0x363   :  { %v3818_v11 = vmax.f32 %v3754_v14, 0.0  ;;  %v3819_v62 = vmax.f32 %v3755_v43, 0.0  ;;  %v3820_v24 = vmax.f32 %v3756_v61, 0.0  ;;  %v3821_v8 = vmax.f32 %v3757_v9, 0.0 }
 0x364   :  { %v12133_v49 = vrot.slane %v17633_v44, 1  ;;  %v12135_v2 = vrot.slane %v3815_v36, 1  ;;  %v3880_v3 = vrot.slane %v3816_v42, 1  ;;  %v3881_v63 = vrot.slane %v3817_v19, 1 }
 0x365   :  { %v3882_v50 = vrot.slane %v3818_v11, 1  ;;  %v3883_v29 = vrot.slane %v3819_v62, 1  ;;  %v3884_v47 = vrot.slane %v3820_v24, 1  ;;  %v3885_v54 = vrot.slane %v3821_v8, 1 }
 0x366   :  { %18500 = vst [vmem:[#allocation82_spill] sm:$0xff] %v12133_v49  ;;  %18501 = vst [vmem:[#allocation101_spill] sm:$0xff] %v12135_v2  ;;  %v3890_v45 = vsel %vm18502_vm4, %v3880_v3, %v3881_v63  ;;  %v3891_v58 = vsel %vm18503_vm9, %v12135_v2, %v3880_v3  ;;  %v12144_v26 = vmul.f32 %v12097_v33, %v11557_v10 }
 0x367   :  { %v12148_v13 = vmul.f32 %v12097_v33, %v11561_v35  ;;  %v3886_v14 = vsel %vm18504_vm14, %v3884_v47, %v3885_v54  ;;  %v3887_v43 = vsel %vm18505_vm7, %v3883_v29, %v3884_v47  ;;  %v3888_v61 = vsel %vm18506_vm5, %v3882_v50, %v3883_v29  ;;  %vm18615_vm4 = vmmov %vm18614_vm0 }
 0x368   :  { %v3889_v9 = vsel %vm18507_vm2, %v3881_v63, %v3882_v50  ;;  %v3949_v10 = vsel %vm18508_vm6, %v3885_v54, %v12133_v49  ;;  %v12161_v3 = vmax.f32 %v3815_v36, %v3891_v58  ;;  %v12163_v35 = vmax.f32 %v3816_v42, %v3890_v45  ;;  %v18520_v50 = vld [vmem:[#allocation55_spill] sm:$0xff]  ;;  %v18521_v54 = vld [vmem:[#allocation44_spill] sm:$0xff]  ;;  %v18522_v45 = vld [vmem:[#allocation62_spill] sm:$0xff] }
 0x369   :  { %v4009_v59 = vmax.f32 %v3817_v19, %v3889_v9  ;;  %v4010_v44 = vmax.f32 %v3818_v11, %v3888_v61  ;;  %v4011_v31 = vmax.f32 %v3819_v62, %v3887_v43  ;;  %v12165_v2 = vmax.f32 %v3820_v24, %v3886_v14  ;;  %v18523_v58 = vld [vmem:[#allocation53_spill] sm:$0xff]  ;;  %v18525_v9 = vld [vmem:[#allocation68_spill] sm:$0xff]  ;;  %v18542_v49 = vld [vmem:[#allocation191_spill] sm:$0xff] }
 0x36a   :  { %18509 = vst [vmem:[#allocation103_spill] sm:$0xff] %v12161_v3  ;;  %18510 = vst [vmem:[#allocation91_spill] sm:$0xff] %v12163_v35  ;;  %v12167_v47 = vmax.f32 %v3821_v8, %v3949_v10  ;;  %v12174_v63 = vmul.f32 %v12097_v33, %v11565_v4  ;;  %v12178_v36 = vmul.f32 %v12097_v33, %v11573_v30  ;;  %v18524_v43 = vld [vmem:[#allocation65_spill] sm:$0xff]  ;;  %vm4270_vm14 = vcmp.lt.s32.totalorder %v18498_v51, 4 }
 0x36b   :  { %18511 = vst [vmem:[#allocation108_spill] sm:$0xff] %v12165_v2  ;;  %v12170_v29 = vmax.f32 %v12161_v3, %v4009_v59  ;;  %v12182_v42 = vmul.f32 %v12097_v33, %v11579_v46  ;;  %v12185_v19 = vmax.f32 %v12163_v35, %v4010_v44  ;;  %v12187_v11 = vmax.f32 %v4009_v59, %v4011_v31  ;;  %v18538_v35 = vld [vmem:[#allocation190_spill] sm:$0xff]  ;;  %vm18616_vm9 = vmmov %vm18614_vm0 }
 0x36c   :  { %18512 = vst [vmem:[#allocation109_spill] sm:$0xff] %v12167_v47  ;;  %v12190_v62 = vmax.f32 %v4010_v44, %v12165_v2  ;;  %v12193_v24 = vmax.f32 %v4011_v31, %v12167_v47  ;;  %v12197_v4 = vmul.f32 %v12097_v33, %v11589_v15  ;;  %v12201_v30 = vmul.f32 %v12097_v33, %v11599_v40  ;;  %v18534_v47 = vld [vmem:[#allocation89_spill] sm:$0xff]  ;;  %v18535_v2 = vld [vmem:[#allocation80_spill] sm:$0xff]  ;;  %v18541_v3 = vld [vmem:[#allocation94_spill] sm:$0xff] }
 0x36d   :  { %18513 = vst [vmem:[#allocation96_spill] sm:$0xff] %v12170_v29  ;;  %18514 = vst [vmem:[#allocation115_spill] sm:$0xff] %v12185_v19  ;;  %v12205_v46 = vmul.f32 %v12097_v33, %v11608_v23  ;;  %v12209_v59 = vmul.f32 %v12097_v33, %v11617_v34  ;;  %v12213_v31 = vmul.f32 %v12097_v33, %v11626_v16  ;;  %v18532_v19 = vld [vmem:[#allocation69_spill] sm:$0xff]  ;;  %v18533_v29 = vld [vmem:[#allocation87_spill] sm:$0xff] }
 0x36e   :  { %18515 = vst [vmem:[#allocation117_spill] sm:$0xff] %v12187_v11  ;;  %18516 = vst [vmem:[#allocation105_spill] sm:$0xff] %v12190_v62  ;;  %v12217_v15 = vmul.f32 %v12097_v33, %v11635_v22  ;;  %v12221_v40 = vmul.f32 %v12097_v33, %v11644_v0  ;;  %v12225_v23 = vmul.f32 %v12097_v33, %v11653_v60  ;;  %v18530_v62 = vld [vmem:[#allocation79_spill] sm:$0xff]  ;;  %v18531_v11 = vld [vmem:[#allocation81_spill] sm:$0xff] }
 0x36f   :  { %18517 = vst [vmem:[#allocation122_spill] sm:$0xff] %v12193_v24  ;;  %v3640_v34 = vmul.f32 %v12097_v33, %v11662_v18  ;;  %v3641_v44 = vmul.f32 %v12097_v33, %v11671_v32  ;;  %v3642_v16 = vmul.f32 %v12097_v33, %v11680_v56  ;;  %v3643_v22 = vmul.f32 %v12097_v33, %v11689_v52  ;;  %v18529_v24 = vld [vmem:[#allocation66_spill] sm:$0xff]  ;;  %vm18622_vm7 = vmmov %vm18577_vm1 }
 0x370   :  { %v3644_v0 = vmul.f32 %v12097_v33, %v11698_v20  ;;  %v3645_v8 = vmul.f32 %v12097_v33, %v11707_v17  ;;  %v12241_v60 = vmul.f32 %v12097_v33, %v11716_v25  ;;  %v12245_v18 = vmul.f32 %v12097_v33, %v11725_v39  ;;  %vm18623_vm5 = vmmov %vm18577_vm1 }
 0x371   :  { %v12249_v32 = vmul.f32 %v12097_v33, %v11734_v38  ;;  %v12253_v56 = vmul.f32 %v12097_v33, %v11743_v1  ;;  %v12257_v52 = vmul.f32 %v12097_v33, %v11752_v37  ;;  %v12261_v20 = vmul.f32 %v12097_v33, %v11761_v28  ;;  %vm18680_vm2 = vmmov %vm18614_vm0 }
 0x372   :  { %v12265_v17 = vmul.f32 %v12097_v33, %v11770_v12  ;;  %v12269_v25 = vmul.f32 %v12097_v33, %v11779_v6  ;;  %v12273_v39 = vmul.f32 %v12097_v33, %v11788_v48  ;;  %v12277_v38 = vmul.f32 %v12097_v33, %v11797_v5  ;;  %v18518_v12 = vld [vmem:[#allocation42_spill] sm:$0xff]  ;;  %v18519_v6 = vld [vmem:[#allocation52_spill] sm:$0xff]  ;;  %vm18682_vm6 = vmmov %vm18614_vm0 }
 0x373   :  { %v12281_v1 = vmul.f32 %v12097_v33, %v11806_v21  ;;  %v12285_v37 = vmul.f32 %v12097_v33, %v11815_v57  ;;  %v12289_v28 = vmul.f32 %v12097_v33, %v18518_v12  ;;  %v12293_v48 = vmul.f32 %v12097_v33, %v18519_v6  ;;  %v18526_v6 = vld [vmem:[#allocation56_spill] sm:$0xff] }
 0x374   :  { %v12297_v5 = vmul.f32 %v12097_v33, %v18520_v50  ;;  %v12301_v21 = vmul.f32 %v12097_v33, %v18521_v54  ;;  %v12305_v57 = vmul.f32 %v12097_v33, %v18522_v45  ;;  %v12309_v14 = vmul.f32 %v12097_v33, %v18523_v58  ;;  %v18527_v54 = vld [vmem:[#allocation75_spill] sm:$0xff]  ;;  %v18528_v58 = vld [vmem:[#allocation78_spill] sm:$0xff] }
 0x375   :  { %v12313_v61 = vmul.f32 %v12097_v33, %v18524_v43  ;;  %v12317_v10 = vmul.f32 %v12097_v33, %v18525_v9  ;;  %v12321_v12 = vmul.f32 %v12097_v33, %v11896_v55  ;;  %v12325_v50 = vmul.f32 %v12097_v33, %v18526_v6 }
 0x376   :  { %v12329_v45 = vmul.f32 %v12097_v33, %v18527_v54  ;;  %v12333_v43 = vmul.f32 %v12097_v33, %v18528_v58  ;;  %v12337_v9 = vmul.f32 %v12097_v33, %v18529_v24  ;;  %v12341_v55 = vmul.f32 %v12097_v33, %v18530_v62 }
 0x377   :  { %v12345_v6 = vmul.f32 %v12097_v33, %v18531_v11  ;;  %v12349_v54 = vmul.f32 %v12097_v33, %v18532_v19  ;;  %v12353_v58 = vmul.f32 %v12097_v33, %v18533_v29  ;;  %v12357_v24 = vmul.f32 %v12097_v33, %v18534_v47 }
 0x378   :  { %v12361_v62 = vmul.f32 %v12097_v33, %v11986_v27  ;;  %v12365_v11 = vmul.f32 %v12097_v33, %v18535_v2  ;;  %v12369_v19 = vmul.f32 %v12097_v33, %v12004_v41  ;;  %v12373_v29 = vmul.f32 %v12097_v33, %v18538_v35 }
 0x379   :  { %v12377_v47 = vmul.f32 %v12097_v33, %v12018_v53  ;;  %v12381_v27 = vmul.f32 %v12097_v33, %v18541_v3  ;;  %v12385_v2 = vmul.f32 %v12097_v33, %v18542_v49  ;;  %v3709_v41 = vadd.f32 %v12102_v7, %v3641_v44 }
 0x37a   :  { %18536 = vst [vmem:[#allocation124_spill] sm:$0xff] %v12365_v11  ;;  %18537 = vst [vmem:[#allocation110_spill] sm:$0xff] %v12369_v19  ;;  %v3708_v11 = vadd.f32 %v12102_v7, %v3640_v34  ;;  %v3710_v19 = vadd.f32 %v12102_v7, %v3642_v16  ;;  %v3711_v35 = vadd.f32 %v12102_v7, %v3643_v22 }
 0x37b   :  { %18539 = vst [vmem:[#allocation131_spill] sm:$0xff] %v12373_v29  ;;  %18540 = vst [vmem:[#allocation134_spill] sm:$0xff] %v12377_v47  ;;  %v3712_v29 = vadd.f32 %v12102_v7, %v3644_v0  ;;  %v12393_v53 = vadd.f32 %v12102_v7, %v3645_v8  ;;  %v12397_v3 = vadd.f32 %v12102_v7, %v12144_v26  ;;  %v3773_v49 = vmax.f32 %v3709_v41, 0.0 }
 0x37c   :  { %18543 = vst [vmem:[#allocation119_spill] sm:$0xff] %v12385_v2  ;;  %v3772_v47 = vmax.f32 %v3708_v11, 0.0  ;;  %v12401_v33 = vadd.f32 %v12102_v7, %v12148_v13  ;;  %v3774_v34 = vmax.f32 %v3710_v19, 0.0  ;;  %v3775_v44 = vmax.f32 %v3711_v35, 0.0 }
 0x37d   :  { %18544 = vst [vmem:[#allocation137_spill] sm:$0xff] %v12393_v53  ;;  %18545 = vst [vmem:[#allocation125_spill] sm:$0xff] %v12397_v3  ;;  %v3776_v16 = vmax.f32 %v3712_v29, 0.0  ;;  %v17647_v22 = vmax.f32 %v12393_v53, 0.0  ;;  %v12408_v0 = vadd.f32 %v12102_v7, %v12174_v63  ;;  %v12412_v26 = vadd.f32 %v12102_v7, %v12178_v36 }
 0x37e   :  { %18546 = vst [vmem:[#allocation144_spill] sm:$0xff] %v12401_v33  ;;  %v12404_v2 = vrot.slane %v3772_v47, 1  ;;  %v3837_v8 = vrot.slane %v3773_v49, 1  ;;  %v3838_v11 = vrot.slane %v3774_v34, 1  ;;  %v3839_v13 = vrot.slane %v3775_v44, 1 }
 0x37f   :  { %18547 = vst [vmem:[#allocation147_spill] sm:$0xff] %v12408_v0  ;;  %18548 = vst [vmem:[#allocation135_spill] sm:$0xff] %v12412_v26  ;;  %v3840_v33 = vrot.slane %v3776_v16, 1  ;;  %v12416_v19 = vrot.slane %v17647_v22, 1  ;;  %v12420_v29 = vadd.f32 %v12102_v7, %v12182_v42  ;;  %v12424_v63 = vadd.f32 %v12102_v7, %v12197_v4 }
 0x380   :  { %v12428_v36 = vadd.f32 %v12102_v7, %v12201_v30  ;;  %v3932_v35 = vsel %vm18554_vm10, %v3838_v11, %v3839_v13  ;;  %v3933_v22 = vsel %vm18555_vm3, %v3837_v8, %v3838_v11  ;;  %v3934_v42 = vsel %vm18556_vm8, %v12404_v2, %v3837_v8  ;;  %vm18685_vm10 = vmmov %vm18614_vm0 }
 0x381   :  { %18549 = vst [vmem:[#allocation148_spill] sm:$0xff] %v12416_v19  ;;  %18550 = vst [vmem:[#allocation151_spill] sm:$0xff] %v12420_v29  ;;  %v3931_v41 = vsel %vm18553_vm13, %v3839_v13, %v3840_v33  ;;  %v3930_v4 = vsel %vm18557_vm12, %v3840_v33, %v12416_v19  ;;  %v12442_v53 = vmax.f32 %v3772_v47, %v3934_v42 }
 0x382   :  { %18551 = vst [vmem:[#allocation138_spill] sm:$0xff] %v12424_v63  ;;  %18552 = vst [vmem:[#allocation158_spill] sm:$0xff] %v12428_v36  ;;  %v12444_v30 = vmax.f32 %v3773_v49, %v3933_v22  ;;  %v3966_v36 = vmax.f32 %v3774_v34, %v3932_v35  ;;  %v12446_v63 = vmax.f32 %v3775_v44, %v3931_v41 }
 0x383   :  { %v12448_v29 = vmax.f32 %v3776_v16, %v3930_v4  ;;  %v12452_v11 = vadd.f32 %v12102_v7, %v12205_v46  ;;  %v12456_v8 = vadd.f32 %v12102_v7, %v12209_v59  ;;  %v12463_v47 = vadd.f32 %v12102_v7, %v12213_v31  ;;  %v18598_v4 = vld [vmem:[#allocation124_spill] sm:$0xff]  ;;  %vm18683_vm13 = vmmov %vm18614_vm0 }
 0x384   :  { %18558 = vst [vmem:[#allocation161_spill] sm:$0xff] %v12444_v30  ;;  %18559 = vst [vmem:[#allocation149_spill] sm:$0xff] %v12446_v63  ;;  %v12459_v13 = vmax.f32 %v12442_v53, %v3966_v36  ;;  %v12467_v33 = vadd.f32 %v12102_v7, %v12217_v15  ;;  %v12471_v49 = vadd.f32 %v12102_v7, %v12221_v40 }
 0x385   :  { %18560 = vst [vmem:[#allocation162_spill] sm:$0xff] %v12448_v29  ;;  %18561 = vst [vmem:[#allocation152_spill] sm:$0xff] %v12452_v11  ;;  %v12475_v46 = vmax.f32 %v12444_v30, %v12446_v63  ;;  %v12478_v59 = vmax.f32 %v3966_v36, %v12448_v29  ;;  %v12482_v34 = vadd.f32 %v12102_v7, %v12225_v23 }
 0x386   :  { %18562 = vst [vmem:[#allocation170_spill] sm:$0xff] %v12456_v8  ;;  %18563 = vst [vmem:[#allocation174_spill] sm:$0xff] %v12459_v13  ;;  %v12486_v31 = vadd.f32 %v12102_v7, %v12241_v60  ;;  %v17652_v15 = vrot.slane %v12459_v13, 2  ;;  %v12491_v40 = vadd.f32 %v12102_v7, %v12245_v18  ;;  %v12495_v44 = vadd.f32 %v12102_v7, %v12249_v32 }
 0x387   :  { %18564 = vst [vmem:[#allocation163_spill] sm:$0xff] %v12475_v46  ;;  %18565 = vst [vmem:[#allocation165_spill] sm:$0xff] %v12478_v59  ;;  %v12499_v16 = vadd.f32 %v12102_v7, %v12253_v56  ;;  %v4093_v23 = vrot.slane %v12475_v46, 2  ;;  %v17653_v22 = vrot.slane %v12478_v59, 2  ;;  %v12505_v60 = vadd.f32 %v12102_v7, %v12257_v52 }
 0x388   :  { %18566 = vst [vmem:[#allocation176_spill] sm:$0xff] %v12486_v31  ;;  %18567 = vst [vmem:[#allocation181_spill] sm:$0xff] %v12491_v40  ;;  %v12509_v18 = vadd.f32 %v12102_v7, %v12261_v20  ;;  %v12513_v32 = vadd.f32 %v12102_v7, %v12265_v17  ;;  %v12517_v56 = vadd.f32 %v12102_v7, %v12269_v25  ;;  %v18629_v8 = vmax.f32 %v12397_v3, 0.0 }
 0x389   :  { %18568 = vst [vmem:[#allocation185_spill] sm:$0xff] %v12495_v44  ;;  %18569 = vst [vmem:[#allocation189_spill] sm:$0xff] %v12499_v16  ;;  %v12521_v36 = vadd.f32 %v12102_v7, %v12273_v39  ;;  %v12525_v52 = vadd.f32 %v12102_v7, %v12277_v38  ;;  %v4189_v20 = vsel %vm18576_vm15, %v4093_v23, %v17653_v22  ;;  %v3770_v22 = vmax.f32 %v12471_v49, 0.0 }
 0x38a   :  { %18570 = vst [vmem:[#allocation42_spill] sm:$0xff] %v12505_v60  ;;  %18571 = vst [vmem:[#allocation52_spill] sm:$0xff] %v12509_v18  ;;  %v4190_v17 = vsel %vm18577_vm1, %v17652_v15, %v4093_v23  ;;  %v12537_v25 = vadd.f32 %v12102_v7, %v12281_v1  ;;  %v12541_v39 = vadd.f32 %v12102_v7, %v12285_v37  ;;  %v18600_v23 = vld [vmem:[#allocation110_spill] sm:$0xff]  ;;  %v3768_v15 = vmax.f32 %v12463_v47, 0.0  ;;  %v18610_v47 = vld [vmem:[#allocation151_spill] sm:$0xff] }
 0x38b   :  { %18572 = vst [vmem:[#allocation55_spill] sm:$0xff] %v12513_v32  ;;  %18573 = vst [vmem:[#allocation44_spill] sm:$0xff] %v12517_v56  ;;  %v8115_v38 = vpack.i.bf16 %v4189_v20, %v4190_v17  ;;  %v12545_v41 = vadd.f32 %v12102_v7, %v12289_v28  ;;  %v12549_v35 = vadd.f32 %v12102_v7, %v12293_v48  ;;  %v18601_v20 = vld [vmem:[#allocation131_spill] sm:$0xff]  ;;  %v18603_v17 = vld [vmem:[#allocation134_spill] sm:$0xff] }
 0x38c   :  { %18574 = vst [vmem:[#allocation62_spill] sm:$0xff] %v12521_v36  ;;  %18575 = vst [vmem:[#allocation53_spill] sm:$0xff] %v12525_v52  ;;  %v12553_v42 = vadd.f32 %v12102_v7, %v12297_v5  ;;  %v12557_v1 = vadd.f32 %v12102_v7, %v12301_v21  ;;  %v12561_v37 = vadd.f32 %v12102_v7, %v12305_v57  ;;  %v12650_v19 = vrot.slane %v3768_v15, 1 }
 0x38d   :  { %18578 = vst [vmem:[#allocation65_spill] sm:$0xff] %v12537_v25  ;;  %18579 = vst [vmem:[#allocation68_spill] sm:$0xff] %v12541_v39  ;;  %v12565_v28 = vadd.f32 %v12102_v7, %v12309_v14  ;;  %v12569_v48 = vadd.f32 %v12102_v7, %v12313_v61  ;;  %8116 = vrot.lane.b32.xlu1 %v8115_v38, %s8805_s10  ;;  %v12574_v5 = vadd.f32 %v12102_v7, %v12317_v10  ;;  %v18606_v38 = vld [vmem:[#allocation119_spill] sm:$0xff] }
 0x38e   :  { %18580 = vst [vmem:[#allocation56_spill] sm:$0xff] %v12545_v41  ;;  %18581 = vst [vmem:[#allocation75_spill] sm:$0xff] %v12549_v35  ;;  %v12578_v21 = vadd.f32 %v12102_v7, %v12321_v12  ;;  %v12582_v57 = vadd.f32 %v12102_v7, %v12325_v50  ;;  %v12586_v14 = vadd.f32 %v12102_v7, %v12329_v45 }
 0x38f   :  { %18582 = vst [vmem:[#allocation78_spill] sm:$0xff] %v12553_v42  ;;  %18583 = vst [vmem:[#allocation66_spill] sm:$0xff] %v12557_v1  ;;  %v12590_v61 = vadd.f32 %v12102_v7, %v12333_v43  ;;  %v12594_v10 = vadd.f32 %v12102_v7, %v12337_v9  ;;  %v12598_v12 = vadd.f32 %v12102_v7, %v12341_v55 }
 0x390   :  { %18584 = vst [vmem:[#allocation79_spill] sm:$0xff] %v12561_v37  ;;  %18585 = vst [vmem:[#allocation81_spill] sm:$0xff] %v12565_v28  ;;  %v12602_v50 = vadd.f32 %v12102_v7, %v12345_v6  ;;  %v12606_v45 = vadd.f32 %v12102_v7, %v12349_v54  ;;  %v12610_v43 = vadd.f32 %v12102_v7, %v12353_v58 }
 0x391   :  { %18586 = vst [vmem:[#allocation69_spill] sm:$0xff] %v12569_v48  ;;  %18587 = vst [vmem:[#allocation87_spill] sm:$0xff] %v12574_v5  ;;  %v12614_v9 = vadd.f32 %v12102_v7, %v12357_v24  ;;  %v12618_v55 = vadd.f32 %v12102_v7, %v12361_v62  ;;  %v12622_v6 = vadd.f32 %v12102_v7, %v18598_v4 }
 0x392   :  { %18588 = vst [vmem:[#allocation89_spill] sm:$0xff] %v12578_v21  ;;  %18589 = vst [vmem:[#allocation80_spill] sm:$0xff] %v12582_v57  ;;  %v12626_v54 = vadd.f32 %v12102_v7, %v18600_v23  ;;  %v12630_v58 = vadd.f32 %v12102_v7, %v18601_v20  ;;  %v12634_v24 = vadd.f32 %v12102_v7, %v18603_v17  ;;  %v3769_v23 = vmax.f32 %v12467_v33, 0.0 }
 0x393   :  { %18590 = vst [vmem:[#allocation190_spill] sm:$0xff] %v12586_v14  ;;  %18591 = vst [vmem:[#allocation94_spill] sm:$0xff] %v12590_v61  ;;  %v12638_v62 = vadd.f32 %v12102_v7, %v12381_v27  ;;  %v12642_v4 = vadd.f32 %v12102_v7, %v18606_v38  ;;  %v3771_v20 = vmax.f32 %v12482_v34, 0.0  ;;  %v3834_v38 = vrot.slane %v3770_v22, 1  ;;  %v18613_v34 = vld [vmem:[#allocation158_spill] sm:$0xff] }
 0x394   :  { %18592 = vst [vmem:[#allocation191_spill] sm:$0xff] %v12594_v10  ;;  %18593 = vst [vmem:[#allocation192_spill] sm:$0xff] %v12598_v12  ;;  %v3833_v27 = vrot.slane %v3769_v23, 1  ;;  %v12740_v17 = vrot.slane %v18629_v8, 1  ;;  %v18634_v8 = vmax.f32 %v18610_v47, 0.0  ;;  %v18641_v47 = vld [vmem:[#allocation170_spill] sm:$0xff] }
 0x395   :  { %18594 = vst [vmem:[#allocation193_spill] sm:$0xff] %v12602_v50  ;;  %18595 = vst [vmem:[#allocation194_spill] sm:$0xff] %v12606_v45  ;;  %v3835_v46 = vrot.slane %v3771_v20, 1 }
 0x396   :  { %18596 = vst [vmem:[#allocation195_spill] sm:$0xff] %v12610_v43  ;;  %18597 = vst [vmem:[#allocation196_spill] sm:$0xff] %v12614_v9  ;;  %v3938_v49 = vsel %vm18612_vm11, %v12650_v19, %v3833_v27  ;;  %v3937_v30 = vsel %vm18616_vm9, %v3833_v27, %v3834_v38 }
 0x397   :  { %18599 = vst [vmem:[#allocation124_spill] sm:$0xff] %v12622_v6  ;;  %18602 = vst [vmem:[#allocation110_spill] sm:$0xff] %v12630_v58  ;;  %v3935_v7 = vsel %vm18614_vm0, %v3835_v46, %v12404_v2  ;;  %v3936_v59 = vsel %vm18615_vm4, %v3834_v38, %v3835_v46  ;;  %v12669_v13 = vmax.f32 %v3768_v15, %v3938_v49  ;;  %v18627_v2 = vld [vmem:[#allocation163_spill] sm:$0xff] }
 0x398   :  { %18604 = vst [vmem:[#allocation131_spill] sm:$0xff] %v12634_v24  ;;  %18605 = vst [vmem:[#allocation134_spill] sm:$0xff] %v12638_v62  ;;  %v12671_v33 = vmax.f32 %v3769_v23, %v3937_v30  ;;  %v3963_v29 = vmax.f32 %v3771_v20, %v3935_v7  ;;  %v18624_v23 = vld [vmem:[#allocation161_spill] sm:$0xff]  ;;  %v18626_v20 = vld [vmem:[#allocation174_spill] sm:$0xff] }
 0x399   :  { %18607 = vst [vmem:[#allocation119_spill] sm:$0xff] %v12642_v4  ;;  %18609 = vst [vmem:[#allocation197_spill] sm:$0xff] %v12650_v19  ;;  %v3962_v19 = vmax.f32 %v3770_v22, %v3936_v59  ;;  %v17675_v22 = vrot.slane %v18626_v20, 4 }
 0x39a   :  { %18617 = vst [vmem:[#allocation198_spill] sm:$0xff] %v12669_v13  ;;  %18618 = vst [vmem:[#allocation199_spill] sm:$0xff] %v12671_v33  ;;  %v12682_v15 = vmax.f32 %v12671_v33, %v3963_v29 }
 0x39b   :  { %v12679_v46 = vmax.f32 %v12669_v13, %v3962_v19  ;;  %v12685_v30 = vmax.f32 %v3962_v19, %v12442_v53  ;;  %v4221_v19 = vrot.slane %v18627_v2, 4  ;;  %v12760_v2 = vrot.slane %v18634_v8, 1  ;;  %v18635_v13 = vld [vmem:[#allocation138_spill] sm:$0xff]  ;;  %vm18687_vm3 = vmmov %vm18614_vm0 }
 0x39c   :  { %18620 = vst [vmem:[#allocation201_spill] sm:$0xff] %v12682_v15  ;;  %v4089_v38 = vrot.slane %v12682_v15, 2  ;;  %v18642_v8 = vmax.f32 %v18641_v47, 0.0  ;;  %vm18689_vm8 = vmmov %vm18614_vm0 }
 0x39d   :  { %18619 = vst [vmem:[#allocation200_spill] sm:$0xff] %v12679_v46  ;;  %18621 = vst [vmem:[#allocation202_spill] sm:$0xff] %v12685_v30  ;;  %v17670_v7 = vrot.slane %v12679_v46, 2  ;;  %v17669_v49 = vrot.slane %v12685_v30, 2 }
 0x39e   :  { %vm18692_vm12 = vmmov %vm18614_vm0 }
 0x39f   :  { %v4193_v27 = vsel %vm18622_vm7, %v4089_v38, %v17669_v49  ;;  %v4194_v59 = vsel %vm18623_vm5, %v17670_v7, %v4089_v38  ;;  %v12733_v7 = vmax.f32 %v3963_v29, %v18624_v23  ;;  %v18628_v49 = vld [vmem:[#allocation165_spill] sm:$0xff]  ;;  %v4319_v29 = vsel %vm4270_vm14, %v17675_v22, %v4221_v19  ;;  %vm18693_vm15 = vmmov %vm18614_vm0 }
 0x3a0   :  { %v8110_v11 = vpack.i.bf16 %v4193_v27, %v4194_v59  ;;  %v18632_v59 = vmax.f32 %v12408_v0, 0.0  ;;  %v18633_v23 = vmax.f32 %v12412_v26, 0.0  ;;  %v18639_v26 = vld [vmem:[#allocation152_spill] sm:$0xff]  ;;  %vm18694_vm1 = vmmov %vm18614_vm0 }
 0x3a1   :  { %18625 = vst [vmem:[#allocation161_spill] sm:$0xff] %v12733_v7  ;;  %v18638_v7 = vmax.f32 %v18613_v34, 0.0  ;;  %v18658_v34 = vmax.f32 %v12557_v1, 0.0  ;;  %vm18695_vm11 = vmmov %vm18614_vm0 }
 0x3a2   :  { %8111 = vrot.lane.b32.xlu0 %v8110_v11, %s8805_s10  ;;  %v18630_v11 = vld [vmem:[#allocation144_spill] sm:$0xff]  ;;  %v12748_v27 = vrot.slane %v18632_v59, 1  ;;  %v12756_v53 = vrot.slane %v18633_v23, 1  ;;  %v18637_v59 = vrot.slane %v18628_v49, 4  ;;  %v18640_v23 = vmax.f32 %v18639_v26, 0.0  ;;  %vm18696_vm4 = vmmov %vm18614_vm0 }
 0x3a3   :  { %v18631_v63 = vmax.f32 %v18630_v11, 0.0  ;;  %v12772_v22 = vrot.slane %v18638_v7, 1  ;;  %v12780_v11 = vrot.slane %v18642_v8, 1  ;;  %v18644_v49 = vmax.f32 %v12491_v40, 0.0  ;;  %vm18697_vm9 = vmmov %vm18614_vm0 }
 0x3a4   :  { %v4318_v20 = vsel %vm4270_vm14, %v4221_v19, %v18637_v59  ;;  %v12776_v0 = vrot.slane %v18640_v23, 1  ;;  %v18645_v7 = vmax.f32 %v12495_v44, 0.0  ;;  %v18646_v23 = vmax.f32 %v12499_v16, 0.0  ;;  %vm18698_vm7 = vmmov %vm18614_vm0 }
 0x3a5   :  { %v12744_v38 = vrot.slane %v18631_v63, 1  ;;  %v18636_v63 = vmax.f32 %v18635_v13, 0.0  ;;  %v8125_v13 = vpack.i.bf16 %v4318_v20, %v4319_v29  ;;  %v12788_v19 = vrot.slane %v18644_v49, 1  ;;  %vm18699_vm5 = vmmov %vm18614_vm0 }
 0x3a6   :  { %v12792_v59 = vrot.slane %v18645_v7, 1  ;;  %v12796_v26 = vrot.slane %v18646_v23, 1  ;;  %v18647_v8 = vmax.f32 %v12505_v60, 0.0  ;;  %v18648_v20 = vmax.f32 %v12509_v18, 0.0 }
 0x3a7   :  { %v12764_v33 = vrot.slane %v18636_v63, 1  ;;  %v18643_v63 = vmax.f32 %v12486_v31, 0.0  ;;  %8126 = vrot.lane.b32.xlu1 %v8125_v13, %s8806_s13  ;;  %v18650_v7 = vmax.f32 %v12517_v56, 0.0  ;;  %v18651_v23 = vmax.f32 %v12521_v36, 0.0 }
 0x3a8   :  { %v12800_v47 = vrot.slane %v18647_v8, 1  ;;  %v12804_v29 = vrot.slane %v18648_v20, 1  ;;  %v18652_v8 = vmax.f32 %v12525_v52, 0.0  ;;  %v18653_v20 = vmax.f32 %v12537_v25, 0.0 }
 0x3a9   :  { %v12784_v3 = vrot.slane %v18643_v63, 1  ;;  %v18649_v63 = vmax.f32 %v12513_v32, 0.0  ;;  %v12813_v16 = vrot.slane %v18650_v7, 1  ;;  %v12817_v60 = vrot.slane %v18651_v23, 1 }
 0x3aa   :  { %v12821_v18 = vrot.slane %v18652_v8, 1  ;;  %v3852_v32 = vrot.slane %v18653_v20, 1  ;;  %v18655_v13 = vmax.f32 %v12545_v41, 0.0  ;;  %v18656_v7 = vmax.f32 %v12549_v35, 0.0 }
 0x3ab   :  { %v12808_v49 = vrot.slane %v18649_v63, 1  ;;  %v18654_v63 = vmax.f32 %v12541_v39, 0.0  ;;  %v18657_v36 = vmax.f32 %v12553_v42, 0.0  ;;  %v3857_v52 = vrot.slane %v18658_v34, 1 }
 0x3ac   :  { %v3854_v40 = vrot.slane %v18655_v13, 1  ;;  %v3855_v56 = vrot.slane %v18656_v7, 1  ;;  %v18659_v8 = vmax.f32 %v12561_v37, 0.0  ;;  %v18660_v20 = vmax.f32 %v12565_v28, 0.0 }
 0x3ad   :  { %v3853_v44 = vrot.slane %v18654_v63, 1  ;;  %v3856_v23 = vrot.slane %v18657_v36, 1  ;;  %v18661_v63 = vmax.f32 %v12569_v48, 0.0  ;;  %v18662_v13 = vmax.f32 %v12574_v5, 0.0 }
 0x3ae   :  { %v3858_v31 = vrot.slane %v18659_v8, 1  ;;  %v3859_v25 = vrot.slane %v18660_v20, 1  ;;  %v18663_v7 = vmax.f32 %v12578_v21, 0.0  ;;  %v18664_v36 = vmax.f32 %v12582_v57, 0.0 }
 0x3af   :  { %v3860_v39 = vrot.slane %v18661_v63, 1  ;;  %v3861_v41 = vrot.slane %v18662_v13, 1  ;;  %v18665_v34 = vmax.f32 %v12586_v14, 0.0  ;;  %v18666_v8 = vmax.f32 %v12590_v61, 0.0 }
 0x3b0   :  { %v3862_v35 = vrot.slane %v18663_v7, 1  ;;  %v3863_v42 = vrot.slane %v18664_v36, 1  ;;  %v18667_v20 = vmax.f32 %v12594_v10, 0.0  ;;  %v18668_v63 = vmax.f32 %v12598_v12, 0.0 }
 0x3b1   :  { %v3864_v1 = vrot.slane %v18665_v34, 1  ;;  %v3865_v37 = vrot.slane %v18666_v8, 1  ;;  %v18669_v13 = vmax.f32 %v12602_v50, 0.0  ;;  %v18670_v7 = vmax.f32 %v12606_v45, 0.0 }
 0x3b2   :  { %v3866_v28 = vrot.slane %v18667_v20, 1  ;;  %v3867_v48 = vrot.slane %v18668_v63, 1  ;;  %v18671_v36 = vmax.f32 %v12610_v43, 0.0  ;;  %v18672_v34 = vmax.f32 %v12614_v9, 0.0 }
 0x3b3   :  { %v3868_v5 = vrot.slane %v18669_v13, 1  ;;  %v3869_v21 = vrot.slane %v18670_v7, 1  ;;  %v18673_v8 = vmax.f32 %v12618_v55, 0.0  ;;  %v18674_v20 = vmax.f32 %v12622_v6, 0.0 }
 0x3b4   :  { %v3870_v57 = vrot.slane %v18671_v36, 1  ;;  %v3871_v14 = vrot.slane %v18672_v34, 1  ;;  %v18675_v63 = vmax.f32 %v12626_v54, 0.0  ;;  %v18676_v13 = vmax.f32 %v12630_v58, 0.0 }
 0x3b5   :  { %v3872_v61 = vrot.slane %v18673_v8, 1  ;;  %v3873_v10 = vrot.slane %v18674_v20, 1  ;;  %v18677_v7 = vmax.f32 %v12634_v24, 0.0  ;;  %v18678_v36 = vmax.f32 %v12638_v62, 0.0 }
 0x3b6   :  { %v3874_v12 = vrot.slane %v18675_v63, 1  ;;  %v3875_v50 = vrot.slane %v18676_v13, 1  ;;  %v18679_v34 = vmax.f32 %v12642_v4, 0.0  ;;  %v17716_v8 = vrot.slane %v12679_v46, 4 }
 0x3b7   :  { %v3876_v45 = vrot.slane %v18677_v7, 1  ;;  %v3877_v43 = vrot.slane %v18678_v36, 1  ;;  %v4217_v6 = vrot.slane %v12682_v15, 4 }
 0x3b8   :  { %v3878_v9 = vrot.slane %v18679_v34, 1  ;;  %v12886_v13 = vsel %vm18682_vm6, %v3874_v12, %v3875_v50  ;;  %v12890_v7 = vsel %vm18683_vm13, %v3873_v10, %v3874_v12  ;;  %v18684_v34 = vld [vmem:[#allocation101_spill] sm:$0xff]  ;;  %v18691_v12 = vrot.slane %v12685_v30, 4  ;;  %vm18701_vm6 = vmmov %vm18614_vm0 }
 0x3b9   :  { %v12882_v63 = vsel %vm18680_vm2, %v3875_v50, %v3876_v45  ;;  %v4323_v36 = vsel %vm4270_vm14, %v17716_v8, %v4217_v6  ;;  %v12907_v50 = vsel %vm18689_vm8, %v3876_v45, %v3877_v43  ;;  %v12915_v8 = vsel %vm18692_vm12, %v3872_v61, %v3873_v10  ;;  %vm18700_vm2 = vmmov %vm18614_vm0 }
 0x3ba   :  { %18681 = vst [vmem:[#allocation203_spill] sm:$0xff] %v12882_v63  ;;  %v12899_v20 = vsel %vm18685_vm10, %v3878_v9, %v18684_v34  ;;  %v12903_v15 = vsel %vm18687_vm3, %v3877_v43, %v3878_v9  ;;  %18690 = vst [vmem:[#allocation205_spill] sm:$0xff] %v12907_v50  ;;  %v4322_v46 = vsel %vm4270_vm14, %v4217_v6, %v18691_v12  ;;  %v18743_v50 = vld [vmem:[#allocation144_spill] sm:$0xff] }
 0x3bb   :  { %18686 = vst [vmem:[#allocation101_spill] sm:$0xff] %v12899_v20  ;;  %18688 = vst [vmem:[#allocation204_spill] sm:$0xff] %v12903_v15  ;;  %v12919_v34 = vsel %vm18693_vm15, %v3871_v14, %v3872_v61  ;;  %v12923_v9 = vsel %vm18694_vm1, %v3870_v57, %v3871_v14  ;;  %v8120_v4 = vpack.i.bf16 %v4322_v46, %v4323_v36  ;;  %v18721_v46 = vld [vmem:[#allocation148_spill] sm:$0xff]  ;;  %v18734_v36 = vld [vmem:[#allocation137_spill] sm:$0xff]  ;;  %v18744_v58 = vmax.f32 %v18743_v50, 0.0 }
 0x3bc   :  { %v12927_v45 = vsel %vm18695_vm11, %v3869_v21, %v3870_v57  ;;  %v12931_v43 = vsel %vm18614_vm0, %v3868_v5, %v3869_v21  ;;  %v12935_v10 = vsel %vm18696_vm4, %v3867_v48, %v3868_v5  ;;  %v12939_v61 = vsel %vm18697_vm9, %v3866_v28, %v3867_v48  ;;  %vm18702_vm13 = vmmov %vm18614_vm0  ;;  %v18739_v20 = vld [vmem:[#allocation95_spill] sm:$0xff]  ;;  %v18741_v15 = vld [vmem:[#allocation125_spill] sm:$0xff] }
 0x3bd   :  { %v12943_v14 = vsel %vm18698_vm7, %v3865_v37, %v3866_v28  ;;  %v12947_v57 = vsel %vm18699_vm5, %v3864_v1, %v3865_v37  ;;  %v12951_v21 = vsel %vm18700_vm2, %v3863_v42, %v3864_v1  ;;  %8121 = vrot.lane.b32.xlu0 %v8120_v4, %s8806_s13  ;;  %v12956_v5 = vsel %vm18701_vm6, %v3862_v35, %v3863_v42  ;;  %vm18703_vm10 = vmmov %vm18614_vm0 }
 0x3be   :  { %v12960_v48 = vsel %vm18702_vm13, %v3861_v41, %v3862_v35  ;;  %v12964_v28 = vsel %vm18703_vm10, %v3860_v39, %v3861_v41  ;;  %vm18704_vm3 = vmmov %vm18614_vm0  ;;  %v3917_v4 = vsel %vm18614_vm0, %v3853_v44, %v3854_v40  ;;  %v18735_v12 = vmax.f32 %v18734_v36, 0.0  ;;  %v18748_v36 = vld [vmem:[#allocation135_spill] sm:$0xff] }
 0x3bf   :  { %v12968_v37 = vsel %vm18704_vm3, %v3859_v25, %v3860_v39  ;;  %vm18705_vm8 = vmmov %vm18614_vm0  ;;  %v18742_v24 = vmax.f32 %v18741_v15, 0.0 }
 0x3c0   :  { %v3912_v1 = vsel %vm18705_vm8, %v3858_v31, %v3859_v25  ;;  %vm18706_vm12 = vmmov %vm18614_vm0 }
 0x3c1   :  { %v3913_v6 = vsel %vm18706_vm12, %v3857_v52, %v3858_v31  ;;  %vm18707_vm15 = vmmov %vm18614_vm0 }
 0x3c2   :  { %v3914_v42 = vsel %vm18707_vm15, %v3856_v23, %v3857_v52  ;;  %vm18708_vm1 = vmmov %vm18614_vm0 }
 0x3c3   :  { %v3915_v35 = vsel %vm18708_vm1, %v3855_v56, %v3856_v23  ;;  %vm18709_vm11 = vmmov %vm18614_vm0  ;;  %v18732_v23 = vld [vmem:[#allocation82_spill] sm:$0xff] }
 0x3c4   :  { %v3916_v41 = vsel %vm18709_vm11, %v3854_v40, %v3855_v56  ;;  %vm18710_vm4 = vmmov %vm18614_vm0 }
 0x3c5   :  { %v3918_v39 = vsel %vm18710_vm4, %v3852_v32, %v3853_v44  ;;  %vm18711_vm9 = vmmov %vm18614_vm0 }
 0x3c6   :  { %v3919_v25 = vsel %vm18711_vm9, %v12821_v18, %v3852_v32  ;;  %vm18712_vm7 = vmmov %vm18614_vm0 }
 0x3c7   :  { %v3920_v31 = vsel %vm18712_vm7, %v12817_v60, %v12821_v18  ;;  %vm18713_vm5 = vmmov %vm18614_vm0 }
 0x3c8   :  { %v3921_v56 = vsel %vm18713_vm5, %v12813_v16, %v12817_v60  ;;  %vm18714_vm2 = vmmov %vm18614_vm0 }
 0x3c9   :  { %v3922_v40 = vsel %vm18714_vm2, %v12808_v49, %v12813_v16  ;;  %vm18715_vm6 = vmmov %vm18614_vm0 }
 0x3ca   :  { %v3923_v44 = vsel %vm18715_vm6, %v12804_v29, %v12808_v49  ;;  %vm18716_vm13 = vmmov %vm18614_vm0 }
 0x3cb   :  { %v3924_v18 = vsel %vm18716_vm13, %v12800_v47, %v12804_v29  ;;  %vm18717_vm10 = vmmov %vm18614_vm0  ;;  %v18723_v29 = vld [vmem:[#allocation197_spill] sm:$0xff] }
 0x3cc   :  { %v3925_v60 = vsel %vm18717_vm10, %v12796_v26, %v12800_v47  ;;  %vm18718_vm3 = vmmov %vm18614_vm0  ;;  %vm18785_vm10 = vcmp.lt.s32.totalorder %v18498_v51, 6 }
 0x3cd   :  { %v3926_v16 = vsel %vm18718_vm3, %v12792_v59, %v12796_v26  ;;  %vm18719_vm8 = vmmov %vm18614_vm0 }
 0x3ce   :  { %v3927_v32 = vsel %vm18719_vm8, %v12788_v19, %v12792_v59  ;;  %vm18720_vm12 = vmmov %vm18614_vm0 }
 0x3cf   :  { %v3928_v52 = vsel %vm18720_vm12, %v12784_v3, %v12788_v19  ;;  %vm18722_vm15 = vmmov %vm18614_vm0  ;;  %v3941_v19 = vsel %vm18614_vm0, %v12772_v22, %v12776_v0 }
 0x3d0   :  { %v3929_v47 = vsel %vm18722_vm15, %v18721_v46, %v12784_v3  ;;  %vm18724_vm1 = vmmov %vm18614_vm0 }
 0x3d1   :  { %v3939_v26 = vsel %vm18724_vm1, %v12780_v11, %v18723_v29  ;;  %vm18725_vm11 = vmmov %vm18614_vm0  ;;  %v13069_v46 = vmax.f32 %v18735_v12, %v3929_v47  ;;  %v18749_v12 = vmax.f32 %v18748_v36, 0.0 }
 0x3d2   :  { %v3940_v59 = vsel %vm18725_vm11, %v12776_v0, %v12780_v11  ;;  %vm18726_vm4 = vmmov %vm18614_vm0 }
 0x3d3   :  { %v3942_v3 = vsel %vm18726_vm4, %v12764_v33, %v12772_v22  ;;  %vm18727_vm9 = vmmov %vm18614_vm0 }
 0x3d4   :  { %v3943_v49 = vsel %vm18727_vm9, %v12760_v2, %v12764_v33  ;;  %vm18728_vm7 = vmmov %vm18614_vm0 }
 0x3d5   :  { %v3944_v11 = vsel %vm18728_vm7, %v12756_v53, %v12760_v2  ;;  %vm18729_vm5 = vmmov %vm18614_vm0 }
 0x3d6   :  { %v3945_v0 = vsel %vm18729_vm5, %v12748_v27, %v12756_v53  ;;  %vm18730_vm2 = vmmov %vm18614_vm0  ;;  %v18736_v53 = vld [vmem:[#allocation176_spill] sm:$0xff] }
 0x3d7   :  { %v3946_v22 = vsel %vm18730_vm2, %v12744_v38, %v12748_v27  ;;  %vm18731_vm6 = vmmov %vm18614_vm0  ;;  %v18737_v29 = vmax.f32 %v18736_v53, 0.0  ;;  %v18740_v27 = vmax.f32 %v18739_v20, 0.0  ;;  %v13091_v53 = vmax.f32 %v18749_v12, %v3944_v11  ;;  %v18761_v11 = vld [vmem:[#allocation152_spill] sm:$0xff] }
 0x3d8   :  { %v3947_v33 = vsel %vm18731_vm6, %v12740_v17, %v12744_v38  ;;  %vm18733_vm13 = vmmov %vm18614_vm0  ;;  %v13085_v63 = vmax.f32 %v18744_v58, %v3946_v22  ;;  %v18756_v58 = vld [vmem:[#allocation138_spill] sm:$0xff] }
 0x3d9   :  { %v3948_v2 = vsel %vm18733_vm13, %v18732_v23, %v12740_v17  ;;  %v13073_v30 = vmax.f32 %v18737_v29, %v3928_v52  ;;  %v13081_v38 = vmax.f32 %v18742_v24, %v3947_v33  ;;  %v18746_v17 = vld [vmem:[#allocation147_spill] sm:$0xff]  ;;  %18750 = vst [vmem:[#allocation82_spill] sm:$0xff] %v13091_v53  ;;  %v18754_v24 = vld [vmem:[#allocation162_spill] sm:$0xff]  ;;  %v18757_v50 = vmax.f32 %v18756_v58, 0.0  ;;  %v18768_v53 = vld [vmem:[#allocation185_spill] sm:$0xff] }
 0x3da   :  { %v13077_v62 = vmax.f32 %v18740_v27, %v3948_v2  ;;  %18745 = vst [vmem:[#allocation197_spill] sm:$0xff] %v13085_v63  ;;  %v18747_v23 = vmax.f32 %v18746_v17, 0.0  ;;  %v18751_v52 = vld [vmem:[#allocation151_spill] sm:$0xff]  ;;  %v18753_v2 = vld [vmem:[#allocation149_spill] sm:$0xff]  ;;  %vm18788_vm3 = vmmov %vm18785_vm10 }
 0x3db   :  { %18738 = vst [vmem:[#allocation148_spill] sm:$0xff] %v13073_v30  ;;  %v18752_v29 = vmax.f32 %v18751_v52, 0.0  ;;  %v13097_v27 = vmax.f32 %v18753_v2, %v13069_v46  ;;  %v13101_v15 = vmax.f32 %v18754_v24, %v13073_v30  ;;  %v13105_v22 = vmax.f32 %v18757_v50, %v3942_v3  ;;  %v18771_v50 = vld [vmem:[#allocation189_spill] sm:$0xff]  ;;  %vm18852_vm8 = vmmov %vm18788_vm3 }
 0x3dc   :  { %v3953_v47 = vmax.f32 %v18747_v23, %v3945_v0  ;;  %v18759_v0 = vld [vmem:[#allocation158_spill] sm:$0xff]  ;;  %v18762_v23 = vmax.f32 %v18761_v11, 0.0  ;;  %v18769_v24 = vmax.f32 %v18768_v53, 0.0  ;;  %vm18855_vm12 = vmmov %vm18788_vm3 }
 0x3dd   :  { %v3955_v20 = vmax.f32 %v18752_v29, %v3943_v49  ;;  %18755 = vst [vmem:[#allocation137_spill] sm:$0xff] %v13101_v15  ;;  %18758 = vst [vmem:[#allocation176_spill] sm:$0xff] %v13105_v22  ;;  %v18760_v33 = vmax.f32 %v18759_v0, 0.0  ;;  %v18764_v49 = vld [vmem:[#allocation170_spill] sm:$0xff]  ;;  %v18766_v29 = vld [vmem:[#allocation181_spill] sm:$0xff]  ;;  %v4095_v3 = vrot.slane %v13097_v27, 2 }
 0x3de   :  { %v13111_v36 = vmax.f32 %v18762_v23, %v3940_v59  ;;  %v18765_v12 = vmax.f32 %v18764_v49, 0.0  ;;  %v18767_v2 = vmax.f32 %v18766_v29, 0.0  ;;  %v13119_v30 = vmax.f32 %v18769_v24, %v3926_v16  ;;  %v18776_v23 = vld [vmem:[#allocation52_spill] sm:$0xff]  ;;  %v18782_v24 = vld [vmem:[#allocation62_spill] sm:$0xff]  ;;  %vm18889_vm15 = vmmov %vm18788_vm3 }
 0x3df   :  { %v3957_v17 = vmax.f32 %v18760_v33, %v3941_v19  ;;  %v18772_v19 = vmax.f32 %v18771_v50, 0.0  ;;  %v18773_v33 = vld [vmem:[#allocation42_spill] sm:$0xff]  ;;  %v18780_v16 = vld [vmem:[#allocation44_spill] sm:$0xff]  ;;  %v18783_v22 = vmax.f32 %v18782_v24, 0.0  ;;  %v18784_v50 = vrot.slane %v13101_v15, 2  ;;  %vm18890_vm1 = vmmov %vm18788_vm3 }
 0x3e0   :  { %18763 = vst [vmem:[#allocation95_spill] sm:$0xff] %v13111_v36  ;;  %v3959_v52 = vmax.f32 %v18765_v12, %v3939_v26  ;;  %v3971_v63 = vmax.f32 %v18767_v2, %v3927_v32  ;;  %18770 = vst [vmem:[#allocation125_spill] sm:$0xff] %v13119_v30  ;;  %v18774_v59 = vmax.f32 %v18773_v33, 0.0  ;;  %v18777_v26 = vmax.f32 %v18776_v23, 0.0  ;;  %v18778_v12 = vld [vmem:[#allocation55_spill] sm:$0xff]  ;;  %v18789_v33 = vld [vmem:[#allocation53_spill] sm:$0xff] }
 0x3e1   :  { %v3973_v0 = vmax.f32 %v18772_v19, %v3925_v60  ;;  %v18779_v32 = vmax.f32 %v18778_v12, 0.0  ;;  %v18781_v53 = vmax.f32 %v18780_v16, 0.0  ;;  %v3978_v58 = vmax.f32 %v18783_v22, %v3920_v31  ;;  %v18791_v23 = vld [vmem:[#allocation65_spill] sm:$0xff]  ;;  %v18795_v22 = vld [vmem:[#allocation56_spill] sm:$0xff]  ;;  %v18797_v36 = vld [vmem:[#allocation75_spill] sm:$0xff] }
 0x3e2   :  { %v13127_v11 = vmax.f32 %v18774_v59, %v3924_v18  ;;  %v3975_v49 = vmax.f32 %v18777_v26, %v3923_v44  ;;  %v4187_v60 = vsel %vm18785_vm10, %v4095_v3, %v18784_v50  ;;  %v18786_v18 = vld [vmem:[#allocation165_spill] sm:$0xff]  ;;  %v18790_v59 = vmax.f32 %v18789_v33, 0.0  ;;  %vm18891_vm11 = vmmov %vm18890_vm1 }
 0x3e3   :  { %v13133_v29 = vmax.f32 %v18779_v32, %v3922_v40  ;;  %v3977_v2 = vmax.f32 %v18781_v53, %v3921_v56  ;;  %v18787_v19 = vrot.slane %v18786_v18, 2  ;;  %v18792_v26 = vmax.f32 %v18791_v23, 0.0  ;;  %v18793_v32 = vld [vmem:[#allocation68_spill] sm:$0xff]  ;;  %v18799_v18 = vld [vmem:[#allocation78_spill] sm:$0xff]  ;;  %vm18892_vm0 = vmmov %vm18890_vm1 }
 0x3e4   :  { %18775 = vst [vmem:[#allocation144_spill] sm:$0xff] %v13127_v11  ;;  %v3979_v40 = vmax.f32 %v18790_v59, %v3919_v25  ;;  %v18794_v16 = vmax.f32 %v18793_v32, 0.0  ;;  %v18796_v53 = vmax.f32 %v18795_v22, 0.0  ;;  %v18798_v50 = vmax.f32 %v18797_v36, 0.0  ;;  %v18803_v25 = vld [vmem:[#allocation79_spill] sm:$0xff]  ;;  %vm18893_vm4 = vmmov %vm18892_vm0 }
 0x3e5   :  { %v4188_v44 = vsel %vm18788_vm3, %v18787_v19, %v4095_v3  ;;  %v3980_v12 = vmax.f32 %v18792_v26, %v3918_v39  ;;  %v18800_v30 = vmax.f32 %v18799_v18, 0.0  ;;  %v18801_v3 = vld [vmem:[#allocation66_spill] sm:$0xff]  ;;  %v18804_v59 = vmax.f32 %v18803_v25, 0.0  ;;  %v18805_v39 = vld [vmem:[#allocation81_spill] sm:$0xff]  ;;  %v18821_v25 = vld [vmem:[#allocation192_spill] sm:$0xff] }
 0x3e6   :  { %v8135_v56 = vpack.i.bf16 %v4187_v60, %v4188_v44  ;;  %v3981_v31 = vmax.f32 %v18794_v16, %v3917_v4  ;;  %v3982_v24 = vmax.f32 %v18796_v53, %v3916_v41  ;;  %v3983_v11 = vmax.f32 %v18798_v50, %v3915_v35  ;;  %v18807_v41 = vld [vmem:[#allocation69_spill] sm:$0xff]  ;;  %v18809_v35 = vld [vmem:[#allocation87_spill] sm:$0xff]  ;;  %v18817_v53 = vld [vmem:[#allocation94_spill] sm:$0xff] }
 0x3e7   :  { %v3984_v15 = vmax.f32 %v18800_v30, %v3914_v42  ;;  %v18802_v19 = vmax.f32 %v18801_v3, 0.0  ;;  %v3986_v23 = vmax.f32 %v18804_v59, %v3912_v1  ;;  %v18806_v60 = vmax.f32 %v18805_v39, 0.0  ;;  %v18811_v42 = vld [vmem:[#allocation89_spill] sm:$0xff]  ;;  %v18813_v1 = vld [vmem:[#allocation80_spill] sm:$0xff]  ;;  %v18819_v3 = vld [vmem:[#allocation191_spill] sm:$0xff] }
 0x3e8   :  { %8136 = vrot.lane.b32.xlu1 %v8135_v56, %s8805_s10  ;;  %v18808_v4 = vmax.f32 %v18807_v41, 0.0  ;;  %v18810_v18 = vmax.f32 %v18809_v35, 0.0  ;;  %v18814_v32 = vmax.f32 %v18813_v1, 0.0  ;;  %v18818_v50 = vmax.f32 %v18817_v53, 0.0  ;;  %v18823_v39 = vld [vmem:[#allocation193_spill] sm:$0xff]  ;;  %v18825_v41 = vld [vmem:[#allocation194_spill] sm:$0xff]  ;;  %vm18894_vm9 = vmmov %vm18892_vm0 }
 0x3e9   :  { %v3985_v33 = vmax.f32 %v18802_v19, %v3913_v6  ;;  %v3987_v44 = vmax.f32 %v18806_v60, %v12968_v37  ;;  %v18812_v6 = vmax.f32 %v18811_v42, 0.0  ;;  %v18815_v37 = vld [vmem:[#allocation190_spill] sm:$0xff]  ;;  %v18820_v19 = vmax.f32 %v18819_v3, 0.0  ;;  %v18827_v35 = vld [vmem:[#allocation195_spill] sm:$0xff]  ;;  %v18829_v42 = vld [vmem:[#allocation196_spill] sm:$0xff] }
 0x3ea   :  { %v3988_v36 = vmax.f32 %v18808_v4, %v12964_v28  ;;  %v3989_v30 = vmax.f32 %v18810_v18, %v12960_v48  ;;  %v3991_v16 = vmax.f32 %v18814_v32, %v12951_v21  ;;  %v18816_v22 = vmax.f32 %v18815_v37, 0.0  ;;  %v18832_v32 = vld [vmem:[#allocation124_spill] sm:$0xff]  ;;  %v18835_v53 = vld [vmem:[#allocation203_spill] sm:$0xff]  ;;  %vm18895_vm7 = vmmov %vm18892_vm0 }
 0x3eb   :  { %v3990_v26 = vmax.f32 %v18812_v6, %v12956_v5  ;;  %v3993_v28 = vmax.f32 %v18818_v50, %v12943_v14  ;;  %v3994_v48 = vmax.f32 %v18820_v19, %v12939_v61  ;;  %v18822_v59 = vmax.f32 %v18821_v25, 0.0  ;;  %v18836_v50 = vld [vmem:[#allocation110_spill] sm:$0xff]  ;;  %v18838_v19 = vld [vmem:[#allocation205_spill] sm:$0xff]  ;;  %v18839_v25 = vld [vmem:[#allocation131_spill] sm:$0xff] }
 0x3ec   :  { %v3992_v56 = vmax.f32 %v18816_v22, %v12947_v57  ;;  %v18824_v60 = vmax.f32 %v18823_v39, 0.0  ;;  %v18826_v4 = vmax.f32 %v18825_v41, 0.0  ;;  %v18828_v18 = vmax.f32 %v18827_v35, 0.0  ;;  %v18841_v39 = vld [vmem:[#allocation204_spill] sm:$0xff]  ;;  %v18844_v41 = vld [vmem:[#allocation101_spill] sm:$0xff]  ;;  %vm18896_vm5 = vmmov %vm18892_vm0 }
 0x3ed   :  { %v3995_v5 = vmax.f32 %v18822_v59, %v12935_v10  ;;  %v18830_v6 = vmax.f32 %v18829_v42, 0.0  ;;  %v18831_v1 = vmax.f32 %v12618_v55, 0.0  ;;  %v18833_v37 = vmax.f32 %v18832_v32, 0.0  ;;  %v18850_v32 = vld [vmem:[#allocation174_spill] sm:$0xff]  ;;  %vm18899_vm2 = vmmov %vm18892_vm0 }
 0x3ee   :  { %v3996_v21 = vmax.f32 %v18824_v60, %v12931_v43  ;;  %v3997_v57 = vmax.f32 %v18826_v4, %v12927_v45  ;;  %v3998_v14 = vmax.f32 %v18828_v18, %v12923_v9  ;;  %v18834_v22 = vmax.f32 %v12626_v54, 0.0  ;;  %v18842_v60 = vld [vmem:[#allocation134_spill] sm:$0xff]  ;;  %v18845_v4 = vld [vmem:[#allocation119_spill] sm:$0xff]  ;;  %v18847_v18 = vld [vmem:[#allocation161_spill] sm:$0xff] }
 0x3ef   :  { %v3999_v61 = vmax.f32 %v18830_v6, %v12919_v34  ;;  %v4000_v10 = vmax.f32 %v18831_v1, %v12915_v8  ;;  %v4001_v43 = vmax.f32 %v18833_v37, %v12890_v7  ;;  %v18837_v3 = vmax.f32 %v18836_v50, 0.0  ;;  %vm18900_vm6 = vmmov %vm18892_vm0 }
 0x3f0   :  { %v4002_v45 = vmax.f32 %v18834_v22, %v12886_v13  ;;  %v18840_v59 = vmax.f32 %v18839_v25, 0.0  ;;  %v18843_v55 = vmax.f32 %v18842_v60, 0.0  ;;  %v18846_v35 = vmax.f32 %v18845_v4, 0.0  ;;  %vm18903_vm13 = vmmov %vm18892_vm0 }
 0x3f1   :  { %v4003_v9 = vmax.f32 %v18837_v3, %v18835_v53  ;;  %v4091_v42 = vrot.slane %v18847_v18, 2  ;;  %v13226_v54 = vmax.f32 %v13081_v38, %v3953_v47  ;;  %v13228_v13 = vmax.f32 %v3953_v47, %v3955_v20  ;;  %v18853_v53 = vld [vmem:[#allocation202_spill] sm:$0xff]  ;;  %vm18904_vm10 = vmmov %vm18892_vm0 }
 0x3f2   :  { %v4004_v34 = vmax.f32 %v18840_v59, %v18838_v19  ;;  %v4005_v8 = vmax.f32 %v18843_v55, %v18841_v39  ;;  %v4006_v7 = vmax.f32 %v18846_v35, %v18844_v41  ;;  %v13230_v6 = vmax.f32 %v3955_v20, %v3957_v17  ;;  %v18856_v19 = vld [vmem:[#allocation199_spill] sm:$0xff]  ;;  %vm18906_vm3 = vmmov %vm18892_vm0 }
 0x3f3   :  { %18848 = vst [vmem:[#allocation147_spill] sm:$0xff] %v13226_v54  ;;  %18849 = vst [vmem:[#allocation135_spill] sm:$0xff] %v13228_v13  ;;  %v13232_v1 = vmax.f32 %v3957_v17, %v3959_v52  ;;  %v18851_v37 = vrot.slane %v18850_v32, 2  ;;  %v18854_v50 = vrot.slane %v18853_v53, 2  ;;  %v13243_v25 = vmax.f32 %v3959_v52, %v18856_v19 }
 0x3f4   :  { %v13246_v47 = vmax.f32 %v13069_v46, %v3971_v63  ;;  %v13248_v59 = vmax.f32 %v3971_v63, %v3973_v0  ;;  %v13250_v17 = vmax.f32 %v3973_v0, %v3975_v49  ;;  %v13252_v39 = vmax.f32 %v3975_v49, %v3977_v2 }
 0x3f5   :  { %v4191_v22 = vsel %vm18852_vm8, %v4091_v42, %v18851_v37  ;;  %v4192_v3 = vsel %vm18855_vm12, %v18854_v50, %v4091_v42  ;;  %18857 = vst [vmem:[#allocation151_spill] sm:$0xff] %v13243_v25  ;;  %v13255_v60 = vmax.f32 %v13133_v29, %v3978_v58  ;;  %v13257_v55 = vmax.f32 %v3977_v2, %v3979_v40  ;;  %v18881_v50 = vld [vmem:[#allocation125_spill] sm:$0xff]  ;;  %vm18907_vm8 = vmmov %vm18892_vm0 }
 0x3f6   :  { %v8130_v20 = vpack.i.bf16 %v4191_v22, %v4192_v3  ;;  %v13259_v41 = vmax.f32 %v3978_v58, %v3980_v12  ;;  %v13261_v4 = vmax.f32 %v3979_v40, %v3981_v31  ;;  %v13264_v46 = vmax.f32 %v3980_v12, %v3982_v24  ;;  %vm18908_vm12 = vmmov %vm18892_vm0 }
 0x3f7   :  { %18858 = vst [vmem:[#allocation149_spill] sm:$0xff] %v13255_v60  ;;  %18859 = vst [vmem:[#allocation162_spill] sm:$0xff] %v13257_v55  ;;  %v13266_v52 = vmax.f32 %v3981_v31, %v3983_v11  ;;  %v13268_v63 = vmax.f32 %v3982_v24, %v3984_v15  ;;  %v13270_v0 = vmax.f32 %v3983_v11, %v3985_v33  ;;  %v4097_v19 = vrot.slane %v13246_v47, 2 }
 0x3f8   :  { %18860 = vst [vmem:[#allocation138_spill] sm:$0xff] %v13259_v41  ;;  %18861 = vst [vmem:[#allocation158_spill] sm:$0xff] %v13261_v4  ;;  %8131 = vrot.lane.b32.xlu0 %v8130_v20, %s8805_s10  ;;  %v13272_v49 = vmax.f32 %v3984_v15, %v3986_v23  ;;  %v13274_v35 = vmax.f32 %v3985_v33, %v3987_v44  ;;  %v13276_v2 = vmax.f32 %v3986_v23, %v3988_v36  ;;  %v18883_v20 = vld [vmem:[#allocation144_spill] sm:$0xff] }
 0x3f9   :  { %18862 = vst [vmem:[#allocation152_spill] sm:$0xff] %v13264_v46  ;;  %18863 = vst [vmem:[#allocation170_spill] sm:$0xff] %v13266_v52  ;;  %v13278_v58 = vmax.f32 %v3987_v44, %v3989_v30  ;;  %v13280_v40 = vmax.f32 %v3988_v36, %v3990_v26  ;;  %v13282_v42 = vmax.f32 %v3989_v30, %v3991_v16 }
 0x3fa   :  { %18864 = vst [vmem:[#allocation181_spill] sm:$0xff] %v13268_v63  ;;  %18865 = vst [vmem:[#allocation185_spill] sm:$0xff] %v13270_v0  ;;  %v13284_v12 = vmax.f32 %v3990_v26, %v3992_v56  ;;  %v13286_v31 = vmax.f32 %v3991_v16, %v3993_v28  ;;  %v13288_v24 = vmax.f32 %v3992_v56, %v3994_v48 }
 0x3fb   :  { %18866 = vst [vmem:[#allocation189_spill] sm:$0xff] %v13272_v49  ;;  %v13290_v11 = vmax.f32 %v3993_v28, %v3995_v5  ;;  %v13292_v15 = vmax.f32 %v3994_v48, %v3996_v21  ;;  %v13294_v33 = vmax.f32 %v3995_v5, %v3997_v57  ;;  %v13296_v23 = vmax.f32 %v3996_v21, %v3998_v14  ;;  %v18872_v5 = vld [vmem:[#allocation103_spill] sm:$0xff] }
 0x3fc   :  { %v13298_v44 = vmax.f32 %v3997_v57, %v3999_v61  ;;  %v13300_v36 = vmax.f32 %v3998_v14, %v4000_v10  ;;  %v13302_v30 = vmax.f32 %v3999_v61, %v4001_v43  ;;  %v13304_v26 = vmax.f32 %v4000_v10, %v4002_v45  ;;  %v18874_v21 = vld [vmem:[#allocation91_spill] sm:$0xff]  ;;  %v18876_v14 = vld [vmem:[#allocation108_spill] sm:$0xff]  ;;  %v18878_v10 = vld [vmem:[#allocation109_spill] sm:$0xff] }
 0x3fd   :  { %v13306_v16 = vmax.f32 %v4001_v43, %v4003_v9  ;;  %v13308_v56 = vmax.f32 %v4002_v45, %v4004_v34  ;;  %v13310_v28 = vmax.f32 %v4003_v9, %v4005_v8  ;;  %v13312_v48 = vmax.f32 %v4004_v34, %v4006_v7  ;;  %v18880_v9 = vld [vmem:[#allocation137_spill] sm:$0xff] }
 0x3fe   :  { %18867 = vst [vmem:[#allocation42_spill] sm:$0xff] %v13304_v26  ;;  %v13315_v37 = vmax.f32 %v4005_v8, %v18872_v5  ;;  %v13318_v57 = vmax.f32 %v4006_v7, %v18874_v21  ;;  %v13322_v61 = vmax.f32 %v18876_v14, %v13077_v62  ;;  %v13326_v43 = vmax.f32 %v18878_v10, %v13081_v38  ;;  %v18882_v8 = vld [vmem:[#allocation148_spill] sm:$0xff]  ;;  %v18884_v21 = vld [vmem:[#allocation165_spill] sm:$0xff] }
 0x3ff   :  { %18868 = vst [vmem:[#allocation52_spill] sm:$0xff] %v13306_v16  ;;  %18869 = vst [vmem:[#allocation55_spill] sm:$0xff] %v13308_v56  ;;  %v4223_v45 = vrot.slane %v13097_v27, 4  ;;  %v4224_v22 = vrot.slane %v18880_v9, 4  ;;  %v4219_v34 = vrot.slane %v18847_v18, 4  ;;  %v13333_v3 = vmax.f32 %v18882_v8, %v18881_v50 }
 0x400   :  { %18870 = vst [vmem:[#allocation44_spill] sm:$0xff] %v13310_v28  ;;  %18871 = vst [vmem:[#allocation62_spill] sm:$0xff] %v13312_v48  ;;  %v4225_v7 = vrot.slane %v13246_v47, 4  ;;  %v13339_v5 = vmax.f32 %v18881_v50, %v18883_v20  ;;  %v18885_v14 = vrot.slane %v18884_v21, 4 }
 0x401   :  { %18873 = vst [vmem:[#allocation53_spill] sm:$0xff] %v13315_v37  ;;  %18875 = vst [vmem:[#allocation65_spill] sm:$0xff] %v13318_v57  ;;  %v4316_v38 = vsel %vm4270_vm14, %v4223_v45, %v4224_v22  ;;  %v4226_v48 = vrot.slane %v13333_v3, 4  ;;  %v4098_v13 = vrot.slane %v13333_v3, 2 }
 0x402   :  { %18877 = vst [vmem:[#allocation68_spill] sm:$0xff] %v13322_v61  ;;  %18879 = vst [vmem:[#allocation56_spill] sm:$0xff] %v13326_v43  ;;  %v4317_v10 = vsel %vm4270_vm14, %v18885_v14, %v4223_v45  ;;  %v18886_v43 = vrot.slane %v18850_v32, 4  ;;  %v18887_v61 = vrot.slane %v18853_v53, 4  ;;  %v4315_v28 = vsel %vm4270_vm14, %v4224_v22, %v4225_v7 }
 0x403   :  { %v8145_v50 = vpack.i.bf16 %v4316_v38, %v4317_v10  ;;  %v18888_v45 = vrot.slane %v18880_v9, 2  ;;  %v4228_v56 = vrot.slane %v13339_v5, 4  ;;  %v4100_v22 = vrot.slane %v13339_v5, 2 }
 0x404   :  { %v4320_v8 = vsel %vm4270_vm14, %v4219_v34, %v18886_v43  ;;  %v4321_v57 = vsel %vm4270_vm14, %v18887_v61, %v4219_v34  ;;  %v4227_v43 = vrot.slane %v13248_v59, 4  ;;  %v4099_v61 = vrot.slane %v13248_v59, 2 }
 0x405   :  { %v8140_v37 = vpack.i.bf16 %v4320_v8, %v4321_v57  ;;  %v4186_v14 = vsel %vm18889_vm15, %v18888_v45, %v4097_v19  ;;  %8146 = vrot.lane.b32.xlu1 %v8145_v50, %s8806_s13  ;;  %v4314_v57 = vsel %vm4270_vm14, %v4225_v7, %v4226_v48  ;;  %v13373_v34 = vmax.f32 %v18883_v20, %v13133_v29  ;;  %vm18909_vm15 = vmmov %vm18892_vm0 }
 0x406   :  { %v8155_v38 = vpack.i.bf16 %v4314_v57, %v4315_v28  ;;  %v4185_v10 = vsel %vm18890_vm1, %v4097_v19, %v4098_v13  ;;  %v4312_v50 = vsel %vm4270_vm14, %v4227_v43, %v4228_v56  ;;  %v4183_v7 = vsel %vm18891_vm11, %v4099_v61, %v4100_v22  ;;  %vm18913_vm1 = vmmov %vm18892_vm0 }
 0x407   :  { %8141 = vrot.lane.b32.xlu0 %v8140_v37, %s8806_s13  ;;  %v8150_v8 = vpack.i.bf16 %v4185_v10, %v4186_v14  ;;  %v4313_v37 = vsel %vm4270_vm14, %v4226_v48, %v4227_v43  ;;  %v4184_v45 = vsel %vm18892_vm0, %v4098_v13, %v4099_v61  ;;  %v4229_v29 = vrot.slane %v13250_v17, 4  ;;  %vm18914_vm11 = vmmov %vm18892_vm0 }
 0x408   :  { %v4230_v28 = vrot.slane %v13373_v34, 4  ;;  %v4101_v20 = vrot.slane %v13250_v17, 2  ;;  %v4102_v19 = vrot.slane %v13373_v34, 2  ;;  %v4231_v48 = vrot.slane %v13252_v39, 4 }
 0x409   :  { %8156 = vrot.lane.b32.xlu1 %v8155_v38, %s8806_s13  ;;  %v4232_v14 = vrot.slane %v13255_v60, 4  ;;  %v4103_v43 = vrot.slane %v13252_v39, 2  ;;  %v4104_v13 = vrot.slane %v13255_v60, 2  ;;  %v8165_v57 = vpack.i.bf16 %v4312_v50, %v4313_v37 }
 0x40a   :  { %v8160_v61 = vpack.i.bf16 %v4183_v7, %v4184_v45  ;;  %v4310_v10 = vsel %vm4270_vm14, %v4229_v29, %v4230_v28  ;;  %v4311_v38 = vsel %vm4270_vm14, %v4228_v56, %v4229_v29  ;;  %v4182_v16 = vsel %vm18894_vm9, %v4100_v22, %v4101_v20  ;;  %vm18916_vm9 = vmmov %vm18892_vm0 }
 0x40b   :  { %8151 = vrot.lane.b32.xlu0 %v8150_v8, %s8805_s10  ;;  %v4181_v8 = vsel %vm18893_vm4, %v4101_v20, %v4102_v19  ;;  %v4308_v50 = vsel %vm4270_vm14, %v4231_v48, %v4232_v14  ;;  %v4309_v37 = vsel %vm4270_vm14, %v4230_v28, %v4231_v48  ;;  %v4179_v7 = vsel %vm18895_vm7, %v4103_v43, %v4104_v13  ;;  %vm18915_vm4 = vmmov %vm18892_vm0 }
 0x40c   :  { %v4180_v56 = vsel %vm18896_vm5, %v4102_v19, %v4103_v43  ;;  %v4233_v45 = vrot.slane %v13257_v55, 4  ;;  %v4234_v22 = vrot.slane %v13259_v41, 4  ;;  %v8175_v29 = vpack.i.bf16 %v4310_v10, %v4311_v38  ;;  %v18898_v38 = vld [vmem:[#allocation176_spill] sm:$0xff]  ;;  %vm18917_vm7 = vmmov %vm18892_vm0 }
 0x40d   :  { %8166 = vrot.lane.b32.xlu1 %v8165_v57, %s8806_s13  ;;  %v8170_v20 = vpack.i.bf16 %v4181_v8, %v4182_v16  ;;  %v4105_v57 = vrot.slane %v13257_v55, 2  ;;  %v8185_v28 = vpack.i.bf16 %v4308_v50, %v4309_v37  ;;  %v8180_v48 = vpack.i.bf16 %v4179_v7, %v4180_v56  ;;  %v18897_v16 = vld [vmem:[#allocation95_spill] sm:$0xff]  ;;  %v18901_v56 = vld [vmem:[#allocation198_spill] sm:$0xff]  ;;  %vm18918_vm5 = vmmov %vm18892_vm0 }
 0x40e   :  { %v4235_v60 = vrot.slane %v13261_v4, 4  ;;  %v4306_v19 = vsel %vm4270_vm14, %v4233_v45, %v4234_v22  ;;  %v4236_v43 = vrot.slane %v13264_v46, 4  ;;  %v4107_v10 = vrot.slane %v13261_v4, 2 }
 0x40f   :  { %8161 = vrot.lane.b32.xlu0 %v8160_v61, %s8805_s10  ;;  %v4106_v61 = vrot.slane %v13259_v41, 2  ;;  %v13426_v8 = vmax.f32 %v18898_v38, %v18897_v16  ;;  %v4178_v37 = vsel %vm18900_vm6, %v4104_v13, %v4105_v57  ;;  %v4108_v7 = vrot.slane %v13264_v46, 2  ;;  %vm18922_vm6 = vmmov %vm18892_vm0 }
 0x410   :  { %v4109_v46 = vrot.slane %v13266_v52, 2  ;;  %v4110_v55 = vrot.slane %v13268_v63, 2 }
 0x411   :  { %8176 = vrot.lane.b32.xlu1 %v8175_v29, %s8806_s13  ;;  %v4307_v29 = vsel %vm4270_vm14, %v4232_v14, %v4233_v45  ;;  %v4177_v50 = vsel %vm18899_vm2, %v4105_v57, %v4106_v61  ;;  %v4304_v14 = vsel %vm4270_vm14, %v4235_v60, %v4236_v43  ;;  %v4305_v45 = vsel %vm4270_vm14, %v4234_v22, %v4235_v60  ;;  %v18905_v60 = vld [vmem:[#allocation82_spill] sm:$0xff]  ;;  %vm18919_vm2 = vmmov %vm18892_vm0 }
 0x412   :  { %v8195_v41 = vpack.i.bf16 %v4306_v19, %v4307_v29  ;;  %v8190_v4 = vpack.i.bf16 %v4177_v50, %v4178_v37  ;;  %v4175_v13 = vsel %vm18903_vm13, %v4107_v10, %v4108_v7  ;;  %v4176_v57 = vsel %vm18904_vm10, %v4106_v61, %v4107_v10  ;;  %vm18923_vm13 = vmmov %vm18892_vm0 }
 0x413   :  { %8171 = vrot.lane.b32.xlu0 %v8170_v20, %s8805_s10  ;;  %v13437_v20 = vmax.f32 %v18897_v16, %v18901_v56  ;;  %v4213_v16 = vrot.slane %v13232_v1, 4  ;;  %v4084_v29 = vrot.slane %v13426_v8, 2  ;;  %v13459_v22 = vmax.f32 %v18905_v60, %v18898_v38  ;;  %vm18924_vm10 = vmmov %vm18892_vm0 }
 0x414   :  { %v8205_v61 = vpack.i.bf16 %v4304_v14, %v4305_v45  ;;  %v8200_v10 = vpack.i.bf16 %v4175_v13, %v4176_v57  ;;  %v4237_v37 = vrot.slane %v13266_v52, 4  ;;  %v4238_v56 = vrot.slane %v13268_v63, 4 }
 0x415   :  { %18902 = vst [vmem:[#allocation75_spill] sm:$0xff] %v13437_v20  ;;  %8186 = vrot.lane.b32.xlu1 %v8185_v28, %s8806_s13  ;;  %v4085_v28 = vrot.slane %v13232_v1, 2  ;;  %v4214_v19 = vrot.slane %v13437_v20, 4  ;;  %v4086_v50 = vrot.slane %v13437_v20, 2  ;;  %v4215_v14 = vrot.slane %v13243_v25, 4 }
 0x416   :  { %v4087_v45 = vrot.slane %v13243_v25, 2  ;;  %v4302_v63 = vsel %vm4270_vm14, %v4237_v37, %v4238_v56  ;;  %v4173_v52 = vsel %vm18908_vm12, %v4109_v46, %v4110_v55  ;;  %vm18927_vm12 = vcmask 261120  }
 0x417   :  { %8181 = vrot.lane.b32.xlu0 %v8180_v48, %s8805_s10  ;;  %v4212_v48 = vrot.slane %v13426_v8, 4  ;;  %v4326_v20 = vsel %vm4270_vm14, %v4213_v16, %v4214_v19  ;;  %v4198_v38 = vsel %vm18907_vm8, %v4084_v29, %v4085_v28  ;;  %vm17798_vm8 = vcmask 523264  }
 0x419   :  { %8196 = vrot.lane.b32.xlu1 %v8195_v41, %s8806_s13  ;;  %v4327_v41 = vsel %vm4270_vm14, %v4212_v48, %v4213_v16  ;;  %v4303_v16 = vsel %vm4270_vm14, %v4236_v43, %v4237_v37 }
 0x41a   :  { %v8215_v13 = vpack.i.bf16 %v4326_v20, %v4327_v41  ;;  %v4240_v20 = vrot.slane %v13272_v49, 4  ;;  %v4112_v41 = vrot.slane %v13272_v49, 2 }
 0x41b   :  { %8191 = vrot.lane.b32.xlu0 %v8190_v4, %s8805_s10  ;;  %v4197_v4 = vsel %vm18906_vm3, %v4085_v28, %v4086_v50  ;;  %v4174_v28 = vsel %vm18909_vm15, %v4108_v7, %v4109_v46  ;;  %v4325_v46 = vsel %vm4270_vm14, %v4214_v19, %v4215_v14  ;;  %vm18925_vm3 = vmmov %vm18892_vm0 }
 0x41c   :  { %v8210_v57 = vpack.i.bf16 %v4197_v4, %v4198_v38  ;;  %v18910_v4 = vld [vmem:[#allocation200_spill] sm:$0xff]  ;;  %v8220_v25 = vpack.i.bf16 %v4173_v52, %v4174_v28  ;;  %v17752_v52 = vrot.slane %v13459_v22, 4  ;;  %v4241_v28 = vrot.slane %v13274_v35, 4  ;;  %vm18928_vm15 = vmmov %vm18927_vm12 }
 0x41d   :  { %8206 = vrot.lane.b32.xlu1 %v8205_v61, %s8806_s13  ;;  %v4239_v61 = vrot.slane %v13270_v0, 4  ;;  %v18911_v43 = vrot.slane %v18910_v4, 4  ;;  %v18912_v7 = vrot.slane %v18910_v4, 2 }
 0x41f   :  { %8201 = vrot.lane.b32.xlu0 %v8200_v10, %s8805_s10  ;;  %v4111_v10 = vrot.slane %v13270_v0, 2  ;;  %v4324_v37 = vsel %vm4270_vm14, %v4215_v14, %v18911_v43  ;;  %v4195_v38 = vsel %vm18913_vm1, %v4087_v45, %v18912_v7  ;;  %v4300_v43 = vsel %vm4270_vm14, %v4239_v61, %v4240_v20  ;;  %vm18930_vm1 = vmmov %vm18927_vm12 }
 0x420   :  { %v8235_v49 = vpack.i.bf16 %v4324_v37, %v4325_v46  ;;  %v4301_v19 = vsel %vm4270_vm14, %v4238_v56, %v4239_v61  ;;  %v4242_v61 = vrot.slane %v13276_v2, 4 }
 0x421   :  { %8216 = vrot.lane.b32.xlu1 %v8215_v13, %s8806_s13  ;;  %v4196_v13 = vsel %vm18914_vm11, %v4086_v50, %v4087_v45  ;;  %v4171_v14 = vsel %vm18892_vm0, %v4111_v10, %v4112_v41  ;;  %v4172_v50 = vsel %vm18915_vm4, %v4110_v55, %v4111_v10  ;;  %v4083_v45 = vrot.slane %v13230_v6, 2  ;;  %vm18931_vm11 = vmmov %vm18930_vm1 }
 0x422   :  { %v8230_v0 = vpack.i.bf16 %v4195_v38, %v4196_v13  ;;  %v8240_v56 = vpack.i.bf16 %v4171_v14, %v4172_v50  ;;  %v4113_v55 = vrot.slane %v13274_v35, 2  ;;  %v4114_v10 = vrot.slane %v13276_v2, 2  ;;  %vm18932_vm4 = vmmov %vm18892_vm0 }
 0x423   :  { %8211 = vrot.lane.b32.xlu0 %v8210_v57, %s8805_s10  ;;  %v8225_v57 = vpack.i.bf16 %v4302_v63, %v4303_v16  ;;  %v4211_v63 = vrot.slane %v13230_v6, 4  ;;  %v8245_v16 = vpack.i.bf16 %v4300_v43, %v4301_v19  ;;  %v4299_v13 = vsel %vm4270_vm14, %v4240_v20, %v4241_v28 }
 0x424   :  { %v4243_v43 = vrot.slane %v13278_v58, 4  ;;  %v4244_v19 = vrot.slane %v13280_v40, 4  ;;  %v4115_v14 = vrot.slane %v13278_v58, 2  ;;  %v4116_v50 = vrot.slane %v13280_v40, 2 }
 0x425   :  { %8226 = vrot.lane.b32.xlu1 %v8225_v57, %s8806_s13  ;;  %v4328_v37 = vsel %vm4270_vm14, %v4211_v63, %v4212_v48  ;;  %v4298_v48 = vsel %vm4270_vm14, %v4241_v28, %v4242_v61  ;;  %v4170_v57 = vsel %vm18919_vm2, %v4112_v41, %v4113_v55  ;;  %v4245_v28 = vrot.slane %v13282_v42, 4  ;;  %vm18936_vm2 = vmmov %vm18930_vm1 }
 0x427   :  { %8221 = vrot.lane.b32.xlu0 %v8220_v25, %s8805_s10  ;;  %v17753_v25 = vrot.slane %v13459_v22, 2 }
 0x429   :  { %8236 = vrot.lane.b32.xlu1 %v8235_v49, %s8806_s13  ;;  %v4329_v49 = vsel %vm4270_vm14, %v17752_v52, %v4211_v63  ;;  %v4200_v46 = vsel %vm18917_vm7, %v17753_v25, %v4083_v45  ;;  %v8265_v63 = vpack.i.bf16 %v4298_v48, %v4299_v13  ;;  %v4295_v48 = vsel %vm4270_vm14, %v4244_v19, %v4245_v28  ;;  %vm18934_vm7 = vmmov %vm18930_vm1 }
 0x42a   :  { %v8255_v7 = vpack.i.bf16 %v4328_v37, %v4329_v49  ;;  %v4117_v37 = vrot.slane %v13282_v42, 2  ;;  %v4296_v49 = vsel %vm4270_vm14, %v4243_v43, %v4244_v19  ;;  %v8753_v19 = vld [vmem:[%s17240_s2 + $0x30] sm:$0xff]  }
 0x42b   :  { %8231 = vrot.lane.b32.xlu0 %v8230_v0, %s8805_s10  ;;  %v4199_v0 = vsel %vm18916_vm9, %v4083_v45, %v4084_v29  ;;  %v4169_v29 = vsel %vm18918_vm5, %v4113_v55, %v4114_v10  ;;  %v18920_v45 = vld [vmem:[#allocation197_spill] sm:$0xff]  ;;  %v4246_v55 = vrot.slane %v13284_v12, 4  ;;  %vm18933_vm9 = vmmov %vm18930_vm1 }
 0x42c   :  { %v8250_v38 = vpack.i.bf16 %v4199_v0, %v4200_v46  ;;  %v8260_v20 = vpack.i.bf16 %v4169_v29, %v4170_v57  ;;  %v13557_v41 = vmax.f32 %v18920_v45, %v18905_v60  ;;  %v4168_v0 = vsel %vm18923_vm13, %v4114_v10, %v4115_v14  ;;  %vm18935_vm5 = vmmov %vm18930_vm1 }
 0x42d   :  { %8246 = vrot.lane.b32.xlu1 %v8245_v16, %s8806_s13  ;;  %v13553_v16 = vmax.f32 %v13077_v62, %v18920_v45  ;;  %v4167_v62 = vsel %vm18922_vm6, %v4115_v14, %v4116_v50  ;;  %v4118_v60 = vrot.slane %v13284_v12, 2  ;;  %v4166_v13 = vsel %vm18925_vm3, %v4116_v50, %v4117_v37  ;;  %v8117_v14 = vpop.permute.xlu1 %8116  ;;  %v8754_v50 = vld [vmem:[%s17240_s2 + $0x28] sm:$0xff]   ;;  %v8755_v45 = vld [vmem:[%s17240_s2 + $0x20] sm:$0xff]   ;;  %vm18937_vm6 = vmmov %vm18892_vm0 }
 0x42e   :  { %18921 = vst [vmem:[#allocation78_spill] sm:$0xff] %v13557_v41  ;;  %v8270_v46 = vpack.i.bf16 %v4167_v62, %v4168_v0  ;;  %v8807_v29 = vmov 0   ;;  %v4248_v62 = vrot.slane %v13288_v24, 4  ;;  %v18926_v0 = vld [vmem:[#allocation163_spill] sm:$0xff]  ;;  %vm18938_vm13 = vmmov %vm18892_vm0 }
 0x42f   :  { %8241 = vrot.lane.b32.xlu0 %v8240_v56, %s8805_s10  ;;  %v4297_v56 = vsel %vm4270_vm14, %v4242_v61, %v4243_v43  ;;  %v4165_v10 = vsel %vm18924_vm10, %v4117_v37, %v4118_v60  ;;  %7429 = vmatprep.subr.bf16.mxu1 %v8807_v29  ;;  %vm18939_vm10 = vmmov %vm18930_vm1 }
 0x430   :  { %v8275_v61 = vpack.i.bf16 %v4296_v49, %v4297_v56  ;;  %5893 = vmatprep.subr.bf16.mxu0 %v8807_v29  ;;  %v8280_v43 = vpack.i.bf16 %v4165_v10, %v4166_v13  ;;  %v4247_v49 = vrot.slane %v13286_v31, 4  ;;  %vm18940_vm3 = vmmov %vm18930_vm1 }
 0x431   :  { %8256 = vrot.lane.b32.xlu1 %v8255_v7, %s8806_s13  ;;  %v8752_v7 = vld [vmem:[%s17240_s2 + $0x38] sm:$0xff]   ;;  %v8127_v56 = vpop.permute.xlu1 %8126 }
 0x432   :  { %7445 = vmatpush1.bf16.msra.mxu1 %v8752_v7  ;;  %5894 = vmatpush1.bf16.msra.mxu0 %v8752_v7  ;;  %v8128_v37 = vunpack.i.l.bf16 %v8127_v56  ;;  %v4293_v13 = vsel %vm4270_vm14, %v4246_v55, %v4247_v49 }
 0x433   :  { %8251 = vrot.lane.b32.xlu0 %v8250_v38, %s8805_s10  ;;  %v4294_v38 = vsel %vm4270_vm14, %v4245_v28, %v4246_v55  ;;  %7430 = vmatprep.subr.bf16.mxu1 %v8807_v29  ;;  %v8129_v28 = vunpack.i.h.bf16 %v8127_v56  ;;  %v4119_v56 = vrot.slane %v13286_v31, 2 }
 0x434   :  { %v8285_v57 = vpack.i.bf16 %v4294_v38, %v4295_v48  ;;  %5895 = vmatprep.subr.bf16.mxu0 %v8807_v29  ;;  %v8756_v48 = vld [vmem:[%s17240_s2 + $0x18] sm:$0xff]  }
 0x435   :  { %8266 = vrot.lane.b32.xlu1 %v8265_v63, %s8806_s13  ;;  %v8119_v63 = vunpack.i.h.bf16 %v8117_v14 }
 0x436   :  { %7446 = vmatpush1.bf16.msra.mxu1 %v8753_v19  ;;  %5896 = vmatpush1.bf16.msra.mxu0 %v8753_v19 }
 0x437   :  { %8261 = vrot.lane.b32.xlu0 %v8260_v20, %s8805_s10  ;;  %7431 = vmatprep.subr.bf16.mxu1 %v8807_v29  ;;  %v8118_v20 = vunpack.i.l.bf16 %v8117_v14 }
 0x438   :  { %5897 = vmatprep.subr.bf16.mxu0 %v8807_v29 }
 0x439   :  { %8276 = vrot.lane.b32.xlu1 %v8275_v61, %s8806_s13  ;;  %v4862_v61 = vsel %vm18927_vm12, %v18926_v0, %v8119_v63  ;;  %vm18944_vm12 = vmmov %vm18892_vm0 }
 0x43a   :  { %7447 = vmatpush1.bf16.msra.mxu1 %v8754_v50  ;;  %5898 = vmatpush1.bf16.msra.mxu0 %v8754_v50  ;;  %v13617_v38 = vsel %vm17798_vm8, %v4862_v61, %v8129_v28  ;;  %v8758_v50 = vld [vmem:[%s17240_s2 + $0x8] sm:$0xff]   ;;  %v4120_v28 = vrot.slane %v13288_v24, 2  ;;  %v8759_v61 = vld [vmem:[%s17240_s2] sm:$0xff]  }
 0x43b   :  { %8271 = vrot.lane.b32.xlu0 %v8270_v46, %s8805_s10  ;;  %7432 = vmatprep.subr.bf16.mxu1 %v8807_v29  ;;  %v4861_v46 = vsel %vm18928_vm15, %v18850_v32, %v8118_v20  ;;  %v4292_v32 = vsel %vm4270_vm14, %v4247_v49, %v4248_v62  ;;  %vm18945_vm15 = vmmov %vm18892_vm0 }
 0x43c   :  { %5899 = vmatprep.subr.bf16.mxu0 %v8807_v29  ;;  %v13614_v7 = vsel %vm17798_vm8, %v4861_v46, %v8128_v37  ;;  %v8305_v19 = vpack.i.bf16 %v4292_v32, %v4293_v13  ;;  %v18929_v37 = vld [vmem:[#allocation201_spill] sm:$0xff]  ;;  %v4164_v13 = vsel %vm18932_vm4, %v4118_v60, %v4119_v56  ;;  %v8761_v60 = vld [vmem:[%s17240_s2 + $0x70] sm:$0xff]   ;;  %vm18949_vm4 = vmmov %vm18892_vm0 }
 0x43d   :  { %8286 = vrot.lane.b32.xlu1 %v8285_v57, %s8806_s13  ;;  %v13624_v10 = vpack.i.bf16 %v13617_v38, %v13614_v7  ;;  %v8112_v57 = vpop.permute.xlu0 %8111 }
 0x43e   :  { %7448 = vmatpush1.bf16.msra.mxu1 %v8755_v45  ;;  %5900 = vmatpush1.bf16.msra.mxu0 %v8755_v45  ;;  %v8114_v55 = vunpack.i.h.bf16 %v8112_v57  ;;  %v8113_v14 = vunpack.i.l.bf16 %v8112_v57  ;;  %v8760_v57 = vld [vmem:[%s17240_s2 + $0x78] sm:$0xff]  }
 0x43f   :  { %8281 = vrot.lane.b32.xlu0 %v8280_v43, %s8805_s10  ;;  %7433 = vmatprep.subr.bf16.mxu1 %v8807_v29  ;;  %v8757_v43 = vld [vmem:[%s17240_s2 + $0x10] sm:$0xff]  }
 0x440   :  { %5901 = vmatprep.subr.bf16.mxu0 %v8807_v29  ;;  %v4858_v49 = vsel %vm18930_vm1, %v18929_v37, %v8114_v55  ;;  %v4857_v0 = vsel %vm18931_vm11, %v18910_v4, %v8113_v14  ;;  %v4163_v4 = vsel %vm18892_vm0, %v4119_v56, %v4120_v28  ;;  %v8763_v55 = vld [vmem:[%s17240_s2 + $0x60] sm:$0xff]   ;;  %v8764_v14 = vld [vmem:[%s17240_s2 + $0x58] sm:$0xff]   ;;  %v4249_v56 = vrot.slane %v13290_v11, 4  ;;  %vm18946_vm11 = vmmov %vm18930_vm1 }
 0x441   :  { %8301 = vrot.lane.b32.xlu1 %v13624_v10, %s8806_s13  ;;  %v8122_v63 = vpop.permute.xlu0 %8121  ;;  %v17754_v37 = vrot.slane %v13292_v15, 4 }
 0x442   :  { %7449 = vmatpush1.bf16.msra.mxu1 %v8756_v48  ;;  %5902 = vmatpush1.bf16.msra.mxu0 %v8756_v48  ;;  %v8124_v20 = vunpack.i.h.bf16 %v8122_v63  ;;  %v8123_v45 = vunpack.i.l.bf16 %v8122_v63  ;;  %v8766_v63 = vld [vmem:[%s17240_s2 + $0x48] sm:$0xff]  }
 0x443   :  { %7434 = vmatprep.subr.bf16.mxu1 %v8807_v29  ;;  %5903 = vmatprep.subr.bf16.mxu0 %v8807_v29 }
 0x444   :  { %v13657_v46 = vsel %vm17798_vm8, %v4857_v0, %v8123_v45  ;;  %v13660_v48 = vsel %vm17798_vm8, %v4858_v49, %v8124_v20  ;;  %v8767_v49 = vld [vmem:[%s17240_s2 + $0x40] sm:$0xff]  }
 0x445   :  { %8306 = vrot.lane.b32.xlu1 %v8305_v19, %s8806_s13  ;;  %v13665_v32 = vpack.i.bf16 %v13660_v48, %v13657_v46  ;;  %v8762_v19 = vld [vmem:[%s17240_s2 + $0x68] sm:$0xff]  }
 0x446   :  { %7450 = vmatpush1.bf16.msra.mxu1 %v8757_v43  ;;  %5904 = vmatpush1.bf16.msra.mxu0 %v8757_v43  ;;  %v8295_v43 = vpack.i.bf16 %v4163_v4, %v4164_v13 }
 0x447   :  { %7435 = vmatprep.subr.bf16.mxu1 %v8807_v29  ;;  %5905 = vmatprep.subr.bf16.mxu0 %v8807_v29 }
 0x448   :  { %8291 = vrot.lane.b32.xlu0 %v13665_v32, %s8808_s29 }
 0x44a   :  { %7451 = vmatpush1.bf16.msra.mxu1 %v8758_v50  ;;  %5906 = vmatpush1.bf16.msra.mxu0 %v8758_v50  ;;  %v8765_v50 = vld [vmem:[%s17240_s2 + $0x50] sm:$0xff]  }
 0x44b   :  { %7436 = vmatprep.subr.bf16.mxu1 %v8807_v29  ;;  %5907 = vmatprep.subr.bf16.mxu0 %v8807_v29 }
 0x44c   :  { %8296 = vrot.lane.b32.xlu0 %v8295_v43, %s8805_s10 }
 0x44e   :  { %7452 = vmatpush1.bf16.msra.mxu1 %v8759_v61  ;;  %5908 = vmatpush1.bf16.msra.mxu0 %v8759_v61 }
 0x44f   :  { %7437 = vmatprep.subr.bf16.mxu1 %v8807_v29  ;;  %5909 = vmatprep.subr.bf16.mxu0 %v8807_v29 }
 0x452   :  { %7453 = vmatpush2.bf16.msra.mxu1 %v8760_v57  ;;  %5910 = vmatpush2.bf16.msra.mxu0 %v8760_v57 }
 0x453   :  { %7438 = vmatprep.subr.bf16.mxu1 %v8807_v29  ;;  %5911 = vmatprep.subr.bf16.mxu0 %v8807_v29 }
 0x456   :  { %7454 = vmatpush2.bf16.msra.mxu1 %v8761_v60  ;;  %5912 = vmatpush2.bf16.msra.mxu0 %v8761_v60  ;;  %v4290_v60 = vsel %vm4270_vm14, %v4249_v56, %v17754_v37  ;;  %v4123_v37 = vrot.slane %v13294_v33, 2 }
 0x457   :  { %7439 = vmatprep.subr.bf16.mxu1 %v8807_v29  ;;  %5913 = vmatprep.subr.bf16.mxu0 %v8807_v29 }
 0x45a   :  { %7455 = vmatpush2.bf16.msra.mxu1 %v8762_v19  ;;  %5914 = vmatpush2.bf16.msra.mxu0 %v8762_v19  ;;  %v8137_v20 = vpop.permute.xlu1 %8136  ;;  %v4291_v19 = vsel %vm4270_vm14, %v4248_v62, %v4249_v56 }
 0x45b   :  { %7440 = vmatprep.subr.bf16.mxu1 %v8807_v29  ;;  %5915 = vmatprep.subr.bf16.mxu0 %v8807_v29  ;;  %v8139_v0 = vunpack.i.h.bf16 %v8137_v20  ;;  %v8138_v61 = vunpack.i.l.bf16 %v8137_v20 }
 0x45d   :  { %v4863_v52 = vsel %vm18934_vm7, %v18884_v21, %v8138_v61  ;;  %vm18951_vm7 = vmmov %vm18930_vm1 }
 0x45e   :  { %7456 = vmatpush2.bf16.msra.mxu1 %v8763_v55  ;;  %5916 = vmatpush2.bf16.msra.mxu0 %v8763_v55  ;;  %v4121_v55 = vrot.slane %v13290_v11, 2 }
 0x45f   :  { %7441 = vmatprep.subr.bf16.mxu1 %v8807_v29  ;;  %5917 = vmatprep.subr.bf16.mxu0 %v8807_v29 }
 0x462   :  { %7457 = vmatpush2.bf16.msra.mxu1 %v8764_v14  ;;  %5918 = vmatpush2.bf16.msra.mxu0 %v8764_v14  ;;  %v4122_v14 = vrot.slane %v13292_v15, 2 }
 0x463   :  { %7442 = vmatprep.subr.bf16.mxu1 %v8807_v29  ;;  %5919 = vmatprep.subr.bf16.mxu0 %v8807_v29 }
 0x466   :  { %7458 = vmatpush2.bf16.msra.mxu1 %v8765_v50  ;;  %5920 = vmatpush2.bf16.msra.mxu0 %v8765_v50 }
 0x467   :  { %7443 = vmatprep.subr.bf16.mxu1 %v8807_v29  ;;  %5921 = vmatprep.subr.bf16.mxu0 %v8807_v29 }
 0x46a   :  { %v8132_v45 = vpop.permute.xlu0 %8131  ;;  %7459 = vmatpush2.bf16.msra.mxu1 %v8766_v63  ;;  %5922 = vmatpush2.bf16.msra.mxu0 %v8766_v63 }
 0x46b   :  { %7444 = vmatprep.subr.bf16.mxu1 %v8807_v29  ;;  %v8134_v4 = vunpack.i.h.bf16 %v8132_v45  ;;  %v8133_v13 = vunpack.i.l.bf16 %v8132_v45  ;;  %5923 = vmatprep.subr.bf16.mxu0 %v8807_v29  ;;  %v4864_v45 = vsel %vm18933_vm9, %v13097_v27, %v8139_v0  ;;  %vm18950_vm9 = vmmov %vm18930_vm1 }
 0x46d   :  { %v4860_v25 = vsel %vm18935_vm5, %v18847_v18, %v8134_v4  ;;  %v4859_v62 = vsel %vm18936_vm2, %v18853_v53, %v8133_v13  ;;  %vm18955_vm5 = vmmov %vm18892_vm0 }
 0x46e   :  { %7460 = vmatpush2.bf16.msra.mxu1 %v8767_v49  ;;  %5924 = vmatpush2.bf16.msra.mxu0 %v8767_v49  ;;  %v4162_v49 = vsel %vm18938_vm13, %v4120_v28, %v4121_v55  ;;  %vm18956_vm2 = vmmov %vm18892_vm0 }
 0x46f   :  { %vm18960_vm13 = vmmov %vm18892_vm0 }
 0x477   :  { %v8147_v57 = vpop.permute.xlu1 %8146 }
 0x478   :  { %v8149_v50 = vunpack.i.h.bf16 %v8147_v57  ;;  %v8148_v63 = vunpack.i.l.bf16 %v8147_v57 }
 0x479   :  { %v8142_v43 = vpop.permute.xlu0 %8141 }
 0x47a   :  { %v8144_v29 = vunpack.i.h.bf16 %v8142_v43  ;;  %v8143_v20 = vunpack.i.l.bf16 %v8142_v43  ;;  %v13740_v56 = vsel %vm17798_vm8, %v4863_v52, %v8148_v63  ;;  %v13743_v57 = vsel %vm17798_vm8, %v4864_v45, %v8149_v50 }
 0x47b   :  { %v8157_v21 = vpop.permute.xlu1 %8156  ;;  %v13753_v18 = vpack.i.bf16 %v13743_v57, %v13740_v56  ;;  %v4161_v52 = vsel %vm18937_vm6, %v4121_v55, %v4122_v14  ;;  %v8325_v45 = vpack.i.bf16 %v4290_v60, %v4291_v19  ;;  %v4251_v55 = vrot.slane %v13294_v33, 4  ;;  %vm18958_vm6 = vmmov %vm18892_vm0 }
 0x47c   :  { %v13746_v43 = vsel %vm17798_vm8, %v4859_v62, %v8143_v20  ;;  %v13749_v27 = vsel %vm17798_vm8, %v4860_v25, %v8144_v29  ;;  %v8159_v25 = vunpack.i.h.bf16 %v8157_v21  ;;  %v8158_v61 = vunpack.i.l.bf16 %v8157_v21 }
 0x47d   :  { %v8152_v0 = vpop.permute.xlu0 %8151  ;;  %v13757_v53 = vpack.i.bf16 %v13749_v27, %v13746_v43  ;;  %8321 = vrot.lane.b32.xlu1 %v13753_v18, %s8806_s13  ;;  %v8315_v28 = vpack.i.bf16 %v4161_v52, %v4162_v49  ;;  %v4252_v62 = vrot.slane %v13296_v23, 4 }
 0x47e   :  { %v8154_v4 = vunpack.i.h.bf16 %v8152_v0  ;;  %v8153_v13 = vunpack.i.l.bf16 %v8152_v0 }
 0x47f   :  { %8311 = vrot.lane.b32.xlu0 %v13757_v53, %s8808_s29  ;;  %v8167_v29 = vpop.permute.xlu1 %8166  ;;  %v4288_v49 = vsel %vm4270_vm14, %v4251_v55, %v4252_v62 }
 0x480   :  { %v4866_v50 = vsel %vm18939_vm10, %v13246_v47, %v8154_v4  ;;  %v4865_v63 = vsel %vm18940_vm3, %v18880_v9, %v8153_v13  ;;  %v4124_v47 = vrot.slane %v13296_v23, 2  ;;  %v8169_v13 = vunpack.i.h.bf16 %v8167_v29  ;;  %vm18961_vm10 = vmmov %vm18930_vm1 }
 0x481   :  { %v8162_v20 = vpop.permute.xlu0 %8161  ;;  %v13776_v21 = vsel %vm17798_vm8, %v4865_v63, %v8158_v61  ;;  %v13779_v0 = vsel %vm17798_vm8, %v4866_v50, %v8159_v25  ;;  %8326 = vrot.lane.b32.xlu1 %v8325_v45, %s8806_s13  ;;  %v18943_v25 = vrot.slane %v13292_v15, 4  ;;  %v8168_v50 = vunpack.i.l.bf16 %v8167_v29  ;;  %vm18962_vm3 = vmmov %vm18930_vm1 }
 0x482   :  { %18941 = vst [vmem:[#allocation66_spill] sm:$0xff] %v13776_v21  ;;  %18942 = vst [vmem:[#allocation79_spill] sm:$0xff] %v13779_v0  ;;  %v8164_v4 = vunpack.i.h.bf16 %v8162_v20  ;;  %v8163_v9 = vunpack.i.l.bf16 %v8162_v20  ;;  %v13787_v52 = vpack.i.bf16 %v13779_v0, %v13776_v21  ;;  %v4159_v63 = vsel %vm18944_vm12, %v4123_v37, %v4124_v47 }
 0x483   :  { %8316 = vrot.lane.b32.xlu0 %v8315_v28, %s8805_s10  ;;  %v8177_v60 = vpop.permute.xlu1 %8176  ;;  %v4289_v61 = vsel %vm4270_vm14, %v18943_v25, %v4251_v55  ;;  %v4160_v20 = vsel %vm18945_vm15, %v4122_v14, %v4123_v37  ;;  %v4253_v21 = vrot.slane %v13298_v44, 4  ;;  %v17757_v37 = vrot.slane %v13300_v36, 4  ;;  %vm18963_vm12 = vmmov %vm18930_vm1 }
 0x484   :  { %v4868_v45 = vsel %vm18930_vm1, %v13248_v59, %v8164_v4  ;;  %v4867_v28 = vsel %vm18946_vm11, %v13333_v3, %v8163_v9  ;;  %v8345_v25 = vpack.i.bf16 %v4288_v49, %v4289_v61  ;;  %v8340_v0 = vpack.i.bf16 %v4159_v63, %v4160_v20  ;;  %vm18964_vm15 = vmmov %vm18930_vm1 }
 0x485   :  { %v8172_v19 = vpop.permute.xlu0 %8171  ;;  %8331 = vrot.lane.b32.xlu1 %v13624_v10, %s8808_s29  ;;  %v13812_v59 = vsel %vm17798_vm8, %v4867_v28, %v8168_v50  ;;  %v13815_v3 = vsel %vm17798_vm8, %v4868_v45, %v8169_v13  ;;  %v4125_v10 = vrot.slane %v13298_v44, 2  ;;  %v4126_v14 = vrot.slane %v13300_v36, 2  ;;  %vm18971_vm11 = vmmov %vm18930_vm1 }
 0x486   :  { %18947 = vst [vmem:[#allocation81_spill] sm:$0xff] %v13812_v59  ;;  %18948 = vst [vmem:[#allocation69_spill] sm:$0xff] %v13815_v3  ;;  %v8174_v4 = vunpack.i.h.bf16 %v8172_v19  ;;  %v8173_v9 = vunpack.i.l.bf16 %v8172_v19  ;;  %v13827_v50 = vpack.i.bf16 %v13815_v3, %v13812_v59  ;;  %v4286_v13 = vsel %vm4270_vm14, %v4253_v21, %v17757_v37 }
 0x487   :  { %8336 = vrot.lane.b32.xlu0 %v13787_v52, %s8806_s13  ;;  %v13807_v55 = vpop.permute.xlu1 %8186  ;;  %v4287_v19 = vsel %vm4270_vm14, %v4252_v62, %v4253_v21  ;;  %v8179_v63 = vunpack.i.h.bf16 %v8177_v60  ;;  %v8178_v20 = vunpack.i.l.bf16 %v8177_v60  ;;  %v4158_v45 = vsel %vm18949_vm4, %v4124_v47, %v4125_v10  ;;  %vm18978_vm4 = vmmov %vm18892_vm0 }
 0x488   :  { %v4870_v28 = vsel %vm18950_vm9, %v13250_v17, %v8174_v4  ;;  %v4127_v62 = vrot.slane %v13302_v30, 2  ;;  %v4079_v47 = vrot.slane %v13226_v54, 2  ;;  %v18954_v60 = vrot.slane %v13304_v26, 2  ;;  %vm18980_vm9 = vmmov %vm18892_vm0 }
 0x489   :  { %v8182_v29 = vpop.permute.xlu0 %8181  ;;  %8346 = vrot.lane.b32.xlu1 %v8345_v25, %s8806_s13  ;;  %v4869_v25 = vsel %vm18951_vm7, %v13339_v5, %v8173_v9  ;;  %v8365_v5 = vpack.i.bf16 %v4286_v13, %v4287_v19  ;;  %v18957_v19 = vrot.slane %v13557_v41, 2  ;;  %vm18982_vm7 = vmmov %vm18892_vm0 }
 0x48a   :  { %v13857_v37 = vsel %vm17798_vm8, %v4869_v25, %v8178_v20  ;;  %v8184_v3 = vunpack.i.h.bf16 %v8182_v29  ;;  %v8183_v21 = vunpack.i.l.bf16 %v8182_v29  ;;  %v4156_v13 = vsel %vm18956_vm2, %v4126_v14, %v4127_v62  ;;  %vm18986_vm2 = vmmov %vm18930_vm1 }
 0x48b   :  { %8341 = vrot.lane.b32.xlu0 %v8340_v0, %s8805_s10  ;;  %v13821_v49 = vpop.permute.xlu1 %8196  ;;  %v4157_v0 = vsel %vm18892_vm0, %v4125_v10, %v4126_v14  ;;  %18952 = vst [vmem:[#allocation87_spill] sm:$0xff] %v13857_v37  ;;  %v4155_v10 = vsel %vm18955_vm5, %v4127_v62, %v18954_v60  ;;  %v18959_v20 = vrot.slane %v13553_v16, 2  ;;  %vm18984_vm5 = vmmov %vm18930_vm1 }
 0x48c   :  { %v8355_v9 = vpack.i.bf16 %v4157_v0, %v4158_v45  ;;  %v8189_v0 = vunpack.i.h.bf16 %v13807_v55  ;;  %v8188_v45 = vunpack.i.l.bf16 %v13807_v55  ;;  %v4255_v55 = vrot.slane %v13302_v30, 4 }
 0x48d   :  { %v13823_v61 = vpop.permute.xlu0 %8191  ;;  %8361 = vrot.lane.b32.xlu1 %v13827_v50, %s8806_s13  ;;  %v4204_v29 = vsel %vm18960_vm13, %v18959_v20, %v4079_v47  ;;  %vm18995_vm13 = vmmov %vm18930_vm1 }
 0x48f   :  { %8351 = vrot.lane.b32.xlu0 %v13753_v18, %s8808_s29  ;;  %v13852_v17 = vpop.permute.xlu1 %8206  ;;  %v13860_v18 = vsel %vm17798_vm8, %v4870_v28, %v8179_v63  ;;  %v4203_v63 = vsel %vm18958_vm6, %v4079_v47, %v18957_v19  ;;  %v4872_v19 = vsel %vm18961_vm10, %v13252_v39, %v8184_v3  ;;  %v4871_v47 = vsel %vm18962_vm3, %v13373_v34, %v8183_v21  ;;  %vm18993_vm6 = vmmov %vm18930_vm1 }
 0x490   :  { %18953 = vst [vmem:[#allocation89_spill] sm:$0xff] %v13860_v18  ;;  %v13882_v60 = vpack.i.bf16 %v13860_v18, %v13857_v37  ;;  %v17762_v39 = vrot.slane %v13304_v26, 4  ;;  %v8375_v34 = vpack.i.bf16 %v4203_v63, %v4204_v29  ;;  %v17766_v21 = vrot.slane %v13553_v16, 4  ;;  %vm19000_vm10 = vmmov %vm18892_vm0 }
 0x491   :  { %v13854_v4 = vpop.permute.xlu0 %8201  ;;  %8366 = vrot.lane.b32.xlu1 %v8365_v5, %s8806_s13  ;;  %v13908_v37 = vsel %vm17798_vm8, %v4871_v47, %v8188_v45  ;;  %v8193_v63 = vunpack.i.l.bf16 %v13823_v61  ;;  %vm19002_vm3 = vmmov %vm18892_vm0 }
 0x492   :  { %18965 = vst [vmem:[#allocation80_spill] sm:$0xff] %v13908_v37 }
 0x493   :  { %8356 = vrot.lane.b32.xlu0 %v8355_v9, %s8805_s10  ;;  %v8217_v28 = vpop.permute.xlu1 %8216 }
 0x494   :  { %v8219_v14 = vunpack.i.h.bf16 %v8217_v28  ;;  %v8218_v62 = vunpack.i.l.bf16 %v8217_v28 }
 0x495   :  { %v8212_v25 = vpop.permute.xlu0 %8211  ;;  %8381 = vrot.lane.b32.xlu1 %v13882_v60, %s8806_s13 }
 0x496   :  { %v8214_v5 = vunpack.i.h.bf16 %v8212_v25  ;;  %v8213_v9 = vunpack.i.l.bf16 %v8212_v25  ;;  %v8385_v25 = vpack.i.bf16 %v4155_v10, %v4156_v13  ;;  %v17761_v10 = vrot.slane %v13557_v41, 4 }
 0x497   :  { %8371 = vrot.lane.b32.xlu0 %v13787_v52, %s8808_s29  ;;  %v13898_v3 = vpop.permute.xlu1 %8226  ;;  %v8194_v13 = vunpack.i.h.bf16 %v13823_v61  ;;  %v18968_v61 = vrot.slane %v13300_v36, 4 }
 0x498   :  { %v4854_v20 = vsel %vm18963_vm12, %v13232_v1, %v8214_v5  ;;  %v4853_v28 = vsel %vm18964_vm15, %v13426_v8, %v8213_v9  ;;  %v13911_v1 = vsel %vm17798_vm8, %v4872_v19, %v8189_v0  ;;  %v4207_v8 = vrot.slane %v13226_v54, 4  ;;  %vm19004_vm12 = vmmov %vm18930_vm1 }
 0x499   :  { %v13902_v18 = vsel %vm17798_vm8, %v4853_v28, %v8218_v62  ;;  %v13905_v52 = vsel %vm17798_vm8, %v4854_v20, %v8219_v14  ;;  %18966 = vst [vmem:[#allocation190_spill] sm:$0xff] %v13911_v1  ;;  %8386 = vrot.lane.b32.xlu1 %v8385_v25, %s8805_s10  ;;  %v8400_v0 = vpack.i.bf16 %v13911_v1, %v13908_v37  ;;  %v8199_v5 = vunpack.i.h.bf16 %v13821_v49  ;;  %v18969_v20 = vld [vmem:[#allocation162_spill] sm:$0xff]  ;;  %v18970_v25 = vld [vmem:[#allocation149_spill] sm:$0xff]  ;;  %v18973_v1 = vld [vmem:[#allocation55_spill] sm:$0xff] }
 0x49a   :  { %v13921_v29 = vpack.i.bf16 %v13905_v52, %v13902_v18  ;;  %v4284_v14 = vsel %vm4270_vm14, %v4255_v55, %v17762_v39  ;;  %v4285_v62 = vsel %vm4270_vm14, %v18968_v61, %v4255_v55  ;;  %v8198_v9 = vunpack.i.l.bf16 %v13821_v49  ;;  %v8222_v49 = vpop.permute.xlu0 %8221  ;;  %vm19006_vm15 = vmmov %vm18930_vm1 }
 0x49b   :  { %8376 = vrot.lane.b32.xlu0 %v8375_v34, %s8805_s10  ;;  %v13923_v45 = vpop.permute.xlu1 %8236  ;;  %v4332_v19 = vsel %vm4270_vm14, %v4207_v8, %v17761_v10  ;;  %v4333_v47 = vsel %vm4270_vm14, %v17766_v21, %v4207_v8  ;;  %v4874_v28 = vsel %vm18930_vm1, %v18969_v20, %v8194_v13  ;;  %v4873_v55 = vsel %vm18971_vm11, %v18970_v25, %v8193_v63  ;;  %v18972_v10 = vld [vmem:[#allocation52_spill] sm:$0xff]  ;;  %v18976_v63 = vld [vmem:[#allocation135_spill] sm:$0xff]  ;;  %v18983_v21 = vld [vmem:[#allocation158_spill] sm:$0xff] }
 0x49c   :  { %18967 = vst [vmem:[#allocation94_spill] sm:$0xff] %v13921_v29  ;;  %v8405_v34 = vpack.i.bf16 %v4284_v14, %v4285_v62  ;;  %v8395_v61 = vpack.i.bf16 %v4332_v19, %v4333_v47  ;;  %v4129_v39 = vrot.slane %v18972_v10, 2  ;;  %v17767_v37 = vrot.slane %v18973_v1, 2  ;;  %vm19009_vm11 = vmmov %vm18930_vm1 }
 0x49d   :  { %8401 = vrot.lane.b32.xlu1 %v8400_v0, %s8806_s13  ;;  %v13957_v8 = vsel %vm17798_vm8, %v4873_v55, %v8198_v9  ;;  %v13960_v13 = vsel %vm17798_vm8, %v4874_v28, %v8199_v5  ;;  %v4081_v20 = vrot.slane %v18976_v63, 2  ;;  %v8204_v25 = vunpack.i.h.bf16 %v13854_v4 }
 0x49e   :  { %18974 = vst [vmem:[#allocation191_spill] sm:$0xff] %v13957_v8  ;;  %18975 = vst [vmem:[#allocation192_spill] sm:$0xff] %v13960_v13  ;;  %v13969_v14 = vpack.i.bf16 %v13960_v13, %v13957_v8  ;;  %v4153_v62 = vsel %vm18892_vm0, %v4129_v39, %v17767_v37  ;;  %v18977_v5 = vrot.slane %v13304_v26, 2  ;;  %v8208_v19 = vunpack.i.l.bf16 %v13852_v17  ;;  %v13981_v47 = vpop.permute.xlu0 %8231 }
 0x49f   :  { %8391 = vrot.lane.b32.xlu0 %v13827_v50, %s8808_s29  ;;  %v13954_v59 = vpop.permute.xlu1 %8246  ;;  %v8203_v50 = vunpack.i.l.bf16 %v13854_v4  ;;  %v8209_v4 = vunpack.i.h.bf16 %v13852_v17  ;;  %v18979_v28 = vrot.slane %v13459_v22, 2  ;;  %v4876_v37 = vsel %vm18984_vm5, %v18983_v21, %v8204_v25  ;;  %vm19010_vm0 = vmmov %vm18930_vm1 }
 0x4a0   :  { %v4154_v9 = vsel %vm18978_vm4, %v18977_v5, %v4129_v39  ;;  %v18985_v39 = vld [vmem:[#allocation138_spill] sm:$0xff]  ;;  %v4257_v8 = vrot.slane %v18972_v10, 4  ;;  %v4209_v25 = vrot.slane %v18976_v63, 4  ;;  %vm19011_vm4 = vmmov %vm19010_vm0 }
 0x4a1   :  { %8406 = vrot.lane.b32.xlu1 %v8405_v34, %s8806_s13  ;;  %v4201_v55 = vsel %vm18980_vm9, %v4081_v20, %v18979_v28  ;;  %v18981_v34 = vrot.slane %v13557_v41, 2  ;;  %v4875_v5 = vsel %vm18986_vm2, %v18985_v39, %v8203_v50  ;;  %v8425_v28 = vpack.i.bf16 %v4153_v62, %v4154_v9  ;;  %vm19012_vm9 = vmmov %vm19010_vm0 }
 0x4a2   :  { %v14007_v21 = vsel %vm17798_vm8, %v4876_v37, %v8209_v4  ;;  %v8224_v50 = vunpack.i.h.bf16 %v8222_v49  ;;  %v8223_v39 = vunpack.i.l.bf16 %v8222_v49  ;;  %v8229_v4 = vunpack.i.h.bf16 %v13898_v3  ;;  %vm19016_vm5 = vmmov %vm19010_vm0 }
 0x4a3   :  { %8396 = vrot.lane.b32.xlu0 %v8395_v61, %s8806_s13  ;;  %v4202_v61 = vsel %vm18982_vm7, %v18981_v34, %v4081_v20  ;;  %v13999_v17 = vpop.permute.xlu1 %8256  ;;  %v4258_v20 = vrot.slane %v18973_v1, 4  ;;  %v14004_v34 = vsel %vm17798_vm8, %v4875_v5, %v8208_v19  ;;  %18988 = vst [vmem:[#allocation194_spill] sm:$0xff] %v14007_v21  ;;  %v18989_v19 = vrot.slane %v13304_v26, 4  ;;  %v18997_v26 = vld [vmem:[#allocation62_spill] sm:$0xff]  ;;  %vm19014_vm7 = vmmov %vm19010_vm0 }
 0x4a4   :  { %v8415_v13 = vpack.i.bf16 %v4201_v55, %v4202_v61  ;;  %18987 = vst [vmem:[#allocation193_spill] sm:$0xff] %v14004_v34  ;;  %v14014_v62 = vpack.i.bf16 %v14007_v21, %v14004_v34  ;;  %v8228_v49 = vunpack.i.l.bf16 %v13898_v3  ;;  %v18991_v5 = vrot.slane %v13557_v41, 4  ;;  %v18992_v21 = vld [vmem:[#allocation170_spill] sm:$0xff]  ;;  %v18996_v3 = vld [vmem:[#allocation44_spill] sm:$0xff]  ;;  %vm19017_vm2 = vmmov %vm19010_vm0 }
 0x4a5   :  { %8421 = vrot.lane.b32.xlu1 %v13969_v14, %s8806_s13  ;;  %v4282_v9 = vsel %vm4270_vm14, %v4257_v8, %v4258_v20  ;;  %v4283_v37 = vsel %vm4270_vm14, %v18989_v19, %v4257_v8  ;;  %v4878_v34 = vsel %vm18993_vm6, %v18992_v21, %v8224_v50  ;;  %v18994_v8 = vld [vmem:[#allocation152_spill] sm:$0xff]  ;;  %v4259_v63 = vrot.slane %v18996_v3, 4 }
 0x4a6   :  { %v4877_v19 = vsel %vm18995_vm13, %v18994_v8, %v8223_v39  ;;  %v4131_v41 = vrot.slane %v18996_v3, 2  ;;  %v17777_v10 = vrot.slane %v18997_v26, 2  ;;  %v14049_v50 = vsel %vm17798_vm8, %v4878_v34, %v8229_v4  ;;  %vm19018_vm13 = vmmov %vm19010_vm0 }
 0x4a7   :  { %8411 = vrot.lane.b32.xlu0 %v13882_v60, %s8808_s29  ;;  %v8242_v60 = vpop.permute.xlu0 %8241  ;;  %v14024_v55 = vpop.permute.xlu1 %8266  ;;  %v14046_v21 = vsel %vm17798_vm8, %v4877_v19, %v8228_v49  ;;  %18999 = vst [vmem:[#allocation196_spill] sm:$0xff] %v14049_v50  ;;  %v8234_v49 = vunpack.i.h.bf16 %v13981_v47  ;;  %v8249_v19 = vunpack.i.h.bf16 %v13954_v59  ;;  %vm17799_vm6 = vcmask 785408  }
 0x4a8   :  { %18998 = vst [vmem:[#allocation195_spill] sm:$0xff] %v14046_v21  ;;  %v8244_v39 = vunpack.i.h.bf16 %v8242_v60  ;;  %v8243_v8 = vunpack.i.l.bf16 %v8242_v60  ;;  %v4151_v34 = vsel %vm19000_vm10, %v4131_v41, %v17777_v10  ;;  %v19001_v60 = vrot.slane %v18973_v1, 2  ;;  %vm19019_vm10 = vmmov %vm19010_vm0 }
 0x4a9   :  { %8426 = vrot.lane.b32.xlu1 %v8425_v28, %s8805_s10  ;;  %v4331_v28 = vsel %vm4270_vm14, %v18991_v5, %v4209_v25 }
 0x4aa   :  { %v4152_v4 = vsel %vm19002_vm3, %v19001_v60, %v4131_v41  ;;  %vm19022_vm3 = vmmov %vm19010_vm0 }
 0x4ab   :  { %8416 = vrot.lane.b32.xlu0 %v8415_v13, %s8805_s10  ;;  %v18990_v13 = vrot.slane %v13459_v22, 4  ;;  %v8252_v54 = vpop.permute.xlu0 %8251  ;;  %v8455_v60 = vpack.i.bf16 %v4151_v34, %v4152_v4 }
 0x4ac   :  { %v8253_v1 = vunpack.i.l.bf16 %v8252_v54 }
 0x4ad   :  { %v4330_v61 = vsel %vm4270_vm14, %v4209_v25, %v18990_v13  ;;  %8441 = vrot.lane.b32.xlu1 %v14014_v62, %s8806_s13  ;;  %v17778_v13 = vrot.slane %v18997_v26, 4  ;;  %v8445_v25 = vpack.i.bf16 %v4282_v9, %v4283_v37  ;;  %v4281_v37 = vsel %vm4270_vm14, %v4258_v20, %v4259_v63  ;;  %v19003_v20 = vld [vmem:[#allocation185_spill] sm:$0xff] }
 0x4ae   :  { %v8435_v5 = vpack.i.bf16 %v4330_v61, %v4331_v28  ;;  %v8233_v61 = vunpack.i.l.bf16 %v13981_v47  ;;  %v8460_v28 = vpack.i.bf16 %v14049_v50, %v14046_v21  ;;  %v8239_v50 = vunpack.i.h.bf16 %v13923_v45  ;;  %v19007_v21 = vld [vmem:[#allocation151_spill] sm:$0xff] }
 0x4af   :  { %8431 = vrot.lane.b32.xlu0 %v8400_v0, %s8808_s29  ;;  %v14053_v0 = vpop.permute.xlu1 %8276  ;;  %v4280_v9 = vsel %vm4270_vm14, %v4259_v63, %v17778_v13  ;;  %v8248_v63 = vunpack.i.l.bf16 %v13954_v59  ;;  %v8254_v13 = vunpack.i.h.bf16 %v8252_v54  ;;  %v8262_v41 = vpop.permute.xlu0 %8261  ;;  %v8238_v59 = vunpack.i.l.bf16 %v13923_v45 }
 0x4b0   :  { %v8465_v47 = vpack.i.bf16 %v4280_v9, %v4281_v37  ;;  %v8259_v54 = vunpack.i.h.bf16 %v13999_v17  ;;  %v8264_v37 = vunpack.i.h.bf16 %v8262_v41  ;;  %v8263_v34 = vunpack.i.l.bf16 %v8262_v41 }
 0x4b1   :  { %8446 = vrot.lane.b32.xlu1 %v8445_v25, %s8806_s13  ;;  %v4880_v25 = vsel %vm19004_vm12, %v19003_v20, %v8244_v39  ;;  %v4856_v39 = vsel %vm18930_vm1, %v19007_v21, %v8234_v49  ;;  %v19008_v20 = vld [vmem:[#allocation75_spill] sm:$0xff]  ;;  %v4852_v45 = vsel %vm19010_vm0, %v13230_v6, %v8254_v13  ;;  %v4851_v21 = vsel %vm19011_vm4, %v13459_v22, %v8253_v1  ;;  %vm19023_vm12 = vmmov %vm19010_vm0 }
 0x4b2   :  { %v14096_v9 = vsel %vm17798_vm8, %v4880_v25, %v8249_v19  ;;  %v14110_v4 = vsel %vm17798_vm8, %v4856_v39, %v8239_v50  ;;  %v8269_v6 = vunpack.i.h.bf16 %v14024_v55  ;;  %v8268_v13 = vunpack.i.l.bf16 %v14024_v55  ;;  %v19013_v19 = vld [vmem:[#allocation189_spill] sm:$0xff] }
 0x4b3   :  { %8436 = vrot.lane.b32.xlu0 %v8435_v5, %s8806_s13  ;;  %v19005_v5 = vld [vmem:[#allocation181_spill] sm:$0xff]  ;;  %v14090_v3 = vpop.permute.xlu1 %8286  ;;  %v14118_v1 = vsel %vm17798_vm8, %v4852_v45, %v8259_v54  ;;  %v8272_v25 = vpop.permute.xlu0 %8271  ;;  %v8278_v54 = vunpack.i.l.bf16 %v14053_v0 }
 0x4b4   :  { %v4879_v10 = vsel %vm19006_vm15, %v19005_v5, %v8243_v8  ;;  %v4855_v8 = vsel %vm19009_vm11, %v19008_v20, %v8233_v61  ;;  %v8258_v5 = vunpack.i.l.bf16 %v13999_v17  ;;  %v4882_v61 = vsel %vm19012_vm9, %v13274_v35, %v8264_v37 }
 0x4b5   :  { %8461 = vrot.lane.b32.xlu1 %v8460_v28, %s8806_s13  ;;  %v14136_v35 = vsel %vm17798_vm8, %v4882_v61, %v8269_v6  ;;  %v8274_v39 = vunpack.i.h.bf16 %v8272_v25  ;;  %vm19025_vm15 = vcmp.lt.s32.totalorder %v18498_v51, 6  ;;  %v19065_v51 = vld [vmem:[#allocation42_spill] sm:$0xff] }
 0x4b6   :  { %v14115_v22 = vsel %vm17798_vm8, %v4851_v21, %v8258_v5  ;;  %vm19027_vm1 = vmmov %vm19025_vm15 }
 0x4b7   :  { %8451 = vrot.lane.b32.xlu0 %v13969_v14, %s8808_s29  ;;  %v14093_v14 = vsel %vm17798_vm8, %v4879_v10, %v8248_v63  ;;  %v14107_v10 = vsel %vm17798_vm8, %v4855_v8, %v8238_v59  ;;  %v8302_v49 = vpop.permute.xlu1 %8301  ;;  %v4881_v63 = vsel %vm19014_vm7, %v19013_v19, %v8263_v34  ;;  %v14129_v41 = vpack.i.bf16 %v14118_v1, %v14115_v22  ;;  %v8282_v5 = vpop.permute.xlu0 %8281  ;;  %vm19030_vm11 = vmmov %vm19027_vm1 }
 0x4b8   :  { %v8475_v17 = vpack.i.bf16 %v14096_v9, %v14093_v14  ;;  %v8304_v50 = vunpack.i.h.bf16 %v8302_v49  ;;  %v8303_v55 = vunpack.i.l.bf16 %v8302_v49  ;;  %v14139_v59 = vsel %vm17798_vm8, %v4881_v63, %v8268_v13  ;;  %vm19031_vm0 = vmmov %vm19027_vm1 }
 0x4b9   :  { %8466 = vrot.lane.b32.xlu1 %v8465_v47, %s8806_s13  ;;  %19015 = vst [vmem:[#allocation124_spill] sm:$0xff] %v14129_v41  ;;  %v8485_v47 = vpack.i.bf16 %v14110_v4, %v14107_v10  ;;  %v8495_v20 = vpack.i.bf16 %v14136_v35, %v14139_v59  ;;  %v8279_v8 = vunpack.i.h.bf16 %v14053_v0  ;;  %v4884_v45 = vsel %vm19016_vm5, %v13278_v58, %v8274_v39  ;;  %vm19034_vm4 = vmmov %vm19031_vm0 }
 0x4ba   :  { %v8284_v37 = vunpack.i.h.bf16 %v8282_v5  ;;  %v8283_v13 = vunpack.i.l.bf16 %v8282_v5  ;;  %v8288_v49 = vunpack.i.l.bf16 %v14090_v3  ;;  %vm19035_vm9 = vmmov %vm19031_vm0 }
 0x4bb   :  { %8456 = vrot.lane.b32.xlu0 %v8455_v60, %s8805_s10  ;;  %v14133_v60 = vpack.c.bf16 %v8304_v50, %v8303_v55  ;;  %v14155_v34 = vsel %vm17798_vm8, %v4884_v45, %v8279_v8  ;;  %v8292_v58 = vpop.permute.xlu0 %8291  ;;  %v19020_v8 = vld [vmem:[#allocation53_spill] sm:$0xff]  ;;  %vm19038_vm7 = vmmov %vm19031_vm0 }
 0x4bc   :  { %v8293_v0 = vunpack.i.l.bf16 %v8292_v58  ;;  %v4886_v61 = vsel %vm19018_vm13, %v13282_v42, %v8284_v37  ;;  %v4885_v42 = vsel %vm19019_vm10, %v13280_v40, %v8283_v13  ;;  %vm19039_vm5 = vmmov %vm19031_vm0 }
 0x4bd   :  { %8476 = vrot.lane.b32.xlu1 %v8475_v17, %s8806_s13  ;;  %v14192_v40 = vsel %vm17798_vm8, %v4885_v42, %v8288_v49  ;;  %vm19041_vm13 = vmmov %vm19017_vm2 }
 0x4be   :  { %v5495_v63 = vsel %vm17798_vm8, %v8293_v0, %v8303_v55  ;;  %vm19045_vm10 = vmmov %vm19031_vm0 }
 0x4bf   :  { %8471 = vrot.lane.b32.xlu0 %v14014_v62, %s8808_s29  ;;  %v8273_v62 = vunpack.i.l.bf16 %v8272_v25  ;;  %v8297_v55 = vpop.permute.xlu0 %8296 }
 0x4c0   :  { %v8299_v45 = vunpack.i.h.bf16 %v8297_v55 }
 0x4c1   :  { %8481 = vrot.lane.b32.xlu1 %v14129_v41, %s8808_s29  ;;  %v4883_v21 = vsel %vm19017_vm2, %v13276_v2, %v8273_v62  ;;  %v8294_v2 = vunpack.i.h.bf16 %v8292_v58 }
 0x4c2   :  { %v14158_v6 = vsel %vm17798_vm8, %v4883_v21, %v8278_v54  ;;  %v19021_v54 = vld [vmem:[#allocation65_spill] sm:$0xff]  ;;  %v8298_v21 = vunpack.i.l.bf16 %v8297_v55  ;;  %v19028_v55 = vld [vmem:[#allocation96_spill] sm:$0xff] }
 0x4c3   :  { %8486 = vrot.lane.b32.xlu0 %v8485_v47, %s8806_s13  ;;  %v8515_v19 = vpack.i.bf16 %v14155_v34, %v14158_v6  ;;  %v5496_v25 = vsel %vm17798_vm8, %v8294_v2, %v8304_v50  ;;  %v5432_v39 = vsel %vm17799_vm6, %v13905_v52, %v8294_v2  ;;  %v4262_v5 = vrot.slane %v19021_v54, 4  ;;  %v8307_v52 = vpop.permute.xlu1 %8306 }
 0x4c4   :  { %v5563_v50 = vpack.c.bf16 %v5496_v25, %v5495_v63  ;;  %v4134_v13 = vrot.slane %v19021_v54, 2  ;;  %v8309_v58 = vunpack.i.h.bf16 %v8307_v52  ;;  %v8308_v2 = vunpack.i.l.bf16 %v8307_v52 }
 0x4c5   :  { %8496 = vrot.lane.b32.xlu1 %v8495_v20, %s8806_s13  ;;  %v4887_v49 = vsel %vm19023_vm12, %v13284_v12, %v8298_v21  ;;  %v19024_v63 = vrot.slane %v18997_v26, 4  ;;  %v19026_v25 = vrot.slane %v18997_v26, 2  ;;  %v4263_v52 = vrot.slane %v19028_v55, 4  ;;  %vm19048_vm12 = vmmov %vm19017_vm2 }
 0x4c6   :  { %5949 = vmatprep.mubr.bf16.mxu1 %v5563_v50  ;;  %v4135_v50 = vrot.slane %v19028_v55, 2 }
 0x4c7   :  { %8491 = vrot.lane.b32.xlu0 %v8460_v28, %s8808_s29  ;;  %v8289_v28 = vunpack.i.h.bf16 %v14090_v3  ;;  %v14179_v3 = vld [vmem:[%s17240_s2 + $0x88] sm:$0xff]  }
 0x4c8   :  { %7361 = vmatprep.subr.bf16.mxu0 %v14179_v3 }
 0x4c9   :  { %8501 = vrot.lane.b32.xlu1 %v13921_v29, %s8808_s29  ;;  %v14189_v37 = vsel %vm17798_vm8, %v4886_v61, %v8289_v28  ;;  %v4888_v28 = vsel %vm19022_vm3, %v13286_v31, %v8299_v45  ;;  %v14223_v31 = vsel %vm17798_vm8, %v4887_v49, %v8308_v2  ;;  %v4277_v2 = vsel %vm4270_vm14, %v4262_v5, %v4263_v52  ;;  %vm19047_vm3 = vmmov %vm19031_vm0 }
 0x4ca   :  { %v14220_v12 = vsel %vm17798_vm8, %v4888_v28, %v8309_v58 }
 0x4cb   :  { %8506 = vrot.lane.b32.xlu0 %v13665_v32, %s8806_s13  ;;  %v5431_v32 = vsel %vm17799_vm6, %v13902_v18, %v8293_v0  ;;  %v4261_v18 = vrot.slane %v19020_v8, 4  ;;  %v8540_v0 = vpack.i.bf16 %v14189_v37, %v14192_v40 }
 0x4cc   :  { %v5562_v62 = vpack.c.bf16 %v5432_v39, %v5431_v32 }
 0x4cd   :  { %8516 = vrot.lane.b32.xlu1 %v8515_v19, %s8806_s13  ;;  %v4278_v61 = vsel %vm4270_vm14, %v4261_v18, %v4262_v5 }
 0x4ce   :  { %5950 = vmatmul.mubr.bf16.vlgmr.msra.gmra.mxu1 %v5562_v62  ;;  %v19029_v62 = vld [vmem:[#allocation115_spill] sm:$0xff] }
 0x4cf   :  { %8511 = vrot.lane.b32.xlu0 %v8475_v17, %s8808_s29  ;;  %v4133_v17 = vrot.slane %v19020_v8, 2  ;;  %v17783_v45 = vrot.slane %v19029_v62, 4 }
 0x4d1   :  { %8521 = vrot.lane.b32.xlu1 %v8485_v47, %s8808_s29  ;;  %v4279_v47 = vsel %vm4270_vm14, %v19024_v63, %v4261_v18  ;;  %v4150_v32 = vsel %vm19027_vm1, %v19026_v25, %v4133_v17  ;;  %v4136_v18 = vrot.slane %v19029_v62, 2  ;;  %v4276_v58 = vsel %vm4270_vm14, %v4263_v52, %v17783_v45  ;;  %v19036_v25 = vld [vmem:[#allocation122_spill] sm:$0xff]  ;;  %vm19050_vm1 = vmmov %vm19017_vm2 }
 0x4d2   :  { %v8545_v39 = vpack.i.bf16 %v4278_v61, %v4279_v47  ;;  %v8565_v49 = vpack.i.bf16 %v4276_v58, %v4277_v2  ;;  %v19032_v61 = vld [vmem:[#allocation117_spill] sm:$0xff] }
 0x4d3   :  { %8526 = vrot.lane.b32.xlu0 %v13757_v53, %s8806_s13  ;;  %v4149_v53 = vsel %vm19025_vm15, %v4133_v17, %v4134_v13  ;;  %v4147_v21 = vsel %vm19030_vm11, %v4135_v50, %v4136_v18  ;;  %v4148_v17 = vsel %vm19031_vm0, %v4134_v13, %v4135_v50  ;;  %v4137_v63 = vrot.slane %v19032_v61, 2  ;;  %v19033_v47 = vld [vmem:[#allocation105_spill] sm:$0xff]  ;;  %vm19049_vm15 = vmmov %vm19017_vm2 }
 0x4d4   :  { %v8535_v42 = vpack.i.bf16 %v4149_v53, %v4150_v32  ;;  %v8555_v28 = vpack.i.bf16 %v4147_v21, %v4148_v17  ;;  %v4138_v53 = vrot.slane %v19033_v47, 2  ;;  %v4139_v32 = vrot.slane %v19036_v25, 2  ;;  %vm19051_vm11 = vmmov %vm19050_vm1 }
 0x4d5   :  { %8541 = vrot.lane.b32.xlu1 %v8540_v0, %s8806_s13  ;;  %v4146_v5 = vsel %vm19035_vm9, %v4136_v18, %v4137_v63  ;;  %vm19054_vm0 = vmmov %vm19050_vm1 }
 0x4d6   :  { %v4145_v13 = vsel %vm19034_vm4, %v4137_v63, %v4138_v53  ;;  %v4144_v52 = vsel %vm19039_vm5, %v4138_v53, %v4139_v32  ;;  %vm19056_vm4 = vmmov %vm19054_vm0 }
 0x4d7   :  { %8531 = vrot.lane.b32.xlu0 %v8495_v20, %s8808_s29  ;;  %v8560_v20 = vpack.i.bf16 %v14220_v12, %v14223_v31  ;;  %vm19057_vm9 = vmmov %vm19054_vm0 }
 0x4d8   :  { %vm19066_vm5 = vmmov %vm19054_vm0 }
 0x4d9   :  { %8546 = vrot.lane.b32.xlu1 %v8545_v39, %s8806_s13  ;;  %v19037_v39 = vld [vmem:[#allocation68_spill] sm:$0xff] }
 0x4da   :  { %v4268_v29 = vrot.slane %v19037_v39, 4 }
 0x4db   :  { %8536 = vrot.lane.b32.xlu0 %v8535_v42, %s8805_s10  ;;  %v4140_v42 = vrot.slane %v19037_v39, 2 }
 0x4dd   :  { %8561 = vrot.lane.b32.xlu1 %v8560_v20, %s8806_s13  ;;  %v4143_v50 = vsel %vm19038_vm7, %v4139_v32, %v4140_v42  ;;  %vm19063_vm7 = vmmov %vm19054_vm0 }
 0x4de   :  { %v8595_v18 = vpack.i.bf16 %v4143_v50, %v4144_v52  ;;  %v4265_v50 = vrot.slane %v19032_v61, 4  ;;  %v4266_v52 = vrot.slane %v19033_v47, 4 }
 0x4df   :  { %8551 = vrot.lane.b32.xlu0 %v8515_v19, %s8808_s29  ;;  %v8575_v19 = vpack.i.bf16 %v4145_v13, %v4146_v5 }
 0x4e1   :  { %8566 = vrot.lane.b32.xlu1 %v8565_v49, %s8806_s13 }
 0x4e3   :  { %8556 = vrot.lane.b32.xlu0 %v8555_v28, %s8805_s10 }
 0x4e7   :  { %8571 = vrot.lane.b32.xlu0 %v8540_v0, %s8808_s29 }
 0x4eb   :  { %8576 = vrot.lane.b32.xlu0 %v8575_v19, %s8805_s10 }
 0x4ef   :  { %8591 = vrot.lane.b32.xlu0 %v8560_v20, %s8808_s29  ;;  %v8322_v21 = vpop.permute.xlu1 %8321 }
 0x4f0   :  { %v8324_v58 = vunpack.i.h.bf16 %v8322_v21  ;;  %v8323_v0 = vunpack.i.l.bf16 %v8322_v21 }
 0x4f1   :  { %v8312_v17 = vpop.permute.xlu0 %8311 }
 0x4f2   :  { %v8314_v2 = vunpack.i.h.bf16 %v8312_v17  ;;  %v8313_v28 = vunpack.i.l.bf16 %v8312_v17  ;;  %v14263_v49 = vpack.c.bf16 %v8324_v58, %v8323_v0 }
 0x4f3   :  { %8596 = vrot.lane.b32.xlu0 %v8595_v18, %s8805_s10  ;;  %v8327_v5 = vpop.permute.xlu1 %8326 }
 0x4f4   :  { %v5497_v63 = vsel %vm17798_vm8, %v8313_v28, %v8323_v0  ;;  %v5498_v13 = vsel %vm17798_vm8, %v8314_v2, %v8324_v58  ;;  %v5433_v53 = vsel %vm17799_vm6, %v14107_v10, %v8313_v28  ;;  %v5434_v32 = vsel %vm17799_vm6, %v14110_v4, %v8314_v2  ;;  %v19040_v58 = vld [vmem:[#allocation56_spill] sm:$0xff] }
 0x4f5   :  { %v8317_v20 = vpop.permute.xlu0 %8316  ;;  %v5566_v19 = vpack.c.bf16 %v5498_v13, %v5497_v63  ;;  %v8329_v21 = vunpack.i.h.bf16 %v8327_v5  ;;  %v8328_v17 = vunpack.i.l.bf16 %v8327_v5  ;;  %v5565_v0 = vpack.c.bf16 %v5434_v32, %v5433_v53 }
 0x4f6   :  { %v8319_v18 = vunpack.i.h.bf16 %v8317_v20  ;;  %v8318_v45 = vunpack.i.l.bf16 %v8317_v20  ;;  %v4141_v41 = vrot.slane %v19040_v58, 2  ;;  %v4274_v53 = vsel %vm4270_vm14, %v4265_v50, %v4266_v52 }
 0x4f7   :  { %5957 = vmatprep.mubr.bf16.mxu1 %v5566_v19  ;;  %v8332_v63 = vpop.permute.xlu1 %8331 }
 0x4f8   :  { %v4890_v10 = vsel %vm19017_vm2, %v13290_v11, %v8319_v18  ;;  %v4889_v28 = vsel %vm19041_vm13, %v13288_v24, %v8318_v45  ;;  %5958 = vmatmul.mubr.bf16.gmra.mxu1 %v5565_v0  ;;  %v8334_v5 = vunpack.i.h.bf16 %v8332_v63  ;;  %v8333_v20 = vunpack.i.l.bf16 %v8332_v63  ;;  %vm19068_vm2 = vmmov %vm19054_vm0 }
 0x4f9   :  { %v14279_v4 = vsel %vm17798_vm8, %v4890_v10, %v8329_v21  ;;  %v14282_v2 = vsel %vm17798_vm8, %v4889_v28, %v8328_v17  ;;  %v8337_v13 = vpop.permute.xlu0 %8336  ;;  %v19044_v24 = vrot.slane %v19029_v62, 4  ;;  %v4142_v21 = vsel %vm19045_vm10, %v4140_v42, %v4141_v41  ;;  %vm19070_vm13 = vmmov %vm19054_vm0 }
 0x4fa   :  { %19042 = vst [vmem:[#allocation203_spill] sm:$0xff] %v14279_v4  ;;  %19043 = vst [vmem:[#allocation110_spill] sm:$0xff] %v14282_v2  ;;  %v8339_v19 = vunpack.i.h.bf16 %v8337_v13  ;;  %v8338_v32 = vunpack.i.l.bf16 %v8337_v13  ;;  %v8580_v11 = vpack.i.bf16 %v14279_v4, %v14282_v2  ;;  %v5435_v10 = vsel %vm17799_vm6, %v13657_v46, %v8333_v20 }
 0x4fb   :  { %v4275_v45 = vsel %vm4270_vm14, %v19044_v24, %v4265_v50  ;;  %v8347_v28 = vpop.permute.xlu1 %8346  ;;  %v5436_v50 = vsel %vm17799_vm6, %v13660_v48, %v8334_v5  ;;  %v19046_v42 = vrot.slane %v13553_v16, 2  ;;  %vm19076_vm10 = vmmov %vm19054_vm0 }
 0x4fc   :  { %v14294_v17 = vpack.c.bf16 %v8339_v19, %v8338_v32  ;;  %v5499_v18 = vsel %vm17798_vm8, %v8333_v20, %v8338_v32  ;;  %v5500_v0 = vsel %vm17798_vm8, %v8334_v5, %v8339_v19  ;;  %8581 = vrot.lane.b32.xlu1 %v8580_v11, %s8806_s13  ;;  %8611 = vrot.lane.b32.xlu0 %v8580_v11, %s8808_s29  ;;  %v8349_v24 = vunpack.i.h.bf16 %v8347_v28 }
 0x4fd   :  { %v8342_v63 = vpop.permute.xlu0 %8341  ;;  %v5569_v13 = vpack.c.bf16 %v5500_v0, %v5499_v18  ;;  %v4205_v32 = vsel %vm19047_vm3, %v4141_v41, %v19046_v42  ;;  %v8348_v19 = vunpack.i.l.bf16 %v8347_v28  ;;  %v5568_v46 = vpack.c.bf16 %v5436_v50, %v5435_v10  ;;  %vm19078_vm3 = vmmov %vm19054_vm0 }
 0x4fe   :  { %v8344_v4 = vunpack.i.h.bf16 %v8342_v63  ;;  %v8343_v2 = vunpack.i.l.bf16 %v8342_v63  ;;  %v8585_v20 = vpack.i.bf16 %v4274_v53, %v4275_v45  ;;  %v4267_v11 = vrot.slane %v19036_v25, 4 }
 0x4ff   :  { %5965 = vmatprep.mubr.bf16.mxu1 %v5569_v13  ;;  %v8615_v5 = vpack.i.bf16 %v4205_v32, %v4142_v21  ;;  %v8362_v53 = vpop.permute.xlu1 %8361 }
 0x500   :  { %v4892_v18 = vsel %vm19048_vm12, %v13294_v33, %v8344_v4  ;;  %v4891_v48 = vsel %vm19049_vm15, %v13292_v15, %v8343_v2  ;;  %5966 = vmatmul.mubr.bf16.gmra.mxu1 %v5568_v46  ;;  %8586 = vrot.lane.b32.xlu1 %v8585_v20, %s8806_s13  ;;  %v8364_v10 = vunpack.i.h.bf16 %v8362_v53  ;;  %v8363_v28 = vunpack.i.l.bf16 %v8362_v53  ;;  %vm19091_vm12 = vmmov %vm19054_vm0 }
 0x501   :  { %v14315_v41 = vsel %vm17798_vm8, %v4892_v18, %v8349_v24  ;;  %v14318_v0 = vsel %vm17798_vm8, %v4891_v48, %v8348_v19  ;;  %v8352_v45 = vpop.permute.xlu0 %8351  ;;  %8616 = vrot.lane.b32.xlu0 %v8615_v5, %s8805_s10  ;;  %v4272_v2 = vsel %vm4270_vm14, %v4267_v11, %v4268_v29  ;;  %v4273_v21 = vsel %vm4270_vm14, %v4266_v52, %v4267_v11  ;;  %vm19092_vm15 = vmmov %vm19054_vm0 }
 0x502   :  { %v8354_v33 = vunpack.i.h.bf16 %v8352_v45  ;;  %v8353_v4 = vunpack.i.l.bf16 %v8352_v45  ;;  %v8600_v15 = vpack.i.bf16 %v14315_v41, %v14318_v0  ;;  %v14328_v63 = vpack.c.bf16 %v8364_v10, %v8363_v28 }
 0x503   :  { %v8367_v32 = vpop.permute.xlu1 %8366  ;;  %v8605_v5 = vpack.i.bf16 %v4272_v2, %v4273_v21  ;;  %v4269_v53 = vrot.slane %v19040_v58, 4 }
 0x504   :  { %v5501_v13 = vsel %vm17798_vm8, %v8353_v4, %v8363_v28  ;;  %v5502_v50 = vsel %vm17798_vm8, %v8354_v33, %v8364_v10  ;;  %v5437_v42 = vsel %vm17799_vm6, %v13746_v43, %v8353_v4  ;;  %8601 = vrot.lane.b32.xlu1 %v8600_v15, %s8806_s13  ;;  %v5438_v46 = vsel %vm17799_vm6, %v13749_v27, %v8354_v33 }
 0x505   :  { %v8357_v24 = vpop.permute.xlu0 %8356  ;;  %v5572_v19 = vpack.c.bf16 %v5502_v50, %v5501_v13  ;;  %8631 = vrot.lane.b32.xlu0 %v8600_v15, %s8808_s29  ;;  %v8369_v52 = vunpack.i.h.bf16 %v8367_v32  ;;  %v8368_v20 = vunpack.i.l.bf16 %v8367_v32  ;;  %v5571_v48 = vpack.c.bf16 %v5438_v46, %v5437_v42 }
 0x506   :  { %v8359_v11 = vunpack.i.h.bf16 %v8357_v24  ;;  %v8358_v18 = vunpack.i.l.bf16 %v8357_v24  ;;  %v19052_v13 = vrot.slane %v13553_v16, 4 }
 0x507   :  { %5973 = vmatprep.mubr.bf16.mxu1 %v5572_v19  ;;  %v8382_v28 = vpop.permute.xlu1 %8381 }
 0x508   :  { %v4894_v43 = vsel %vm19050_vm1, %v13298_v44, %v8359_v11  ;;  %v4893_v45 = vsel %vm19051_vm11, %v13296_v23, %v8358_v18  ;;  %5974 = vmatmul.mubr.bf16.gmra.mxu1 %v5571_v48  ;;  %8606 = vrot.lane.b32.xlu1 %v8605_v5, %s8806_s13  ;;  %v8384_v4 = vunpack.i.h.bf16 %v8382_v28  ;;  %v8383_v15 = vunpack.i.l.bf16 %v8382_v28  ;;  %vm19096_vm11 = vmmov %vm19054_vm0 }
 0x509   :  { %v14344_v10 = vsel %vm17798_vm8, %v4894_v43, %v8369_v52  ;;  %v14347_v27 = vsel %vm17798_vm8, %v4893_v45, %v8368_v20  ;;  %v8372_v33 = vpop.permute.xlu0 %8371  ;;  %v4271_v23 = vsel %vm4270_vm14, %v4268_v29, %v4269_v53  ;;  %v4334_v50 = vsel %vm4270_vm14, %v4269_v53, %v19052_v13  ;;  %vm19053_vm14 = vmmov %vm19050_vm1 }
 0x50a   :  { %v8374_v2 = vunpack.i.h.bf16 %v8372_v33  ;;  %v8373_v21 = vunpack.i.l.bf16 %v8372_v33  ;;  %v8620_v44 = vpack.i.bf16 %v14344_v10, %v14347_v27  ;;  %v14358_v42 = vpack.c.bf16 %v8384_v4, %v8383_v15  ;;  %vm19093_vm1 = vmmov %vm19054_vm0 }
 0x50b   :  { %v8387_v46 = vpop.permute.xlu1 %8386  ;;  %v8625_v18 = vpack.i.bf16 %v4334_v50, %v4271_v23 }
 0x50c   :  { %v5503_v32 = vsel %vm17798_vm8, %v8373_v21, %v8383_v15  ;;  %v5504_v24 = vsel %vm17798_vm8, %v8374_v2, %v8384_v4  ;;  %v5439_v19 = vsel %vm17799_vm6, %v13614_v7, %v8373_v21  ;;  %8621 = vrot.lane.b32.xlu1 %v8620_v44, %s8806_s13  ;;  %8641 = vrot.lane.b32.xlu0 %v8620_v44, %s8808_s29  ;;  %v8389_v48 = vunpack.i.h.bf16 %v8387_v46 }
 0x50d   :  { %v8377_v29 = vpop.permute.xlu0 %8376  ;;  %v5575_v52 = vpack.c.bf16 %v5504_v24, %v5503_v32  ;;  %v5440_v20 = vsel %vm17799_vm6, %v13617_v38, %v8374_v2  ;;  %v8388_v33 = vunpack.i.l.bf16 %v8387_v46 }
 0x50e   :  { %v5574_v11 = vpack.c.bf16 %v5440_v20, %v5439_v19  ;;  %v8379_v4 = vunpack.i.h.bf16 %v8377_v29  ;;  %v8378_v15 = vunpack.i.l.bf16 %v8377_v29  ;;  %v4896_v23 = vsel %vm19053_vm14, %v13302_v30, %v8389_v48  ;;  %vm19097_vm14 = vmmov %vm19054_vm0 }
 0x50f   :  { %5981 = vmatprep.mubr.bf16.mxu1 %v5575_v52  ;;  %v8402_v5 = vpop.permute.xlu1 %8401  ;;  %v4895_v20 = vsel %vm19054_vm0, %v13300_v36, %v8388_v33 }
 0x510   :  { %5982 = vmatmul.mubr.bf16.gmra.mxu1 %v5574_v11  ;;  %8626 = vrot.lane.b32.xlu1 %v8625_v18, %s8806_s13  ;;  %v8404_v7 = vunpack.i.h.bf16 %v8402_v5  ;;  %v8403_v43 = vunpack.i.l.bf16 %v8402_v5  ;;  %v19055_v11 = vld [vmem:[#allocation147_spill] sm:$0xff] }
 0x511   :  { %v8392_v53 = vpop.permute.xlu0 %8391  ;;  %v4848_v18 = vsel %vm19056_vm4, %v19055_v11, %v8379_v4  ;;  %vm19098_vm4 = vmmov %vm19054_vm0 }
 0x512   :  { %v8394_v45 = vunpack.i.h.bf16 %v8392_v53  ;;  %v8393_v28 = vunpack.i.l.bf16 %v8392_v53  ;;  %v14369_v21 = vpack.c.bf16 %v8404_v7, %v8403_v43 }
 0x513   :  { %v8407_v13 = vpop.permute.xlu1 %8406 }
 0x514   :  { %v5505_v38 = vsel %vm17798_vm8, %v8393_v28, %v8403_v43  ;;  %v5506_v2 = vsel %vm17798_vm8, %v8394_v45, %v8404_v7  ;;  %v5441_v44 = vsel %vm17799_vm6, %v13740_v56, %v8393_v28  ;;  %v5442_v24 = vsel %vm17799_vm6, %v13743_v57, %v8394_v45 }
 0x515   :  { %v8397_v50 = vpop.permute.xlu0 %8396  ;;  %v5578_v32 = vpack.c.bf16 %v5506_v2, %v5505_v38  ;;  %v8409_v19 = vunpack.i.h.bf16 %v8407_v13  ;;  %v8408_v46 = vunpack.i.l.bf16 %v8407_v13  ;;  %v4847_v56 = vsel %vm19057_vm9, %v13553_v16, %v8378_v15  ;;  %vm19099_vm9 = vmmov %vm19054_vm0 }
 0x516   :  { %v8399_v29 = vunpack.i.h.bf16 %v8397_v50  ;;  %v8398_v52 = vunpack.i.l.bf16 %v8397_v50  ;;  %v5577_v30 = vpack.c.bf16 %v5442_v24, %v5441_v44  ;;  %v19059_v44 = vld [vmem:[#allocation66_spill] sm:$0xff]  ;;  %v19060_v24 = vld [vmem:[#allocation79_spill] sm:$0xff] }
 0x517   :  { %5989 = vmatprep.mubr.bf16.mxu1 %v5578_v32  ;;  %v14386_v48 = vsel %vm17798_vm8, %v4895_v20, %v8408_v46  ;;  %v14389_v57 = vsel %vm17798_vm8, %v4896_v23, %v8409_v19  ;;  %v8422_v36 = vpop.permute.xlu1 %8421 }
 0x518   :  { %19058 = vst [vmem:[#allocation205_spill] sm:$0xff] %v14389_v57  ;;  %v14392_v5 = vsel %vm17798_vm8, %v4847_v56, %v8398_v52  ;;  %v14395_v53 = vsel %vm17798_vm8, %v4848_v18, %v8399_v29  ;;  %5990 = vmatmul.mubr.bf16.gmra.mxu1 %v5577_v30  ;;  %v8635_v16 = vpack.i.bf16 %v14389_v57, %v14386_v48  ;;  %v8424_v45 = vunpack.i.h.bf16 %v8422_v36 }
 0x519   :  { %v8412_v7 = vpop.permute.xlu0 %8411  ;;  %v14401_v43 = vpack.i.bf16 %v14395_v53, %v14392_v5  ;;  %v8423_v28 = vunpack.i.l.bf16 %v8422_v36 }
 0x51a   :  { %v8414_v33 = vunpack.i.h.bf16 %v8412_v7  ;;  %v8413_v4 = vunpack.i.l.bf16 %v8412_v7  ;;  %8636 = vrot.lane.b32.xlu1 %v8635_v16, %s8806_s13  ;;  %8651 = vrot.lane.b32.xlu0 %v8635_v16, %s8808_s29 }
 0x51b   :  { %v14405_v15 = vpack.c.bf16 %v8424_v45, %v8423_v28  ;;  %v8427_v13 = vpop.permute.xlu1 %8426 }
 0x51c   :  { %v5507_v38 = vsel %vm17798_vm8, %v8413_v4, %v8423_v28  ;;  %v5508_v2 = vsel %vm17798_vm8, %v8414_v33, %v8424_v45  ;;  %v5443_v23 = vsel %vm17799_vm6, %v19059_v44, %v8413_v4  ;;  %v5444_v19 = vsel %vm17799_vm6, %v19060_v24, %v8414_v33  ;;  %v19061_v33 = vld [vmem:[#allocation81_spill] sm:$0xff] }
 0x51d   :  { %v8417_v50 = vpop.permute.xlu0 %8416  ;;  %v5581_v32 = vpack.c.bf16 %v5508_v2, %v5507_v38  ;;  %v5580_v46 = vpack.c.bf16 %v5444_v19, %v5443_v23  ;;  %v8429_v29 = vunpack.i.h.bf16 %v8427_v13  ;;  %v8428_v36 = vunpack.i.l.bf16 %v8427_v13  ;;  %v19062_v2 = vld [vmem:[#allocation52_spill] sm:$0xff]  ;;  %v19064_v19 = vld [vmem:[#allocation69_spill] sm:$0xff] }
 0x51e   :  { %v8419_v7 = vunpack.i.h.bf16 %v8417_v50  ;;  %v8418_v16 = vunpack.i.l.bf16 %v8417_v50 }
 0x51f   :  { %5997 = vmatprep.mubr.bf16.mxu1 %v5581_v32  ;;  %v8442_v52 = vpop.permute.xlu1 %8441  ;;  %v4898_v44 = vsel %vm19063_vm7, %v19062_v2, %v8429_v29  ;;  %vm19100_vm7 = vmmov %vm19054_vm0 }
 0x520   :  { %5998 = vmatmul.mubr.bf16.gmra.mxu1 %v5580_v46  ;;  %v8444_v11 = vunpack.i.h.bf16 %v8442_v52  ;;  %v8443_v18 = vunpack.i.l.bf16 %v8442_v52 }
 0x521   :  { %v8432_v20 = vpop.permute.xlu0 %8431 }
 0x522   :  { %v8434_v56 = vunpack.i.h.bf16 %v8432_v20  ;;  %v8433_v30 = vunpack.i.l.bf16 %v8432_v20  ;;  %v14413_v45 = vpack.c.bf16 %v8444_v11, %v8443_v18 }
 0x523   :  { %v8447_v23 = vpop.permute.xlu1 %8446 }
 0x524   :  { %v5509_v28 = vsel %vm17798_vm8, %v8433_v30, %v8443_v18  ;;  %v5510_v4 = vsel %vm17798_vm8, %v8434_v56, %v8444_v11  ;;  %v5445_v38 = vsel %vm17799_vm6, %v19061_v33, %v8433_v30  ;;  %v5446_v13 = vsel %vm17799_vm6, %v19064_v19, %v8434_v56  ;;  %v19067_v11 = vld [vmem:[#allocation135_spill] sm:$0xff]  ;;  %v19069_v30 = vld [vmem:[#allocation78_spill] sm:$0xff] }
 0x525   :  { %v8437_v32 = vpop.permute.xlu0 %8436  ;;  %v5584_v24 = vpack.c.bf16 %v5510_v4, %v5509_v28  ;;  %v8449_v46 = vunpack.i.h.bf16 %v8447_v23  ;;  %v8448_v50 = vunpack.i.l.bf16 %v8447_v23  ;;  %v4897_v18 = vsel %vm19066_vm5, %v19065_v51, %v8428_v36  ;;  %vm19101_vm5 = vmmov %vm19054_vm0 }
 0x526   :  { %v8439_v52 = vunpack.i.h.bf16 %v8437_v32  ;;  %v8438_v20 = vunpack.i.l.bf16 %v8437_v32  ;;  %v4850_v57 = vsel %vm19068_vm2, %v19067_v11, %v8419_v7  ;;  %v4849_v33 = vsel %vm19070_vm13, %v19069_v30, %v8418_v16  ;;  %vm19102_vm2 = vmmov %vm19054_vm0 }
 0x527   :  { %6005 = vmatprep.mubr.bf16.mxu1 %v5584_v24  ;;  %v5583_v29 = vpack.c.bf16 %v5446_v13, %v5445_v38  ;;  %v14430_v28 = vsel %vm17798_vm8, %v4897_v18, %v8448_v50  ;;  %v14433_v56 = vsel %vm17798_vm8, %v4898_v44, %v8449_v46  ;;  %v8462_v51 = vpop.permute.xlu1 %8461  ;;  %v19073_v13 = vld [vmem:[#allocation87_spill] sm:$0xff]  ;;  %v19074_v18 = vld [vmem:[#allocation89_spill] sm:$0xff]  ;;  %vm19103_vm13 = vmmov %vm19054_vm0 }
 0x528   :  { %19071 = vst [vmem:[#allocation131_spill] sm:$0xff] %v14430_v28  ;;  %19072 = vst [vmem:[#allocation204_spill] sm:$0xff] %v14433_v56  ;;  %v14436_v4 = vsel %vm17798_vm8, %v4849_v33, %v8438_v20  ;;  %v14439_v2 = vsel %vm17798_vm8, %v4850_v57, %v8439_v52  ;;  %v8645_v7 = vpack.i.bf16 %v14433_v56, %v14430_v28  ;;  %v8464_v38 = vunpack.i.h.bf16 %v8462_v51  ;;  %v19077_v56 = vld [vmem:[#allocation55_spill] sm:$0xff] }
 0x529   :  { %6006 = vmatmul.mubr.bf16.gmra.mxu1 %v5583_v29  ;;  %v8452_v36 = vpop.permute.xlu0 %8451  ;;  %v14445_v16 = vpack.i.bf16 %v14439_v2, %v14436_v4  ;;  %v8463_v23 = vunpack.i.l.bf16 %v8462_v51 }
 0x52a   :  { %v8454_v44 = vunpack.i.h.bf16 %v8452_v36  ;;  %v8453_v32 = vunpack.i.l.bf16 %v8452_v36  ;;  %8646 = vrot.lane.b32.xlu1 %v8645_v7, %s8806_s13  ;;  %8661 = vrot.lane.b32.xlu0 %v8645_v7, %s8808_s29  ;;  %v19075_v7 = vld [vmem:[#allocation44_spill] sm:$0xff] }
 0x52b   :  { %v14449_v57 = vpack.c.bf16 %v8464_v38, %v8463_v23  ;;  %v8467_v50 = vpop.permute.xlu1 %8466 }
 0x52c   :  { %v5511_v24 = vsel %vm17798_vm8, %v8453_v32, %v8463_v23  ;;  %v5512_v19 = vsel %vm17798_vm8, %v8454_v44, %v8464_v38  ;;  %v5447_v46 = vsel %vm17799_vm6, %v19073_v13, %v8453_v32  ;;  %v5448_v11 = vsel %vm17799_vm6, %v19074_v18, %v8454_v44 }
 0x52d   :  { %v8457_v52 = vpop.permute.xlu0 %8456  ;;  %v5587_v20 = vpack.c.bf16 %v5512_v19, %v5511_v24  ;;  %v8469_v30 = vunpack.i.h.bf16 %v8467_v50  ;;  %v8468_v33 = vunpack.i.l.bf16 %v8467_v50  ;;  %v5586_v36 = vpack.c.bf16 %v5448_v11, %v5447_v46 }
 0x52e   :  { %v8459_v29 = vunpack.i.h.bf16 %v8457_v52  ;;  %v8458_v51 = vunpack.i.l.bf16 %v8457_v52 }
 0x52f   :  { %6013 = vmatprep.mubr.bf16.mxu1 %v5587_v20  ;;  %v8477_v44 = vpop.permute.xlu1 %8476 }
 0x530   :  { %v4900_v23 = vsel %vm19076_vm10, %v19075_v7, %v8459_v29  ;;  %v4899_v38 = vsel %vm19078_vm3, %v19077_v56, %v8458_v51  ;;  %v8479_v13 = vunpack.i.h.bf16 %v8477_v44  ;;  %v8478_v50 = vunpack.i.l.bf16 %v8477_v44  ;;  %v19082_v7 = vld [vmem:[#allocation190_spill] sm:$0xff]  ;;  %vm19104_vm10 = vmmov %vm19054_vm0 }
 0x531   :  { %v14462_v32 = vsel %vm17798_vm8, %v4900_v23, %v8469_v30  ;;  %v14465_v24 = vsel %vm17798_vm8, %v4899_v38, %v8468_v33  ;;  %6014 = vmatmul.mubr.bf16.gmra.mxu1 %v5586_v36  ;;  %v8472_v19 = vpop.permute.xlu0 %8471  ;;  %v19081_v30 = vld [vmem:[#allocation80_spill] sm:$0xff]  ;;  %vm19105_vm3 = vmmov %vm19054_vm0 }
 0x532   :  { %19079 = vst [vmem:[#allocation134_spill] sm:$0xff] %v14462_v32  ;;  %19080 = vst [vmem:[#allocation101_spill] sm:$0xff] %v14465_v24  ;;  %v8474_v52 = vunpack.i.h.bf16 %v8472_v19  ;;  %v8473_v20 = vunpack.i.l.bf16 %v8472_v19  ;;  %v8670_v46 = vpack.i.bf16 %v14462_v32, %v14465_v24  ;;  %v14469_v18 = vpack.c.bf16 %v8479_v13, %v8478_v50 }
 0x533   :  { %v8482_v29 = vpop.permute.xlu1 %8481 }
 0x534   :  { %v5513_v56 = vsel %vm17798_vm8, %v8473_v20, %v8478_v50  ;;  %v5514_v11 = vsel %vm17798_vm8, %v8474_v52, %v8479_v13  ;;  %v5449_v33 = vsel %vm17799_vm6, %v19081_v30, %v8473_v20  ;;  %8671 = vrot.lane.b32.xlu0 %v8670_v46, %s8808_s29  ;;  %8656 = vrot.lane.b32.xlu1 %v8670_v46, %s8806_s13  ;;  %v8484_v38 = vunpack.i.h.bf16 %v8482_v29 }
 0x535   :  { %v14477_v51 = vpop.permute.xlu0 %8486  ;;  %v5590_v36 = vpack.c.bf16 %v5514_v11, %v5513_v56  ;;  %v5450_v23 = vsel %vm17799_vm6, %v19082_v7, %v8474_v52  ;;  %v8483_v44 = vunpack.i.l.bf16 %v8482_v29 }
 0x536   :  { %v17793_v19 = vunpack.i.h.bf16 %v14477_v51  ;;  %v17796_v13 = vunpack.i.l.bf16 %v14477_v51  ;;  %v5589_v50 = vpack.c.bf16 %v5450_v23, %v5449_v33  ;;  %v5426_v46 = vsel %vm17799_vm6, %v14395_v53, %v8484_v38 }
 0x537   :  { %6021 = vmatprep.mubr.bf16.mxu1 %v5590_v36  ;;  %v5425_v20 = vsel %vm17799_vm6, %v14392_v5, %v8483_v44  ;;  %v8497_v52 = vpop.permute.xlu1 %8496 }
 0x538   :  { %v5489_v56 = vsel %vm17798_vm8, %v8483_v44, %v17796_v13  ;;  %v5553_v11 = vpack.c.bf16 %v5426_v46, %v5425_v20  ;;  %v5490_v29 = vsel %vm17798_vm8, %v8484_v38, %v17793_v19  ;;  %v8499_v36 = vunpack.i.h.bf16 %v8497_v52  ;;  %v19083_v44 = vld [vmem:[#allocation191_spill] sm:$0xff]  ;;  %v8769_v20 = vld [vmem:[%s17240_s2 + $0x80] sm:$0xff]  }
 0x539   :  { %6022 = vmatmul.mubr.bf16.gmra.mxu1 %v5589_v50  ;;  %v8492_v30 = vpop.permute.xlu0 %8491  ;;  %v8498_v33 = vunpack.i.l.bf16 %v8497_v52  ;;  %v5554_v5 = vpack.c.bf16 %v5490_v29, %v5489_v56 }
 0x53a   :  { %v8494_v7 = vunpack.i.h.bf16 %v8492_v30  ;;  %v8493_v23 = vunpack.i.l.bf16 %v8492_v30  ;;  %v19084_v30 = vld [vmem:[#allocation192_spill] sm:$0xff] }
 0x53b   :  { %v14493_v32 = vpack.c.bf16 %v8499_v36, %v8498_v33  ;;  %5925 = vmatprep.mubr.bf16.mxu0 %v5554_v5  ;;  %v8502_v38 = vpop.permute.xlu1 %8501 }
 0x53c   :  { %v5515_v53 = vsel %vm17798_vm8, %v8493_v23, %v8498_v33  ;;  %v5516_v24 = vsel %vm17798_vm8, %v8494_v7, %v8499_v36  ;;  %v5451_v50 = vsel %vm17799_vm6, %v19083_v44, %v8493_v23  ;;  %v5452_v56 = vsel %vm17799_vm6, %v19084_v30, %v8494_v7  ;;  %5926 = vmatmul.mubr.bf16.vlgmr.msra.gmra.mxu0 %v5553_v11 }
 0x53d   :  { %v14502_v46 = vpop.permute.xlu0 %8506  ;;  %v5593_v52 = vpack.c.bf16 %v5516_v24, %v5515_v53  ;;  %v8504_v29 = vunpack.i.h.bf16 %v8502_v38  ;;  %v8503_v33 = vunpack.i.l.bf16 %v8502_v38  ;;  %v5592_v23 = vpack.c.bf16 %v5452_v56, %v5451_v50  ;;  %7362 = vmatpush3.bf16.msra.mxu0 %v14179_v3 }
 0x53e   :  { %v17795_v36 = vunpack.i.h.bf16 %v14502_v46  ;;  %v17794_v19 = vunpack.i.l.bf16 %v14502_v46  ;;  %7363 = vmatprep.subr.bf16.mxu0 %v8769_v20 }
 0x53f   :  { %6029 = vmatprep.mubr.bf16.mxu1 %v5593_v52  ;;  %v5427_v11 = vsel %vm17799_vm6, %v14436_v4, %v8503_v33  ;;  %v8517_v7 = vpop.permute.xlu1 %8516  ;;  %v5428_v50 = vsel %vm17799_vm6, %v14439_v2, %v8504_v29  ;;  %v19086_v2 = vld [vmem:[#allocation194_spill] sm:$0xff] }
 0x540   :  { %v5491_v5 = vsel %vm17798_vm8, %v8503_v33, %v17794_v19  ;;  %v5492_v24 = vsel %vm17798_vm8, %v8504_v29, %v17795_v36  ;;  %v8519_v3 = vunpack.i.h.bf16 %v8517_v7  ;;  %v8518_v38 = vunpack.i.l.bf16 %v8517_v7  ;;  %v19085_v33 = vld [vmem:[#allocation193_spill] sm:$0xff] }
 0x541   :  { %6030 = vmatmul.mubr.bf16.gmra.mxu1 %v5592_v23  ;;  %v8512_v53 = vpop.permute.xlu0 %8511  ;;  %v5557_v44 = vpack.c.bf16 %v5492_v24, %v5491_v5  ;;  %v5556_v56 = vpack.c.bf16 %v5428_v50, %v5427_v11  ;;  %7364 = vmatpush3.bf16.msra.mxu0 %v8769_v20 }
 0x542   :  { %v8514_v52 = vunpack.i.h.bf16 %v8512_v53  ;;  %v8513_v30 = vunpack.i.l.bf16 %v8512_v53  ;;  %v14519_v19 = vpack.c.bf16 %v8519_v3, %v8518_v38 }
 0x543   :  { %5933 = vmatprep.mubr.bf16.mxu0 %v5557_v44  ;;  %v8522_v5 = vpop.permute.xlu1 %8521 }
 0x544   :  { %v5517_v36 = vsel %vm17798_vm8, %v8513_v30, %v8518_v38  ;;  %v5518_v4 = vsel %vm17798_vm8, %v8514_v52, %v8519_v3  ;;  %v5453_v23 = vsel %vm17799_vm6, %v19085_v33, %v8513_v30  ;;  %v5454_v29 = vsel %vm17799_vm6, %v19086_v2, %v8514_v52  ;;  %5934 = vmatmul.mubr.bf16.gmra.mxu0 %v5556_v56 }
 0x545   :  { %v8527_v24 = vpop.permute.xlu0 %8526  ;;  %v5596_v13 = vpack.c.bf16 %v5518_v4, %v5517_v36  ;;  %v8524_v7 = vunpack.i.h.bf16 %v8522_v5  ;;  %v8523_v53 = vunpack.i.l.bf16 %v8522_v5  ;;  %v5595_v44 = vpack.c.bf16 %v5454_v29, %v5453_v23 }
 0x546   :  { %v8529_v11 = vunpack.i.h.bf16 %v8527_v24  ;;  %v8528_v20 = vunpack.i.l.bf16 %v8527_v24 }
 0x547   :  { %6037 = vmatprep.mubr.bf16.mxu1 %v5596_v13  ;;  %v5429_v38 = vsel %vm17799_vm6, %v14115_v22, %v8523_v53  ;;  %v8542_v30 = vpop.permute.xlu1 %8541  ;;  %v5430_v52 = vsel %vm17799_vm6, %v14118_v1, %v8524_v7  ;;  %v19087_v22 = vld [vmem:[#allocation195_spill] sm:$0xff] }
 0x548   :  { %v5493_v50 = vsel %vm17798_vm8, %v8523_v53, %v8528_v20  ;;  %v5494_v3 = vsel %vm17798_vm8, %v8524_v7, %v8529_v11  ;;  %v8544_v56 = vunpack.i.h.bf16 %v8542_v30  ;;  %v8543_v33 = vunpack.i.l.bf16 %v8542_v30 }
 0x549   :  { %6038 = vmatmul.mubr.bf16.gmra.mxu1 %v5595_v44  ;;  %v8532_v36 = vpop.permute.xlu0 %8531  ;;  %v5560_v4 = vpack.c.bf16 %v5494_v3, %v5493_v50  ;;  %v5559_v13 = vpack.c.bf16 %v5430_v52, %v5429_v38  ;;  %v19088_v44 = vunpack.i.l.bf16 %v14477_v51  ;;  %v19089_v50 = vunpack.i.h.bf16 %v14477_v51 }
 0x54a   :  { %v8534_v5 = vunpack.i.h.bf16 %v8532_v36  ;;  %v8533_v24 = vunpack.i.l.bf16 %v8532_v36  ;;  %v14533_v23 = vpack.c.bf16 %v8544_v56, %v8543_v33  ;;  %v19090_v36 = vld [vmem:[#allocation196_spill] sm:$0xff] }
 0x54b   :  { %5941 = vmatprep.mubr.bf16.mxu0 %v5560_v4  ;;  %v5555_v1 = vpack.c.bf16 %v19089_v50, %v19088_v44  ;;  %v8547_v7 = vpop.permute.xlu1 %8546 }
 0x54c   :  { %v5519_v2 = vsel %vm17798_vm8, %v8533_v24, %v8543_v33  ;;  %v5520_v29 = vsel %vm17798_vm8, %v8534_v5, %v8544_v56  ;;  %v5455_v53 = vsel %vm17799_vm6, %v19087_v22, %v8533_v24  ;;  %v5456_v38 = vsel %vm17799_vm6, %v19090_v36, %v8534_v5  ;;  %5942 = vmatmul.mubr.bf16.gmra.mxu0 %v5559_v13 }
 0x54d   :  { %v8537_v3 = vpop.permute.xlu0 %8536  ;;  %v5599_v30 = vpack.c.bf16 %v5520_v29, %v5519_v2  ;;  %v8549_v4 = vunpack.i.h.bf16 %v8547_v7  ;;  %v8548_v52 = vunpack.i.l.bf16 %v8547_v7  ;;  %7365 = vmatprep.mubr.msk.bf16.mxu0 %vm19091_vm12, %v5555_v1  ;;  %v5598_v56 = vpack.c.bf16 %v5456_v38, %v5455_v53  ;;  %vm19106_vm12 = vmmov %vm19054_vm0 }
 0x54e   :  { %v8539_v33 = vunpack.i.h.bf16 %v8537_v3  ;;  %v8538_v28 = vunpack.i.l.bf16 %v8537_v3  ;;  %v5561_v7 = vpack.c.bf16 %v8529_v11, %v8528_v20 }
 0x54f   :  { %6045 = vmatprep.mubr.bf16.mxu1 %v5599_v30  ;;  %v14556_v29 = vpop.permute.xlu1 %8561 }
 0x550   :  { %v4902_v24 = vsel %vm19092_vm15, %v19020_v8, %v8539_v33  ;;  %v4901_v51 = vsel %vm19093_vm1, %v18997_v26, %v8538_v28  ;;  %v8564_v8 = vunpack.i.h.bf16 %v14556_v29  ;;  %v8563_v50 = vunpack.i.l.bf16 %v14556_v29  ;;  %vm19107_vm15 = vmmov %vm19054_vm0 }
 0x551   :  { %v14551_v2 = vsel %vm17798_vm8, %v4902_v24, %v8549_v4  ;;  %v14554_v5 = vsel %vm17798_vm8, %v4901_v51, %v8548_v52  ;;  %6046 = vmatmul.mubr.bf16.gmra.mxu1 %v5598_v56  ;;  %v8552_v13 = vpop.permute.xlu0 %8551  ;;  %v19094_v26 = vunpack.i.l.bf16 %v14502_v46  ;;  %v19095_v28 = vunpack.i.h.bf16 %v14502_v46  ;;  %vm19108_vm1 = vmmov %vm19054_vm0 }
 0x552   :  { %v8554_v22 = vunpack.i.h.bf16 %v8552_v13  ;;  %v8553_v44 = vunpack.i.l.bf16 %v8552_v13  ;;  %v8680_v53 = vpack.i.bf16 %v14551_v2, %v14554_v5 }
 0x553   :  { %v5558_v1 = vpack.c.bf16 %v19095_v28, %v19094_v26  ;;  %v8567_v30 = vpop.permute.xlu1 %8566 }
 0x554   :  { %8681 = vrot.lane.b32.xlu0 %v8680_v53, %s8808_s29  ;;  %8666 = vrot.lane.b32.xlu1 %v8680_v53, %s8806_s13  ;;  %v5521_v36 = vsel %vm17798_vm8, %v8553_v44, %v8563_v50  ;;  %v5522_v38 = vsel %vm17798_vm8, %v8554_v22, %v8564_v8  ;;  %v5457_v4 = vsel %vm17799_vm6, %v14093_v14, %v8553_v44  ;;  %v8569_v52 = vunpack.i.h.bf16 %v8567_v30 }
 0x555   :  { %v8557_v3 = vpop.permute.xlu0 %8556  ;;  %v5458_v46 = vsel %vm17799_vm6, %v14096_v9, %v8554_v22  ;;  %7366 = vmatmul.mubr.msk.bf16.vlgmr.msra.gmra.mxu0 %vm19096_vm11, %v5558_v1  ;;  %v8568_v33 = vunpack.i.l.bf16 %v8567_v30  ;;  %v5602_v56 = vpack.c.bf16 %v5522_v38, %v5521_v36  ;;  %vm19109_vm11 = vmmov %vm19054_vm0 }
 0x556   :  { %v8559_v11 = vunpack.i.h.bf16 %v8557_v3  ;;  %v8558_v20 = vunpack.i.l.bf16 %v8557_v3  ;;  %7369 = vmatprep.mubr.msk.bf16.mxu0 %vm19097_vm14, %v5561_v7  ;;  %v5601_v13 = vpack.c.bf16 %v5458_v46, %v5457_v4  ;;  %vm19110_vm14 = vmmov %vm19054_vm0 }
 0x557   :  { %6053 = vmatprep.mubr.bf16.mxu1 %v5602_v56 }
 0x558   :  { %v4904_v24 = vsel %vm19054_vm0, %v19028_v55, %v8559_v11  ;;  %v4903_v51 = vsel %vm19098_vm4, %v19021_v54, %v8558_v20  ;;  %vm19111_vm4 = vmmov %vm19054_vm0 }
 0x559   :  { %v14585_v14 = vsel %vm17798_vm8, %v4903_v51, %v8568_v33  ;;  %v14588_v9 = vsel %vm17798_vm8, %v4904_v24, %v8569_v52  ;;  %6054 = vmatmul.mubr.bf16.gmra.mxu1 %v5601_v13  ;;  %v8572_v54 = vpop.permute.xlu0 %8571 }
 0x55a   :  { %v8690_v22 = vpack.i.bf16 %v14588_v9, %v14585_v14  ;;  %v8574_v53 = vunpack.i.h.bf16 %v8572_v54  ;;  %v8573_v26 = vunpack.i.l.bf16 %v8572_v54 }
 0x55c   :  { %8691 = vrot.lane.b32.xlu0 %v8690_v22, %s8808_s29  ;;  %8676 = vrot.lane.b32.xlu1 %v8690_v22, %s8806_s13  ;;  %v5460_v7 = vsel %vm17799_vm6, %v14136_v35, %v8574_v53 }
 0x55d   :  { %7370 = vmatmul.mubr.msk.bf16.gmra.mxu0 %vm19099_vm9, %v14133_v60  ;;  %v8577_v55 = vpop.permute.xlu0 %8576  ;;  %vm19112_vm9 = vmmov %vm19054_vm0 }
 0x55e   :  { %7373 = vmatprep.mubr.msk.bf16.mxu0 %vm19100_vm7, %v14263_v49  ;;  %v8578_v1 = vunpack.i.l.bf16 %v8577_v55  ;;  %vm19113_vm7 = vmmov %vm19054_vm0 }
 0x560   :  { %v4905_v35 = vsel %vm19106_vm12, %v19029_v62, %v8578_v1  ;;  %vm19121_vm12 = vmmov %vm19054_vm0 }
 0x561   :  { %v8592_v44 = vpop.permute.xlu0 %8591 }
 0x562   :  { %v8594_v11 = vunpack.i.h.bf16 %v8592_v44  ;;  %v8593_v20 = vunpack.i.l.bf16 %v8592_v44 }
 0x565   :  { %7374 = vmatmul.mubr.msk.bf16.gmra.mxu0 %vm19101_vm5, %v14294_v17  ;;  %v8579_v17 = vunpack.i.h.bf16 %v8577_v55  ;;  %v8597_v3 = vpop.permute.xlu0 %8596  ;;  %vm19114_vm5 = vmmov %vm19054_vm0 }
 0x566   :  { %7377 = vmatprep.mubr.msk.bf16.mxu0 %vm19102_vm2, %v14328_v63  ;;  %v5459_v63 = vsel %vm17799_vm6, %v14139_v59, %v8573_v26  ;;  %v8599_v13 = vunpack.i.h.bf16 %v8597_v3  ;;  %v8598_v22 = vunpack.i.l.bf16 %v8597_v3  ;;  %vm19115_vm2 = vmmov %vm19054_vm0 }
 0x567   :  { %v5604_v46 = vpack.c.bf16 %v5460_v7, %v5459_v63  ;;  %v4906_v59 = vsel %vm19105_vm3, %v19032_v61, %v8579_v17  ;;  %vm19120_vm3 = vmmov %vm19054_vm0 }
 0x568   :  { %v4908_v63 = vsel %vm19109_vm11, %v19036_v25, %v8599_v13  ;;  %vm19126_vm11 = vmmov %vm19054_vm0 }
 0x56d   :  { %7378 = vmatmul.mubr.msk.bf16.gmra.mxu0 %vm19103_vm13, %v14358_v42  ;;  %vm19116_vm13 = vmmov %vm19054_vm0 }
 0x56e   :  { %7381 = vmatprep.mubr.msk.bf16.mxu0 %vm19104_vm10, %v14369_v21  ;;  %v14606_v60 = vpop.permute.xlu1 %8581  ;;  %v8612_v56 = vpop.permute.xlu0 %8611  ;;  %vm19117_vm10 = vmmov %vm19054_vm0 }
 0x56f   :  { %v8584_v49 = vunpack.i.h.bf16 %v14606_v60  ;;  %v8583_v28 = vunpack.i.l.bf16 %v14606_v60  ;;  %v8613_v7 = vunpack.i.l.bf16 %v8612_v56 }
 0x571   :  { %v5523_v42 = vsel %vm17798_vm8, %v8573_v26, %v8583_v28  ;;  %v5524_v21 = vsel %vm17798_vm8, %v8574_v53, %v8584_v49 }
 0x572   :  { %v8587_v30 = vpop.permute.xlu1 %8586  ;;  %v5605_v36 = vpack.c.bf16 %v5524_v21, %v5523_v42 }
 0x573   :  { %v8589_v38 = vunpack.i.h.bf16 %v8587_v30  ;;  %v8588_v4 = vunpack.i.l.bf16 %v8587_v30  ;;  %v8617_v3 = vpop.permute.xlu0 %8616 }
 0x574   :  { %6061 = vmatprep.mubr.bf16.mxu1 %v5605_v36 }
 0x575   :  { %v14625_v52 = vsel %vm17798_vm8, %v4905_v35, %v8588_v4  ;;  %v14628_v33 = vsel %vm17798_vm8, %v4906_v59, %v8589_v38  ;;  %7382 = vmatmul.mubr.msk.bf16.gmra.mxu0 %vm19107_vm15, %v14405_v15  ;;  %6062 = vmatmul.mubr.bf16.gmra.mxu1 %v5604_v46  ;;  %v5461_v15 = vsel %vm17799_vm6, %v14158_v6, %v8593_v20  ;;  %v8619_v38 = vunpack.i.h.bf16 %v8617_v3  ;;  %vm19122_vm15 = vmmov %vm19054_vm0 }
 0x576   :  { %7385 = vmatprep.mubr.msk.bf16.mxu0 %vm19108_vm1, %v14413_v45  ;;  %v14634_v61 = vpop.permute.xlu1 %8601  ;;  %v8700_v62 = vpack.i.bf16 %v14628_v33, %v14625_v52  ;;  %v5462_v45 = vsel %vm17799_vm6, %v14155_v34, %v8594_v11  ;;  %v4907_v6 = vsel %vm19110_vm14, %v19033_v47, %v8598_v22  ;;  %v8614_v34 = vunpack.i.h.bf16 %v8612_v56  ;;  %vm19123_vm1 = vmmov %vm19054_vm0 }
 0x577   :  { %v8604_v24 = vunpack.i.h.bf16 %v14634_v61  ;;  %v8603_v51 = vunpack.i.l.bf16 %v14634_v61  ;;  %v5607_v1 = vpack.c.bf16 %v5462_v45, %v5461_v15  ;;  %v8618_v4 = vunpack.i.l.bf16 %v8617_v3  ;;  %v8632_v15 = vpop.permute.xlu0 %8631  ;;  %v19124_v3 = vld [vmem:[#allocation110_spill] sm:$0xff]  ;;  %vm19127_vm14 = vmmov %vm19054_vm0 }
 0x578   :  { %8701 = vrot.lane.b32.xlu0 %v8700_v62, %s8808_s29  ;;  %8686 = vrot.lane.b32.xlu1 %v8700_v62, %s8806_s13  ;;  %v4910_v13 = vsel %vm19112_vm9, %v19040_v58, %v8619_v38  ;;  %v8633_v45 = vunpack.i.l.bf16 %v8632_v15  ;;  %vm19133_vm9 = vmmov %vm19054_vm0 }
 0x579   :  { %v5525_v54 = vsel %vm17798_vm8, %v8593_v20, %v8603_v51  ;;  %v5526_v55 = vsel %vm17798_vm8, %v8594_v11, %v8604_v24  ;;  %v4909_v22 = vsel %vm19113_vm7, %v19037_v39, %v8618_v4  ;;  %v8634_v39 = vunpack.i.h.bf16 %v8632_v15  ;;  %vm19138_vm7 = vmmov %vm19054_vm0 }
 0x57a   :  { %v8607_v44 = vpop.permute.xlu1 %8606  ;;  %v5608_v53 = vpack.c.bf16 %v5526_v55, %v5525_v54  ;;  %v5603_v54 = vpack.c.bf16 %v8564_v8, %v8563_v50 }
 0x57b   :  { %v8609_v26 = vunpack.i.h.bf16 %v8607_v44  ;;  %v8608_v17 = vunpack.i.l.bf16 %v8607_v44  ;;  %v5465_v44 = vsel %vm17799_vm6, %v14223_v31, %v8633_v45  ;;  %v5466_v29 = vsel %vm17799_vm6, %v14220_v12, %v8634_v39 }
 0x57c   :  { %6069 = vmatprep.mubr.bf16.mxu1 %v5608_v53  ;;  %v5613_v53 = vpack.c.bf16 %v5466_v29, %v5465_v44  ;;  %v5606_v12 = vpack.c.bf16 %v8584_v49, %v8583_v28 }
 0x57d   :  { %v14657_v42 = vsel %vm17798_vm8, %v4907_v6, %v8608_v17  ;;  %v14660_v21 = vsel %vm17798_vm8, %v4908_v63, %v8609_v26  ;;  %7386 = vmatmul.mubr.msk.bf16.gmra.mxu0 %vm19054_vm0, %v14449_v57  ;;  %6070 = vmatmul.mubr.bf16.gmra.mxu1 %v5607_v1  ;;  %v5463_v57 = vsel %vm17799_vm6, %v14192_v40, %v8613_v7  ;;  %v19119_v1 = vld [vmem:[#allocation124_spill] sm:$0xff] }
 0x57e   :  { %7389 = vmatprep.mubr.msk.bf16.mxu0 %vm19111_vm4, %v14469_v18  ;;  %v14666_v25 = vpop.permute.xlu1 %8621  ;;  %v8710_v47 = vpack.i.bf16 %v14660_v21, %v14657_v42  ;;  %v5464_v18 = vsel %vm17799_vm6, %v14189_v37, %v8614_v34  ;;  %v5609_v17 = vpack.c.bf16 %v8604_v24, %v8603_v51  ;;  %v8642_v6 = vpop.permute.xlu0 %8641  ;;  %vm19129_vm4 = vmmov %vm19054_vm0 }
 0x57f   :  { %v8624_v30 = vunpack.i.h.bf16 %v14666_v25  ;;  %v8623_v36 = vunpack.i.l.bf16 %v14666_v25  ;;  %v5610_v56 = vpack.c.bf16 %v5464_v18, %v5463_v57  ;;  %v8644_v60 = vunpack.i.h.bf16 %v8642_v6 }
 0x580   :  { %8711 = vrot.lane.b32.xlu0 %v8710_v47, %s8808_s29  ;;  %8696 = vrot.lane.b32.xlu1 %v8710_v47, %s8806_s13  ;;  %v8643_v49 = vunpack.i.l.bf16 %v8642_v6  ;;  %v19125_v47 = vld [vmem:[#allocation203_spill] sm:$0xff] }
 0x581   :  { %v5527_v46 = vsel %vm17798_vm8, %v8613_v7, %v8623_v36  ;;  %v5528_v59 = vsel %vm17798_vm8, %v8614_v34, %v8624_v30  ;;  %v5612_v28 = vpack.c.bf16 %v8624_v30, %v8623_v36  ;;  %v5468_v38 = vsel %vm17799_vm6, %v19125_v47, %v8644_v60 }
 0x582   :  { %v8627_v35 = vpop.permute.xlu1 %8626  ;;  %v5611_v11 = vpack.c.bf16 %v5528_v59, %v5527_v46  ;;  %v5467_v25 = vsel %vm17799_vm6, %v19124_v3, %v8643_v49 }
 0x583   :  { %v8629_v20 = vunpack.i.h.bf16 %v8627_v35  ;;  %v8628_v62 = vunpack.i.l.bf16 %v8627_v35  ;;  %v5616_v36 = vpack.c.bf16 %v5468_v38, %v5467_v25  ;;  %v19128_v38 = vld [vmem:[#allocation205_spill] sm:$0xff] }
 0x584   :  { %6077 = vmatprep.mubr.bf16.mxu1 %v5611_v11 }
 0x585   :  { %v14685_v40 = vsel %vm17798_vm8, %v4909_v22, %v8628_v62  ;;  %v14688_v37 = vsel %vm17798_vm8, %v4910_v13, %v8629_v20  ;;  %7390 = vmatmul.mubr.msk.bf16.gmra.mxu0 %vm19114_vm5, %v14493_v32  ;;  %6078 = vmatmul.mubr.bf16.gmra.mxu1 %v5610_v56  ;;  %vm19142_vm5 = vmmov %vm19054_vm0 }
 0x586   :  { %7393 = vmatprep.mubr.msk.bf16.mxu0 %vm19115_vm2, %v14519_v19  ;;  %v8720_v58 = vpack.i.bf16 %v14688_v37, %v14685_v40  ;;  %vm19145_vm2 = vmmov %vm19054_vm0 }
 0x588   :  { %8721 = vrot.lane.b32.xlu0 %v8720_v58, %s8808_s29  ;;  %8706 = vrot.lane.b32.xlu1 %v8720_v58, %s8806_s13 }
 0x58c   :  { %8731 = vrot.lane.b32.xlu0 %v14401_v43, %s8808_s29  ;;  %8716 = vrot.lane.b32.xlu1 %v14401_v43, %s8806_s13  ;;  %v8637_v32 = vpop.permute.xlu1 %8636  ;;  %v19118_v43 = vld [vmem:[#allocation94_spill] sm:$0xff]  ;;  %v8652_v30 = vpop.permute.xlu0 %8651 }
 0x58d   :  { %7394 = vmatmul.mubr.msk.bf16.gmra.mxu0 %vm19116_vm13, %v14533_v23  ;;  %v8639_v19 = vunpack.i.h.bf16 %v8637_v32  ;;  %v8638_v55 = vunpack.i.l.bf16 %v8637_v32  ;;  %v8654_v46 = vunpack.i.h.bf16 %v8652_v30  ;;  %v8653_v59 = vunpack.i.l.bf16 %v8652_v30 }
 0x58e   :  { %7397 = vmatprep.mubr.msk.bf16.mxu0 %vm19117_vm10, %v5603_v54  ;;  %v14719_v26 = vpop.f32.mrf.mxu1  ;;  %vm19151_vm10 = vmmov %vm19054_vm0 }
 0x58f   :  { %v5529_v8 = vsel %vm17798_vm8, %v8633_v45, %v8638_v55  ;;  %v5530_v50 = vsel %vm17798_vm8, %v8634_v39, %v8639_v19  ;;  %v5615_v7 = vpack.c.bf16 %v8639_v19, %v8638_v55  ;;  %v5469_v62 = vsel %vm17799_vm6, %v14318_v0, %v8653_v59 }
 0x590   :  { %8741 = vrot.lane.b32.xlu0 %v19118_v43, %s8806_s13  ;;  %8726 = vrot.lane.b32.xlu1 %v14445_v16, %s8806_s13  ;;  %v5614_v23 = vpack.c.bf16 %v5530_v50, %v5529_v8  ;;  %v5953_v31 = vpop.f32.mrf.mxu1  ;;  %v5470_v56 = vsel %vm17799_vm6, %v14315_v41, %v8654_v46 }
 0x591   :  { %v5619_v39 = vpack.c.bf16 %v5470_v56, %v5469_v62 }
 0x592   :  { %6085 = vmatprep.mubr.bf16.mxu1 %v5614_v23  ;;  %v14732_v63 = vpop.f32.mrf.mxu1 }
 0x593   :  { %6086 = vmatmul.mubr.bf16.gmra.mxu1 %v5613_v53 }
 0x594   :  { %8736 = vrot.lane.b32.xlu1 %v19119_v1, %s8806_s13  ;;  %v5956_v34 = vpop.f32.mrf.mxu1 }
 0x595   :  { %7398 = vmatmul.mubr.msk.bf16.gmra.mxu0 %vm19120_vm3, %v5606_v12 }
 0x596   :  { %7401 = vmatprep.mubr.msk.bf16.mxu0 %vm19121_vm12, %v5609_v17 }
 0x598   :  { %8746 = vrot.lane.b32.xlu1 %v14445_v16, %s8808_s29 }
 0x59c   :  { %v8647_v61 = vpop.permute.xlu1 %8646  ;;  %v8662_v19 = vpop.permute.xlu0 %8661 }
 0x59d   :  { %7402 = vmatmul.mubr.msk.bf16.gmra.mxu0 %vm19122_vm15, %v5612_v28  ;;  %v8649_v24 = vunpack.i.h.bf16 %v8647_v61  ;;  %v8648_v51 = vunpack.i.l.bf16 %v8647_v61  ;;  %v8664_v44 = vunpack.i.h.bf16 %v8662_v19  ;;  %v8663_v29 = vunpack.i.l.bf16 %v8662_v19 }
 0x59e   :  { %7405 = vmatprep.mubr.msk.bf16.mxu0 %vm19123_vm1, %v5615_v7 }
 0x59f   :  { %v5531_v4 = vsel %vm17798_vm8, %v8643_v49, %v8648_v51  ;;  %v5532_v16 = vsel %vm17798_vm8, %v8644_v60, %v8649_v24  ;;  %v5618_v18 = vpack.c.bf16 %v8649_v24, %v8648_v51  ;;  %v5471_v12 = vsel %vm17799_vm6, %v14347_v27, %v8663_v29 }
 0x5a0   :  { %v5617_v57 = vpack.c.bf16 %v5532_v16, %v5531_v4  ;;  %v5472_v31 = vsel %vm17799_vm6, %v14344_v10, %v8664_v44 }
 0x5a1   :  { %v5622_v7 = vpack.c.bf16 %v5472_v31, %v5471_v12 }
 0x5a2   :  { %6093 = vmatprep.mubr.bf16.mxu1 %v5617_v57 }
 0x5a3   :  { %6094 = vmatmul.mubr.bf16.gmra.mxu1 %v5616_v36 }
 0x5a5   :  { %7406 = vmatmul.mubr.msk.bf16.gmra.mxu0 %vm19126_vm11, %v5618_v18 }
 0x5a6   :  { %v8657_v35 = vpop.permute.xlu1 %8656  ;;  %v8672_v17 = vpop.permute.xlu0 %8671 }
 0x5a7   :  { %v8659_v11 = vunpack.i.h.bf16 %v8657_v35  ;;  %v8658_v20 = vunpack.i.l.bf16 %v8657_v35  ;;  %v8674_v61 = vunpack.i.h.bf16 %v8672_v17  ;;  %v8673_v24 = vunpack.i.l.bf16 %v8672_v17 }
 0x5a9   :  { %v5621_v13 = vpack.c.bf16 %v8659_v11, %v8658_v20  ;;  %v5533_v22 = vsel %vm17798_vm8, %v8653_v59, %v8658_v20  ;;  %v5534_v58 = vsel %vm17798_vm8, %v8654_v46, %v8659_v11  ;;  %v5473_v47 = vsel %vm17799_vm6, %v14386_v48, %v8673_v24 }
 0x5aa   :  { %v5620_v15 = vpack.c.bf16 %v5534_v58, %v5533_v22  ;;  %v5474_v4 = vsel %vm17799_vm6, %v19128_v38, %v8674_v61 }
 0x5ab   :  { %7409 = vmatprep.mubr.msk.bf16.mxu0 %vm19127_vm14, %v5621_v13  ;;  %v5625_v59 = vpack.c.bf16 %v5474_v4, %v5473_v47  ;;  %v19135_v4 = vld [vmem:[#allocation101_spill] sm:$0xff]  ;;  %vm19160_vm14 = vmmov %vm19054_vm0 }
 0x5ac   :  { %6101 = vmatprep.mubr.bf16.mxu1 %v5620_v15 }
 0x5ad   :  { %6102 = vmatmul.mubr.bf16.gmra.mxu1 %v5619_v39 }
 0x5b8   :  { %v14753_v45 = vpop.f32.mrf.mxu1 }
 0x5ba   :  { %v5961_v54 = vpop.f32.mrf.mxu1 }
 0x5bc   :  { %v14755_v32 = vpop.f32.mrf.mxu1 }
 0x5be   :  { %v5964_v0 = vpop.f32.mrf.mxu1 }
 0x5c0   :  { %v14757_v55 = vpop.f32.mrf.mxu1 }
 0x5c2   :  { %v5969_v41 = vpop.f32.mrf.mxu1 }
 0x5c4   :  { %v14759_v8 = vpop.f32.mrf.mxu1 }
 0x5c6   :  { %v8667_v50 = vpop.permute.xlu1 %8666  ;;  %v5972_v43 = vpop.f32.mrf.mxu1 }
 0x5c7   :  { %v8669_v23 = vunpack.i.h.bf16 %v8667_v50  ;;  %v8668_v53 = vunpack.i.l.bf16 %v8667_v50  ;;  %v8682_v15 = vpop.permute.xlu0 %8681  ;;  %v19130_v43 = vld [vmem:[#allocation131_spill] sm:$0xff] }
 0x5c8   :  { %v14765_v6 = vpop.f32.mrf.mxu1  ;;  %v8684_v54 = vunpack.i.h.bf16 %v8682_v15  ;;  %v8683_v0 = vunpack.i.l.bf16 %v8682_v15 }
 0x5c9   :  { %v5624_v1 = vpack.c.bf16 %v8669_v23, %v8668_v53  ;;  %v5535_v34 = vsel %vm17798_vm8, %v8663_v29, %v8668_v53  ;;  %v5536_v60 = vsel %vm17798_vm8, %v8664_v44, %v8669_v23  ;;  %v19131_v53 = vld [vmem:[#allocation204_spill] sm:$0xff] }
 0x5ca   :  { %v5623_v49 = vpack.c.bf16 %v5536_v60, %v5535_v34  ;;  %v5977_v28 = vpop.f32.mrf.mxu1  ;;  %v5475_v23 = vsel %vm17799_vm6, %v19130_v43, %v8683_v0  ;;  %v5476_v12 = vsel %vm17799_vm6, %v19131_v53, %v8684_v54 }
 0x5cb   :  { %7410 = vmatmul.mubr.msk.bf16.gmra.mxu0 %vm19054_vm0, %v5624_v1 }
 0x5cc   :  { %6109 = vmatprep.mubr.bf16.mxu1 %v5623_v49  ;;  %v14770_v27 = vpop.f32.mrf.mxu1 }
 0x5cd   :  { %6110 = vmatmul.mubr.bf16.gmra.mxu1 %v5622_v7  ;;  %v5628_v7 = vpack.c.bf16 %v5476_v12, %v5475_v23 }
 0x5ce   :  { %v8677_v10 = vpop.permute.xlu1 %8676  ;;  %v5980_v51 = vpop.f32.mrf.mxu1 }
 0x5cf   :  { %v8679_v3 = vunpack.i.h.bf16 %v8677_v10  ;;  %v8678_v25 = vunpack.i.l.bf16 %v8677_v10  ;;  %v8692_v31 = vpop.permute.xlu0 %8691 }
 0x5d0   :  { %v14776_v16 = vpop.f32.mrf.mxu1 }
 0x5d1   :  { %v5627_v57 = vpack.c.bf16 %v8679_v3, %v8678_v25  ;;  %v5537_v30 = vsel %vm17798_vm8, %v8673_v24, %v8678_v25  ;;  %v5538_v36 = vsel %vm17798_vm8, %v8674_v61, %v8679_v3  ;;  %v8694_v61 = vunpack.i.h.bf16 %v8692_v31 }
 0x5d2   :  { %v5626_v18 = vpack.c.bf16 %v5538_v36, %v5537_v30  ;;  %v5985_v46 = vpop.f32.mrf.mxu1  ;;  %v8693_v24 = vunpack.i.l.bf16 %v8692_v31  ;;  %v19136_v30 = vld [vmem:[#allocation134_spill] sm:$0xff] }
 0x5d3   :  { %7413 = vmatprep.mubr.msk.bf16.mxu0 %vm19129_vm4, %v5627_v57  ;;  %v5478_v36 = vsel %vm17799_vm6, %v19136_v30, %v8694_v61 }
 0x5d4   :  { %6117 = vmatprep.mubr.bf16.mxu1 %v5626_v18  ;;  %v14781_v35 = vpop.f32.mrf.mxu1  ;;  %v5477_v57 = vsel %vm17799_vm6, %v19135_v4, %v8693_v24 }
 0x5d5   :  { %6118 = vmatmul.mubr.bf16.gmra.mxu1 %v5625_v59 }
 0x5d6   :  { %v5988_v48 = vpop.f32.mrf.mxu1 }
 0x5d8   :  { %v14783_v11 = vpop.f32.mrf.mxu1 }
 0x5da   :  { %v5993_v20 = vpop.f32.mrf.mxu1 }
 0x5dc   :  { %v14785_v62 = vpop.f32.mrf.mxu1 }
 0x5de   :  { %v5996_v56 = vpop.f32.mrf.mxu1 }
 0x5e0   :  { %v14787_v13 = vpop.f32.mrf.mxu1 }
 0x5e2   :  { %v6001_v22 = vpop.f32.mrf.mxu1 }
 0x5e4   :  { %v14789_v58 = vpop.f32.mrf.mxu1 }
 0x5e6   :  { %v6004_v39 = vpop.f32.mrf.mxu1 }
 0x5e9   :  { %v14791_v19 = vpop.f32.mrf.mxu1 }
 0x5ea   :  { %v8687_v41 = vpop.permute.xlu1 %8686  ;;  %v8702_v51 = vpop.permute.xlu0 %8701 }
 0x5eb   :  { %v8689_v44 = vunpack.i.h.bf16 %v8687_v41  ;;  %v8688_v29 = vunpack.i.l.bf16 %v8687_v41  ;;  %v6009_v50 = vpop.f32.mrf.mxu1  ;;  %v8704_v22 = vunpack.i.h.bf16 %v8702_v51  ;;  %v8703_v15 = vunpack.i.l.bf16 %v8702_v51 }
 0x5ed   :  { %v5630_v17 = vpack.c.bf16 %v8689_v44, %v8688_v29  ;;  %v14797_v1 = vpop.f32.mrf.mxu1  ;;  %v5539_v34 = vsel %vm17798_vm8, %v8683_v0, %v8688_v29  ;;  %v5540_v60 = vsel %vm17798_vm8, %v8684_v54, %v8689_v44  ;;  %v5631_v54 = vpack.c.bf16 %v5478_v36, %v5477_v57 }
 0x5ee   :  { %19132 = vst [vmem:[#allocation119_spill] sm:$0xff] %v14797_v1  ;;  %v5629_v49 = vpack.c.bf16 %v5540_v60, %v5539_v34  ;;  %v5479_v23 = vsel %vm17799_vm6, %v14554_v5, %v8703_v15  ;;  %v5480_v53 = vsel %vm17799_vm6, %v14551_v2, %v8704_v22 }
 0x5ef   :  { %v6012_v28 = vpop.f32.mrf.mxu1  ;;  %7414 = vmatmul.mubr.msk.bf16.gmra.mxu0 %vm19133_vm9, %v5630_v17 }
 0x5f0   :  { %6125 = vmatprep.mubr.bf16.mxu1 %v5629_v49 }
 0x5f1   :  { %v14802_v10 = vpop.f32.mrf.mxu1  ;;  %6126 = vmatmul.mubr.bf16.gmra.mxu1 %v5628_v7  ;;  %v5634_v7 = vpack.c.bf16 %v5480_v53, %v5479_v23 }
 0x5f2   :  { %19134 = vst [vmem:[#allocation161_spill] sm:$0xff] %v14802_v10  ;;  %v8697_v3 = vpop.permute.xlu1 %8696  ;;  %v8712_v20 = vpop.permute.xlu0 %8711  ;;  %v19217_v10 = vmov 0 }
 0x5f3   :  { %v8699_v25 = vunpack.i.h.bf16 %v8697_v3  ;;  %v8698_v47 = vunpack.i.l.bf16 %v8697_v3  ;;  %v6017_v38 = vpop.f32.mrf.mxu1  ;;  %v8714_v51 = vunpack.i.h.bf16 %v8712_v20  ;;  %v8713_v3 = vunpack.i.l.bf16 %v8712_v20  ;;  %v19144_v20 = vld [vmem:[#allocation9_spill] sm:$0xff] }
 0x5f4   :  { %vm790_vm12 = vcmp.lt.s32.totalorder %v19144_v20, 10 }
 0x5f5   :  { %v5633_v18 = vpack.c.bf16 %v8699_v25, %v8698_v47  ;;  %v14808_v46 = vpop.f32.mrf.mxu1  ;;  %v5541_v59 = vsel %vm17798_vm8, %v8693_v24, %v8698_v47  ;;  %v5542_v48 = vsel %vm17798_vm8, %v8694_v61, %v8699_v25  ;;  %v19141_v61 = vld [vmem:[#allocation6_spill] sm:$0xff]  ;;  %v5481_v23 = vsel %vm17799_vm6, %v14585_v14, %v8713_v3 }
 0x5f6   :  { %19137 = vst [vmem:[#allocation174_spill] sm:$0xff] %v14808_v46  ;;  %v5632_v56 = vpack.c.bf16 %v5542_v48, %v5541_v59  ;;  %v86_v24 = vand.u32 15, %v19141_v61  ;;  %v5482_v53 = vsel %vm17799_vm6, %v14588_v9, %v8714_v51 }
 0x5f7   :  { %v6020_v39 = vpop.f32.mrf.mxu1  ;;  %7417 = vmatprep.mubr.msk.bf16.mxu0 %vm19138_vm7, %v5633_v18 }
 0x5f8   :  { %6133 = vmatprep.mubr.bf16.mxu1 %v5632_v56  ;;  %v470_v56 = vand.u32 1, %v19144_v20 }
 0x5f9   :  { %v14813_v0 = vpop.f32.mrf.mxu1  ;;  %6134 = vmatmul.mubr.bf16.gmra.mxu1 %v5631_v54 }
 0x5fa   :  { %19139 = vst [vmem:[#allocation202_spill] sm:$0xff] %v14813_v0  ;;  %v14815_v41 = vpop.permute.xlu0 %8721  ;;  %v8707_v44 = vpop.permute.xlu1 %8706  ;;  %vm14869_vm13 = vcmp.eq.s32.totalorder %v470_v56, 0 }
 0x5fb   :  { %v8709_v29 = vunpack.i.h.bf16 %v8707_v44  ;;  %v8708_v50 = vunpack.i.l.bf16 %v8707_v44  ;;  %v6025_v43 = vpop.f32.mrf.mxu1  ;;  %v8724_v39 = vunpack.i.h.bf16 %v14815_v41  ;;  %v8723_v54 = vunpack.i.l.bf16 %v14815_v41 }
 0x5fc   :  { %v14821_v31 = vpop.f32.mrf.mxu0 }
 0x5fd   :  { %v5636_v12 = vpack.c.bf16 %v8709_v29, %v8708_v50  ;;  %v14823_v17 = vpop.f32.mrf.mxu1  ;;  %v5543_v34 = vsel %vm17798_vm8, %v8703_v15, %v8708_v50  ;;  %v5544_v60 = vsel %vm17798_vm8, %v8704_v22, %v8709_v29  ;;  %v14838_v22 = vand.u32 1, %v86_v24  ;;  %v14843_v15 = vld [vmem:[%s17241_s3 + $0x3] ss:$0 sm:$0xff] }
 0x5fe   :  { %19140 = vst [vmem:[#allocation199_spill] sm:$0xff] %v14823_v17  ;;  %v8717_v49 = vpop.permute.xlu1 %8716  ;;  %v5635_v28 = vpack.c.bf16 %v5544_v60, %v5543_v34  ;;  %v5929_v2 = vpop.f32.mrf.mxu0  ;;  %v14861_v61 = vadd.f32 %v14843_v15, %v14719_v26  ;;  %v14865_v14 = vadd.f32 %v14843_v15, %v14732_v63  ;;  %v5637_v26 = vpack.c.bf16 %v5482_v53, %v5481_v23  ;;  %v19157_v53 = vld [vmem:[#allocation7_spill] sm:$0xff] }
 0x5ff   :  { %v6028_v5 = vpop.f32.mrf.mxu1  ;;  %v8719_v25 = vunpack.i.h.bf16 %v8717_v49  ;;  %v8718_v47 = vunpack.i.l.bf16 %v8717_v49  ;;  %7418 = vmatmul.mubr.msk.bf16.gmra.mxu0 %vm19142_vm5, %v5636_v12  ;;  %v14829_v38 = vpop.permute.xlu0 %8731  ;;  %v19146_v12 = vld [vmem:[#allocation10_spill] sm:$0xff]  ;;  %vm662_vm3 = vcmp.eq.s32.totalorder %v14838_v22, 0 }
 0x600   :  { %6141 = vmatprep.mubr.bf16.mxu1 %v5635_v28  ;;  %v14831_v57 = vpop.f32.mrf.mxu0  ;;  %v468_v34 = vand.u32 1, %v19146_v12 }
 0x601   :  { %v5639_v4 = vpack.c.bf16 %v8719_v25, %v8718_v47  ;;  %v14833_v30 = vpop.f32.mrf.mxu1  ;;  %6142 = vmatmul.mubr.bf16.gmra.mxu1 %v5634_v7  ;;  %v5545_v36 = vsel %vm17798_vm8, %v8713_v3, %v8718_v47  ;;  %v5546_v18 = vsel %vm17798_vm8, %v8714_v51, %v8719_v25  ;;  %v19150_v3 = vld [vmem:[#allocation5_spill] sm:$0xff] }
 0x602   :  { %19143 = vst [vmem:[#allocation103_spill] sm:$0xff] %v14833_v30  ;;  %v8727_v59 = vpop.permute.xlu1 %8726  ;;  %v5638_v48 = vpack.c.bf16 %v5546_v18, %v5545_v36  ;;  %v5932_v43 = vpop.f32.mrf.mxu0  ;;  %v84_v5 = vand.u32 15, %v19150_v3  ;;  %vm14877_vm15 = vcmp.eq.s32.totalorder %v468_v34, 0  ;;  %v19154_v18 = vld [vmem:[#allocation15_spill] sm:$0xff]  ;;  %v19174_v30 = vld [vmem:[#allocation18_spill] sm:$0xff]  ;;  %v19188_v51 = vld [vmem:[#allocation13_spill] sm:$0xff] }
 0x603   :  { %v6033_v44 = vpop.f32.mrf.mxu1  ;;  %v8729_v29 = vunpack.i.h.bf16 %v8727_v59  ;;  %v8728_v50 = vunpack.i.l.bf16 %v8727_v59  ;;  %7421 = vmatprep.mubr.msk.bf16.mxu0 %vm19145_vm2, %v5639_v4  ;;  %v14867_v9 = vpop.permute.xlu0 %8741  ;;  %v471_v59 = vand.u32 1, %v19154_v18  ;;  %vm791_vm11 = vcmp.lt.s32.totalorder %v19154_v18, 10  ;;  %vm19175_vm2 = vmmov %vm19054_vm0  ;;  %v19196_v18 = vld [vmem:[#allocation17_spill] sm:$0xff] }
 0x604   :  { %6149 = vmatprep.mubr.bf16.mxu1 %v5638_v48  ;;  %v14853_v49 = vpop.f32.mrf.mxu0  ;;  %v19155_v48 = vld [vmem:[#allocation16_spill] sm:$0xff]  ;;  %v596_v34 = vand.u32 1, %v84_v5  ;;  %v8733_v44 = vunpack.i.l.bf16 %v14829_v38  ;;  %v19189_v36 = vmov 0 }
 0x605   :  { %v5642_v60 = vpack.c.bf16 %v8729_v29, %v8728_v50  ;;  %v14855_v28 = vpop.f32.mrf.mxu1  ;;  %v5547_v41 = vsel %vm17798_vm8, %v8723_v54, %v8728_v50  ;;  %v5548_v7 = vsel %vm17798_vm8, %v8724_v39, %v8729_v29  ;;  %v599_v56 = vand.u32 1, %v19155_v48 }
 0x606   :  { %19147 = vst [vmem:[#allocation91_spill] sm:$0xff] %v14855_v28  ;;  %v8737_v24 = vpop.permute.xlu1 %8736  ;;  %v5937_v4 = vpop.f32.mrf.mxu0  ;;  %v5641_v63 = vpack.c.bf16 %v5548_v7, %v5547_v41  ;;  %v19158_v41 = vld [vmem:[#allocation8_spill] sm:$0xff]  ;;  %vm14903_vm4 = vcmp.eq.s32.totalorder %v471_v59, 0  ;;  %v19212_v59 = vunpack.i.h.bf16 %v14867_v9 }
 0x607   :  { %v6036_v25 = vpop.f32.mrf.mxu1  ;;  %v8739_v47 = vunpack.i.h.bf16 %v8737_v24  ;;  %v8738_v2 = vunpack.i.l.bf16 %v8737_v24  ;;  %7422 = vmatmul.mubr.msk.bf16.gmra.mxu0 %vm19151_vm10, %v5642_v60  ;;  %v469_v60 = vand.u32 1, %v19157_v53  ;;  %v597_v7 = vand.u32 1, %v19158_v41  ;;  %v19159_v24 = vld [vmem:[#allocation14_spill] sm:$0xff]  ;;  %vm14940_vm10 = vmand %vm14869_vm13, %vm662_vm3 }
 0x608   :  { %v14885_v43 = vpop.f32.mrf.mxu0  ;;  %v90_v25 = vand.u32 15, %v19159_v24  ;;  %v8734_v4 = vunpack.i.h.bf16 %v14829_v38  ;;  %vm14907_vm9 = vcmp.eq.s32.totalorder %v599_v56, 0  ;;  %v19173_v56 = vld [vmem:[#allocation20_spill] sm:$0xff] }
 0x609   :  { %v5645_v50 = vpack.c.bf16 %v8739_v47, %v8738_v2  ;;  %v14887_v23 = vpop.f32.mrf.mxu1  ;;  %6150 = vmatmul.mubr.bf16.gmra.mxu1 %v5637_v26  ;;  %v19161_v26 = vld [vmem:[#allocation11_spill] sm:$0xff]  ;;  %vm14921_vm7 = vcmp.eq.s32.totalorder %v469_v60, 0  ;;  %vm14927_vm5 = vcmp.eq.s32.totalorder %v597_v7, 0  ;;  %v19260_v60 = vld [vmem:[#allocation32_spill] sm:$0xff] }
 0x60a   :  { %19156 = vst [vmem:[#allocation108_spill] sm:$0xff] %v14887_v23  ;;  %6157 = vmatprep.mubr.bf16.mxu1 %v5641_v63  ;;  %v5940_v3 = vpop.f32.mrf.mxu0  ;;  %v88_v5 = vand.u32 15, %v19161_v26  ;;  %v5483_v63 = vsel %vm17799_vm6, %v14625_v52, %v8723_v54  ;;  %v5484_v23 = vsel %vm17799_vm6, %v14628_v33, %v8724_v39  ;;  %v5549_v52 = vsel %vm17798_vm8, %v8733_v44, %v8738_v2  ;;  %v14925_v54 = vpop.permute.xlu1 %8746 }
 0x60b   :  { %v6041_v29 = vpop.f32.mrf.mxu1  ;;  %7425 = vmatprep.mubr.msk.bf16.mxu0 %vm19160_vm14, %v5645_v50  ;;  %v19166_v3 = vunpack.i.l.bf16 %v14867_v9  ;;  %v5550_v33 = vsel %vm17798_vm8, %v8734_v4, %v8739_v47  ;;  %v5640_v47 = vpack.c.bf16 %v5484_v23, %v5483_v63  ;;  %vm660_vm14 = vcmp.eq.s32.totalorder %v596_v34, 0 }
 0x60c   :  { %v19167_v29 = vunpack.i.h.bf16 %v14867_v9  ;;  %v14915_v26 = vpop.f32.mrf.mxu0  ;;  %v14944_v7 = vand.u32 1, %v88_v5  ;;  %v5644_v46 = vpack.c.bf16 %v5550_v33, %v5549_v52  ;;  %v17800_v23 = vunpack.i.l.bf16 %v14925_v54  ;;  %vm14969_vm8 = vmand %vm14877_vm15, %vm660_vm14 }
 0x60d   :  { %v14917_v28 = vpop.f32.mrf.mxu1  ;;  %vm14987_vm15 = vmand %vm14940_vm10, %vm790_vm12  ;;  %vm19197_vm10 = vcmask 785408  }
 0x60e   :  { %v5648_v50 = vpack.c.bf16 %v19167_v29, %v19166_v3  ;;  %19168 = vst [vmem:[#allocation109_spill] sm:$0xff] %v14917_v28  ;;  %v474_v3 = vand.u32 1, %v19173_v56  ;;  %v14932_v29 = vand.u32 1, %v90_v25  ;;  %v472_v28 = vand.u32 1, %v19174_v30  ;;  %v5945_v17 = vpop.f32.mrf.mxu0  ;;  %v19178_v25 = vld [vmem:[#allocation23_spill] sm:$0xff] }
 0x60f   :  { %v6044_v2 = vpop.f32.mrf.mxu1  ;;  %v475_v0 = vand.u32 1, %v19178_v25  ;;  %v19179_v17 = vld [vmem:[#allocation21_spill] sm:$0xff]  ;;  %v19190_v36 = vsel %vm14987_vm15, 4294967295, %v19189_v36  ;;  %v5485_v24 = vsel %vm19197_vm10, %v14657_v42, %v8733_v44 }
 0x610   :  { %7426 = vmatmul.mubr.msk.bf16.gmra.mxu0 %vm19175_vm2, %v5648_v50  ;;  %vm727_vm2 = vmand %vm14903_vm4, %vm14907_vm9  ;;  %v603_v22 = vand.u32 1, %v19179_v17  ;;  %v14956_v5 = vpop.f32.mrf.mxu0  ;;  %v19181_v50 = vld [vmem:[#allocation24_spill] sm:$0xff]  ;;  %vm14973_vm1 = vcmp.eq.s32.totalorder %v474_v3, 0  ;;  %vm14978_vm6 = vcmp.eq.s32.totalorder %v472_v28, 0  ;;  %19191 = vst [vmem:[#allocation125_spill] sm:$0xff] %v19190_v36  ;;  %v601_v3 = vand.u32 1, %v19196_v18 }
 0x611   :  { %v14958_v63 = vpop.f32.mrf.mxu1  ;;  %6158 = vmatmul.mubr.bf16.gmra.mxu1 %v5640_v47  ;;  %v94_v52 = vand.u32 15, %v19181_v50  ;;  %v473_v50 = vand.u32 1, %v19188_v51  ;;  %vm14998_vm14 = vmand %vm727_vm2, %vm791_vm11  ;;  %vm15004_vm13 = vcmp.eq.s32.totalorder %v475_v0, 0  ;;  %vm19199_vm4 = vcmp.lt.s32.totalorder %v19157_v53, 10 }
 0x612   :  { %19180 = vst [vmem:[#allocation137_spill] sm:$0xff] %v14958_v63  ;;  %6165 = vmatprep.mubr.bf16.mxu1 %v5644_v46  ;;  %v5948_v46 = vpop.f32.mrf.mxu0  ;;  %vm19198_vm11 = vmmov %vm19197_vm10  ;;  %vm15025_vm0 = vcmp.eq.s32.totalorder %v603_v22, 0  ;;  %vm19207_vm10 = vcmp.lt.s32.totalorder %v19146_v12, 10  ;;  %v19208_v53 = vmov 0  ;;  %v19213_v22 = vunpack.i.h.bf16 %v14925_v54  ;;  %v19215_v12 = vld [vmem:[#allocation19_spill] sm:$0xff] }
 0x613   :  { %v6049_v34 = vpop.f32.mrf.mxu1  ;;  %v5486_v38 = vsel %vm19198_vm11, %v14660_v21, %v8734_v4  ;;  %vm19200_vm9 = vmand %vm14921_vm7, %vm14927_vm5  ;;  %v19205_v46 = vld [vmem:[#allocation26_spill] sm:$0xff]  ;;  %v19210_v4 = vunpack.i.l.bf16 %v14867_v9  ;;  %vm19211_vm7 = vcmask 523264   ;;  %v92_v33 = vand.u32 15, %v19215_v12 }
 0x614   :  { %vm15021_vm2 = vmand %vm19200_vm9, %vm19199_vm4  ;;  %v478_v42 = vand.u32 1, %v19205_v46  ;;  %v5928_v63 = vadd.f32 %v14843_v15, %v14821_v31  ;;  %v5643_v12 = vpack.c.bf16 %v5486_v38, %v5485_v24  ;;  %v19223_v31 = vmov 0 }
 0x615   :  { %v15030_v44 = vpop.f32.mrf.mxu1  ;;  %v7367_v21 = vpop.f32.mrf.mxu0  ;;  %vm15036_vm11 = vmand %vm14969_vm8, %vm19207_vm10  ;;  %v5551_v39 = vsel %vm19211_vm7, %v17800_v23, %v19210_v4  ;;  %vm19216_vm8 = vcmp.lt.s32.totalorder %v19155_v48, 10  ;;  %vm15064_vm10 = vcmp.eq.s32.totalorder %v473_v50, 0  ;;  %v19227_v50 = vld [vmem:[#allocation30_spill] sm:$0xff]  ;;  %v19228_v23 = vld [vmem:[#allocation29_spill] sm:$0xff]  ;;  %v5931_v2 = vadd.f32 %v14843_v15, %v14831_v57 }
 0x616   :  { %19206 = vst [vmem:[#allocation148_spill] sm:$0xff] %v15030_v44  ;;  %v19209_v53 = vsel %vm15036_vm11, 4294967295, %v19208_v53  ;;  %vm19214_vm5 = vmmov %vm19211_vm7  ;;  %v15050_v44 = vand.u32 1, %v94_v52  ;;  %v19221_v52 = vld [vmem:[#allocation27_spill] sm:$0xff]  ;;  %vm19222_vm7 = vcmp.lt.s32.totalorder %v19158_v41, 10  ;;  %v479_v28 = vand.u32 1, %v19227_v50 }
 0x617   :  { %v5552_v34 = vsel %vm19214_vm5, %v19213_v22, %v19212_v59  ;;  %vm15059_vm4 = vmand %vm14998_vm14, %vm19216_vm8  ;;  %v476_v4 = vand.u32 1, %v19221_v52  ;;  %v6052_v59 = vpop.f32.mrf.mxu1  ;;  %v6216_v22 = vpop.f32.mrf.mxu0  ;;  %vm15077_vm14 = vcmp.eq.s32.totalorder %v601_v3, 0  ;;  %v607_v1 = vand.u32 1, %v19228_v23 }
 0x618   :  { %v19218_v10 = vsel %vm15059_vm4, 4294967295, %v19217_v10  ;;  %vm15073_vm5 = vmand %vm15021_vm2, %vm19222_vm7  ;;  %v5936_v59 = vadd.f32 %v14843_v15, %v14853_v49  ;;  %v15085_v24 = vadd.f32 %v6216_v22, %v5928_v63  ;;  %v5647_v41 = vpack.c.bf16 %v5552_v34, %v5551_v39 }
 0x619   :  { %v19224_v31 = vsel %vm15073_vm5, 4294967295, %v19223_v31  ;;  %vm19229_vm8 = vcmp.eq.s32.totalorder %v14932_v29, 0  ;;  %v7368_v3 = vpop.f32.mrf.mxu0  ;;  %6166 = vmatmul.mubr.bf16.gmra.mxu1 %v5643_v12  ;;  %vm15101_vm3 = vcmp.eq.s32.totalorder %v478_v42, 0  ;;  %v19232_v49 = vmov 0  ;;  %v15106_v63 = vpop.f32.mrf.mxu1 }
 0x61a   :  { %vm15091_vm2 = vmand %vm14973_vm1, %vm19229_vm8  ;;  %v19233_v49 = vsel %vm15101_vm3, 4294967295, %v19232_v49  ;;  %v604_v29 = vand.u32 1, %v92_v33  ;;  %v5939_v0 = vadd.f32 %v14843_v15, %v14885_v43  ;;  %v15112_v39 = vadd.f32 %v7367_v21, %v5936_v59  ;;  %6173 = vmatprep.mubr.bf16.mxu1 %v5647_v41  ;;  %v19270_v33 = vld [vmem:[#allocation28_spill] sm:$0xff] }
 0x61b   :  { %vm15118_vm12 = vcmp.eq.s32.totalorder %v476_v4, 0  ;;  %v19234_v42 = vmov 0  ;;  %v19236_v34 = vunpack.i.h.bf16 %v14925_v54  ;;  %vm19237_vm7 = vcmask 785408   ;;  %v6219_v43 = vpop.f32.mrf.mxu0  ;;  %v6057_v12 = vpop.f32.mrf.mxu1 }
 0x61c   :  { %v19235_v42 = vsel %vm15118_vm12, 4294967295, %v19234_v42  ;;  %vm19238_vm9 = vcmp.lt.s32.totalorder %v19173_v56, 10  ;;  %v19239_v21 = vmov 0  ;;  %vm19241_vm8 = vcmp.eq.s32.totalorder %v14944_v7, 0  ;;  %v19248_v56 = vld [vmem:[#allocation25_spill] sm:$0xff] }
 0x61d   :  { %v5488_v57 = vsel %vm19237_vm7, %v14688_v37, %v19236_v34  ;;  %vm15131_vm3 = vmand %vm15091_vm2, %vm19238_vm9  ;;  %vm15143_vm1 = vcmp.eq.s32.totalorder %v479_v28, 0  ;;  %vm15147_vm7 = vcmp.eq.s32.totalorder %v607_v1, 0  ;;  %v19246_v37 = vmov 0 }
 0x61e   :  { %v19240_v21 = vsel %vm15131_vm3, 4294967295, %v19239_v21  ;;  %vm15139_vm12 = vmand %vm14978_vm6, %vm19241_vm8  ;;  %v19247_v37 = vsel %vm15147_vm7, 4294967295, %v19246_v37  ;;  %v477_v22 = vand.u32 1, %v19248_v56  ;;  %v19249_v7 = vunpack.i.l.bf16 %v14925_v54  ;;  %v19274_v54 = vld [vmem:[#allocation33_spill] sm:$0xff] }
 0x61f   :  { %vm19250_vm6 = vcmask 785408   ;;  %v6471_v28 = vsel %vm15036_vm11, %v15085_v24, 0.0  ;;  %v15160_v59 = vadd.f32 %v7368_v3, %v5939_v0  ;;  %v15162_v1 = vadd.f32 %v6219_v43, %v5931_v2  ;;  %vm19252_vm8 = vmand %vm15004_vm13, %vm15025_vm0  ;;  %v15190_v3 = vpop.f32.mrf.mxu1  ;;  %v19264_v0 = vld [vmem:[#allocation35_spill] sm:$0xff] }
 0x620   :  { %v5487_v47 = vsel %vm19250_vm6, %v14685_v40, %v19249_v7  ;;  %vm19251_vm2 = vcmp.lt.s32.totalorder %v19178_v25, 10  ;;  %v7371_v40 = vpop.f32.mrf.mxu0  ;;  %vm19255_vm6 = vcmp.lt.s32.totalorder %v19188_v51, 10  ;;  %vm19256_vm11 = vmand %vm15064_vm10, %vm15077_vm14  ;;  %vm668_vm7 = vcmp.eq.s32.totalorder %v604_v29, 0  ;;  %v19259_v25 = vld [vmem:[#allocation22_spill] sm:$0xff] }
 0x621   :  { %vm15171_vm9 = vmand %vm19252_vm8, %vm19251_vm2  ;;  %v605_v20 = vand.u32 1, %v19259_v25  ;;  %v98_v38 = vand.u32 15, %v19260_v60  ;;  %v5944_v51 = vadd.f32 %v14843_v15, %v14915_v26  ;;  %v6473_v9 = vsel %vm14987_vm15, %v15112_v39, 0.0  ;;  %v6060_v36 = vpop.f32.mrf.mxu1 }
 0x622   :  { %vm15182_vm3 = vmand %vm19256_vm11, %vm19255_vm6  ;;  %v6472_v48 = vsel %vm15073_vm5, %v15162_v1, 0.0  ;;  %vm19261_vm13 = vcmp.lt.s32.totalorder %v19174_v30, 10  ;;  %v19262_v2 = vmov 0  ;;  %v482_v26 = vand.u32 1, %v19264_v0  ;;  %v6232_v7 = vpop.f32.mrf.mxu0 }
 0x623   :  { %vm15204_vm11 = vmand %vm15139_vm12, %vm19261_vm13  ;;  %v5646_v34 = vpack.c.bf16 %v5488_v57, %v5487_v47  ;;  %vm19265_vm14 = vcmask 261120   ;;  %vm19267_vm8 = vcmp.lt.s32.totalorder %v19179_v17, 10  ;;  %v96_v60 = vand.u32 15, %v19270_v33 }
 0x624   :  { %v19263_v2 = vsel %vm15204_vm11, 4294967295, %v19262_v2  ;;  %v6535_v43 = vsel %vm19265_vm14, %v6471_v28, 0.0  ;;  %vm19266_vm2 = vmmov %vm19265_vm14  ;;  %v6474_v57 = vsel %vm15059_vm4, %v15160_v59, 0.0  ;;  %v15224_v28 = vadd.f32 %v6232_v7, %v5944_v51  ;;  %v7372_v36 = vpop.f32.mrf.mxu0 }
 0x625   :  { %v6536_v12 = vsel %vm19266_vm2, %v6472_v48, 0.0  ;;  %vm15216_vm6 = vmand %vm15171_vm9, %vm19267_vm8  ;;  %vm19271_vm12 = vcmp.lt.s32.totalorder %v19196_v18, 10  ;;  %v19272_v17 = vmov 0  ;;  %v480_v48 = vand.u32 1, %v19274_v54  ;;  %6174 = vmatmul.mubr.bf16.gmra.mxu1 %v5646_v34 }
 0x626   :  { %v6537_v47 = vadd.f32 %v6536_v12, %v6535_v43  ;;  %vm15230_vm13 = vmand %vm15182_vm3, %vm19271_vm12  ;;  %vm19276_vm14 = vcmp.eq.s32.totalorder %v15050_v44, 0  ;;  %vm15244_vm10 = vcmp.eq.s32.totalorder %v477_v22, 0  ;;  %vm15248_vm3 = vcmp.eq.s32.totalorder %v605_v20, 0  ;;  %v6235_v20 = vpop.f32.mrf.mxu0 }
 0x627   :  { %v19273_v17 = vsel %vm15230_vm13, 4294967295, %v19272_v17  ;;  %vm19275_vm9 = vmmov %vm19266_vm2  ;;  %vm19277_vm2 = vnez %v19233_v49  ;;  %v610_v43 = vand.u32 1, %v98_v38  ;;  %v15255_v44 = vadd.f32 %v7371_v40, %v14861_v61 }
 0x628   :  { %v6538_v33 = vsel %vm19275_vm9, %v6473_v9, 0.0  ;;  %vm15240_vm8 = vmand %vm19277_vm2, %vm19276_vm14  ;;  %v5947_v9 = vadd.f32 %v14843_v15, %v14956_v5  ;;  %v6475_v49 = vsel %vm15204_vm11, %v15224_v28, 0.0  ;;  %vm19284_vm12 = vnez %v19235_v42  ;;  %v7375_v12 = vpop.f32.mrf.mxu0 }
 0x629   :  { %v6539_v34 = vadd.f32 %v6538_v33, %v6537_v47  ;;  %vm732_vm9 = vmand %vm19284_vm12, %vm668_vm7  ;;  %vm19285_vm14 = vcmask 261120   ;;  %vm19286_vm2 = vnez %v19247_v37  ;;  %vm15269_vm15 = vcmp.eq.s32.totalorder %v482_v26, 0  ;;  %v19305_v37 = vld [vmem:[#allocation36_spill] sm:$0xff] }
 0x62a   :  { %v6540_v22 = vsel %vm19285_vm14, %v6474_v57, 0.0  ;;  %v19287_v61 = vmov 0  ;;  %v608_v5 = vand.u32 1, %v96_v60  ;;  %v15274_v29 = vadd.f32 %v7372_v36, %v14865_v14  ;;  %v19294_v14 = vld [vmem:[#allocation12_spill] sm:$0xff]  ;;  %v19295_v57 = vld [vmem:[#allocation31_spill] sm:$0xff] }
 0x62b   :  { %v19288_v61 = vsel %vm15269_vm15, 4294967295, %v19287_v61  ;;  %v6541_v40 = vadd.f32 %v6540_v22, %v6539_v34  ;;  %v15276_v42 = vadd.f32 %v6235_v20, %v5947_v9  ;;  %vm15282_vm12 = vcmp.eq.s32.totalorder %v480_v48, 0 }
 0x62c   :  { %v6542_v26 = vsel %vm19285_vm14, %v6475_v49, 0.0  ;;  %vm19291_vm4 = vcmp.lt.s32.totalorder %v19221_v52, 10  ;;  %v19292_v7 = vmov 0  ;;  %v481_v60 = vand.u32 1, %v19294_v14 }
 0x62d   :  { %vm15289_vm0 = vmand %vm732_vm9, %vm19291_vm4  ;;  %v609_v47 = vand.u32 1, %v19295_v57  ;;  %v5960_v48 = vadd.f32 %v14843_v15, %v14753_v45  ;;  %vm19296_vm7 = vnez %v19240_v21  ;;  %v6543_v36 = vadd.f32 %v6542_v26, %v6541_v40  ;;  %v6248_v45 = vpop.f32.mrf.mxu0 }
 0x62e   :  { %v19293_v7 = vsel %vm15289_vm0, 4294967295, %v19292_v7  ;;  %v6477_v33 = vsel %vm19296_vm7, %v15255_v44, 0.0  ;;  %v6476_v52 = vsel %vm15230_vm13, %v15276_v42, 0.0  ;;  %vm19297_vm4 = vcmp.lt.s32.totalorder %v19227_v50, 10  ;;  %vm19298_vm9 = vmand %vm15143_vm1, %vm19286_vm2  ;;  %v19304_v50 = vld [vmem:[#allocation37_spill] sm:$0xff] }
 0x62f   :  { %vm863_vm14 = vmand %vm19298_vm9, %vm19297_vm4  ;;  %vm19299_vm11 = vcmask 261120   ;;  %vm19300_vm5 = vcmp.lt.s32.totalorder %v19248_v56, 10  ;;  %vm672_vm13 = vcmp.eq.s32.totalorder %v608_v5, 0  ;;  %v483_v4 = vand.u32 1, %v19304_v50 }
 0x630   :  { %v6544_v9 = vsel %vm19299_vm11, %v6476_v52, 0.0  ;;  %vm19301_vm7 = vmand %vm15244_vm10, %vm15248_vm3  ;;  %v611_v49 = vand.u32 1, %v19305_v37  ;;  %v5968_v22 = vadd.f32 %v14843_v15, %v14757_v55  ;;  %v6478_v56 = vsel %vm15216_vm6, %v15274_v29, 0.0 }
 0x631   :  { %vm15318_vm15 = vmand %vm19301_vm7, %vm19300_vm5  ;;  %v6545_v18 = vadd.f32 %v6544_v9, %v6543_v36  ;;  %vm19306_vm1 = vcmp.lt.s32.totalorder %v19205_v46, 10  ;;  %v19307_v41 = vmov 0  ;;  %v15337_v20 = vadd.f32 %v6248_v45, %v5960_v48  ;;  %v7376_v46 = vpop.f32.mrf.mxu0 }
 0x632   :  { %vm15333_vm5 = vmand %vm15240_vm8, %vm19306_vm1  ;;  %v5963_v40 = vadd.f32 %v14843_v15, %v14755_v32  ;;  %v6546_v55 = vsel %vm19299_vm11, %v6477_v33, 0.0  ;;  %vm19310_vm10 = vcmp.lt.s32.totalorder %v19228_v23, 10  ;;  %v19311_v26 = vmov 0 }
 0x633   :  { %v19308_v41 = vsel %vm15333_vm5, 4294967295, %v19307_v41  ;;  %vm15344_vm3 = vmand %vm863_vm14, %vm19310_vm10  ;;  %vm15348_vm2 = vcmp.eq.s32.totalorder %v481_v60, 0  ;;  %vm15352_vm8 = vcmp.eq.s32.totalorder %v609_v47, 0  ;;  %v5971_v32 = vadd.f32 %v14843_v15, %v14759_v8  ;;  %v6251_v52 = vpop.f32.mrf.mxu0 }
 0x634   :  { %19309 = vst [vmem:[#allocation144_spill] sm:$0xff] %v19308_v41  ;;  %v19312_v26 = vsel %vm15344_vm3, 4294967295, %v19311_v26  ;;  %v6547_v48 = vadd.f32 %v6546_v55, %v6545_v18  ;;  %v15358_v33 = vadd.f32 %v7375_v12, %v5968_v22  ;;  %v6479_v23 = vsel %vm15289_vm0, %v15337_v20, 0.0  ;;  %vm19322_vm9 = vmmov %vm19299_vm11 }
 0x635   :  { %19313 = vst [vmem:[#allocation165_spill] sm:$0xff] %v19312_v26  ;;  %vm19318_vm7 = vcmp.lt.s32.totalorder %v19259_v25, 10  ;;  %v19319_v60 = vmov 0  ;;  %v6548_v47 = vsel %vm19322_vm9, %v6478_v56, 0.0  ;;  %vm15376_vm1 = vmand %vm15282_vm12, %vm672_vm13  ;;  %vm15381_vm10 = vcmp.eq.s32.totalorder %v483_v4, 0  ;;  %v7379_v4 = vpop.f32.mrf.mxu0 }
 0x636   :  { %vm15367_vm4 = vmand %vm15318_vm15, %vm19318_vm7  ;;  %v6549_v12 = vadd.f32 %v6548_v47, %v6547_v48  ;;  %v15385_v9 = vadd.f32 %v7376_v46, %v5971_v32  ;;  %v15387_v45 = vadd.f32 %v6251_v52, %v5963_v40  ;;  %vm19327_vm15 = vcmp.eq.s32.totalorder %v610_v43, 0  ;;  %v19334_v43 = vld [vmem:[#allocation34_spill] sm:$0xff]  ;;  %v19340_v46 = vld [vmem:[#allocation39_spill] sm:$0xff] }
 0x637   :  { %v19320_v60 = vsel %vm15367_vm4, 4294967295, %v19319_v60  ;;  %vm19328_vm7 = vnez %v19288_v61  ;;  %vm15396_vm13 = vcmp.eq.s32.totalorder %v611_v49, 0  ;;  %vm19333_vm12 = vmmov %vm19299_vm11  ;;  %vm801_vm0 = vcmp.lt.s32.totalorder %v19294_v14, 10  ;;  %v19341_v48 = vld [vmem:[#allocation38_spill] sm:$0xff] }
 0x638   :  { %19321 = vst [vmem:[#allocation95_spill] sm:$0xff] %v19320_v60  ;;  %vm15392_vm9 = vmand %vm19328_vm7, %vm19327_vm15  ;;  %v6550_v34 = vsel %vm19333_vm12, %v6479_v23, 0.0  ;;  %v100_v61 = vand.u32 15, %v19334_v43  ;;  %v5976_v49 = vadd.f32 %v14843_v15, %v14765_v6  ;;  %v6481_v22 = vsel %vm15333_vm5, %v15358_v33, 0.0  ;;  %v6264_v6 = vpop.f32.mrf.mxu0  ;;  %v19348_v43 = vld [vmem:[#allocation41_spill] sm:$0xff] }
 0x639   :  { %v6551_v56 = vadd.f32 %v6550_v34, %v6549_v12  ;;  %v6480_v18 = vsel %vm15367_vm4, %v15387_v45, 0.0  ;;  %vm19335_vm15 = vcmp.lt.s32.totalorder %v19274_v54, 10  ;;  %v19336_v40 = vmov 0  ;;  %vm19339_vm12 = vmmov %vm19299_vm11 }
 0x63a   :  { %vm15420_vm7 = vmand %vm15376_vm1, %vm19335_vm15  ;;  %v6552_v55 = vsel %vm19339_vm12, %v6480_v18, 0.0  ;;  %v485_v32 = vand.u32 1, %v19340_v46  ;;  %v613_v54 = vand.u32 1, %v19341_v48  ;;  %v5984_v23 = vadd.f32 %v14843_v15, %v14776_v16  ;;  %v7380_v34 = vpop.f32.mrf.mxu0 }
 0x63b   :  { %v19337_v40 = vsel %vm15420_vm7, 4294967295, %v19336_v40  ;;  %v6482_v47 = vsel %vm15344_vm3, %v15385_v9, 0.0  ;;  %v6553_v52 = vadd.f32 %v6552_v55, %v6551_v56  ;;  %v15437_v8 = vadd.f32 %v6264_v6, %v5976_v49  ;;  %vm19342_vm1 = vmand %vm15348_vm2, %vm15352_vm8 }
 0x63c   :  { %19338 = vst [vmem:[#allocation176_spill] sm:$0xff] %v19337_v40  ;;  %vm865_vm15 = vmand %vm19342_vm1, %vm801_vm0  ;;  %v19345_v16 = vmov 0  ;;  %v484_v49 = vand.u32 1, %v19348_v43  ;;  %v612_v14 = vand.u32 1, %v100_v61  ;;  %v5979_v51 = vadd.f32 %v14843_v15, %v14770_v27  ;;  %v19359_v61 = vld [vmem:[#allocation40_spill] sm:$0xff] }
 0x63d   :  { %vm19343_vm12 = vmmov %vm19299_vm11  ;;  %vm19344_vm11 = vcmp.lt.s32.totalorder %v19264_v0, 10  ;;  %v15458_v56 = vadd.f32 %v7379_v4, %v5984_v23  ;;  %v6483_v0 = vsel %vm15420_vm7, %v15437_v8, 0.0  ;;  %vm19350_vm0 = vcmp.lt.s32.totalorder %v19304_v50, 10  ;;  %v6267_v50 = vpop.f32.mrf.mxu0 }
 0x63e   :  { %v6554_v12 = vsel %vm19343_vm12, %v6481_v22, 0.0  ;;  %vm15451_vm14 = vmand %vm15392_vm9, %vm19344_vm11  ;;  %vm931_vm9 = vcmp.lt.s32.totalorder %v19305_v37, 10  ;;  %vm19355_vm1 = vcmp.lt.s32.totalorder %v19295_v57, 10  ;;  %v19356_v4 = vmov 0 }
 0x63f   :  { %v19346_v16 = vsel %vm15451_vm14, 4294967295, %v19345_v16  ;;  %v6555_v36 = vadd.f32 %v6554_v12, %v6553_v52  ;;  %19349 = vst [vmem:[#allocation82_spill] sm:$0xff] %v15458_v56  ;;  %vm19351_vm2 = vmand %vm15381_vm10, %vm15396_vm13  ;;  %v102_v25 = vand.u32 15, %v19359_v61  ;;  %vm15483_vm7 = vcmp.eq.s32.totalorder %v485_v32, 0  ;;  %v7383_v23 = vpop.f32.mrf.mxu0 }
 0x640   :  { %19347 = vst [vmem:[#allocation198_spill] sm:$0xff] %v19346_v16  ;;  %vm15470_vm8 = vmand %vm19351_vm2, %vm19350_vm0  ;;  %v5987_v22 = vadd.f32 %v14843_v15, %v14781_v35  ;;  %v15489_v55 = vadd.f32 %v6267_v50, %v5979_v51  ;;  %vm15491_vm10 = vcmp.eq.s32.totalorder %v613_v54, 0  ;;  %vm676_vm0 = vcmp.eq.s32.totalorder %v612_v14, 0 }
 0x641   :  { %vm19354_vm11 = vmmov %vm19343_vm12  ;;  %v6485_v35 = vsel %vm15451_vm14, %v15458_v56, 0.0  ;;  %v19368_v54 = vmov 0  ;;  %v5992_v37 = vadd.f32 %v14843_v15, %v14783_v11  ;;  %v614_v5 = vand.u32 1, %v102_v25  ;;  %v19521_v56 = vld [vmem:[#allocation92_spill] sm:$0xff] }
 0x642   :  { %v6556_v27 = vsel %vm19354_vm11, %v6482_v47, 0.0  ;;  %vm15478_vm12 = vmand %vm865_vm15, %vm19355_vm1  ;;  %19362 = vst [vmem:[#allocation197_spill] sm:$0xff] %v15489_v55  ;;  %v15496_v47 = vpop.f32.mrf.mxu1  ;;  %vm15498_vm15 = vcmp.eq.s32.totalorder %v484_v49, 0  ;;  %v15513_v12 = vadd.f32 %v7380_v34, %v5987_v22  ;;  %v6562_v61 = vsel %vm19354_vm11, %v6485_v35, 0.0  ;;  %v19373_v22 = vld [vmem:[#allocation47_spill] sm:$0xff] }
 0x643   :  { %v19357_v4 = vsel %vm15478_vm12, 4294967295, %v19356_v4  ;;  %v6557_v18 = vadd.f32 %v6556_v27, %v6555_v36  ;;  %vm19365_vm13 = vmmov %vm19354_vm11  ;;  %v6484_v49 = vsel %vm15478_vm12, %v15489_v55, 0.0  ;;  %v19372_v36 = vld [vmem:[#allocation45_spill] sm:$0xff]  ;;  %v6280_v27 = vpop.f32.mrf.mxu0  ;;  %v5995_v11 = vadd.f32 %v14843_v15, %v14785_v62 }
 0x644   :  { %19358 = vst [vmem:[#allocation200_spill] sm:$0xff] %v19357_v4  ;;  %v6558_v57 = vsel %vm19365_vm13, %v6483_v0, 0.0  ;;  %vm15509_vm2 = vmand %vm15470_vm8, %vm931_vm9  ;;  %v6560_v51 = vsel %vm19354_vm11, %v6484_v49, 0.0  ;;  %v486_v0 = vand.u32 1, %v19372_v36  ;;  %v6065_v50 = vpop.f32.mrf.mxu1  ;;  %vm805_vm9 = vcmp.lt.s32.totalorder %v19340_v46, 10  ;;  %v19400_v4 = vld [vmem:[#allocation50_spill] sm:$0xff] }
 0x645   :  { %v6559_v52 = vadd.f32 %v6558_v57, %v6557_v18  ;;  %v19369_v54 = vsel %vm15509_vm2, 4294967295, %v19368_v54  ;;  %19371 = vst [vmem:[#allocation201_spill] sm:$0xff] %v15513_v12  ;;  %vm740_vm1 = vmand %vm15498_vm15, %vm676_vm0  ;;  %vm804_vm13 = vcmp.lt.s32.totalorder %v19348_v43, 10  ;;  %v487_v18 = vand.u32 1, %v19373_v22  ;;  %v19374_v57 = vld [vmem:[#allocation46_spill] sm:$0xff]  ;;  %v7384_v50 = vpop.f32.mrf.mxu0 }
 0x646   :  { %19370 = vst [vmem:[#allocation163_spill] sm:$0xff] %v19369_v54  ;;  %v615_v49 = vand.u32 1, %v19374_v57  ;;  %v15534_v16 = vpop.f32.mrf.mxu1  ;;  %v6486_v14 = vsel %vm15509_vm2, %v15513_v12, 0.0  ;;  %v15542_v43 = vadd.f32 %v6280_v27, %v5992_v37  ;;  %vm19376_vm15 = vmand %vm15483_vm7, %vm15491_vm10  ;;  %v19377_v32 = vmov 0  ;;  %v19390_v37 = vld [vmem:[#allocation43_spill] sm:$0xff] }
 0x647   :  { %v6561_v34 = vadd.f32 %v6560_v51, %v6559_v52  ;;  %vm869_vm0 = vmand %vm19376_vm15, %vm805_vm9  ;;  %v6283_v62 = vpop.f32.mrf.mxu0  ;;  %vm550_vm8 = vcmp.eq.s32.totalorder %v486_v0, 0  ;;  %vm678_vm14 = vcmp.eq.s32.totalorder %v614_v5, 0  ;;  %vm19381_vm2 = vcmask 261120  }
 0x648   :  { %19375 = vst [vmem:[#allocation162_spill] sm:$0xff] %v15542_v43  ;;  %vm15551_vm11 = vmand %vm740_vm1, %vm804_vm13  ;;  %v6068_v35 = vpop.f32.mrf.mxu1  ;;  %v15555_v52 = vadd.f32 %v6283_v62, %v5995_v11  ;;  %v6564_v51 = vsel %vm19381_vm2, %v6486_v14, 0.0  ;;  %vm15558_vm12 = vcmp.eq.s32.totalorder %v487_v18, 0  ;;  %vm15562_vm3 = vcmp.eq.s32.totalorder %v615_v49, 0  ;;  %v19391_v14 = vld [vmem:[#allocation49_spill] sm:$0xff]  ;;  %v19392_v62 = vld [vmem:[#allocation48_spill] sm:$0xff] }
 0x649   :  { %v6563_v25 = vadd.f32 %v6562_v61, %v6561_v34  ;;  %v19378_v32 = vsel %vm15551_vm11, 4294967295, %v19377_v32  ;;  %vm19386_vm7 = vcmp.lt.s32.totalorder %v19341_v48, 10  ;;  %v19387_v6 = vmov 0  ;;  %v15572_v0 = vpop.f32.mrf.mxu0  ;;  %vm742_vm2 = vmand %vm550_vm8, %vm678_vm14 }
 0x64a   :  { %19379 = vst [vmem:[#allocation149_spill] sm:$0xff] %v19378_v32  ;;  %19380 = vst [vmem:[#allocation158_spill] sm:$0xff] %v15555_v52  ;;  %v15574_v27 = vpop.f32.mrf.mxu1  ;;  %v104_v34 = vand.u32 15, %v19390_v37  ;;  %v6487_v5 = vsel %vm15551_vm11, %v15542_v43, 0.0  ;;  %vm806_vm9 = vcmp.lt.s32.totalorder %v19372_v36, 10  ;;  %vm807_vm1 = vcmp.lt.s32.totalorder %v19373_v22, 10 }
 0x64b   :  { %vm15568_vm10 = vmand %vm869_vm0, %vm19386_vm7  ;;  %v6565_v61 = vadd.f32 %v6564_v51, %v6563_v25  ;;  %v6296_v48 = vpop.f32.mrf.mxu0  ;;  %v6000_v49 = vadd.f32 %v14843_v15, %v14787_v13  ;;  %v489_v25 = vand.u32 1, %v19391_v14  ;;  %v617_v36 = vand.u32 1, %v19392_v62  ;;  %v19394_v51 = vld [vmem:[#allocation51_spill] sm:$0xff] }
 0x64c   :  { %v19388_v6 = vsel %vm15568_vm10, 4294967295, %v19387_v6  ;;  %v6073_v18 = vpop.f32.mrf.mxu1  ;;  %vm743_vm13 = vmand %vm15558_vm12, %vm15562_vm3  ;;  %v6488_v11 = vsel %vm15568_vm10, %v15555_v52, 0.0  ;;  %vm19393_vm14 = vcmask 261120   ;;  %v488_v37 = vand.u32 1, %v19394_v51  ;;  %v19453_v43 = vld [vmem:[#allocation199_spill] sm:$0xff] }
 0x64d   :  { %19389 = vst [vmem:[#allocation138_spill] sm:$0xff] %v19388_v6  ;;  %v6566_v35 = vsel %vm19393_vm14, %v6487_v5, 0.0  ;;  %v616_v18 = vand.u32 1, %v104_v34  ;;  %vm15597_vm8 = vmand %vm742_vm2, %vm806_vm9  ;;  %v19395_v13 = vmov 0  ;;  %v15601_v46 = vadd.f32 %v7383_v23, %v6000_v49  ;;  %v15607_v5 = vpop.f32.mrf.mxu0 }
 0x64e   :  { %v15595_v32 = vpop.f32.mrf.mxu1  ;;  %v19396_v13 = vsel %vm15597_vm8, 4294967295, %v19395_v13  ;;  %v6567_v38 = vadd.f32 %v6566_v35, %v6565_v61  ;;  %vm871_vm3 = vmand %vm743_vm13, %vm807_vm1  ;;  %vm935_vm12 = vcmp.lt.s32.totalorder %v19374_v57, 10  ;;  %v6003_v34 = vadd.f32 %v14843_v15, %v14789_v58 }
 0x64f   :  { %19397 = vst [vmem:[#allocation170_spill] sm:$0xff] %v19396_v13  ;;  %19398 = vst [vmem:[#allocation152_spill] sm:$0xff] %v15601_v46  ;;  %v106_v52 = vand.u32 15, %v19400_v4  ;;  %vm15612_vm0 = vcmp.eq.s32.totalorder %v489_v25, 0  ;;  %vm15616_vm7 = vcmp.eq.s32.totalorder %v617_v36, 0  ;;  %vm552_vm2 = vcmp.eq.s32.totalorder %v488_v37, 0  ;;  %v6299_v61 = vpop.f32.mrf.mxu0 }
 0x650   :  { %vm19399_vm15 = vmmov %vm19393_vm14  ;;  %v6076_v54 = vpop.f32.mrf.mxu1  ;;  %vm680_vm9 = vcmp.eq.s32.totalorder %v616_v18, 0  ;;  %v19405_v58 = vmov 0  ;;  %v15629_v4 = vadd.f32 %v7384_v50, %v6003_v34  ;;  %vm809_vm14 = vcmp.lt.s32.totalorder %v19391_v14, 10  ;;  %v19409_v25 = vld [vmem:[#allocation57_spill] sm:$0xff]  ;;  %v19411_v18 = vld [vmem:[#allocation58_spill] sm:$0xff] }
 0x651   :  { %v6568_v6 = vsel %vm19399_vm15, %v6488_v11, 0.0  ;;  %v6489_v54 = vsel %vm15597_vm8, %v15601_v46, 0.0  ;;  %vm15625_vm1 = vmand %vm871_vm3, %vm935_vm12  ;;  %v6008_v11 = vadd.f32 %v14843_v15, %v14791_v19  ;;  %v490_v36 = vand.u32 1, %v19409_v25 }
 0x652   :  { %v15620_v22 = vpop.f32.mrf.mxu1  ;;  %v19406_v58 = vsel %vm15625_vm1, 4294967295, %v19405_v58  ;;  %19408 = vst [vmem:[#allocation185_spill] sm:$0xff] %v15629_v4  ;;  %v6569_v57 = vadd.f32 %v6568_v6, %v6567_v38  ;;  %v618_v35 = vand.u32 1, %v106_v52  ;;  %vm744_vm3 = vmand %vm552_vm2, %vm680_vm9  ;;  %vm808_vm12 = vcmp.lt.s32.totalorder %v19394_v51, 10  ;;  %v19410_v6 = vld [vmem:[#allocation59_spill] sm:$0xff] }
 0x653   :  { %19407 = vst [vmem:[#allocation62_spill] sm:$0xff] %v19406_v58  ;;  %v6570_v50 = vsel %vm19399_vm15, %v6489_v54, 0.0  ;;  %v491_v37 = vand.u32 1, %v19410_v6  ;;  %v619_v38 = vand.u32 1, %v19411_v18  ;;  %v6490_v19 = vsel %vm15625_vm1, %v15629_v4, 0.0  ;;  %vm19414_vm2 = vmand %vm15612_vm0, %vm15616_vm7  ;;  %v15664_v54 = vpop.f32.mrf.mxu0 }
 0x654   :  { %v6081_v49 = vpop.f32.mrf.mxu1  ;;  %v6571_v52 = vadd.f32 %v6570_v50, %v6569_v57  ;;  %v15651_v46 = vadd.f32 %v6296_v48, %v6008_v11  ;;  %vm873_vm9 = vmand %vm19414_vm2, %vm809_vm14  ;;  %v19415_v51 = vmov 0  ;;  %vm554_vm13 = vcmp.eq.s32.totalorder %v490_v36, 0  ;;  %v19428_v11 = vld [vmem:[#allocation54_spill] sm:$0xff]  ;;  %v19429_v50 = vld [vmem:[#allocation161_spill] sm:$0xff] }
 0x655   :  { %v19412_v49 = vld [vmem:[#allocation119_spill] sm:$0xff]  ;;  %vm15660_vm15 = vmand %vm744_vm3, %vm808_vm12  ;;  %vm682_vm1 = vcmp.eq.s32.totalorder %v618_v35, 0  ;;  %vm19419_vm8 = vcmask 261120   ;;  %vm15669_vm10 = vcmp.eq.s32.totalorder %v491_v37, 0  ;;  %vm15673_vm11 = vcmp.eq.s32.totalorder %v619_v38, 0  ;;  %v6312_v35 = vpop.f32.mrf.mxu0  ;;  %v19430_v38 = vld [vmem:[#allocation61_spill] sm:$0xff] }
 0x656   :  { %v15644_v34 = vpop.f32.mrf.mxu1  ;;  %v6011_v13 = vadd.f32 %v14843_v15, %v19412_v49  ;;  %19413 = vst [vmem:[#allocation181_spill] sm:$0xff] %v15651_v46  ;;  %v19416_v51 = vsel %vm15660_vm15, 4294967295, %v19415_v51  ;;  %v6572_v48 = vsel %vm19419_vm8, %v6490_v19, 0.0  ;;  %vm19424_vm0 = vcmp.lt.s32.totalorder %v19392_v62, 10  ;;  %vm746_vm8 = vmand %vm554_vm13, %vm682_vm1 }
 0x657   :  { %19417 = vst [vmem:[#allocation151_spill] sm:$0xff] %v19416_v51  ;;  %vm15679_vm7 = vmand %vm873_vm9, %vm19424_vm0  ;;  %v19425_v23 = vmov 0  ;;  %v108_v36 = vand.u32 15, %v19428_v11  ;;  %vm810_vm14 = vcmp.lt.s32.totalorder %v19409_v25, 10  ;;  %vm811_vm3 = vcmp.lt.s32.totalorder %v19410_v6, 10  ;;  %v19433_v6 = vld [vmem:[#allocation64_spill] sm:$0xff]  ;;  %v15711_v51 = vpop.f32.mrf.mxu0 }
 0x658   :  { %v6084_v49 = vpop.f32.mrf.mxu1  ;;  %v15666_v57 = vadd.f32 %v6299_v61, %v6011_v13  ;;  %v19426_v23 = vsel %vm15679_vm7, 4294967295, %v19425_v23  ;;  %v6491_v13 = vsel %vm15660_vm15, %v15651_v46, 0.0  ;;  %v6573_v61 = vadd.f32 %v6572_v48, %v6571_v52  ;;  %vm747_vm12 = vmand %vm15669_vm10, %vm15673_vm11  ;;  %v19431_v52 = vld [vmem:[#allocation60_spill] sm:$0xff] }
 0x659   :  { %19427 = vst [vmem:[#allocation189_spill] sm:$0xff] %v19426_v23  ;;  %v6016_v62 = vadd.f32 %v14843_v15, %v19429_v50  ;;  %v493_v19 = vand.u32 1, %v19430_v38  ;;  %v621_v49 = vand.u32 1, %v19431_v52  ;;  %vm19432_vm1 = vcmask 261120   ;;  %vm15702_vm13 = vmand %vm746_vm8, %vm810_vm14 }
 0x65a   :  { %19418 = vst [vmem:[#allocation75_spill] sm:$0xff] %v15666_v57  ;;  %v6492_v37 = vsel %vm15679_vm7, %v15666_v57, 0.0  ;;  %v6574_v25 = vsel %vm19432_vm1, %v6491_v13, 0.0  ;;  %v492_v48 = vand.u32 1, %v19433_v6  ;;  %v620_v11 = vand.u32 1, %v108_v36  ;;  %vm875_vm11 = vmand %vm747_vm12, %vm811_vm3  ;;  %v15713_v58 = vpop.f32.mrf.mxu1  ;;  %v19439_v13 = vld [vmem:[#allocation174_spill] sm:$0xff] }
 0x65b   :  { %v19434_v50 = vmov 0  ;;  %v15707_v14 = vadd.f32 %v15572_v0, %v6016_v62  ;;  %v6575_v40 = vadd.f32 %v6574_v25, %v6573_v61  ;;  %vm939_vm10 = vcmp.lt.s32.totalorder %v19411_v18, 10  ;;  %vm19438_vm2 = vmmov %vm19432_vm1  ;;  %v19440_v57 = vld [vmem:[#allocation63_spill] sm:$0xff]  ;;  %v19449_v25 = vld [vmem:[#allocation202_spill] sm:$0xff] }
 0x65c   :  { %v19435_v50 = vsel %vm15702_vm13, 4294967295, %v19434_v50  ;;  %v6576_v23 = vsel %vm19438_vm2, %v6492_v37, 0.0  ;;  %v6019_v36 = vadd.f32 %v14843_v15, %v19439_v13  ;;  %v110_v46 = vand.u32 15, %v19440_v57  ;;  %v6089_v18 = vpop.f32.mrf.mxu1  ;;  %vm15729_vm3 = vmand %vm875_vm11, %vm939_vm10 }
 0x65d   :  { %19436 = vst [vmem:[#allocation53_spill] sm:$0xff] %v19435_v50  ;;  %19437 = vst [vmem:[#allocation65_spill] sm:$0xff] %v15707_v14  ;;  %vm15718_vm9 = vcmp.eq.s32.totalorder %v493_v19, 0  ;;  %vm15722_vm0 = vcmp.eq.s32.totalorder %v621_v49, 0  ;;  %vm556_vm8 = vcmp.eq.s32.totalorder %v492_v48, 0  ;;  %vm684_vm14 = vcmp.eq.s32.totalorder %v620_v11, 0  ;;  %v6315_v19 = vpop.f32.mrf.mxu0 }
 0x65e   :  { %v6493_v61 = vsel %vm15702_vm13, %v15707_v14, 0.0  ;;  %v19445_v62 = vmov 0  ;;  %v15734_v57 = vadd.f32 %v15607_v5, %v6019_v36  ;;  %v6577_v37 = vadd.f32 %v6576_v23, %v6575_v40  ;;  %v15741_v49 = vpop.f32.mrf.mxu1  ;;  %v19450_v11 = vld [vmem:[#allocation70_spill] sm:$0xff]  ;;  %vm748_vm11 = vmand %vm556_vm8, %vm684_vm14  ;;  %v19451_v23 = vld [vmem:[#allocation72_spill] sm:$0xff] }
 0x65f   :  { %v19446_v62 = vsel %vm15729_vm3, 4294967295, %v19445_v62  ;;  %vm813_vm1 = vcmp.lt.s32.totalorder %v19430_v38, 10  ;;  %v6024_v48 = vadd.f32 %v14843_v15, %v19449_v25  ;;  %v494_v13 = vand.u32 1, %v19450_v11  ;;  %v19452_v36 = vld [vmem:[#allocation71_spill] sm:$0xff]  ;;  %vm19455_vm8 = vmand %vm15718_vm9, %vm15722_vm0 }
 0x660   :  { %19447 = vst [vmem:[#allocation96_spill] sm:$0xff] %v19446_v62  ;;  %19448 = vst [vmem:[#allocation115_spill] sm:$0xff] %v15734_v57  ;;  %v622_v18 = vand.u32 1, %v110_v46  ;;  %vm812_vm10 = vcmp.lt.s32.totalorder %v19433_v6, 10  ;;  %v6578_v5 = vsel %vm19438_vm2, %v6493_v61, 0.0  ;;  %v495_v40 = vand.u32 1, %v19451_v23  ;;  %v6092_v14 = vpop.f32.mrf.mxu1 }
 0x661   :  { %v623_v50 = vand.u32 1, %v19452_v36  ;;  %v6027_v26 = vadd.f32 %v14843_v15, %v19453_v43  ;;  %v6494_v25 = vsel %vm15729_vm3, %v15734_v57, 0.0  ;;  %v6579_v46 = vadd.f32 %v6578_v5, %v6577_v37  ;;  %vm877_vm14 = vmand %vm19455_vm8, %vm813_vm1  ;;  %v15769_v43 = vpop.f32.mrf.mxu0  ;;  %v19469_v61 = vld [vmem:[#allocation67_spill] sm:$0xff]  ;;  %v19481_v62 = vld [vmem:[#allocation76_spill] sm:$0xff] }
 0x662   :  { %v15756_v12 = vadd.f32 %v6312_v35, %v6024_v48  ;;  %vm15765_vm2 = vmand %vm748_vm11, %vm812_vm10  ;;  %v19456_v6 = vmov 0  ;;  %vm558_vm12 = vcmp.eq.s32.totalorder %v494_v13, 0  ;;  %vm686_vm13 = vcmp.eq.s32.totalorder %v622_v18, 0  ;;  %v19470_v48 = vld [vmem:[#allocation103_spill] sm:$0xff]  ;;  %v19471_v18 = vld [vmem:[#allocation74_spill] sm:$0xff] }
 0x663   :  { %v19457_v6 = vsel %vm15765_vm2, 4294967295, %v19456_v6  ;;  %v15771_v14 = vadd.f32 %v6315_v19, %v6027_v26  ;;  %vm19460_vm3 = vcmask 261120   ;;  %vm15774_vm7 = vcmp.eq.s32.totalorder %v495_v40, 0  ;;  %v19472_v40 = vld [vmem:[#allocation73_spill] sm:$0xff]  ;;  %v15859_v57 = vld [vmem:[%s17241_s3 + $0x3] ss:$0 sm:$0xff] }
 0x664   :  { %19454 = vst [vmem:[#allocation117_spill] sm:$0xff] %v15756_v12  ;;  %19458 = vst [vmem:[#allocation105_spill] sm:$0xff] %v19457_v6  ;;  %v6580_v35 = vsel %vm19460_vm3, %v6494_v25, 0.0  ;;  %vm15778_vm15 = vcmp.eq.s32.totalorder %v623_v50, 0  ;;  %vm19465_vm9 = vcmp.lt.s32.totalorder %v19431_v52, 10  ;;  %v19466_v0 = vmov 0  ;;  %v6328_v50 = vpop.f32.mrf.mxu0  ;;  %v15818_v6 = vpop.f32.mrf.mxu1 }
 0x665   :  { %19459 = vst [vmem:[#allocation122_spill] sm:$0xff] %v15771_v14  ;;  %vm15784_vm0 = vmand %vm877_vm14, %vm19465_vm9  ;;  %v112_v37 = vand.u32 15, %v19469_v61  ;;  %v6495_v26 = vsel %vm15765_vm2, %v15756_v12, 0.0  ;;  %v6581_v19 = vadd.f32 %v6580_v35, %v6579_v46  ;;  %vm814_vm1 = vcmp.lt.s32.totalorder %v19450_v11, 10 }
 0x666   :  { %v19467_v0 = vsel %vm15784_vm0, 4294967295, %v19466_v0  ;;  %vm750_vm3 = vmand %vm558_vm12, %vm686_vm13  ;;  %vm815_vm11 = vcmp.lt.s32.totalorder %v19451_v23, 10  ;;  %v6032_v52 = vadd.f32 %v14843_v15, %v19470_v48  ;;  %v6496_v13 = vsel %vm15784_vm0, %v15771_v14, 0.0  ;;  %v19474_v23 = vld [vmem:[#allocation77_spill] sm:$0xff] }
 0x667   :  { %19468 = vst [vmem:[#allocation68_spill] sm:$0xff] %v19467_v0  ;;  %vm751_vm10 = vmand %vm15774_vm7, %vm15778_vm15  ;;  %v497_v5 = vand.u32 1, %v19471_v18  ;;  %v625_v25 = vand.u32 1, %v19472_v40  ;;  %vm19473_vm13 = vcmask 261120   ;;  %v496_v46 = vand.u32 1, %v19474_v23  ;;  %v15816_v0 = vpop.f32.mrf.mxu0 }
 0x668   :  { %v6582_v11 = vsel %vm19473_vm13, %v6495_v26, 0.0  ;;  %v624_v35 = vand.u32 1, %v112_v37  ;;  %vm15807_vm12 = vmand %vm750_vm3, %vm814_vm1  ;;  %v19475_v61 = vmov 0  ;;  %v15812_v38 = vadd.f32 %v15664_v54, %v6032_v52  ;;  %v19480_v26 = vld [vmem:[#allocation91_spill] sm:$0xff] }
 0x669   :  { %v19476_v61 = vsel %vm15807_vm12, 4294967295, %v19475_v61  ;;  %v6583_v4 = vadd.f32 %v6582_v11, %v6581_v19  ;;  %vm879_vm15 = vmand %vm751_vm10, %vm815_vm11  ;;  %vm943_vm7 = vcmp.lt.s32.totalorder %v19452_v36, 10  ;;  %v6035_v37 = vadd.f32 %v14843_v15, %v19480_v26  ;;  %v6097_v36 = vpop.f32.mrf.mxu1  ;;  %v19490_v11 = vld [vmem:[#allocation108_spill] sm:$0xff] }
 0x66a   :  { %19477 = vst [vmem:[#allocation56_spill] sm:$0xff] %v19476_v61  ;;  %19478 = vst [vmem:[#allocation147_spill] sm:$0xff] %v15812_v38  ;;  %v114_v14 = vand.u32 15, %v19481_v62  ;;  %vm15823_vm14 = vcmp.eq.s32.totalorder %v497_v5, 0  ;;  %vm15827_vm9 = vcmp.eq.s32.totalorder %v625_v25, 0  ;;  %vm560_vm3 = vcmp.eq.s32.totalorder %v496_v46, 0  ;;  %v6331_v5 = vpop.f32.mrf.mxu0 }
 0x66b   :  { %vm19479_vm8 = vmmov %vm19473_vm13  ;;  %vm688_vm1 = vcmp.eq.s32.totalorder %v624_v35, 0  ;;  %v6497_v19 = vsel %vm15807_vm12, %v15812_v38, 0.0  ;;  %v19486_v52 = vmov 0  ;;  %v15839_v62 = vadd.f32 %v15711_v51, %v6035_v37  ;;  %v15846_v25 = vpop.f32.mrf.mxu1  ;;  %v19491_v35 = vld [vmem:[#allocation83_spill] sm:$0xff]  ;;  %v19493_v37 = vld [vmem:[#allocation85_spill] sm:$0xff] }
 0x66c   :  { %v6584_v48 = vsel %vm19479_vm8, %v6496_v13, 0.0  ;;  %vm15834_vm11 = vmand %vm879_vm15, %vm943_vm7  ;;  %vm817_vm13 = vcmp.lt.s32.totalorder %v19471_v18, 10  ;;  %v6040_v46 = vadd.f32 %v14843_v15, %v19490_v11  ;;  %v498_v26 = vand.u32 1, %v19491_v35  ;;  %v19494_v15 = vld [vmem:[#allocation109_spill] sm:$0xff] }
 0x66d   :  { %v19487_v52 = vsel %vm15834_vm11, 4294967295, %v19486_v52  ;;  %19489 = vst [vmem:[#allocation79_spill] sm:$0xff] %v15839_v62  ;;  %v6585_v13 = vadd.f32 %v6584_v48, %v6583_v4  ;;  %v626_v36 = vand.u32 1, %v114_v14  ;;  %vm752_vm15 = vmand %vm560_vm3, %vm688_vm1  ;;  %vm816_vm7 = vcmp.lt.s32.totalorder %v19474_v23, 10  ;;  %v19492_v4 = vld [vmem:[#allocation86_spill] sm:$0xff]  ;;  %v6100_v38 = vpop.f32.mrf.mxu1 }
 0x66e   :  { %19488 = vst [vmem:[#allocation66_spill] sm:$0xff] %v19487_v52  ;;  %v6586_v51 = vsel %vm19479_vm8, %v6497_v19, 0.0  ;;  %v499_v48 = vand.u32 1, %v19492_v4  ;;  %v627_v61 = vand.u32 1, %v19493_v37  ;;  %v6043_v14 = vadd.f32 %v15859_v57, %v19494_v15  ;;  %vm19496_vm3 = vmand %vm15823_vm14, %vm15827_vm9  ;;  %v15879_v15 = vpop.f32.mrf.mxu0 }
 0x66f   :  { %v6498_v23 = vsel %vm15834_vm11, %v15839_v62, 0.0  ;;  %v6587_v19 = vadd.f32 %v6586_v51, %v6585_v13  ;;  %v15866_v11 = vadd.f32 %v6328_v50, %v6040_v46  ;;  %vm881_vm1 = vmand %vm19496_vm3, %vm817_vm13  ;;  %v19497_v38 = vmov 0  ;;  %v19510_v13 = vld [vmem:[#allocation84_spill] sm:$0xff]  ;;  %v19511_v51 = vld [vmem:[#allocation137_spill] sm:$0xff] }
 0x670   :  { %vm15875_vm8 = vmand %vm752_vm15, %vm816_vm7  ;;  %vm562_vm10 = vcmp.eq.s32.totalorder %v498_v26, 0  ;;  %vm690_vm12 = vcmp.eq.s32.totalorder %v626_v36, 0  ;;  %v15881_v52 = vadd.f32 %v6331_v5, %v6043_v14  ;;  %vm19501_vm11 = vcmask 261120   ;;  %v15899_v5 = vpop.f32.mrf.mxu1 }
 0x671   :  { %19495 = vst [vmem:[#allocation81_spill] sm:$0xff] %v15866_v11  ;;  %v19498_v38 = vsel %vm15875_vm8, 4294967295, %v19497_v38  ;;  %v6588_v50 = vsel %vm19501_vm11, %v6498_v23, 0.0  ;;  %vm15884_vm0 = vcmp.eq.s32.totalorder %v499_v48, 0  ;;  %vm15888_vm2 = vcmp.eq.s32.totalorder %v627_v61, 0  ;;  %vm754_vm11 = vmand %vm562_vm10, %vm690_vm12  ;;  %v6344_v61 = vpop.f32.mrf.mxu0  ;;  %v19512_v23 = vld [vmem:[#allocation90_spill] sm:$0xff] }
 0x672   :  { %19499 = vst [vmem:[#allocation52_spill] sm:$0xff] %v19498_v38  ;;  %19500 = vst [vmem:[#allocation69_spill] sm:$0xff] %v15881_v52  ;;  %vm19506_vm14 = vcmp.lt.s32.totalorder %v19472_v40, 10  ;;  %v19507_v54 = vmov 0  ;;  %v116_v46 = vand.u32 15, %v19510_v13  ;;  %v6499_v26 = vsel %vm15875_vm8, %v15866_v11, 0.0  ;;  %v6105_v40 = vpop.f32.mrf.mxu1 }
 0x673   :  { %vm15894_vm9 = vmand %vm881_vm1, %vm19506_vm14  ;;  %v6589_v36 = vadd.f32 %v6588_v50, %v6587_v19  ;;  %vm818_vm13 = vcmp.lt.s32.totalorder %v19491_v35, 10  ;;  %vm819_vm15 = vcmp.lt.s32.totalorder %v19492_v4, 10  ;;  %v6048_v48 = vadd.f32 %v15859_v57, %v19511_v51  ;;  %v19513_v50 = vld [vmem:[#allocation88_spill] sm:$0xff]  ;;  %v19515_v38 = vld [vmem:[#allocation93_spill] sm:$0xff] }
 0x674   :  { %v19508_v54 = vsel %vm15894_vm9, 4294967295, %v19507_v54  ;;  %vm755_vm7 = vmand %vm15884_vm0, %vm15888_vm2  ;;  %v6500_v14 = vsel %vm15894_vm9, %v15881_v52, 0.0  ;;  %v501_v19 = vand.u32 1, %v19512_v23  ;;  %v629_v35 = vand.u32 1, %v19513_v50  ;;  %v15919_v62 = vpop.f32.mrf.mxu1  ;;  %v19520_v52 = vld [vmem:[#allocation148_spill] sm:$0xff] }
 0x675   :  { %19509 = vst [vmem:[#allocation42_spill] sm:$0xff] %v19508_v54  ;;  %vm19514_vm12 = vcmask 261120   ;;  %v500_v40 = vand.u32 1, %v19515_v38  ;;  %v628_v11 = vand.u32 1, %v116_v46  ;;  %vm15921_vm10 = vmand %vm754_vm11, %vm818_vm13  ;;  %v19516_v12 = vmov 0  ;;  %v15932_v54 = vpop.f32.mrf.mxu0 }
 0x676   :  { %v6590_v13 = vsel %vm19514_vm12, %v6499_v26, 0.0  ;;  %v19517_v12 = vsel %vm15921_vm10, 4294967295, %v19516_v12  ;;  %v15926_v18 = vadd.f32 %v15769_v43, %v6048_v48  ;;  %vm883_vm2 = vmand %vm755_vm7, %vm819_vm15  ;;  %vm947_vm0 = vcmp.lt.s32.totalorder %v19493_v37, 10  ;;  %v6108_v46 = vpop.f32.mrf.mxu1  ;;  %v19529_v48 = vld [vmem:[#allocation97_spill] sm:$0xff]  ;;  %v19545_v43 = vld [vmem:[#allocation98_spill] sm:$0xff] }
 0x677   :  { %19518 = vst [vmem:[#allocation135_spill] sm:$0xff] %v19517_v12  ;;  %v6591_v51 = vadd.f32 %v6590_v13, %v6589_v36  ;;  %vm19519_vm3 = vmmov %vm19514_vm12  ;;  %v6051_v41 = vadd.f32 %v15859_v57, %v19520_v52  ;;  %v118_v60 = vand.u32 15, %v19521_v56  ;;  %vm15937_vm1 = vcmp.eq.s32.totalorder %v501_v19, 0  ;;  %v19531_v13 = vld [vmem:[#allocation99_spill] sm:$0xff] }
 0x678   :  { %v6592_v26 = vsel %vm19519_vm3, %v6500_v14, 0.0  ;;  %vm15941_vm14 = vcmp.eq.s32.totalorder %v629_v35, 0  ;;  %vm564_vm11 = vcmp.eq.s32.totalorder %v500_v40, 0  ;;  %vm692_vm13 = vcmp.eq.s32.totalorder %v628_v11, 0  ;;  %vm15948_vm15 = vmand %vm883_vm2, %vm947_vm0  ;;  %v6347_v11 = vpop.f32.mrf.mxu0 }
 0x679   :  { %v6501_v4 = vsel %vm15921_vm10, %v15926_v18, 0.0  ;;  %v19526_v37 = vmov 0  ;;  %v15953_v56 = vadd.f32 %v15816_v0, %v6051_v41  ;;  %v6593_v52 = vadd.f32 %v6592_v26, %v6591_v51  ;;  %vm756_vm2 = vmand %vm564_vm11, %vm692_vm13  ;;  %v19530_v0 = vld [vmem:[#allocation100_spill] sm:$0xff] }
 0x67a   :  { %v19527_v37 = vsel %vm15948_vm15, 4294967295, %v19526_v37  ;;  %vm821_vm12 = vcmp.lt.s32.totalorder %v19512_v23, 10  ;;  %v6056_v36 = vadd.f32 %v15859_v57, %v15106_v63  ;;  %v502_v14 = vand.u32 1, %v19529_v48  ;;  %vm19532_vm11 = vmand %vm15937_vm1, %vm15941_vm14 }
 0x67b   :  { %19528 = vst [vmem:[#allocation78_spill] sm:$0xff] %v19527_v37  ;;  %v630_v19 = vand.u32 1, %v118_v60  ;;  %vm820_vm0 = vcmp.lt.s32.totalorder %v19515_v38, 10  ;;  %v6594_v41 = vsel %vm19519_vm3, %v6501_v4, 0.0  ;;  %v503_v35 = vand.u32 1, %v19530_v0  ;;  %vm885_vm13 = vmand %vm19532_vm11, %vm821_vm12 }
 0x67c   :  { %v631_v40 = vand.u32 1, %v19531_v13  ;;  %vm949_vm7 = vcmp.lt.s32.totalorder %v19513_v50, 10  ;;  %v6059_v51 = vadd.f32 %v15859_v57, %v15190_v3  ;;  %v6502_v63 = vsel %vm15948_vm15, %v15953_v56, 0.0  ;;  %vm15982_vm3 = vmand %vm756_vm2, %vm820_vm0  ;;  %v15986_v3 = vpop.f32.mrf.mxu0 }
 0x67d   :  { %v6595_v26 = vadd.f32 %v6594_v41, %v6593_v52  ;;  %v15973_v60 = vadd.f32 %v6344_v61, %v6056_v36  ;;  %v19533_v38 = vmov 0  ;;  %vm566_vm10 = vcmp.eq.s32.totalorder %v502_v14, 0  ;;  %vm15999_vm1 = vmand %vm885_vm13, %vm949_vm7  ;;  %v19546_v41 = vld [vmem:[#allocation104_spill] sm:$0xff] }
 0x67e   :  { %v19534_v38 = vsel %vm15982_vm3, 4294967295, %v19533_v38  ;;  %vm694_vm9 = vcmp.eq.s32.totalorder %v630_v19, 0  ;;  %v15988_v50 = vadd.f32 %v6347_v11, %v6059_v51  ;;  %vm19537_vm15 = vcmask 261120   ;;  %v6360_v36 = vpop.f32.mrf.mxu0 }
 0x67f   :  { %19535 = vst [vmem:[#allocation87_spill] sm:$0xff] %v19534_v38  ;;  %v6596_v61 = vsel %vm19537_vm15, %v6502_v63, 0.0  ;;  %vm15991_vm8 = vcmp.eq.s32.totalorder %v503_v35, 0  ;;  %vm15995_vm5 = vcmp.eq.s32.totalorder %v631_v40, 0  ;;  %v19542_v46 = vmov 0  ;;  %vm758_vm14 = vmand %vm566_vm10, %vm694_vm9  ;;  %v19547_v40 = vld [vmem:[#allocation102_spill] sm:$0xff] }
 0x680   :  { %19536 = vst [vmem:[#allocation89_spill] sm:$0xff] %v15988_v50  ;;  %v19543_v46 = vsel %vm15999_vm1, 4294967295, %v19542_v46  ;;  %v120_v4 = vand.u32 15, %v19545_v43  ;;  %v6503_v52 = vsel %vm15982_vm3, %v15973_v60, 0.0  ;;  %v6597_v11 = vadd.f32 %v6596_v61, %v6595_v26  ;;  %vm759_vm7 = vmand %vm15991_vm8, %vm15995_vm5  ;;  %v16031_v43 = vpop.f32.mrf.mxu0 }
 0x681   :  { %19544 = vst [vmem:[#allocation44_spill] sm:$0xff] %v19543_v46  ;;  %vm822_vm15 = vcmp.lt.s32.totalorder %v19529_v48, 10  ;;  %vm823_vm12 = vcmp.lt.s32.totalorder %v19530_v0, 10  ;;  %v6064_v14 = vadd.f32 %v15859_v57, %v15496_v47  ;;  %v6504_v19 = vsel %vm15999_vm1, %v15988_v50, 0.0  ;;  %v19549_v0 = vld [vmem:[#allocation107_spill] sm:$0xff]  ;;  %v19555_v46 = vld [vmem:[#allocation106_spill] sm:$0xff] }
 0x682   :  { %v505_v35 = vand.u32 1, %v19546_v41  ;;  %v633_v51 = vand.u32 1, %v19547_v40  ;;  %vm19548_vm9 = vcmask 261120   ;;  %v504_v63 = vand.u32 1, %v19549_v0  ;;  %vm16022_vm10 = vmand %vm758_vm14, %vm822_vm15 }
 0x683   :  { %v6598_v48 = vsel %vm19548_vm9, %v6503_v52, 0.0  ;;  %v632_v26 = vand.u32 1, %v120_v4  ;;  %v19550_v47 = vmov 0  ;;  %v16027_v61 = vadd.f32 %v15879_v15, %v6064_v14  ;;  %vm887_vm5 = vmand %vm759_vm7, %vm823_vm12  ;;  %v6363_v14 = vpop.f32.mrf.mxu0 }
 0x684   :  { %v19551_v47 = vsel %vm16022_vm10, 4294967295, %v19550_v47  ;;  %v6599_v23 = vadd.f32 %v6598_v48, %v6597_v11  ;;  %vm951_vm8 = vcmp.lt.s32.totalorder %v19531_v13, 10  ;;  %vm19554_vm2 = vmmov %vm19548_vm9  ;;  %v6067_v52 = vadd.f32 %v15859_v57, %v15534_v16 }
 0x685   :  { %19552 = vst [vmem:[#allocation55_spill] sm:$0xff] %v19551_v47  ;;  %19553 = vst [vmem:[#allocation80_spill] sm:$0xff] %v16027_v61  ;;  %v6600_v55 = vsel %vm19554_vm2, %v6504_v19, 0.0  ;;  %v122_v4 = vand.u32 15, %v19555_v46  ;;  %vm16036_vm0 = vcmp.eq.s32.totalorder %v505_v35, 0  ;;  %vm16040_vm11 = vcmp.eq.s32.totalorder %v633_v51, 0 }
 0x686   :  { %vm568_vm13 = vcmp.eq.s32.totalorder %v504_v63, 0  ;;  %vm696_vm14 = vcmp.eq.s32.totalorder %v632_v26, 0  ;;  %v6505_v13 = vsel %vm16022_vm10, %v16027_v61, 0.0  ;;  %vm16047_vm15 = vmand %vm887_vm5, %vm951_vm8  ;;  %v19560_v11 = vmov 0  ;;  %v19564_v35 = vld [vmem:[#allocation111_spill] sm:$0xff]  ;;  %v19566_v63 = vld [vmem:[#allocation114_spill] sm:$0xff] }
 0x687   :  { %v19561_v11 = vsel %vm16047_vm15, 4294967295, %v19560_v11  ;;  %v16052_v16 = vadd.f32 %v15932_v54, %v6067_v52  ;;  %v6601_v46 = vadd.f32 %v6600_v55, %v6599_v23  ;;  %vm761_vm12 = vmand %vm16036_vm0, %vm16040_vm11  ;;  %vm825_vm7 = vcmp.lt.s32.totalorder %v19546_v41, 10  ;;  %v19567_v23 = vld [vmem:[#allocation113_spill] sm:$0xff] }
 0x688   :  { %19562 = vst [vmem:[#allocation190_spill] sm:$0xff] %v19561_v11  ;;  %v6072_v19 = vadd.f32 %v15859_v57, %v15574_v27  ;;  %v506_v51 = vand.u32 1, %v19564_v35  ;;  %v634_v48 = vand.u32 1, %v122_v4  ;;  %vm760_vm9 = vmand %vm568_vm13, %vm696_vm14  ;;  %vm824_vm5 = vcmp.lt.s32.totalorder %v19549_v0, 10 }
 0x689   :  { %19563 = vst [vmem:[#allocation191_spill] sm:$0xff] %v16052_v16  ;;  %vm19565_vm8 = vmmov %vm19554_vm2  ;;  %v507_v26 = vand.u32 1, %v19566_v63  ;;  %v635_v55 = vand.u32 1, %v19567_v23  ;;  %v6075_v52 = vadd.f32 %v15859_v57, %v15595_v32  ;;  %v6506_v27 = vsel %vm16047_vm15, %v16052_v16, 0.0  ;;  %v16085_v32 = vpop.f32.mrf.mxu0 }
 0x68a   :  { %v6602_v54 = vsel %vm19565_vm8, %v6505_v13, 0.0  ;;  %v16072_v4 = vadd.f32 %v6360_v36, %v6072_v19  ;;  %vm889_vm13 = vmand %vm761_vm12, %vm825_vm7  ;;  %v19569_v0 = vmov 0  ;;  %vm570_vm8 = vcmp.eq.s32.totalorder %v506_v51, 0 }
 0x68b   :  { %v6603_v47 = vadd.f32 %v6602_v54, %v6601_v46  ;;  %vm16081_vm14 = vmand %vm760_vm9, %vm824_vm5  ;;  %vm698_vm2 = vcmp.eq.s32.totalorder %v634_v48, 0  ;;  %v16087_v13 = vadd.f32 %v6363_v14, %v6075_v52  ;;  %vm19573_vm15 = vcmask 261120   ;;  %v19582_v14 = vld [vmem:[#allocation112_spill] sm:$0xff] }
 0x68c   :  { %19568 = vst [vmem:[#allocation192_spill] sm:$0xff] %v16072_v4  ;;  %v19570_v0 = vsel %vm16081_vm14, 4294967295, %v19569_v0  ;;  %v6604_v41 = vsel %vm19573_vm15, %v6506_v27, 0.0  ;;  %vm16092_vm10 = vcmp.eq.s32.totalorder %v507_v26, 0  ;;  %vm16096_vm0 = vcmp.eq.s32.totalorder %v635_v55, 0  ;;  %vm762_vm15 = vmand %vm570_vm8, %vm698_vm2  ;;  %v6376_v26 = vpop.f32.mrf.mxu0  ;;  %v19584_v27 = vld [vmem:[#allocation116_spill] sm:$0xff] }
 0x68d   :  { %19571 = vst [vmem:[#allocation193_spill] sm:$0xff] %v19570_v0  ;;  %19572 = vst [vmem:[#allocation194_spill] sm:$0xff] %v16087_v13  ;;  %v16089_v36 = vpop.f32.mrf.mxu1  ;;  %vm19578_vm11 = vcmp.lt.s32.totalorder %v19547_v40, 10  ;;  %v19579_v46 = vmov 0  ;;  %v124_v19 = vand.u32 15, %v19582_v14  ;;  %v6507_v51 = vsel %vm16081_vm14, %v16072_v4, 0.0 }
 0x68e   :  { %vm16102_vm12 = vmand %vm889_vm13, %vm19578_vm11  ;;  %v6605_v48 = vadd.f32 %v6604_v41, %v6603_v47  ;;  %vm826_vm7 = vcmp.lt.s32.totalorder %v19564_v35, 10  ;;  %vm827_vm9 = vcmp.lt.s32.totalorder %v19566_v63, 10  ;;  %v6080_v40 = vadd.f32 %v15859_v57, %v15620_v22  ;;  %v19583_v47 = vld [vmem:[#allocation118_spill] sm:$0xff]  ;;  %v16139_v37 = vpop.f32.mrf.mxu0 }
 0x68f   :  { %v19580_v46 = vsel %vm16102_vm12, 4294967295, %v19579_v46  ;;  %v6113_v54 = vpop.f32.mrf.mxu1  ;;  %vm763_vm5 = vmand %vm16092_vm10, %vm16096_vm0  ;;  %v6508_v55 = vsel %vm16102_vm12, %v16087_v13, 0.0  ;;  %v509_v52 = vand.u32 1, %v19583_v47  ;;  %v637_v41 = vand.u32 1, %v19584_v27 }
 0x690   :  { %19581 = vst [vmem:[#allocation195_spill] sm:$0xff] %v19580_v46  ;;  %vm19585_vm2 = vcmask 261120   ;;  %v19586_v54 = vld [vmem:[#allocation121_spill] sm:$0xff]  ;;  %v636_v22 = vand.u32 1, %v124_v19  ;;  %vm16127_vm13 = vmand %vm762_vm15, %vm826_vm7  ;;  %v19587_v15 = vmov 0  ;;  %v16132_v38 = vadd.f32 %v15986_v3, %v6080_v40 }
 0x691   :  { %v16123_v35 = vpop.f32.mrf.mxu1  ;;  %v6606_v14 = vsel %vm19585_vm2, %v6507_v51, 0.0  ;;  %v508_v0 = vand.u32 1, %v19586_v54  ;;  %v19588_v15 = vsel %vm16127_vm13, 4294967295, %v19587_v15  ;;  %vm891_vm10 = vmand %vm763_vm5, %vm827_vm9  ;;  %vm955_vm8 = vcmp.lt.s32.totalorder %v19567_v23, 10  ;;  %v19592_v51 = vld [vmem:[#allocation120_spill] sm:$0xff] }
 0x692   :  { %19589 = vst [vmem:[#allocation196_spill] sm:$0xff] %v19588_v15  ;;  %19590 = vst [vmem:[#allocation94_spill] sm:$0xff] %v16132_v38  ;;  %v6607_v46 = vadd.f32 %v6606_v14, %v6605_v48  ;;  %v126_v4 = vand.u32 15, %v19592_v51  ;;  %v6083_v19 = vadd.f32 %v15859_v57, %v15644_v34  ;;  %vm16143_vm11 = vcmp.eq.s32.totalorder %v509_v52, 0  ;;  %v19601_v14 = vld [vmem:[#allocation128_spill] sm:$0xff]  ;;  %v19606_v15 = vld [vmem:[#allocation123_spill] sm:$0xff] }
 0x693   :  { %v6116_v11 = vpop.f32.mrf.mxu1  ;;  %vm19591_vm0 = vmmov %vm19585_vm2  ;;  %vm16147_vm15 = vcmp.eq.s32.totalorder %v637_v41, 0  ;;  %vm572_vm7 = vcmp.eq.s32.totalorder %v508_v0, 0  ;;  %vm700_vm9 = vcmp.eq.s32.totalorder %v636_v22, 0  ;;  %v6509_v63 = vsel %vm16127_vm13, %v16132_v38, 0.0  ;;  %v6379_v0 = vpop.f32.mrf.mxu0 }
 0x694   :  { %v6608_v13 = vsel %vm19591_vm0, %v6508_v55, 0.0  ;;  %vm16156_vm5 = vmand %vm891_vm10, %vm955_vm8  ;;  %v19597_v23 = vmov 0  ;;  %v16161_v34 = vadd.f32 %v16031_v43, %v6083_v19  ;;  %v19600_v55 = vld [vmem:[#allocation126_spill] sm:$0xff]  ;;  %v638_v41 = vand.u32 1, %v126_v4  ;;  %v19604_v4 = vld [vmem:[#allocation127_spill] sm:$0xff] }
 0x695   :  { %v16151_v11 = vpop.f32.mrf.mxu1  ;;  %v19598_v23 = vsel %vm16156_vm5, 4294967295, %v19597_v23  ;;  %v6609_v48 = vadd.f32 %v6608_v13, %v6607_v46  ;;  %v510_v52 = vand.u32 1, %v19600_v55  ;;  %v511_v51 = vand.u32 1, %v19601_v14  ;;  %vm16172_vm8 = vmand %vm572_vm7, %vm700_vm9 }
 0x696   :  { %19599 = vst [vmem:[#allocation124_spill] sm:$0xff] %v19598_v23  ;;  %vm829_vm10 = vcmp.lt.s32.totalorder %v19583_v47, 10  ;;  %v6088_v22 = vadd.f32 %v15859_v57, %v15713_v58  ;;  %vm828_vm0 = vcmp.lt.s32.totalorder %v19586_v54, 10  ;;  %v639_v13 = vand.u32 1, %v19604_v4  ;;  %vm19605_vm13 = vmmov %vm19585_vm2 }
 0x697   :  { %v6121_v40 = vpop.f32.mrf.mxu1  ;;  %v6610_v19 = vsel %vm19605_vm13, %v6509_v63, 0.0  ;;  %v128_v38 = vand.u32 15, %v19606_v15  ;;  %v6091_v58 = vadd.f32 %v15859_v57, %v15741_v49  ;;  %v6510_v12 = vsel %vm16156_vm5, %v16161_v34, 0.0  ;;  %vm19607_vm13 = vmand %vm16143_vm11, %vm16147_vm15  ;;  %v19615_v15 = vld [vmem:[#allocation130_spill] sm:$0xff] }
 0x698   :  { %v16182_v40 = vpop.f32.mrf.mxu0  ;;  %v6611_v61 = vadd.f32 %v6610_v19, %v6609_v48  ;;  %v16190_v50 = vadd.f32 %v6376_v26, %v6088_v22  ;;  %vm893_vm7 = vmand %vm19607_vm13, %vm829_vm10  ;;  %vm574_vm9 = vcmp.eq.s32.totalorder %v510_v52, 0  ;;  %vm702_vm2 = vcmp.eq.s32.totalorder %v638_v41, 0  ;;  %v19616_v48 = vld [vmem:[#allocation129_spill] sm:$0xff] }
 0x699   :  { %v16178_v46 = vpop.f32.mrf.mxu1  ;;  %vm16203_vm12 = vmand %vm16172_vm8, %vm828_vm0  ;;  %v19608_v49 = vmov 0  ;;  %vm16207_vm5 = vcmp.eq.s32.totalorder %v511_v51, 0  ;;  %vm16211_vm14 = vcmp.eq.s32.totalorder %v639_v13, 0  ;;  %v16215_v47 = vadd.f32 %v6379_v0, %v6091_v58  ;;  %v19622_v22 = vld [vmem:[#allocation133_spill] sm:$0xff]  ;;  %v19623_v58 = vld [vmem:[#allocation132_spill] sm:$0xff] }
 0x69a   :  { %v19609_v49 = vsel %vm16203_vm12, 4294967295, %v19608_v49  ;;  %v513_v3 = vand.u32 1, %v19615_v15  ;;  %v641_v54 = vand.u32 1, %v19616_v48  ;;  %vm19617_vm11 = vcmask 261120   ;;  %v6392_v0 = vpop.f32.mrf.mxu0  ;;  %vm766_vm8 = vmand %vm574_vm9, %vm702_vm2 }
 0x69b   :  { %v6124_v63 = vpop.f32.mrf.mxu1  ;;  %19610 = vst [vmem:[#allocation110_spill] sm:$0xff] %v19609_v49  ;;  %v6612_v52 = vsel %vm19617_vm11, %v6510_v12, 0.0  ;;  %v6096_v41 = vadd.f32 %v15859_v57, %v15818_v6  ;;  %vm19618_vm15 = vcmp.lt.s32.totalorder %v19584_v27, 10  ;;  %v19619_v51 = vmov 0  ;;  %vm767_vm13 = vmand %vm16207_vm5, %vm16211_vm14  ;;  %v19634_v49 = vld [vmem:[#allocation141_spill] sm:$0xff] }
 0x69c   :  { %vm16224_vm10 = vmand %vm893_vm7, %vm19618_vm15  ;;  %v512_v43 = vand.u32 1, %v19622_v22  ;;  %v640_v13 = vand.u32 1, %v128_v38  ;;  %vm830_vm0 = vcmp.lt.s32.totalorder %v19600_v55, 10  ;;  %v6511_v12 = vsel %vm16203_vm12, %v16190_v50, 0.0  ;;  %v16259_v26 = vpop.f32.mrf.mxu0 }
 0x69d   :  { %v19620_v51 = vsel %vm16224_vm10, 4294967295, %v19619_v51  ;;  %v6613_v19 = vadd.f32 %v6612_v52, %v6611_v61  ;;  %v130_v6 = vand.u32 15, %v19623_v58  ;;  %vm831_vm7 = vcmp.lt.s32.totalorder %v19601_v14, 10  ;;  %vm16251_vm15 = vmand %vm766_vm8, %vm830_vm0 }
 0x69e   :  { %19621 = vst [vmem:[#allocation203_spill] sm:$0xff] %v19620_v51  ;;  %v6512_v27 = vsel %vm16224_vm10, %v16215_v47, 0.0  ;;  %vm16243_vm2 = vcmp.eq.s32.totalorder %v513_v3, 0  ;;  %vm16247_vm9 = vcmp.eq.s32.totalorder %v641_v54, 0  ;;  %v19628_v55 = vmov 0  ;;  %vm19631_vm14 = vmmov %vm19617_vm11  ;;  %v19632_v54 = vld [vmem:[#allocation139_spill] sm:$0xff] }
 0x69f   :  { %v19629_v55 = vsel %vm16251_vm15, 4294967295, %v19628_v55  ;;  %v16256_v14 = vadd.f32 %v16085_v32, %v6096_v41  ;;  %v6614_v63 = vsel %vm19631_vm14, %v6511_v12, 0.0  ;;  %vm576_vm5 = vcmp.eq.s32.totalorder %v512_v43, 0  ;;  %vm895_vm10 = vmand %vm767_vm13, %vm831_vm7  ;;  %v19635_v32 = vld [vmem:[#allocation140_spill] sm:$0xff]  ;;  %v6395_v12 = vpop.f32.mrf.mxu0 }
 0x6a0   :  { %19630 = vst [vmem:[#allocation205_spill] sm:$0xff] %v19629_v55  ;;  %vm704_vm11 = vcmp.eq.s32.totalorder %v640_v13, 0  ;;  %v6615_v16 = vadd.f32 %v6614_v63, %v6613_v19  ;;  %v6099_v3 = vadd.f32 %v15859_v57, %v15846_v25  ;;  %v514_v52 = vand.u32 1, %v19632_v54  ;;  %vm19633_vm8 = vmmov %vm19631_vm14  ;;  %v19652_v63 = vld [vmem:[#allocation143_spill] sm:$0xff] }
 0x6a1   :  { %v642_v58 = vand.u32 1, %v130_v6  ;;  %v6616_v51 = vsel %vm19633_vm8, %v6512_v27, 0.0  ;;  %v515_v23 = vand.u32 1, %v19634_v49  ;;  %v643_v41 = vand.u32 1, %v19635_v32  ;;  %vm769_vm0 = vmand %vm16243_vm2, %vm16247_vm9 }
 0x6a2   :  { %vm833_vm14 = vcmp.lt.s32.totalorder %v19615_v15, 10  ;;  %v6104_v25 = vadd.f32 %v15859_v57, %v15899_v5  ;;  %vm768_vm13 = vmand %vm576_vm5, %vm704_vm11  ;;  %vm832_vm7 = vcmp.lt.s32.totalorder %v19622_v22, 10  ;;  %v6513_v43 = vsel %vm16251_vm15, %v16256_v14, 0.0  ;;  %v19640_v15 = vld [vmem:[#allocation136_spill] sm:$0xff] }
 0x6a3   :  { %vm19636_vm8 = vcmp.lt.s32.totalorder %v19604_v4, 10  ;;  %v19637_v13 = vmov 0  ;;  %v132_v19 = vand.u32 15, %v19640_v15  ;;  %v16287_v5 = vadd.f32 %v16139_v37, %v6099_v3  ;;  %vm897_vm11 = vmand %vm769_vm0, %vm833_vm14  ;;  %v19653_v3 = vld [vmem:[#allocation142_spill] sm:$0xff]  ;;  %v19659_v15 = vld [vmem:[#allocation145_spill] sm:$0xff] }
 0x6a4   :  { %vm16280_vm12 = vmand %vm895_vm10, %vm19636_vm8  ;;  %v6617_v6 = vadd.f32 %v6616_v51, %v6615_v16  ;;  %v6107_v22 = vadd.f32 %v15859_v57, %v15919_v62  ;;  %v16291_v27 = vadd.f32 %v6392_v0, %v6104_v25  ;;  %vm16293_vm9 = vcmp.eq.s32.totalorder %v514_v52, 0  ;;  %v19651_v51 = vld [vmem:[#allocation146_spill] sm:$0xff]  ;;  %v19690_v4 = vld [vmem:[#allocation159_spill] sm:$0xff] }
 0x6a5   :  { %v19638_v13 = vsel %vm16280_vm12, 4294967295, %v19637_v13  ;;  %vm706_vm10 = vcmp.eq.s32.totalorder %v642_v58, 0  ;;  %vm16297_vm5 = vmand %vm768_vm13, %vm832_vm7  ;;  %v19643_v38 = vmov 0  ;;  %vm16301_vm8 = vcmp.eq.s32.totalorder %v515_v23, 0 }
 0x6a6   :  { %19639 = vst [vmem:[#allocation131_spill] sm:$0xff] %v19638_v13  ;;  %v19644_v38 = vsel %vm16297_vm5, 4294967295, %v19643_v38  ;;  %vm16305_vm2 = vcmp.eq.s32.totalorder %v643_v41, 0  ;;  %v16309_v62 = vadd.f32 %v6395_v12, %v6107_v22  ;;  %v516_v0 = vand.u32 1, %v19651_v51  ;;  %vm770_vm15 = vmand %vm16293_vm9, %vm706_vm10  ;;  %v19674_v13 = vld [vmem:[#allocation154_spill] sm:$0xff] }
 0x6a7   :  { %19645 = vst [vmem:[#allocation204_spill] sm:$0xff] %v19644_v38  ;;  %v517_v16 = vand.u32 1, %v19652_v63  ;;  %v645_v52 = vand.u32 1, %v19653_v3  ;;  %vm19654_vm0 = vcmask 261120   ;;  %vm834_vm14 = vcmp.lt.s32.totalorder %v19632_v54, 10 }
 0x6a8   :  { %19650 = vst [vmem:[#allocation101_spill] sm:$0xff] %v16309_v62  ;;  %v6618_v58 = vsel %vm19654_vm0, %v6513_v43, 0.0  ;;  %vm19655_vm13 = vcmp.lt.s32.totalorder %v19616_v48, 10  ;;  %v19656_v23 = vmov 0  ;;  %v644_v41 = vand.u32 1, %v132_v19 }
 0x6a9   :  { %vm16318_vm7 = vmand %vm897_vm11, %vm19655_vm13  ;;  %v6514_v25 = vsel %vm16280_vm12, %v16287_v5, 0.0  ;;  %v6619_v12 = vadd.f32 %v6618_v58, %v6617_v6  ;;  %v6112_v43 = vadd.f32 %v15859_v57, %v16089_v36  ;;  %v6515_v48 = vsel %vm16297_vm5, %v16291_v27, 0.0  ;;  %v19672_v58 = vld [vmem:[#allocation153_spill] sm:$0xff] }
 0x6aa   :  { %v19657_v23 = vsel %vm16318_vm7, 4294967295, %v19656_v23  ;;  %vm771_vm11 = vmand %vm16301_vm8, %vm16305_vm2  ;;  %vm835_vm0 = vcmp.lt.s32.totalorder %v19634_v49, 10  ;;  %v134_v19 = vand.u32 15, %v19659_v15  ;;  %v6516_v6 = vsel %vm16318_vm7, %v16309_v62, 0.0  ;;  %v19702_v36 = vld [vmem:[#allocation169_spill] sm:$0xff] }
 0x6ab   :  { %19658 = vst [vmem:[#allocation134_spill] sm:$0xff] %v19657_v23  ;;  %vm16341_vm9 = vcmp.eq.s32.totalorder %v516_v0, 0  ;;  %vm16345_vm10 = vcmp.eq.s32.totalorder %v517_v16, 0  ;;  %vm16349_vm13 = vcmp.eq.s32.totalorder %v645_v52, 0  ;;  %vm19666_vm2 = vcmask 261120   ;;  %vm16356_vm8 = vmand %vm770_vm15, %vm834_vm14  ;;  %v19673_v23 = vld [vmem:[#allocation155_spill] sm:$0xff] }
 0x6ac   :  { %v6620_v49 = vsel %vm19666_vm2, %v6514_v25, 0.0  ;;  %v19667_v61 = vmov 0  ;;  %vm19670_vm7 = vmmov %vm19666_vm2  ;;  %v6115_v0 = vadd.f32 %v15859_v57, %v16123_v35  ;;  %vm708_vm5 = vcmp.eq.s32.totalorder %v644_v41, 0 }
 0x6ad   :  { %v19668_v61 = vsel %vm16356_vm8, 4294967295, %v19667_v61  ;;  %v6622_v37 = vsel %vm19670_vm7, %v6515_v48, 0.0  ;;  %v16364_v16 = vadd.f32 %v16182_v40, %v6112_v43  ;;  %v6621_v52 = vadd.f32 %v6620_v49, %v6619_v12  ;;  %vm899_vm12 = vmand %vm771_vm11, %vm835_vm0  ;;  %v19679_v49 = vld [vmem:[#allocation150_spill] sm:$0xff] }
 0x6ae   :  { %19669 = vst [vmem:[#allocation6_spill] sm:$0xff] %v19668_v61  ;;  %vm963_vm1 = vcmp.lt.s32.totalorder %v19635_v32, 10  ;;  %v518_v25 = vand.u32 1, %v19672_v58  ;;  %v6624_v54 = vsel %vm19666_vm2, %v6516_v6, 0.0  ;;  %v519_v38 = vand.u32 1, %v19673_v23  ;;  %vm773_vm15 = vmand %vm16345_vm10, %vm16349_vm13 }
 0x6af   :  { %19671 = vst [vmem:[#allocation9_spill] sm:$0xff] %v16364_v16  ;;  %v7415_v15 = vpop.f32.mrf.mxu0  ;;  %v647_v48 = vand.u32 1, %v19674_v13  ;;  %vm837_vm14 = vcmp.lt.s32.totalorder %v19652_v63, 10  ;;  %v6623_v35 = vadd.f32 %v6622_v37, %v6621_v52  ;;  %v6120_v40 = vadd.f32 %v15859_v57, %v16151_v11  ;;  %vm772_vm7 = vmand %vm16341_vm9, %vm708_vm5 }
 0x6b0   :  { %v646_v32 = vand.u32 1, %v134_v19  ;;  %vm836_vm11 = vcmp.lt.s32.totalorder %v19651_v51, 10  ;;  %vm16382_vm0 = vmand %vm899_vm12, %vm963_vm1  ;;  %v19675_v12 = vmov 0  ;;  %v16387_v43 = vadd.f32 %v16259_v26, %v6115_v0 }
 0x6b1   :  { %v19676_v12 = vsel %vm16382_vm0, 4294967295, %v19675_v12  ;;  %v6127_v6 = vpop.f32.mrf.mxu1  ;;  %v6408_v63 = vpop.f32.mrf.mxu0  ;;  %v136_v37 = vand.u32 15, %v19679_v49  ;;  %v6517_v11 = vsel %vm16356_vm8, %v16364_v16, 0.0  ;;  %v6625_v41 = vadd.f32 %v6624_v54, %v6623_v35  ;;  %vm16400_vm1 = vmand %vm773_vm15, %vm837_vm14 }
 0x6b2   :  { %19677 = vst [vmem:[#allocation10_spill] sm:$0xff] %v19676_v12  ;;  %19678 = vst [vmem:[#allocation15_spill] sm:$0xff] %v16387_v43  ;;  %v16393_v19 = vadd.f32 %v6408_v63, %v6120_v40  ;;  %vm965_vm12 = vcmp.lt.s32.totalorder %v19653_v3, 10  ;;  %v19683_v26 = vmov 0  ;;  %vm16409_vm9 = vcmp.eq.s32.totalorder %v519_v38, 0 }
 0x6b3   :  { %vm16405_vm5 = vmand %vm772_vm7, %vm836_vm11  ;;  %v6129_v22 = vpop.f32.mrf.mxu1  ;;  %v7416_v0 = vpop.f32.mrf.mxu0  ;;  %vm16413_vm2 = vcmp.eq.s32.totalorder %v647_v48, 0  ;;  %v138_v54 = vand.u32 15, %v19690_v4  ;;  %v6123_v35 = vadd.f32 %v15859_v57, %v16178_v46  ;;  %vm16420_vm10 = vcmp.eq.s32.totalorder %v518_v25, 0  ;;  %v19697_v25 = vld [vmem:[#allocation160_spill] sm:$0xff] }
 0x6b4   :  { %19680 = vst [vmem:[#allocation16_spill] sm:$0xff] %v16393_v19  ;;  %v19684_v26 = vsel %vm16405_vm5, 4294967295, %v19683_v26  ;;  %vm710_vm13 = vcmp.eq.s32.totalorder %v646_v32, 0  ;;  %vm839_vm15 = vcmp.lt.s32.totalorder %v19673_v23, 10  ;;  %vm19693_vm14 = vcmask 261120   ;;  %vm16431_vm7 = vmand %vm16400_vm1, %vm965_vm12 }
 0x6b5   :  { %19685 = vst [vmem:[#allocation7_spill] sm:$0xff] %v19684_v26  ;;  %v6626_v38 = vsel %vm19693_vm14, %v6517_v11, 0.0  ;;  %v6518_v48 = vsel %vm16382_vm0, %v16387_v43, 0.0  ;;  %v6130_v40 = vpop.f32.mrf.mxu1  ;;  %v19694_v63 = vmov 0  ;;  %v6411_v46 = vpop.f32.mrf.mxu0  ;;  %v520_v49 = vand.u32 1, %v19697_v25  ;;  %vm775_vm11 = vmand %vm16409_vm9, %vm16413_vm2 }
 0x6b6   :  { %v19695_v63 = vsel %vm16431_vm7, 4294967295, %v19694_v63  ;;  %v648_v22 = vand.u32 1, %v136_v37  ;;  %v6627_v4 = vadd.f32 %v6626_v38, %v6625_v41  ;;  %v6128_v61 = vadd.f32 %v15859_v57, %v6127_v6  ;;  %v19699_v37 = vld [vmem:[#allocation166_spill] sm:$0xff]  ;;  %vm16452_vm14 = vmand %vm16420_vm10, %vm710_vm13 }
 0x6b7   :  { %19696 = vst [vmem:[#allocation8_spill] sm:$0xff] %v19695_v63  ;;  %v6519_v11 = vsel %vm16405_vm5, %v16393_v19, 0.0  ;;  %v16444_v51 = vadd.f32 %v6411_v46, %v6123_v35  ;;  %vm838_vm1 = vcmp.lt.s32.totalorder %v19672_v58, 10  ;;  %v6132_v12 = vpop.f32.mrf.mxu1  ;;  %v522_v41 = vand.u32 1, %v19699_v37  ;;  %v19703_v46 = vld [vmem:[#allocation157_spill] sm:$0xff]  ;;  %v19704_v19 = vld [vmem:[#allocation156_spill] sm:$0xff]  ;;  %vm903_vm10 = vmand %vm775_vm11, %vm839_vm15 }
 0x6b8   :  { %v650_v38 = vand.u32 1, %v138_v54  ;;  %v523_v35 = vand.u32 1, %v19702_v36  ;;  %v521_v26 = vand.u32 1, %v19703_v46  ;;  %v649_v12 = vand.u32 1, %v19704_v19  ;;  %v19709_v63 = vld [vmem:[#allocation168_spill] sm:$0xff] }
 0x6b9   :  { %19698 = vst [vmem:[#allocation14_spill] sm:$0xff] %v16444_v51  ;;  %v6520_v52 = vsel %vm16431_vm7, %v16444_v51, 0.0  ;;  %vm19705_vm9 = vcmask 261120   ;;  %v6135_v54 = vpop.f32.mrf.mxu1  ;;  %vm16466_vm13 = vcmp.eq.s32.totalorder %v520_v49, 0  ;;  %v651_v51 = vand.u32 1, %v19709_v63 }
 0x6ba   :  { %v6628_v43 = vsel %vm19705_vm9, %v6518_v48, 0.0  ;;  %vm19706_vm2 = vmmov %vm19705_vm9  ;;  %v16471_v55 = vadd.f32 %v7415_v15, %v6128_v61  ;;  %v6131_v62 = vadd.f32 %v15859_v57, %v6130_v40  ;;  %vm712_vm12 = vcmp.eq.s32.totalorder %v648_v22, 0 }
 0x6bb   :  { %v6630_v32 = vsel %vm19706_vm2, %v6519_v11, 0.0  ;;  %v6629_v16 = vadd.f32 %v6628_v43, %v6627_v4  ;;  %vm16478_vm9 = vmand %vm16452_vm14, %vm838_vm1  ;;  %v19710_v23 = vmov 0  ;;  %v6137_v49 = vpop.f32.mrf.mxu1  ;;  %vm586_vm11 = vcmp.eq.s32.totalorder %v522_v41, 0 }
 0x6bc   :  { %v19711_v23 = vsel %vm16478_vm9, 4294967295, %v19710_v23  ;;  %vm19713_vm15 = vmmov %vm19706_vm2  ;;  %vm714_vm2 = vcmp.eq.s32.totalorder %v650_v38, 0  ;;  %vm19714_vm7 = vcmp.lt.s32.totalorder %v19674_v13, 10  ;;  %v19715_v61 = vmov 0 }
 0x6bd   :  { %19712 = vst [vmem:[#allocation11_spill] sm:$0xff] %v19711_v23  ;;  %v6632_v48 = vsel %vm19713_vm15, %v6520_v52, 0.0  ;;  %v6631_v11 = vadd.f32 %v6630_v32, %v6629_v16  ;;  %vm16485_vm5 = vmand %vm903_vm10, %vm19714_vm7  ;;  %vm16489_vm0 = vcmp.eq.s32.totalorder %v521_v26, 0  ;;  %vm16493_vm1 = vcmp.eq.s32.totalorder %v649_v12, 0  ;;  %v6138_v43 = vpop.f32.mrf.mxu1  ;;  %v19726_v16 = vld [vmem:[#allocation164_spill] sm:$0xff] }
 0x6be   :  { %v19716_v61 = vsel %vm16485_vm5, 4294967295, %v19715_v61  ;;  %vm16499_vm14 = vmand %vm16466_vm13, %vm712_vm12  ;;  %vm840_vm7 = vcmp.lt.s32.totalorder %v19697_v25, 10  ;;  %vm16504_vm10 = vcmp.eq.s32.totalorder %v523_v35, 0  ;;  %v140_v26 = vand.u32 15, %v19726_v16 }
 0x6bf   :  { %19717 = vst [vmem:[#allocation20_spill] sm:$0xff] %v19716_v61  ;;  %v6521_v22 = vsel %vm16478_vm9, %v16471_v55, 0.0  ;;  %v16512_v4 = vadd.f32 %v7416_v0, %v6131_v62  ;;  %v6633_v41 = vadd.f32 %v6632_v48, %v6631_v11  ;;  %vm16514_vm15 = vmand %vm586_vm11, %vm714_vm2  ;;  %vm16518_vm12 = vcmp.eq.s32.totalorder %v651_v51, 0  ;;  %v6140_v25 = vpop.f32.mrf.mxu1  ;;  %v7419_v52 = vpop.f32.mrf.mxu0  ;;  %v19734_v51 = vld [vmem:[#allocation171_spill] sm:$0xff]  ;;  %v19737_v11 = vld [vmem:[#allocation172_spill] sm:$0xff] }
 0x6c0   :  { %vm841_vm8 = vcmp.lt.s32.totalorder %v19703_v46, 10  ;;  %v6136_v62 = vadd.f32 %v15859_v57, %v6135_v54  ;;  %vm16531_vm11 = vmand %vm16499_vm14, %vm840_vm7  ;;  %v19731_v0 = vmov 0  ;;  %vm843_vm2 = vcmp.lt.s32.totalorder %v19702_v36, 10  ;;  %v19736_v48 = vld [vmem:[#allocation175_spill] sm:$0xff] }
 0x6c1   :  { %v19732_v0 = vsel %vm16531_vm11, 4294967295, %v19731_v0  ;;  %v524_v35 = vand.u32 1, %v19734_v51  ;;  %vm19735_vm13 = vcmask 261120   ;;  %v6143_v32 = vpop.f32.mrf.mxu1  ;;  %v6424_v3 = vpop.f32.mrf.mxu0  ;;  %v652_v54 = vand.u32 1, %v140_v26  ;;  %vm19738_vm14 = vmand %vm16489_vm0, %vm16493_vm1 }
 0x6c2   :  { %19733 = vst [vmem:[#allocation18_spill] sm:$0xff] %v19732_v0  ;;  %v6634_v12 = vsel %vm19735_vm13, %v6521_v22, 0.0  ;;  %v525_v49 = vand.u32 1, %v19736_v48  ;;  %v653_v40 = vand.u32 1, %v19737_v11  ;;  %v6522_v16 = vsel %vm16485_vm5, %v16512_v4, 0.0  ;;  %vm905_vm7 = vmand %vm19738_vm14, %vm841_vm8 }
 0x6c3   :  { %v6635_v25 = vadd.f32 %v6634_v12, %v6633_v41  ;;  %v6144_v23 = vadd.f32 %v15859_v57, %v6143_v32  ;;  %v16549_v22 = vadd.f32 %v6424_v3, %v6136_v62  ;;  %vm19739_vm13 = vcmp.lt.s32.totalorder %v19699_v37, 10  ;;  %v6145_v41 = vpop.f32.mrf.mxu1  ;;  %v7420_v12 = vpop.f32.mrf.mxu0  ;;  %vm19743_vm8 = vmand %vm16504_vm10, %vm16518_vm12 }
 0x6c4   :  { %vm16562_vm3 = vmand %vm16514_vm15, %vm19739_vm13  ;;  %v19740_v26 = vmov 0  ;;  %v6139_v46 = vadd.f32 %v15859_v57, %v6138_v43  ;;  %vm16580_vm1 = vcmp.eq.s32.totalorder %v524_v35, 0  ;;  %vm19746_vm15 = vcmask 261120  }
 0x6c5   :  { %v19741_v26 = vsel %vm16562_vm3, 4294967295, %v19740_v26  ;;  %v16568_v62 = vadd.f32 %v7419_v52, %v6144_v23  ;;  %v6523_v58 = vsel %vm16531_vm11, %v16549_v22, 0.0  ;;  %vm907_vm0 = vmand %vm19743_vm8, %vm843_vm2  ;;  %v6636_v15 = vsel %vm19746_vm15, %v6522_v16, 0.0  ;;  %v6146_v43 = vpop.f32.mrf.mxu1  ;;  %v6427_v36 = vpop.f32.mrf.mxu0 }
 0x6c6   :  { %19742 = vst [vmem:[#allocation23_spill] sm:$0xff] %v19741_v26  ;;  %vm19747_vm14 = vmmov %vm19746_vm15  ;;  %vm19748_vm13 = vcmp.lt.s32.totalorder %v19704_v19, 10  ;;  %v19749_v38 = vmov 0  ;;  %vm716_vm11 = vcmp.eq.s32.totalorder %v652_v54, 0  ;;  %vm16592_vm5 = vcmp.eq.s32.totalorder %v525_v49, 0 }
 0x6c7   :  { %v6638_v23 = vsel %vm19747_vm14, %v6523_v58, 0.0  ;;  %vm16588_vm9 = vmand %vm905_vm7, %vm19748_vm13  ;;  %v6637_v6 = vadd.f32 %v6636_v15, %v6635_v25  ;;  %v6147_v52 = vadd.f32 %v15859_v57, %v6146_v43  ;;  %v16597_v35 = vadd.f32 %v6427_v36, %v6139_v46  ;;  %v6148_v3 = vpop.f32.mrf.mxu1  ;;  %v16609_v54 = vpop.f32.mrf.mxu0 }
 0x6c8   :  { %v19750_v38 = vsel %vm16588_vm9, 4294967295, %v19749_v38  ;;  %vm16599_vm10 = vcmp.eq.s32.totalorder %v653_v40, 0  ;;  %vm19756_vm12 = vcmp.lt.s32.totalorder %v19709_v63, 10  ;;  %v19757_v19 = vmov 0  ;;  %vm780_vm8 = vmand %vm16580_vm1, %vm716_vm11 }
 0x6c9   :  { %19751 = vst [vmem:[#allocation21_spill] sm:$0xff] %v19750_v38  ;;  %vm16605_vm2 = vmand %vm907_vm0, %vm19756_vm12  ;;  %vm844_vm7 = vcmp.lt.s32.totalorder %v19734_v51, 10  ;;  %v6525_v49 = vsel %vm16562_vm3, %v16568_v62, 0.0  ;;  %v6639_v16 = vadd.f32 %v6638_v23, %v6637_v6  ;;  %v16615_v40 = vadd.f32 %v7420_v12, %v6147_v52  ;;  %v6151_v41 = vpop.f32.mrf.mxu1  ;;  %v6440_v46 = vpop.f32.mrf.mxu0  ;;  %v19761_v12 = vld [vmem:[#allocation167_spill] sm:$0xff] }
 0x6ca   :  { %v19758_v19 = vsel %vm16605_vm2, 4294967295, %v19757_v19  ;;  %v6524_v63 = vsel %vm16588_vm9, %v16597_v35, 0.0  ;;  %vm19760_vm0 = vmmov %vm19747_vm14  ;;  %vm845_vm14 = vcmp.lt.s32.totalorder %v19736_v48, 10  ;;  %v142_v58 = vand.u32 15, %v19761_v12 }
 0x6cb   :  { %19759 = vst [vmem:[#allocation24_spill] sm:$0xff] %v19758_v19  ;;  %v6640_v25 = vsel %vm19760_vm0, %v6524_v63, 0.0  ;;  %vm781_vm15 = vmand %vm16592_vm5, %vm16599_vm10  ;;  %v6526_v15 = vsel %vm16605_vm2, %v16615_v40, 0.0  ;;  %v6152_v37 = vadd.f32 %v15859_v57, %v6151_v41  ;;  %v19763_v36 = vmov 0  ;;  %v6153_v13 = vpop.f32.mrf.mxu1  ;;  %v7424_v6 = vpop.f32.mrf.mxu0 }
 0x6cc   :  { %v6641_v23 = vadd.f32 %v6640_v25, %v6639_v16  ;;  %vm19762_vm11 = vmmov %vm19760_vm0  ;;  %vm973_vm13 = vcmp.lt.s32.totalorder %v19737_v11, 10  ;;  %v19767_v16 = vld [vmem:[#allocation177_spill] sm:$0xff]  ;;  %v19768_v25 = vld [vmem:[#allocation178_spill] sm:$0xff]  ;;  %v19771_v11 = vmov 0 }
 0x6cd   :  { %v6642_v43 = vsel %vm19762_vm11, %v6525_v49, 0.0  ;;  %vm16636_vm1 = vmand %vm780_vm8, %vm844_vm7  ;;  %v16640_v52 = vadd.f32 %v6440_v46, %v6152_v37  ;;  %v6154_v3 = vpop.f32.mrf.mxu1  ;;  %v526_v63 = vand.u32 1, %v19767_v16  ;;  %v654_v49 = vand.u32 1, %v142_v58  ;;  %v19769_v46 = vld [vmem:[#allocation179_spill] sm:$0xff]  ;;  %v19774_v58 = vld [vmem:[#allocation173_spill] sm:$0xff] }
 0x6ce   :  { %v19764_v36 = vsel %vm16636_vm1, 4294967295, %v19763_v36  ;;  %v6643_v48 = vadd.f32 %v6642_v43, %v6641_v23  ;;  %vm909_vm5 = vmand %vm781_vm15, %vm845_vm14  ;;  %v527_v51 = vand.u32 1, %v19768_v25  ;;  %v6155_v23 = vadd.f32 %v15859_v57, %v6154_v3 }
 0x6cf   :  { %19765 = vst [vmem:[#allocation13_spill] sm:$0xff] %v19764_v36  ;;  %vm19766_vm10 = vmmov %vm19760_vm0  ;;  %v6527_v41 = vsel %vm16636_vm1, %v16640_v52, 0.0  ;;  %v655_v37 = vand.u32 1, %v19769_v46  ;;  %v6156_v13 = vpop.f32.mrf.mxu1  ;;  %v144_v19 = vand.u32 15, %v19774_v58  ;;  %vm590_vm8 = vcmp.eq.s32.totalorder %v526_v63, 0 }
 0x6d0   :  { %v6644_v32 = vsel %vm19766_vm10, %v6526_v15, 0.0  ;;  %vm19770_vm12 = vmmov %vm19760_vm0  ;;  %v6443_v15 = vpop.f32.mrf.mxu0  ;;  %vm718_vm0 = vcmp.eq.s32.totalorder %v654_v49, 0  ;;  %vm16659_vm15 = vcmp.eq.s32.totalorder %v527_v51, 0  ;;  %v19779_v13 = vld [vmem:[#allocation183_spill] sm:$0xff]  ;;  %vm975_vm1 = vcmp.lt.s32.totalorder %v19769_v46, 10 }
 0x6d1   :  { %v6645_v12 = vadd.f32 %v6644_v32, %v6643_v48  ;;  %v6646_v43 = vsel %vm19770_vm12, %v6527_v41, 0.0  ;;  %vm16652_vm7 = vmand %vm909_vm5, %vm973_vm13  ;;  %v16657_v38 = vadd.f32 %v6443_v15, %v6155_v23  ;;  %v6159_v48 = vpop.f32.mrf.mxu1  ;;  %vm16666_vm14 = vcmp.eq.s32.totalorder %v655_v37, 0  ;;  %v19790_v41 = vld [vmem:[#allocation188_spill] sm:$0xff] }
 0x6d2   :  { %v19772_v11 = vsel %vm16652_vm7, 4294967295, %v19771_v11  ;;  %v529_v58 = vand.u32 1, %v19779_v13  ;;  %vm19781_vm11 = vmmov %vm19766_vm10  ;;  %v16673_v49 = vpop.f32.mrf.mxu0  ;;  %v656_v36 = vand.u32 1, %v144_v19  ;;  %vm846_vm13 = vcmp.lt.s32.totalorder %v19767_v16, 10 }
 0x6d3   :  { %19773 = vst [vmem:[#allocation17_spill] sm:$0xff] %v19772_v11  ;;  %v6647_v26 = vadd.f32 %v6646_v43, %v6645_v12  ;;  %v6528_v3 = vsel %vm16652_vm7, %v16657_v38, 0.0  ;;  %v19780_v12 = vld [vmem:[#allocation184_spill] sm:$0xff]  ;;  %v6161_v51 = vpop.f32.mrf.mxu1  ;;  %v19782_v43 = vld [vmem:[#allocation182_spill] sm:$0xff]  ;;  %vm782_vm5 = vmand %vm590_vm8, %vm718_vm0  ;;  %v6160_v37 = vadd.f32 %v15859_v57, %v6159_v48  ;;  %vm847_vm12 = vcmp.lt.s32.totalorder %v19768_v25, 10 }
 0x6d4   :  { %v657_v23 = vand.u32 1, %v19780_v12  ;;  %v6648_v63 = vsel %vm19781_vm11, %v6528_v3, 0.0  ;;  %v528_v15 = vand.u32 1, %v19782_v43  ;;  %vm783_vm10 = vmand %vm16659_vm15, %vm16666_vm14  ;;  %v19783_v11 = vld [vmem:[#allocation180_spill] sm:$0xff]  ;;  %vm16685_vm11 = vcmp.eq.s32.totalorder %v529_v58, 0  ;;  %v6456_v48 = vpop.f32.mrf.mxu0 }
 0x6d5   :  { %v6649_v0 = vadd.f32 %v6648_v63, %v6647_v26  ;;  %v6162_v3 = vpop.f32.mrf.mxu1  ;;  %v146_v61 = vand.u32 15, %v19783_v11  ;;  %vm16693_vm0 = vmand %vm782_vm5, %vm846_vm13  ;;  %vm720_vm14 = vcmp.eq.s32.totalorder %v656_v36, 0  ;;  %v16698_v25 = vadd.f32 %v16609_v54, %v6160_v37  ;;  %v19791_v63 = vld [vmem:[#allocation186_spill] sm:$0xff] }
 0x6d6   :  { %v6163_v51 = vadd.f32 %v15859_v57, %v6162_v3  ;;  %vm16689_vm8 = vcmp.eq.s32.totalorder %v657_v23, 0  ;;  %vm592_vm15 = vcmp.eq.s32.totalorder %v528_v15, 0  ;;  %vm911_vm7 = vmand %vm783_vm10, %vm847_vm12  ;;  %vm848_vm2 = vcmp.lt.s32.totalorder %v19782_v43, 10  ;;  %v19792_v15 = vld [vmem:[#allocation187_spill] sm:$0xff]  ;;  %v7428_v3 = vpop.f32.mrf.mxu0 }
 0x6d7   :  { %v6164_v32 = vpop.f32.mrf.mxu1  ;;  %vm785_vm5 = vmand %vm16685_vm11, %vm16689_vm8  ;;  %vm849_vm13 = vcmp.lt.s32.totalorder %v19779_v13, 10  ;;  %v530_v58 = vand.u32 1, %v19790_v41  ;;  %v658_v23 = vand.u32 1, %v146_v61  ;;  %v531_v46 = vand.u32 1, %v19791_v63 }
 0x6d8   :  { %v16708_v36 = vadd.f32 %v7424_v6, %v6163_v51  ;;  %vm784_vm3 = vmand %vm592_vm15, %vm720_vm14  ;;  %v659_v37 = vand.u32 1, %v19792_v15  ;;  %v19793_v26 = vmov 0  ;;  %v6529_v13 = vsel %vm16693_vm0, %v16698_v25, 0.0 }
 0x6d9   :  { %v6167_v11 = vpop.f32.mrf.mxu1  ;;  %vm16713_vm10 = vmand %vm911_vm7, %vm975_vm1  ;;  %vm977_vm11 = vcmp.lt.s32.totalorder %v19780_v12, 10  ;;  %v19796_v6 = vmov 0  ;;  %vm594_vm1 = vcmp.eq.s32.totalorder %v530_v58, 0  ;;  %vm722_vm7 = vcmp.eq.s32.totalorder %v658_v23, 0 }
 0x6da   :  { %v6168_v54 = vadd.f32 %v15859_v57, %v6167_v11  ;;  %v19794_v26 = vsel %vm16713_vm10, 4294967295, %v19793_v26  ;;  %vm913_vm12 = vmand %vm785_vm5, %vm849_vm13  ;;  %v6530_v32 = vsel %vm16713_vm10, %v16708_v36, 0.0  ;;  %vm16731_vm15 = vcmp.eq.s32.totalorder %v531_v46, 0 }
 0x6db   :  { %19795 = vst [vmem:[#allocation26_spill] sm:$0xff] %v19794_v26  ;;  %v6169_v19 = vpop.f32.mrf.mxu1  ;;  %vm16723_vm8 = vmand %vm784_vm3, %vm848_vm2  ;;  %vm16735_vm14 = vcmp.eq.s32.totalorder %v659_v37, 0  ;;  %vm19803_vm3 = vcmask 261120   ;;  %v19804_v58 = vmov 0  ;;  %vm850_vm13 = vcmp.lt.s32.totalorder %v19790_v41, 10 }
 0x6dc   :  { %v6457_v61 = vadd.f32 %v6456_v48, %v6168_v54  ;;  %v19797_v6 = vsel %vm16723_vm8, 4294967295, %v19796_v6  ;;  %v6650_v43 = vsel %vm19803_vm3, %v6529_v13, 0.0  ;;  %v6459_v54 = vpop.f32.mrf.mxu0  ;;  %vm16740_vm2 = vmand %vm913_vm12, %vm977_vm11  ;;  %vm851_vm12 = vcmp.lt.s32.totalorder %v19791_v63, 10 }
 0x6dd   :  { %19798 = vst [vmem:[#allocation19_spill] sm:$0xff] %v19797_v6  ;;  %v6170_v51 = vpop.f32.mrf.mxu1  ;;  %v19805_v58 = vsel %vm16740_vm2, 4294967295, %v19804_v58  ;;  %vm786_vm5 = vmand %vm594_vm1, %vm722_vm7  ;;  %v6651_v13 = vadd.f32 %v6650_v43, %v6649_v0  ;;  %vm979_vm7 = vcmp.lt.s32.totalorder %v19792_v15, 10  ;;  %v1048_v6 = vld [vmem:[%s17241_s3 + $0x4] sm:$0x1] }
 0x6de   :  { %v6171_v11 = vadd.f32 %v15859_v57, %v6170_v51  ;;  %19806 = vst [vmem:[#allocation27_spill] sm:$0xff] %v19805_v58  ;;  %v6531_v19 = vsel %vm16723_vm8, %v6457_v61, 0.0  ;;  %vm19807_vm10 = vmmov %vm19803_vm3 }
 0x6df   :  { %v6172_v23 = vpop.f32.mrf.mxu1  ;;  %v6652_v46 = vsel %vm19807_vm10, %v6530_v32, 0.0  ;;  %vm787_vm3 = vmand %vm16731_vm15, %vm16735_vm14  ;;  %v19809_v32 = vmov 0 }
 0x6e0   :  { %v6460_v57 = vadd.f32 %v6459_v54, %v6171_v11  ;;  %v8778_v11 = vld [vmem:[%s17241_s3 + $0x3] ss:$0 sm:$0xff]  ;;  %vm19808_vm11 = vmmov %vm19807_vm10  ;;  %v6653_v48 = vadd.f32 %v6652_v46, %v6651_v13 }
 0x6e1   :  { %v6654_v41 = vsel %vm19808_vm11, %v6531_v19, 0.0  ;;  %vm16759_vm10 = vmand %vm786_vm5, %vm850_vm13 }
 0x6e2   :  { %v6532_v51 = vsel %vm16740_vm2, %v6460_v57, 0.0  ;;  %v19810_v32 = vsel %vm16759_vm10, 4294967295, %v19809_v32  ;;  %vm915_vm1 = vmand %vm787_vm3, %vm851_vm12  ;;  %v6655_v43 = vadd.f32 %v6654_v41, %v6653_v48  ;;  %vm19817_vm3 = vnez %v19209_v53 }
 0x6e3   :  { %19811 = vst [vmem:[#allocation30_spill] sm:$0xff] %v19810_v32  ;;  %vm19812_vm15 = vmmov %vm19808_vm11  ;;  %vm19818_vm12 = vnez %v19224_v31 }
 0x6e4   :  { %v6656_v0 = vsel %vm19812_vm15, %v6532_v51, 0.0  ;;  %vm19813_vm14 = vmmov %vm19808_vm11  ;;  %vm19823_vm15 = vnez %v19218_v10 }
 0x6e5   :  { %v6175_v37 = vpop.f32.mrf.mxu1  ;;  %vm16769_vm5 = vmand %vm915_vm1, %vm979_vm7  ;;  %v6657_v13 = vadd.f32 %v6656_v0, %v6655_v43 }
 0x6e6   :  { %v6176_v54 = vadd.f32 %v8778_v11, %v6175_v37  ;;  %vm19816_vm13 = vmmov %vm19808_vm11 }
 0x6e7   :  { %v6177_v12 = vpop.f32.mrf.mxu1  ;;  %vm19821_vm1 = vmmov %vm19816_vm13 }
 0x6e8   :  { %v6465_v23 = vadd.f32 %v16673_v49, %v6176_v54  ;;  %vm19822_vm7 = vmmov %vm19821_vm1 }
 0x6e9   :  { %v6178_v63 = vpop.f32.mrf.mxu1 }
 0x6ea   :  { %v6533_v37 = vsel %vm16759_vm10, %v6465_v23, 0.0  ;;  %v6179_v58 = vadd.f32 %v8778_v11, %v6178_v63 }
 0x6eb   :  { %v6658_v19 = vsel %vm19813_vm14, %v6533_v37, 0.0  ;;  %v6180_v46 = vpop.f32.mrf.mxu1  ;;  %vm19824_vm14 = vmmov %vm19821_vm1 }
 0x6ec   :  { %v6468_v49 = vadd.f32 %v7428_v3, %v6179_v58  ;;  %v6659_v54 = vadd.f32 %v6658_v19, %v6657_v13 }
 0x6ee   :  { %v6534_v15 = vsel %vm16769_vm5, %v6468_v49, 0.0 }
 0x6ef   :  { %v6660_v51 = vsel %vm19816_vm13, %v6534_v15, 0.0  ;;  %vm19825_vm13 = vnez %v19263_v2 }
 0x6f0   :  { %v6661_v41 = vadd.f32 %v6660_v51, %v6659_v54 }
 0x6f2   :  { %v6662_v12 = vrot.slane %v6661_v41, 4 }
 0x6f4   :  { %v6663_v48 = vadd.f32 %v6662_v12, %v6661_v41 }
 0x6f6   :  { %v6664_v32 = vrot.slane %v6663_v48, 2 }
 0x6f8   :  { %v6665_v11 = vadd.f32 %v6664_v32, %v6663_v48 }
 0x6fa   :  { %v6666_v63 = vrot.slane %v6665_v11, 1 }
 0x6fc   :  { %v6667_v37 = vadd.f32 %v6666_v63, %v6665_v11 }
 0x6fe   :  { %v16776_v26 = vmul.f32 0.02, %v6667_v37 }
 0x700   :  { %v16780_v46 = vsub.f32 %v16615_v40, %v16776_v26  ;;  %v16784_v3 = vsub.f32 %v16640_v52, %v16776_v26  ;;  %v16788_v58 = vsub.f32 %v16657_v38, %v16776_v26  ;;  %v16792_v0 = vsub.f32 %v16698_v25, %v16776_v26 }
 0x701   :  { %v16796_v32 = vsub.f32 %v16708_v36, %v16776_v26  ;;  %v16799_v43 = vsub.f32 %v6457_v61, %v16776_v26  ;;  %v16802_v40 = vsub.f32 %v6460_v57, %v16776_v26  ;;  %v16805_v52 = vsub.f32 %v6465_v23, %v16776_v26 }
 0x702   :  { %v16808_v38 = vsub.f32 %v6468_v49, %v16776_v26  ;;  %v16812_v25 = vsub.f32 %v15085_v24, %v16776_v26  ;;  %v16816_v36 = vsub.f32 %v15162_v1, %v16776_v26  ;;  %v6671_v61 = vsub.f32 %v15112_v39, %v16776_v26 }
 0x703   :  { %v6672_v57 = vsub.f32 %v15160_v59, %v16776_v26  ;;  %v16828_v24 = vsub.f32 %v15224_v28, %v16776_v26  ;;  %v16832_v1 = vsub.f32 %v15276_v42, %v16776_v26  ;;  %v6675_v54 = vsub.f32 %v15255_v44, %v16776_v26  ;;  %v19819_v28 = vld [vmem:[#allocation125_spill] sm:$0xff] }
 0x704   :  { %v6733_v23 = vmul.f32 %v16812_v25, %v16812_v25  ;;  %v6734_v19 = vmul.f32 %v16816_v36, %v16816_v36  ;;  %v6735_v13 = vmul.f32 %v6671_v61, %v6671_v61  ;;  %vm19820_vm11 = vnez %v19819_v28 }
 0x705   :  { %v6736_v49 = vmul.f32 %v6672_v57, %v6672_v57  ;;  %v6737_v15 = vmul.f32 %v16828_v24, %v16828_v24  ;;  %v6676_v53 = vsub.f32 %v15274_v29, %v16776_v26  ;;  %v6738_v31 = vmul.f32 %v16832_v1, %v16832_v1 }
 0x706   :  { %v6797_v39 = vsel %vm19817_vm3, %v6733_v23, 0.0  ;;  %v6798_v59 = vsel %vm19818_vm12, %v6734_v19, 0.0  ;;  %v6799_v51 = vsel %vm19820_vm11, %v6735_v13, 0.0  ;;  %v16855_v11 = vsub.f32 %v15337_v20, %v16776_v26  ;;  %vm19826_vm3 = vmmov %vm19821_vm1 }
 0x707   :  { %v6861_v41 = vsel %vm19821_vm1, %v6797_v39, 0.0  ;;  %v6862_v42 = vsel %vm19822_vm7, %v6798_v59, 0.0  ;;  %v6800_v12 = vsel %vm19823_vm15, %v6736_v49, 0.0  ;;  %v6864_v48 = vsel %vm19824_vm14, %v6799_v51, 0.0  ;;  %vm19828_vm11 = vmmov %vm19821_vm1 }
 0x708   :  { %v6863_v44 = vadd.f32 %v6862_v42, %v6861_v41  ;;  %v6739_v63 = vmul.f32 %v6675_v54, %v6675_v54  ;;  %v6801_v37 = vsel %vm19825_vm13, %v6737_v15, 0.0  ;;  %v6866_v29 = vsel %vm19826_vm3, %v6800_v12, 0.0  ;;  %vm19830_vm7 = vmmov %vm19826_vm3  ;;  %v19834_v42 = vld [vmem:[#allocation197_spill] sm:$0xff] }
 0x709   :  { %v16862_v57 = vsub.f32 %v15387_v45, %v16776_v26  ;;  %v6740_v10 = vmul.f32 %v6676_v53, %v6676_v53  ;;  %vm19827_vm12 = vnez %v19273_v17  ;;  %v6868_v13 = vsel %vm19828_vm11, %v6801_v37, 0.0  ;;  %vm19831_vm15 = vmmov %vm19826_vm3  ;;  %v19838_v37 = vld [vmem:[#allocation144_spill] sm:$0xff] }
 0x70a   :  { %v6865_v61 = vadd.f32 %v6864_v48, %v6863_v44  ;;  %v6802_v23 = vsel %vm19827_vm12, %v6738_v31, 0.0  ;;  %v6679_v20 = vsub.f32 %v15358_v33, %v16776_v26  ;;  %v6741_v2 = vmul.f32 %v16855_v11, %v16855_v11  ;;  %vm19833_vm13 = vmmov %vm19826_vm3 }
 0x70b   :  { %vm19829_vm1 = vnez %v19240_v21  ;;  %v6870_v45 = vsel %vm19830_vm7, %v6802_v23, 0.0  ;;  %v6680_v59 = vsub.f32 %v15385_v9, %v16776_v26  ;;  %v6742_v17 = vmul.f32 %v16862_v57, %v16862_v57  ;;  %v19841_v23 = vld [vmem:[#allocation201_spill] sm:$0xff] }
 0x70c   :  { %v6867_v19 = vadd.f32 %v6866_v29, %v6865_v61  ;;  %v6803_v49 = vsel %vm19829_vm1, %v6739_v63, 0.0  ;;  %v6804_v54 = vsel %vm15216_vm6, %v6740_v10, 0.0  ;;  %v16883_v28 = vsub.f32 %v15437_v8, %v16776_v26  ;;  %vm19836_vm6 = vmmov %vm19826_vm3  ;;  %v19837_v8 = vld [vmem:[#allocation82_spill] sm:$0xff] }
 0x70d   :  { %v6872_v33 = vsel %vm19831_vm15, %v6803_v49, 0.0  ;;  %v6743_v21 = vmul.f32 %v6679_v20, %v6679_v20  ;;  %vm19832_vm14 = vnez %v19293_v7  ;;  %v6874_v9 = vsel %vm19833_vm13, %v6804_v54, 0.0  ;;  %vm19840_vm12 = vmmov %vm19836_vm6  ;;  %v19842_v20 = vld [vmem:[#allocation165_spill] sm:$0xff]  ;;  %v19846_v54 = vld [vmem:[#allocation176_spill] sm:$0xff] }
 0x70e   :  { %v6869_v39 = vadd.f32 %v6868_v13, %v6867_v19  ;;  %v6805_v51 = vsel %vm19832_vm14, %v6741_v2, 0.0  ;;  %v16890_v53 = vsub.f32 %v19834_v42, %v16776_v26  ;;  %v6744_v30 = vmul.f32 %v6680_v59, %v6680_v59  ;;  %vm19844_vm11 = vmmov %vm19836_vm6  ;;  %v19850_v42 = vld [vmem:[#allocation200_spill] sm:$0xff] }
 0x70f   :  { %v6806_v12 = vsel %vm15367_vm4, %v6742_v17, 0.0  ;;  %v6876_v48 = vsel %vm19836_vm6, %v6805_v51, 0.0  ;;  %v6683_v63 = vsub.f32 %v19837_v8, %v16776_v26  ;;  %v6745_v7 = vmul.f32 %v16883_v28, %v16883_v28  ;;  %vm19848_vm7 = vmmov %vm19836_vm6  ;;  %v19849_v51 = vld [vmem:[#allocation158_spill] sm:$0xff] }
 0x710   :  { %v6871_v15 = vadd.f32 %v6870_v45, %v6869_v39  ;;  %vm19839_vm3 = vnez %v19838_v37  ;;  %v6878_v10 = vsel %vm19840_vm12, %v6806_v12, 0.0  ;;  %v6684_v19 = vsub.f32 %v19841_v23, %v16776_v26  ;;  %v19845_v45 = vld [vmem:[#allocation162_spill] sm:$0xff]  ;;  %vm19852_vm14 = vmmov %vm19836_vm6 }
 0x711   :  { %v6807_v61 = vsel %vm19839_vm3, %v6743_v21, 0.0  ;;  %v6746_v13 = vmul.f32 %v16890_v53, %v16890_v53  ;;  %vm19843_vm4 = vnez %v19842_v20  ;;  %v6685_v59 = vsub.f32 %v19845_v45, %v16776_v26  ;;  %vm19859_vm12 = vmmov %vm19836_vm6 }
 0x712   :  { %v6873_v41 = vadd.f32 %v6872_v33, %v6871_v15  ;;  %v6808_v2 = vsel %vm19843_vm4, %v6744_v30, 0.0  ;;  %v6880_v39 = vsel %vm19844_vm11, %v6807_v61, 0.0  ;;  %v6747_v17 = vmul.f32 %v6683_v63, %v6683_v63  ;;  %v19854_v63 = vld [vmem:[#allocation198_spill] sm:$0xff]  ;;  %vm19863_vm11 = vmmov %vm19836_vm6 }
 0x713   :  { %vm19847_vm1 = vnez %v19846_v54  ;;  %v6882_v21 = vsel %vm19848_vm7, %v6808_v2, 0.0  ;;  %vm19851_vm15 = vnez %v19850_v42  ;;  %v6749_v8 = vmul.f32 %v6685_v59, %v6685_v59  ;;  %v19861_v59 = vld [vmem:[#allocation149_spill] sm:$0xff]  ;;  %vm19867_vm7 = vmmov %vm19836_vm6 }
 0x714   :  { %v6875_v44 = vadd.f32 %v6874_v9, %v6873_v41  ;;  %v6809_v15 = vsel %vm19847_vm1, %v6745_v7, 0.0  ;;  %v6686_v41 = vsub.f32 %v19849_v51, %v16776_v26  ;;  %v6748_v9 = vmul.f32 %v6684_v19, %v6684_v19  ;;  %v19857_v19 = vld [vmem:[#allocation163_spill] sm:$0xff] }
 0x715   :  { %v6810_v30 = vsel %vm19851_vm15, %v6746_v13, 0.0  ;;  %v6884_v12 = vsel %vm19852_vm14, %v6809_v15, 0.0  ;;  %vm19855_vm13 = vnez %v19854_v63  ;;  %vm19858_vm3 = vnez %v19857_v19  ;;  %vm19871_vm14 = vmmov %vm19836_vm6 }
 0x716   :  { %v6877_v29 = vadd.f32 %v6876_v48, %v6875_v44  ;;  %v19853_v44 = vld [vmem:[#allocation152_spill] sm:$0xff]  ;;  %v6811_v7 = vsel %vm19855_vm13, %v6747_v17, 0.0  ;;  %v6886_v61 = vsel %vm19836_vm6, %v6810_v30, 0.0  ;;  %v6750_v23 = vmul.f32 %v6686_v41, %v6686_v41  ;;  %v19865_v41 = vld [vmem:[#allocation138_spill] sm:$0xff] }
 0x717   :  { %v6687_v48 = vsub.f32 %v19853_v44, %v16776_v26  ;;  %v6812_v13 = vsel %vm19858_vm3, %v6748_v9, 0.0  ;;  %v6888_v2 = vsel %vm19859_vm12, %v6811_v7, 0.0  ;;  %vm19862_vm4 = vnez %v19861_v59  ;;  %vm19878_vm12 = vmmov %vm19836_vm6 }
 0x718   :  { %v6879_v49 = vadd.f32 %v6878_v10, %v6877_v29  ;;  %v19856_v29 = vld [vmem:[#allocation185_spill] sm:$0xff]  ;;  %v6813_v17 = vsel %vm19862_vm4, %v6749_v8, 0.0  ;;  %v6890_v15 = vsel %vm19863_vm11, %v6812_v13, 0.0  ;;  %vm19866_vm1 = vnez %v19865_v41  ;;  %vm19882_vm11 = vmmov %vm19836_vm6 }
 0x719   :  { %v6688_v10 = vsub.f32 %v19856_v29, %v16776_v26  ;;  %v6751_v45 = vmul.f32 %v6687_v48, %v6687_v48  ;;  %v6814_v9 = vsel %vm19866_vm1, %v6750_v23, 0.0  ;;  %v6892_v30 = vsel %vm19867_vm7, %v6813_v17, 0.0  ;;  %v19869_v48 = vld [vmem:[#allocation170_spill] sm:$0xff]  ;;  %vm19886_vm7 = vmmov %vm19836_vm6 }
 0x71a   :  { %v6881_v33 = vadd.f32 %v6880_v39, %v6879_v49  ;;  %v19860_v49 = vld [vmem:[#allocation181_spill] sm:$0xff]  ;;  %vm19870_vm15 = vnez %v19869_v48  ;;  %v6894_v7 = vsel %vm19871_vm14, %v6814_v9, 0.0  ;;  %vm19890_vm14 = vmmov %vm19836_vm6 }
 0x71b   :  { %v6689_v39 = vsub.f32 %v19860_v49, %v16776_v26  ;;  %v6752_v51 = vmul.f32 %v6688_v10, %v6688_v10  ;;  %v6815_v8 = vsel %vm19870_vm15, %v6751_v45, 0.0  ;;  %v19873_v10 = vld [vmem:[#allocation62_spill] sm:$0xff] }
 0x71c   :  { %v6883_v31 = vadd.f32 %v6882_v21, %v6881_v33  ;;  %v19864_v33 = vld [vmem:[#allocation75_spill] sm:$0xff]  ;;  %vm19874_vm13 = vnez %v19873_v10  ;;  %v6896_v13 = vsel %vm19836_vm6, %v6815_v8, 0.0 }
 0x71d   :  { %v6690_v21 = vsub.f32 %v19864_v33, %v16776_v26  ;;  %v6753_v44 = vmul.f32 %v6689_v39, %v6689_v39  ;;  %v6816_v23 = vsel %vm19874_vm13, %v6752_v51, 0.0  ;;  %v19876_v39 = vld [vmem:[#allocation151_spill] sm:$0xff] }
 0x71e   :  { %v6885_v37 = vadd.f32 %v6884_v12, %v6883_v31  ;;  %v19868_v31 = vld [vmem:[#allocation65_spill] sm:$0xff]  ;;  %vm19877_vm3 = vnez %v19876_v39  ;;  %v6898_v17 = vsel %vm19878_vm12, %v6816_v23, 0.0  ;;  %vm19897_vm12 = vmmov %vm19836_vm6 }
 0x71f   :  { %v6691_v12 = vsub.f32 %v19868_v31, %v16776_v26  ;;  %v6754_v29 = vmul.f32 %v6690_v21, %v6690_v21  ;;  %v6817_v45 = vsel %vm19877_vm3, %v6753_v44, 0.0  ;;  %v19880_v21 = vld [vmem:[#allocation189_spill] sm:$0xff] }
 0x720   :  { %v6887_v20 = vadd.f32 %v6886_v61, %v6885_v37  ;;  %v19872_v37 = vld [vmem:[#allocation115_spill] sm:$0xff]  ;;  %vm19881_vm4 = vnez %v19880_v21  ;;  %v6900_v9 = vsel %vm19882_vm11, %v6817_v45, 0.0  ;;  %vm19900_vm11 = vmmov %vm19836_vm6 }
 0x721   :  { %v6692_v61 = vsub.f32 %v19872_v37, %v16776_v26  ;;  %v6755_v49 = vmul.f32 %v6691_v12, %v6691_v12  ;;  %v6818_v51 = vsel %vm19881_vm4, %v6754_v29, 0.0  ;;  %v19884_v12 = vld [vmem:[#allocation53_spill] sm:$0xff] }
 0x722   :  { %v6889_v54 = vadd.f32 %v6888_v2, %v6887_v20  ;;  %v19875_v20 = vld [vmem:[#allocation117_spill] sm:$0xff]  ;;  %vm19885_vm1 = vnez %v19884_v12  ;;  %v6902_v8 = vsel %vm19886_vm7, %v6818_v51, 0.0  ;;  %vm19903_vm7 = vmmov %vm19836_vm6 }
 0x723   :  { %v6693_v2 = vsub.f32 %v19875_v20, %v16776_v26  ;;  %v6756_v33 = vmul.f32 %v6692_v61, %v6692_v61  ;;  %v6819_v44 = vsel %vm19885_vm1, %v6755_v49, 0.0  ;;  %v19888_v61 = vld [vmem:[#allocation96_spill] sm:$0xff] }
 0x724   :  { %v6891_v42 = vadd.f32 %v6890_v15, %v6889_v54  ;;  %v19879_v54 = vld [vmem:[#allocation122_spill] sm:$0xff]  ;;  %vm19889_vm15 = vnez %v19888_v61  ;;  %v6904_v23 = vsel %vm19890_vm14, %v6819_v44, 0.0  ;;  %v6700_v44 = vsub.f32 %v15953_v56, %v16776_v26  ;;  %vm19906_vm14 = vmmov %vm19836_vm6  ;;  %v19907_v56 = vld [vmem:[#allocation89_spill] sm:$0xff] }
 0x725   :  { %v6694_v15 = vsub.f32 %v19879_v54, %v16776_v26  ;;  %v6757_v31 = vmul.f32 %v6693_v2, %v6693_v2  ;;  %v6820_v29 = vsel %vm19889_vm15, %v6756_v33, 0.0  ;;  %v19892_v2 = vld [vmem:[#allocation105_spill] sm:$0xff] }
 0x726   :  { %v6893_v63 = vadd.f32 %v6892_v30, %v6891_v42  ;;  %v19883_v42 = vld [vmem:[#allocation147_spill] sm:$0xff]  ;;  %vm19893_vm13 = vnez %v19892_v2  ;;  %v6906_v45 = vsel %vm19836_vm6, %v6820_v29, 0.0  ;;  %v19904_v29 = vld [vmem:[#allocation52_spill] sm:$0xff]  ;;  %v19908_v2 = vld [vmem:[#allocation42_spill] sm:$0xff] }
 0x727   :  { %v6695_v30 = vsub.f32 %v19883_v42, %v16776_v26  ;;  %v6758_v37 = vmul.f32 %v6694_v15, %v6694_v15  ;;  %v6821_v49 = vsel %vm19893_vm13, %v6757_v31, 0.0  ;;  %v19895_v15 = vld [vmem:[#allocation68_spill] sm:$0xff]  ;;  %vm19905_vm15 = vnez %v19904_v29  ;;  %v19922_v29 = vld [vmem:[#allocation194_spill] sm:$0xff] }
 0x728   :  { %v6895_v19 = vadd.f32 %v6894_v7, %v6893_v63  ;;  %v19887_v63 = vld [vmem:[#allocation79_spill] sm:$0xff]  ;;  %vm19896_vm3 = vnez %v19895_v15  ;;  %v6908_v51 = vsel %vm19897_vm12, %v6821_v49, 0.0  ;;  %v19898_v42 = vld [vmem:[#allocation56_spill] sm:$0xff]  ;;  %vm19909_vm13 = vnez %v19908_v2  ;;  %vm19913_vm12 = vmmov %vm19836_vm6 }
 0x729   :  { %v6696_v7 = vsub.f32 %v19887_v63, %v16776_v26  ;;  %v6759_v20 = vmul.f32 %v6695_v30, %v6695_v30  ;;  %v6822_v33 = vsel %vm19896_vm3, %v6758_v37, 0.0  ;;  %vm19899_vm4 = vnez %v19898_v42  ;;  %v19915_v42 = vld [vmem:[#allocation78_spill] sm:$0xff] }
 0x72a   :  { %v6897_v59 = vadd.f32 %v6896_v13, %v6895_v19  ;;  %v19891_v19 = vld [vmem:[#allocation81_spill] sm:$0xff]  ;;  %v6910_v12 = vsel %vm19900_vm11, %v6822_v33, 0.0  ;;  %vm19917_vm11 = vmmov %vm19836_vm6 }
 0x72b   :  { %v6697_v13 = vsub.f32 %v19891_v19, %v16776_v26  ;;  %v6760_v54 = vmul.f32 %v6696_v7, %v6696_v7  ;;  %v6823_v30 = vsel %vm19899_vm4, %v6759_v20, 0.0  ;;  %v6764_v20 = vmul.f32 %v6700_v44, %v6700_v44  ;;  %v19918_v44 = vld [vmem:[#allocation192_spill] sm:$0xff] }
 0x72c   :  { %v6899_v41 = vadd.f32 %v6898_v17, %v6897_v59  ;;  %v19894_v59 = vld [vmem:[#allocation69_spill] sm:$0xff]  ;;  %v6912_v37 = vsel %vm19903_vm7, %v6823_v30, 0.0  ;;  %vm19916_vm4 = vnez %v19915_v42  ;;  %vm19921_vm7 = vmmov %vm19836_vm6  ;;  %v17047_v42 = vsub.f32 %v16190_v50, %v16776_v26 }
 0x72d   :  { %v6698_v17 = vsub.f32 %v19894_v59, %v16776_v26  ;;  %v6828_v30 = vsel %vm19916_vm4, %v6764_v20, 0.0  ;;  %v6711_v50 = vsub.f32 %v16256_v14, %v16776_v26 }
 0x72e   :  { %v6901_v48 = vadd.f32 %v6900_v9, %v6899_v41  ;;  %v6699_v41 = vsub.f32 %v15926_v18, %v16776_v26  ;;  %v6761_v9 = vmul.f32 %v6697_v13, %v6697_v13  ;;  %v16991_v18 = vsub.f32 %v15973_v60, %v16776_v26  ;;  %v19910_v60 = vld [vmem:[#allocation80_spill] sm:$0xff] }
 0x72f   :  { %v16998_v13 = vsub.f32 %v19907_v56, %v16776_v26  ;;  %v6703_v59 = vsub.f32 %v19910_v60, %v16776_v26  ;;  %v19927_v60 = vld [vmem:[#allocation55_spill] sm:$0xff] }
 0x730   :  { %v6903_v10 = vadd.f32 %v6902_v8, %v6901_v48  ;;  %v6762_v48 = vmul.f32 %v6698_v17, %v6698_v17  ;;  %v19901_v8 = vld [vmem:[#allocation66_spill] sm:$0xff]  ;;  %v6763_v61 = vmul.f32 %v6699_v41, %v6699_v41  ;;  %v6765_v17 = vmul.f32 %v16991_v18, %v16991_v18 }
 0x731   :  { %vm19902_vm1 = vnez %v19901_v8  ;;  %v6767_v8 = vmul.f32 %v6703_v59, %v6703_v59 }
 0x732   :  { %v6905_v39 = vadd.f32 %v6904_v23, %v6903_v10  ;;  %v6824_v63 = vsel %vm19902_vm1, %v6760_v54, 0.0  ;;  %v6825_v10 = vsel %vm19905_vm15, %v6761_v9, 0.0  ;;  %v6826_v49 = vsel %vm19909_vm13, %v6762_v48, 0.0  ;;  %v19911_v54 = vld [vmem:[#allocation135_spill] sm:$0xff] }
 0x733   :  { %v6914_v19 = vsel %vm19906_vm14, %v6824_v63, 0.0  ;;  %vm19912_vm3 = vnez %v19911_v54  ;;  %v6766_v9 = vmul.f32 %v16998_v13, %v16998_v13  ;;  %v17019_v48 = vsub.f32 %v19918_v44, %v16776_v26  ;;  %v19919_v63 = vld [vmem:[#allocation87_spill] sm:$0xff]  ;;  %vm19925_vm14 = vmmov %vm19836_vm6 }
 0x734   :  { %v6907_v21 = vadd.f32 %v6906_v45, %v6905_v39  ;;  %v6916_v45 = vsel %vm19836_vm6, %v6825_v10, 0.0  ;;  %v6827_v15 = vsel %vm19912_vm3, %v6763_v61, 0.0  ;;  %vm19920_vm1 = vnez %v19919_v63 }
 0x735   :  { %v6922_v61 = vsel %vm19921_vm7, %v6828_v30, 0.0  ;;  %v17026_v10 = vsub.f32 %v19922_v29, %v16776_v26  ;;  %vm19928_vm13 = vnez %v19927_v60  ;;  %vm19937_vm7 = vmmov %vm19836_vm6 }
 0x736   :  { %v6909_v31 = vadd.f32 %v6908_v51, %v6907_v21  ;;  %v6918_v21 = vsel %vm19913_vm12, %v6826_v49, 0.0  ;;  %v19914_v51 = vld [vmem:[#allocation191_spill] sm:$0xff]  ;;  %v19926_v49 = vld [vmem:[#allocation94_spill] sm:$0xff]  ;;  %v6831_v59 = vsel %vm19928_vm13, %v6767_v8, 0.0  ;;  %vm19931_vm12 = vmmov %vm19836_vm6  ;;  %v17054_v8 = vsub.f32 %v16215_v47, %v16776_v26 }
 0x737   :  { %v6704_v41 = vsub.f32 %v19914_v51, %v16776_v26 }
 0x738   :  { %v6911_v7 = vadd.f32 %v6910_v12, %v6909_v31  ;;  %v6920_v12 = vsel %vm19917_vm11, %v6827_v15, 0.0  ;;  %v6708_v15 = vsub.f32 %v16161_v34, %v16776_v26  ;;  %vm19934_vm11 = vmmov %vm19836_vm6 }
 0x73a   :  { %v6913_v23 = vadd.f32 %v6912_v37, %v6911_v7  ;;  %v6829_v7 = vsel %vm19920_vm1, %v6765_v17, 0.0  ;;  %v6772_v63 = vmul.f32 %v6708_v15, %v6708_v15 }
 0x73b   :  { %v6924_v2 = vsel %vm19925_vm14, %v6829_v7, 0.0  ;;  %v19935_v7 = vld [vmem:[#allocation195_spill] sm:$0xff]  ;;  %vm19940_vm14 = vmmov %vm19836_vm6 }
 0x73c   :  { %v6915_v39 = vadd.f32 %v6914_v19, %v6913_v23  ;;  %v6768_v23 = vmul.f32 %v6704_v41, %v6704_v41  ;;  %v19923_v19 = vld [vmem:[#allocation44_spill] sm:$0xff]  ;;  %vm19936_vm1 = vnez %v19935_v7 }
 0x73d   :  { %vm19924_vm15 = vnez %v19923_v19  ;;  %v19938_v19 = vld [vmem:[#allocation196_spill] sm:$0xff] }
 0x73e   :  { %v6917_v33 = vadd.f32 %v6916_v45, %v6915_v39  ;;  %v6830_v56 = vsel %vm19924_vm15, %v6766_v9, 0.0  ;;  %v6707_v39 = vsub.f32 %v19926_v49, %v16776_v26  ;;  %v6769_v45 = vmul.f32 %v17019_v48, %v17019_v48 }
 0x73f   :  { %v6926_v54 = vsel %vm19836_vm6, %v6830_v56, 0.0  ;;  %v6928_v9 = vsel %vm19931_vm12, %v6831_v59, 0.0  ;;  %vm19939_vm15 = vnez %v19938_v19  ;;  %v6774_v49 = vmul.f32 %v17054_v8, %v17054_v8  ;;  %vm19945_vm12 = vmmov %vm19836_vm6  ;;  %v19955_v19 = vld [vmem:[#allocation131_spill] sm:$0xff] }
 0x740   :  { %v6919_v31 = vadd.f32 %v6918_v21, %v6917_v33  ;;  %v6770_v33 = vmul.f32 %v17026_v10, %v17026_v10  ;;  %v19929_v21 = vld [vmem:[#allocation190_spill] sm:$0xff]  ;;  %v6771_v30 = vmul.f32 %v6707_v39, %v6707_v39  ;;  %v19941_v39 = vld [vmem:[#allocation124_spill] sm:$0xff]  ;;  %v17075_v59 = vsub.f32 %v16291_v27, %v16776_v26  ;;  %v19950_v27 = vld [vmem:[#allocation9_spill] sm:$0xff] }
 0x741   :  { %vm19930_vm3 = vnez %v19929_v21  ;;  %vm19942_vm13 = vnez %v19941_v39  ;;  %v19946_v21 = vld [vmem:[#allocation101_spill] sm:$0xff] }
 0x742   :  { %v6921_v37 = vadd.f32 %v6920_v12, %v6919_v31  ;;  %v6832_v51 = vsel %vm19930_vm3, %v6768_v23, 0.0  ;;  %v19932_v31 = vld [vmem:[#allocation193_spill] sm:$0xff]  ;;  %v6773_v23 = vmul.f32 %v17047_v42, %v17047_v42  ;;  %v6835_v56 = vsel %vm19939_vm15, %v6771_v30, 0.0 }
 0x743   :  { %vm19933_vm4 = vnez %v19932_v31  ;;  %v6930_v34 = vsel %vm19934_vm11, %v6832_v51, 0.0  ;;  %v6936_v14 = vsel %vm19836_vm6, %v6835_v56, 0.0  ;;  %v17082_v51 = vsub.f32 %v19946_v21, %v16776_v26  ;;  %vm19949_vm11 = vmmov %vm19836_vm6 }
 0x744   :  { %v6923_v20 = vadd.f32 %v6922_v61, %v6921_v37  ;;  %v6833_v12 = vsel %vm19933_vm4, %v6769_v45, 0.0  ;;  %v6834_v37 = vsel %vm19936_vm1, %v6770_v33, 0.0  ;;  %v6836_v45 = vsel %vm19942_vm13, %v6772_v63, 0.0  ;;  %v19951_v63 = vld [vmem:[#allocation205_spill] sm:$0xff] }
 0x745   :  { %v6932_v29 = vsel %vm19937_vm7, %v6833_v12, 0.0  ;;  %v6934_v47 = vsel %vm19940_vm14, %v6834_v37, 0.0  ;;  %vm19952_vm1 = vnez %v19951_v63  ;;  %vm19953_vm7 = vmmov %vm19836_vm6  ;;  %vm19956_vm15 = vnez %v19955_v19  ;;  %v19971_v19 = vld [vmem:[#allocation7_spill] sm:$0xff] }
 0x746   :  { %v6925_v17 = vadd.f32 %v6924_v2, %v6923_v20  ;;  %v6712_v2 = vsub.f32 %v16287_v5, %v16776_v26  ;;  %v6938_v5 = vsel %vm19945_vm12, %v6836_v45, 0.0  ;;  %vm19957_vm14 = vmmov %vm19836_vm6  ;;  %v19959_v45 = vld [vmem:[#allocation204_spill] sm:$0xff]  ;;  %v6720_v63 = vsub.f32 %v16512_v4, %v16776_v26 }
 0x747   :  { %vm19960_vm13 = vnez %v19959_v45  ;;  %vm19964_vm12 = vmmov %vm19836_vm6  ;;  %v6722_v4 = vsub.f32 %v16597_v35, %v16776_v26 }
 0x748   :  { %v6927_v41 = vadd.f32 %v6926_v54, %v6925_v17  ;;  %v6775_v17 = vmul.f32 %v6711_v50, %v6711_v50  ;;  %v19943_v54 = vld [vmem:[#allocation110_spill] sm:$0xff] }
 0x749   :  { %vm19944_vm3 = vnez %v19943_v54  ;;  %v19961_v54 = vld [vmem:[#allocation14_spill] sm:$0xff] }
 0x74a   :  { %v6929_v44 = vadd.f32 %v6928_v9, %v6927_v41  ;;  %v6837_v15 = vsel %vm19944_vm3, %v6773_v23, 0.0  ;;  %v6776_v41 = vmul.f32 %v6712_v2, %v6712_v2  ;;  %v19947_v9 = vld [vmem:[#allocation203_spill] sm:$0xff]  ;;  %v6839_v7 = vsel %vm19952_vm1, %v6775_v17, 0.0  ;;  %v19958_v2 = vld [vmem:[#allocation16_spill] sm:$0xff] }
 0x74b   :  { %vm19948_vm4 = vnez %v19947_v9  ;;  %v6940_v12 = vsel %vm19949_vm11, %v6837_v15, 0.0  ;;  %v6778_v23 = vmul.f32 %v17082_v51, %v17082_v51  ;;  %v6718_v15 = vsub.f32 %v19961_v54, %v16776_v26  ;;  %vm19967_vm11 = vmmov %vm19836_vm6 }
 0x74c   :  { %v6931_v61 = vadd.f32 %v6930_v34, %v6929_v44  ;;  %v6838_v30 = vsel %vm19948_vm4, %v6774_v49, 0.0  ;;  %v6715_v44 = vsub.f32 %v19950_v27, %v16776_v26  ;;  %v6777_v34 = vmul.f32 %v17075_v59, %v17075_v59 }
 0x74d   :  { %v6840_v56 = vsel %vm19956_vm15, %v6776_v41, 0.0  ;;  %v6717_v49 = vsub.f32 %v19958_v2, %v16776_v26  ;;  %vm19972_vm15 = vnez %v19971_v19  ;;  %v6784_v2 = vmul.f32 %v6720_v63, %v6720_v63  ;;  %v19990_v19 = vld [vmem:[#allocation24_spill] sm:$0xff] }
 0x74e   :  { %v6933_v20 = vadd.f32 %v6932_v29, %v6931_v61  ;;  %v6942_v61 = vsel %vm19953_vm7, %v6838_v30, 0.0  ;;  %v19954_v29 = vld [vmem:[#allocation15_spill] sm:$0xff]  ;;  %v6779_v39 = vmul.f32 %v6715_v44, %v6715_v44  ;;  %v6946_v17 = vsel %vm19836_vm6, %v6840_v56, 0.0  ;;  %vm19970_vm7 = vmmov %vm19836_vm6 }
 0x74f   :  { %v6716_v50 = vsub.f32 %v19954_v29, %v16776_v26  ;;  %v6719_v30 = vsub.f32 %v16471_v55, %v16776_v26  ;;  %v6721_v55 = vsub.f32 %v16549_v22, %v16776_v26  ;;  %v6723_v22 = vsub.f32 %v16568_v62, %v16776_v26 }
 0x750   :  { %v6935_v60 = vadd.f32 %v6934_v47, %v6933_v20  ;;  %v6944_v47 = vsel %vm19957_vm14, %v6839_v7, 0.0  ;;  %v6782_v7 = vmul.f32 %v6718_v15, %v6718_v15  ;;  %vm19973_vm14 = vmmov %vm19836_vm6  ;;  %v6788_v26 = vmul.f32 %v16780_v46, %v16780_v46 }
 0x752   :  { %v6937_v33 = vadd.f32 %v6936_v14, %v6935_v60  ;;  %v6841_v60 = vsel %vm19960_vm13, %v6777_v34, 0.0 }
 0x753   :  { %v6948_v9 = vsel %vm19964_vm12, %v6841_v60, 0.0  ;;  %vm19978_vm12 = vmmov %vm19836_vm6 }
 0x754   :  { %v6939_v31 = vadd.f32 %v6938_v5, %v6937_v33  ;;  %v6780_v33 = vmul.f32 %v6716_v50, %v6716_v50  ;;  %v19962_v5 = vld [vmem:[#allocation134_spill] sm:$0xff] }
 0x755   :  { %vm19963_vm3 = vnez %v19962_v5  ;;  %v6786_v5 = vmul.f32 %v6722_v4, %v6722_v4  ;;  %v19993_v4 = vld [vmem:[#allocation13_spill] sm:$0xff] }
 0x756   :  { %v6941_v37 = vadd.f32 %v6940_v12, %v6939_v31  ;;  %v6842_v21 = vsel %vm19963_vm3, %v6778_v23, 0.0  ;;  %v6781_v31 = vmul.f32 %v6717_v49, %v6717_v49  ;;  %v19965_v12 = vld [vmem:[#allocation6_spill] sm:$0xff]  ;;  %v6783_v23 = vmul.f32 %v6719_v30, %v6719_v30  ;;  %v19974_v49 = vld [vmem:[#allocation8_spill] sm:$0xff] }
 0x757   :  { %vm19966_vm4 = vnez %v19965_v12  ;;  %v6950_v34 = vsel %vm19967_vm11, %v6842_v21, 0.0  ;;  %vm19975_vm13 = vnez %v19974_v49  ;;  %v19979_v21 = vld [vmem:[#allocation20_spill] sm:$0xff]  ;;  %vm19981_vm11 = vmmov %vm19836_vm6  ;;  %v6787_v30 = vmul.f32 %v6723_v22, %v6723_v22 }
 0x758   :  { %v6943_v20 = vadd.f32 %v6942_v61, %v6941_v37  ;;  %v6843_v27 = vsel %vm19966_vm4, %v6779_v39, 0.0  ;;  %v19968_v37 = vld [vmem:[#allocation10_spill] sm:$0xff]  ;;  %v6845_v56 = vsel %vm19972_vm15, %v6781_v31, 0.0  ;;  %v6846_v39 = vsel %vm19975_vm13, %v6782_v7, 0.0  ;;  %vm19986_vm15 = vmmov %vm19836_vm6 }
 0x759   :  { %vm19969_vm1 = vnez %v19968_v37  ;;  %v6952_v50 = vsel %vm19970_vm7, %v6843_v27, 0.0  ;;  %v6956_v60 = vsel %vm19836_vm6, %v6845_v56, 0.0  ;;  %vm19980_vm4 = vnez %v19979_v21  ;;  %v19982_v31 = vld [vmem:[#allocation18_spill] sm:$0xff]  ;;  %vm19984_vm7 = vmmov %vm19836_vm6 }
 0x75a   :  { %v6945_v14 = vadd.f32 %v6944_v47, %v6943_v20  ;;  %v6844_v61 = vsel %vm19969_vm1, %v6780_v33, 0.0  ;;  %v6958_v33 = vsel %vm19978_vm12, %v6846_v39, 0.0  ;;  %v6848_v35 = vsel %vm19980_vm4, %v6784_v2, 0.0  ;;  %vm19989_vm13 = vmmov %vm19836_vm6 }
 0x75b   :  { %v6954_v47 = vsel %vm19973_vm14, %v6844_v61, 0.0  ;;  %vm19983_vm1 = vnez %v19982_v31  ;;  %v6962_v62 = vsel %vm19984_vm7, %v6848_v35, 0.0  ;;  %v6789_v37 = vmul.f32 %v16784_v3, %v16784_v3  ;;  %v19987_v61 = vld [vmem:[#allocation23_spill] sm:$0xff]  ;;  %vm19995_vm12 = vmmov %vm19984_vm7 }
 0x75c   :  { %v6947_v41 = vadd.f32 %v6946_v17, %v6945_v14  ;;  %v6785_v14 = vmul.f32 %v6721_v55, %v6721_v55  ;;  %v19976_v17 = vld [vmem:[#allocation11_spill] sm:$0xff]  ;;  %vm19988_vm14 = vnez %v19987_v61  ;;  %vm19991_vm6 = vnez %v19990_v19 }
 0x75d   :  { %vm19977_vm3 = vnez %v19976_v17  ;;  %v6852_v46 = vsel %vm19991_vm6, %v6788_v26, 0.0  ;;  %v6792_v39 = vmul.f32 %v16796_v32, %v16796_v32  ;;  %v6795_v35 = vmul.f32 %v16805_v52, %v16805_v52 }
 0x75e   :  { %v6949_v44 = vadd.f32 %v6948_v9, %v6947_v41  ;;  %v6847_v54 = vsel %vm19977_vm3, %v6783_v23, 0.0  ;;  %v6849_v12 = vsel %vm19983_vm1, %v6785_v14, 0.0  ;;  %v6790_v23 = vmul.f32 %v16788_v58, %v16788_v58  ;;  %vm19999_vm1 = vmmov %vm19984_vm7 }
 0x75f   :  { %v6960_v9 = vsel %vm19981_vm11, %v6847_v54, 0.0  ;;  %v6964_v7 = vsel %vm19986_vm15, %v6849_v12, 0.0  ;;  %vm19994_vm3 = vnez %v19993_v4  ;;  %v6970_v49 = vsel %vm19995_vm12, %v6852_v46, 0.0  ;;  %vm19998_vm11 = vmmov %vm19984_vm7 }
 0x760   :  { %v6951_v29 = vadd.f32 %v6950_v34, %v6949_v44  ;;  %v6850_v34 = vsel %vm16588_vm9, %v6786_v5, 0.0  ;;  %vm19992_vm9 = vmmov %vm19984_vm7  ;;  %v6853_v3 = vsel %vm19994_vm3, %v6789_v37, 0.0  ;;  %v6793_v14 = vmul.f32 %v16799_v43, %v16799_v43 }
 0x761   :  { %v6966_v55 = vsel %vm19989_vm13, %v6850_v34, 0.0  ;;  %v6972_v22 = vsel %vm19998_vm11, %v6853_v3, 0.0  ;;  %vm20002_vm15 = vmmov %vm19999_vm1  ;;  %v6859_v26 = vsel %vm16759_vm10, %v6795_v35, 0.0  ;;  %v20011_v3 = vld [vmem:[#allocation5_spill] sm:$0xff] }
 0x762   :  { %v6953_v20 = vadd.f32 %v6952_v50, %v6951_v29  ;;  %v6851_v29 = vsel %vm19988_vm14, %v6787_v30, 0.0  ;;  %v6857_v43 = vsel %vm16723_vm8, %v6793_v14, 0.0  ;;  %v6796_v30 = vmul.f32 %v16808_v38, %v16808_v38 }
 0x764   :  { %v6955_v45 = vadd.f32 %v6954_v47, %v6953_v20  ;;  %v6968_v20 = vsel %vm19992_vm9, %v6851_v29, 0.0  ;;  %v6791_v47 = vmul.f32 %v16792_v0, %v16792_v0  ;;  %v6860_v34 = vsel %vm16769_vm5, %v6796_v30, 0.0 }
 0x766   :  { %v6957_v15 = vadd.f32 %v6956_v60, %v6955_v45  ;;  %v19996_v45 = vld [vmem:[#allocation17_spill] sm:$0xff]  ;;  %v6855_v0 = vsel %vm16693_vm0, %v6791_v47, 0.0  ;;  %vm20004_vm0 = vmmov %vm19999_vm1 }
 0x767   :  { %vm19997_vm4 = vnez %v19996_v45  ;;  %v6976_v21 = vsel %vm20002_vm15, %v6855_v0, 0.0  ;;  %vm20006_vm14 = vmmov %vm20004_vm0  ;;  %vm7112_vm15 = vcmask 1042432  }
 0x768   :  { %v6959_v41 = vadd.f32 %v6958_v33, %v6957_v15  ;;  %v6854_v58 = vsel %vm19997_vm4, %v6790_v23, 0.0  ;;  %v6794_v15 = vmul.f32 %v16802_v40, %v16802_v40  ;;  %v20000_v33 = vld [vmem:[#allocation26_spill] sm:$0xff]  ;;  %vm20008_vm13 = vmmov %vm20004_vm0 }
 0x769   :  { %v6974_v54 = vsel %vm19999_vm1, %v6854_v58, 0.0  ;;  %vm20001_vm7 = vnez %v20000_v33  ;;  %vm20009_vm8 = vmmov %vm20004_vm0  ;;  %vm7108_vm1 = vcmask 1040384  }
 0x76a   :  { %v6961_v27 = vadd.f32 %v6960_v9, %v6959_v41  ;;  %v6856_v32 = vsel %vm20001_vm7, %v6792_v39, 0.0  ;;  %v6858_v40 = vsel %vm16740_vm2, %v6794_v15, 0.0  ;;  %vm20010_vm6 = vmmov %vm20004_vm0  ;;  %vm20013_vm2 = vcmp.lt.s32.totalorder %v20011_v3, 6 }
 0x76b   :  { %v6978_v9 = vsel %vm20004_vm0, %v6856_v32, 0.0  ;;  %v6982_v52 = vsel %vm20008_vm13, %v6858_v40, 0.0  ;;  %v6986_v38 = vsel %vm20010_vm6, %v6860_v34, 0.0  ;;  %vm20014_vm10 = vmmov %vm20013_vm2  ;;  %vm7110_vm7 = vcmask 1041408  }
 0x76c   :  { %v6963_v63 = vadd.f32 %v6962_v62, %v6961_v27  ;;  %v6980_v27 = vsel %vm20006_vm14, %v6857_v43, 0.0  ;;  %vm20015_vm5 = vmmov %vm20013_vm2  ;;  %vm7114_vm0 = vcmask 1043456   ;;  %vm7116_vm14 = vcmask 1044480  }
 0x76d   :  { %vm20016_vm9 = vmmov %vm20013_vm2  ;;  %vm7118_vm13 = vcmask 1045504  }
 0x76e   :  { %v6965_v50 = vadd.f32 %v6964_v7, %v6963_v63  ;;  %v6984_v7 = vsel %vm20009_vm8, %v6859_v26, 0.0  ;;  %vm20017_vm3 = vmmov %vm20013_vm2  ;;  %vm7120_vm8 = vcmask 1046528  }
 0x76f   :  { %vm20018_vm12 = vmmov %vm20013_vm2 }
 0x770   :  { %v6967_v56 = vadd.f32 %v6966_v55, %v6965_v50  ;;  %vm20019_vm4 = vmmov %vm20013_vm2 }
 0x771   :  { %vm20020_vm11 = vmmov %vm20013_vm2 }
 0x772   :  { %v6969_v2 = vadd.f32 %v6968_v20, %v6967_v56 }
 0x774   :  { %v6971_v60 = vadd.f32 %v6970_v49, %v6969_v2  ;;  %v20012_v2 = vsub.s32 0, %v20011_v3 }
 0x776   :  { %v6973_v17 = vadd.f32 %v6972_v22, %v6971_v60  ;;  %v7224_v22 = vld [vmem:[%s17241_s3 + $0x5] ss:$0 sm:$0xff]  ;;  %s8809_s3 = smov [#allocation2]  }
 0x777   :  { %s7129_s0 = sshll.u32 %s8809_s3, 4  ;;  %s7130_s0 = int_to_ptr.vmem [resolvable:$true] %s7129_s0 }
 0x778   :  { %v6975_v5 = vadd.f32 %v6974_v54, %v6973_v17  ;;  %s8779_s21 = scalar_lea.vmem %s7130_s0, 128  ;;  %p8784_p1 = scmp.lt.s32.totalorder %s7130_s0, %s7130_s0 }
 0x779   :  { %p8780_p0 = scmp.ne.s32.totalorder %s7130_s0, %s8779_s21  ;;  %p8785_p2 = scmp.lt.s32.totalorder %s8779_s21, %s8779_s21 }
 0x77a   :  { %v6977_v16 = vadd.f32 %v6976_v21, %v6975_v5 }
 0x77b   :  { %p8786_p3 = por %p8785_p2, %p8784_p1 }
 0x77c   :  { %v6979_v12 = vadd.f32 %v6978_v9, %v6977_v16 }
 0x77d   :  { %p8787_p4 = pnand %p8786_p3, %p8780_p0 }
 0x77e   :  { %v6981_v44 = vadd.f32 %v6980_v27, %v6979_v12 }
 0x780   :  { %v6983_v63 = vadd.f32 %v6982_v52, %v6981_v44 }
 0x782   :  { %v6985_v37 = vadd.f32 %v6984_v7, %v6983_v63 }
 0x784   :  { %v6987_v61 = vadd.f32 %v6986_v38, %v6985_v37 }
 0x786   :  { %v6988_v29 = vrot.slane %v6987_v61, 4 }
 0x788   :  { %v6989_v50 = vadd.f32 %v6988_v29, %v6987_v61 }
 0x78a   :  { %v6990_v55 = vrot.slane %v6989_v50, 2 }
 0x78c   :  { %v6991_v23 = vadd.f32 %v6990_v55, %v6989_v50 }
 0x78e   :  { %v6992_v19 = vrot.slane %v6991_v23, 1 }
 0x790   :  { %v6993_v46 = vadd.f32 %v6992_v19, %v6991_v23 }
 0x792   :  { %v6994_v56 = vmul.f32 0.02, %v6993_v46 }
 0x794   :  { %v6995_v20 = vadd.f32 1e-05, %v6994_v56 }
 0x796   :  { %8772 = vrsqrt.f32 %v6995_v20 }
 0x7a3   :  { %v8773_v47 = vpop.eup %8772 }
 0x7a4   :  { %v6997_v4 = vmul.f32 %v8773_v47, %v1048_v6 }
 0x7a6   :  { %v7001_v49 = vrot.slane %v6997_v4, %v20012_v2 }
 0x7a8   :  { %v7002_v39 = vmul.f32 %v7001_v49, %v16812_v25  ;;  %v7003_v45 = vmul.f32 %v7001_v49, %v16816_v36  ;;  %v7004_v58 = vmul.f32 %v7001_v49, %v16828_v24  ;;  %v7005_v60 = vmul.f32 %v7001_v49, %v16832_v1 }
 0x7a9   :  { %v7006_v14 = vmul.f32 %v7001_v49, %v16855_v11  ;;  %v7007_v0 = vmul.f32 %v7001_v49, %v16862_v57  ;;  %v7008_v17 = vmul.f32 %v7001_v49, %v16883_v28  ;;  %v7009_v54 = vmul.f32 %v7001_v49, %v16890_v53 }
 0x7aa   :  { %v7010_v25 = vmul.f32 %v7001_v49, %v16991_v18  ;;  %v7011_v36 = vmul.f32 %v7001_v49, %v16998_v13  ;;  %v7012_v24 = vmul.f32 %v7001_v49, %v17019_v48  ;;  %v7013_v1 = vmul.f32 %v7001_v49, %v17026_v10 }
 0x7ab   :  { %v7014_v15 = vmul.f32 %v7001_v49, %v17047_v42  ;;  %v7015_v33 = vmul.f32 %v7001_v49, %v17054_v8  ;;  %v7016_v11 = vmul.f32 %v7001_v49, %v17075_v59  ;;  %v7017_v57 = vmul.f32 %v7001_v49, %v17082_v51 }
 0x7ac   :  { %v7022_v32 = vadd.f32 %v7224_v22, %v7002_v39  ;;  %v7023_v28 = vadd.f32 %v7224_v22, %v7003_v45  ;;  %v7024_v5 = vadd.f32 %v7224_v22, %v7004_v58  ;;  %v7025_v53 = vadd.f32 %v7224_v22, %v7005_v60 }
 0x7ad   :  { %v7026_v21 = vadd.f32 %v7224_v22, %v7006_v14  ;;  %v7027_v18 = vadd.f32 %v7224_v22, %v7007_v0  ;;  %v7028_v35 = vadd.f32 %v7224_v22, %v7008_v17  ;;  %v7029_v13 = vadd.f32 %v7224_v22, %v7009_v54 }
 0x7ae   :  { %v7030_v41 = vadd.f32 %v7224_v22, %v7010_v25  ;;  %v7031_v48 = vadd.f32 %v7224_v22, %v7011_v36  ;;  %v7032_v43 = vadd.f32 %v7224_v22, %v7012_v24  ;;  %v7033_v10 = vadd.f32 %v7224_v22, %v7013_v1 }
 0x7af   :  { %v7034_v16 = vadd.f32 %v7224_v22, %v7014_v15  ;;  %v7035_v42 = vadd.f32 %v7224_v22, %v7015_v33  ;;  %v7036_v9 = vadd.f32 %v7224_v22, %v7016_v11  ;;  %v7037_v8 = vadd.f32 %v7224_v22, %v7017_v57 }
 0x7b0   :  { %v7038_v30 = vmax.f32 %v7022_v32, 0.0  ;;  %v7039_v59 = vmax.f32 %v7023_v28, 0.0  ;;  %v7040_v31 = vmax.f32 %v7024_v5, 0.0  ;;  %v7041_v51 = vmax.f32 %v7025_v53, 0.0 }
 0x7b1   :  { %v7042_v40 = vmax.f32 %v7026_v21, 0.0  ;;  %v7043_v12 = vmax.f32 %v7027_v18, 0.0  ;;  %v7044_v27 = vmax.f32 %v7028_v35, 0.0  ;;  %v7045_v62 = vmax.f32 %v7029_v13, 0.0 }
 0x7b2   :  { %v7046_v26 = vmax.f32 %v7030_v41, 0.0  ;;  %v7047_v44 = vmax.f32 %v7031_v48, 0.0  ;;  %v7048_v52 = vmax.f32 %v7032_v43, 0.0  ;;  %v7049_v34 = vmax.f32 %v7033_v10, 0.0 }
 0x7b3   :  { %v7050_v63 = vmax.f32 %v7034_v16, 0.0  ;;  %v7051_v7 = vmax.f32 %v7035_v42, 0.0  ;;  %v7052_v37 = vmax.f32 %v7036_v9, 0.0  ;;  %v7053_v38 = vmax.f32 %v7037_v8, 0.0 }
 0x7b4   :  { %v7054_v61 = vrot.slane %v7038_v30, 2  ;;  %v7055_v29 = vrot.slane %v7039_v59, 2  ;;  %v7056_v50 = vrot.slane %v7040_v31, 2  ;;  %v7057_v55 = vrot.slane %v7041_v51, 2 }
 0x7b5   :  { %v7058_v23 = vrot.slane %v7042_v40, 2  ;;  %v7059_v19 = vrot.slane %v7043_v12, 2  ;;  %v7060_v46 = vrot.slane %v7044_v27, 2  ;;  %v7061_v56 = vrot.slane %v7045_v62, 2 }
 0x7b6   :  { %v7062_v20 = vrot.slane %v7046_v26, 2  ;;  %v7063_v6 = vrot.slane %v7047_v44, 2  ;;  %v7064_v47 = vrot.slane %v7048_v52, 2  ;;  %v7065_v4 = vrot.slane %v7049_v34, 2 }
 0x7b7   :  { %v7066_v2 = vrot.slane %v7050_v63, 2  ;;  %v7067_v49 = vrot.slane %v7051_v7, 2  ;;  %v7068_v39 = vrot.slane %v7052_v37, 2  ;;  %v7069_v45 = vrot.slane %v7053_v38, 2 }
 0x7b8   :  { %v7072_v58 = vsel %vm20013_vm2, %v7064_v47, %v7065_v4  ;;  %v7073_v60 = vsel %vm20014_vm10, %v7062_v20, %v7063_v6  ;;  %v7074_v22 = vsel %vm20015_vm5, %v7060_v46, %v7061_v56  ;;  %v7075_v14 = vsel %vm20016_vm9, %v7058_v23, %v7059_v19 }
 0x7b9   :  { %v7070_v0 = vsel %vm20017_vm3, %v7068_v39, %v7069_v45  ;;  %v7071_v17 = vsel %vm20018_vm12, %v7066_v2, %v7067_v49  ;;  %v7076_v54 = vsel %vm20019_vm4, %v7056_v50, %v7057_v55  ;;  %v7077_v25 = vsel %vm20020_vm11, %v7054_v61, %v7055_v29 }
 0x7ba   :  { %v7078_v36 = vmax.f32 %v7038_v30, %v7077_v25  ;;  %v7079_v24 = vmax.f32 %v7040_v31, %v7076_v54  ;;  %v7080_v1 = vmax.f32 %v7042_v40, %v7075_v14  ;;  %v7081_v15 = vmax.f32 %v7044_v27, %v7074_v22 }
 0x7bb   :  { %v7082_v33 = vmax.f32 %v7046_v26, %v7073_v60  ;;  %v7083_v11 = vmax.f32 %v7048_v52, %v7072_v58  ;;  %v7084_v57 = vmax.f32 %v7050_v63, %v7071_v17  ;;  %v7085_v32 = vmax.f32 %v7052_v37, %v7070_v0 }
 0x7bc   :  { %v7086_v28 = vmax.f32 %v7078_v36, %v7079_v24  ;;  %v7087_v5 = vmax.f32 %v7080_v1, %v7081_v15 }
 0x7bd   :  { %v7088_v53 = vmax.f32 %v7082_v33, %v7083_v11  ;;  %v7089_v35 = vmax.f32 %v7084_v57, %v7085_v32 }
 0x7be   :  { %v7091_v21 = vrot.slane %v7086_v28, 3  ;;  %v7094_v18 = vrot.slane %v7087_v5, 6  ;;  %v7096_v13 = vrot.slane %v7087_v5, 1 }
 0x7bf   :  { %v7099_v41 = vrot.slane %v7088_v53, 4  ;;  %v7101_v43 = vrot.slane %v7088_v53, 7  ;;  %v7104_v16 = vrot.slane %v7089_v35, 2  ;;  %v7106_v9 = vrot.slane %v7089_v35, 5 }
 0x7c0   :  { %v7109_v3 = vsel %vm7108_vm1, %v7086_v28, %v7091_v21 }
 0x7c1   :  { %v7111_v48 = vsel %vm7110_vm7, %v7109_v3, %v7094_v18 }
 0x7c2   :  { %v7113_v10 = vsel %vm7112_vm15, %v7111_v48, %v7096_v13 }
 0x7c3   :  { %v7115_v42 = vsel %vm7114_vm0, %v7113_v10, %v7099_v41 }
 0x7c4   :  { %v7117_v8 = vsel %vm7116_vm14, %v7115_v42, %v7101_v43 }
 0x7c5   :  { %v7119_v30 = vsel %vm7118_vm13, %v7117_v8, %v7104_v16 }
 0x7c6   :  { %v7121_v59 = vsel %vm7120_vm8, %v7119_v30, %v7106_v9 }
 0x7c7   :  { %7122 = vst.msk [vmem:[#allocation2] sm:$0xff] %vm20010_vm6, %v7121_v59 }
 0x7c8   :  { %8790 = shalt.err (!%p8787_p4)
}
 0x7c9   :  { %7132 = dma.vmem_to_hbm [thread:$0]  %s7130_s0, 128, %s17242_s4, [#allocation3]  }
 0x7ca   :  { %8799 = dma.done.wait [#allocation3], 128  }
 0x7cb   :  { %8800 = vsyncadd [#allocation3], 4294967168 }
 0x7cc   :  { %7136 = vsyncpa [#allocation3], 1 }

</bundles_post_ra>
